<compile_context>
chip_gen: v7x
topology: tpu7x:2x2x1
jax: 0.10.0
libtpu: 0.0.40
codegen_flags: <defaults>
</compile_context>

<pallas_src>
import functools

import jax
import jax.numpy as jnp
import numpy as np
from jax import lax
from jax.experimental import pallas as pl
from jax.experimental.pallas import tpu as pltpu

NC = 3
NDF = 64


def _vmem_limit_bytes():
    # <= 48 MiB is valid on every generation (v7x has 64 MiB physical VMEM).
    cap = 48 * 1024 * 1024
    try:
        cap = min(cap, int(pltpu.get_tpu_info().vmem_capacity_bytes) * 3 // 4)
    except Exception:
        pass
    return cap


def _largest_divisor(n, limit):
    limit = max(1, min(n, limit))
    for d in range(limit, 0, -1):
        if n % d == 0:
            return d
    return 1


# ----------------------------------------------------------------------------
# Pallas kernel 1 (primary path): implicit-GEMM 4x4 / stride-2 / pad-1 conv.
# The padded input is pre-transformed (in XLA) to a space-to-depth view
#   X2[n, r, s, (sy, sx, c)] = Xpad[n, 2r+sy, 2s+sx, c]       (N, OH+1, OW+1, 4C)
# so the 16-tap stride-2 conv becomes a 4-tap stride-1 conv whose taps are
# gathered with in-kernel unit-offset slices (no im2col buffer in HBM).
# Grid = (OC tiles, image tiles), both "parallel"; the weight block's index
# only depends on the OC tile, so it stays VMEM-resident across image steps.
# ----------------------------------------------------------------------------
def _conv4x4s2_kernel(x_ref, w_ref, o_ref, acc_ref, *, slope):
    # x_ref  : (nb, OH+1, OW+1, 4C) bf16
    # w_ref  : (4, 4C, toc)         bf16, taps ordered (dy, dx)
    # o_ref  : (nb, OH*OW, toc)     bf16
    # acc_ref: (nb*OH*OW, toc)      f32 VMEM accumulator
    nb, ohp1, owp1, c4 = x_ref.shape
    oh, ow = ohp1 - 1, owp1 - 1
    toc = o_ref.shape[-1]

    x = x_ref[...]
    for t in range(4):
        dy, dx = divmod(t, 2)
        a = x[:, dy:dy + oh, dx:dx + ow, :].reshape(nb * oh * ow, c4)
        p = jnp.dot(a, w_ref[t], preferred_element_type=jnp.float32)
        if t == 0:
            acc_ref[...] = p
        else:
            acc_ref[...] += p

    y = acc_ref[...]
    y = jnp.where(y >= 0, y, slope * y)
    o_ref[...] = y.reshape(nb, oh * ow, toc).astype(o_ref.dtype)


def conv_lrelu_fused(x, w_s2d, *, slope=0.2):
    """Conv2d(k=4, s=2, p=1, bias=False) + LeakyReLU, fused implicit GEMM.

    x:     (N, H, W, C) bf16 NHWC
    w_s2d: (4, 4C, OC)  bf16, taps (dy, dx), features (sy, sx, c)
    ->     (N, H/2, W/2, OC) bf16
    """
    n, h, w, c = x.shape
    assert h % 2 == 0 and w % 2 == 0
    oh, ow = h // 2, w // 2
    c4 = 4 * c
    oc = w_s2d.shape[-1]

    # Pad + space-to-depth in XLA: one ~input-sized HBM buffer, replacing the
    # 4x im2col patch matrix of the fallback path.
    xp = jnp.pad(x, ((0, 0), (1, 1), (1, 1), (0, 0)))
    x2 = xp.reshape(n, oh + 1, 2, ow + 1, 2, c).transpose(0, 1, 3, 2, 4, 5)
    x2 = x2.reshape(n, oh + 1, ow + 1, c4)

    # Images per grid step: bound the GEMM row block and the x2 block bytes.
    rows_cap = 8192 if c4 <= 64 else 2048        # bigger rows for skinny layer 1
    nb_cap = max(1, rows_cap // (oh * ow))
    nb_cap = min(nb_cap, max(1, (4 << 20) // ((oh + 1) * (ow + 1) * c4 * 2)))
    nb = _largest_divisor(n, nb_cap)
    rows = nb * oh * ow

    # OC tiles: weight stays VMEM-resident per tile; guarantee >=2 parallel
    # blocks on the deep layers so v7x's second TensorCore is not idle.
    if oc > 256 and oc % 256 == 0:
        toc = 256
    elif oc >= 256 and n // nb == 1 and oc % 128 == 0:
        toc = 128
    else:
        toc = oc

    kernel = functools.partial(_conv4x4s2_kernel, slope=slope)
    cost = pl.CostEstimate(
        flops=2 * n * oh * ow * (16 * c) * oc,
        transcendentals=0,
        bytes_accessed=x2.size * 2 + w_s2d.size * 2 + n * oh * ow * oc * 2,
    )
    y = pl.pallas_call(
        kernel,
        out_shape=jax.ShapeDtypeStruct((n, oh * ow, oc), jnp.bfloat16),
        grid=(oc // toc, n // nb),
        in_specs=[
            pl.BlockSpec((nb, oh + 1, ow + 1, c4), lambda j, b: (b, 0, 0, 0)),
            pl.BlockSpec((4, c4, toc), lambda j, b: (0, 0, j)),  # resident over b
        ],
        out_specs=pl.BlockSpec((nb, oh * ow, toc), lambda j, b: (b, 0, j)),
        scratch_shapes=[pltpu.VMEM((rows, toc), jnp.float32)],
        compiler_params=pltpu.CompilerParams(
            dimension_semantics=("parallel", "parallel"),
            vmem_limit_bytes=_vmem_limit_bytes(),
        ),
        cost_estimate=cost,
    )(x2, w_s2d)
    return y.reshape(n, oh, ow, oc)


# ----------------------------------------------------------------------------
# Pallas kernel 2 (fallback path): fused act(A @ B), full-K matmul.
#   A: (M, K) bf16 im2col patches, B: (K, OC) bf16 pre-flattened weights.
# Grid = (OC tiles, M tiles), both "parallel"; the weight block's index only
# depends on the OC tile, so it is NOT re-DMA'd across M steps.
# ----------------------------------------------------------------------------
def _mm_act_kernel(a_ref, b_ref, o_ref, *, act, slope):
    x = jnp.dot(a_ref[...], b_ref[...], preferred_element_type=jnp.float32)
    if act == "leaky_relu":
        x = jnp.where(x >= 0, x, slope * x)
    elif act == "sigmoid":
        x = jax.nn.sigmoid(x)
    o_ref[...] = x.astype(o_ref.dtype)


def matmul_act(a, b, act="none", *, slope=0.2, out_dtype=jnp.bfloat16):
    """act(a @ b): a (M, K) bf16, b (K, OC) bf16 -> (M, OC), f32 accumulation."""
    M, K = a.shape
    K2, OC = b.shape
    assert K == K2

    if OC > 256 and OC % 256 == 0:
        toc = 256
    else:
        toc = OC

    # M tile: biggest divisor; up to 1024 for skinny problems (layer 1: K=48).
    cands = (1024, 512, 256, 128, 64, 32, 16, 8) if (K <= 128 and toc <= 128) \
        else (256, 128, 64, 32, 16, 8)
    tm = next((t for t in cands if M % t == 0), M)

    # Guarantee >= 2 parallel blocks for v7x's second TensorCore when possible.
    if OC >= 256 and toc == OC and M // tm == 1 and OC % 128 == 0:
        toc = 128

    cost = pl.CostEstimate(
        flops=2 * M * K * OC,
        transcendentals=M * OC if act == "sigmoid" else 0,
        bytes_accessed=(M * K + K * OC) * 2 + M * OC * jnp.dtype(out_dtype).itemsize,
    )
    kernel = functools.partial(_mm_act_kernel, act=act, slope=slope)
    return pl.pallas_call(
        kernel,
        out_shape=jax.ShapeDtypeStruct((M, OC), out_dtype),
        grid=(OC // toc, M // tm),
        in_specs=[
            pl.BlockSpec((tm, K), lambda j, i: (i, 0)),
            pl.BlockSpec((K, toc), lambda j, i: (0, j)),   # resident across i
        ],
        out_specs=pl.BlockSpec((tm, toc), lambda j, i: (i, j)),
        compiler_params=pltpu.CompilerParams(
            dimension_semantics=("parallel", "parallel"),
            vmem_limit_bytes=_vmem_limit_bytes(),
        ),
        cost_estimate=cost,
    )(a, b)


def _im2col_nhwc(x, kh, kw, stride, pad):
    """x: (N, H, W, C) -> patches (N*OH*OW, KH*KW*C), feature order (kh, kw, c)."""
    n, h, w, c = x.shape
    if pad:
        x = jnp.pad(x, ((0, 0), (pad, pad), (pad, pad), (0, 0)))
    hp, wp = h + 2 * pad, w + 2 * pad
    oh = (hp - kh) // stride + 1
    ow = (wp - kw) // stride + 1
    cols = []
    for i in range(kh):
        for j in range(kw):
            cols.append(x[:, i:i + stride * (oh - 1) + 1:stride,
                             j:j + stride * (ow - 1) + 1:stride, :])
    patches = jnp.concatenate(cols, axis=-1)            # (N, OH, OW, KH*KW*C)
    return patches.reshape(n * oh * ow, kh * kw * c), oh, ow


def conv_lrelu_gemm(x, w_flat, *, slope=0.2):
    """Fallback Conv2d(k=4, s=2, p=1) + LeakyReLU via im2col + GEMM kernel."""
    n = x.shape[0]
    oc = w_flat.shape[1]
    patches, oh, ow = _im2col_nhwc(x, 4, 4, 2, 1)
    y = matmul_act(patches, w_flat, "leaky_relu", slope=slope)
    return y.reshape(n, oh, ow, oc)


# ----------------------------------------------------------------------------
# Pallas kernel 3: final 4x4 valid conv with a single output channel.
#   y[n] = sigmoid(sum_k x[n, k] * w[k]);  tiled over N ("parallel").
# VPU multiply + XLU lane reduction; avoids padding OC=1 to 128 MXU lanes.
# ----------------------------------------------------------------------------
def _final_kernel(x_ref, w_ref, o_ref):
    prod = x_ref[...].astype(jnp.float32) * w_ref[...].astype(jnp.float32)
    o_ref[...] = jax.nn.sigmoid(jnp.sum(prod, axis=-1, keepdims=True))


def final_conv_sigmoid(x_flat, w_row):
    """x_flat: (N, K) bf16, w_row: (1, K) bf16 -> (N, 1) f32."""
    n, k = x_flat.shape
    tn = next((t for t in (256, 128, 64, 32, 16, 8) if n % t == 0), n)
    cost = pl.CostEstimate(flops=2 * n * k, transcendentals=n,
                           bytes_accessed=n * k * 2 + k * 2 + n * 4)
    return pl.pallas_call(
        _final_kernel,
        out_shape=jax.ShapeDtypeStruct((n, 1), jnp.float32),
        grid=(n // tn,),
        in_specs=[
            pl.BlockSpec((tn, k), lambda i: (i, 0)),
            pl.BlockSpec((1, k), lambda i: (0, 0)),        # resident weight row
        ],
        out_specs=pl.BlockSpec((tn, 1), lambda i: (i, 0)),
        compiler_params=pltpu.CompilerParams(
            dimension_semantics=("parallel",),
            vmem_limit_bytes=_vmem_limit_bytes(),
        ),
        cost_estimate=cost,
    )(x_flat, w_row)


# ----------------------------------------------------------------------------
# One-time compile probe: does the fused conv kernel lower for this geometry?
# (The in-kernel window slices / row-merging reshapes are the Mosaic-version
#  dependent part; fall back per layer to the im2col+GEMM path otherwise.)
# ----------------------------------------------------------------------------
@functools.lru_cache(maxsize=None)
def _fused_conv_compiles(n, h, w, c, oc):
    try:
        x_spec = jax.ShapeDtypeStruct((n, h, w, c), jnp.bfloat16)
        w_spec = jax.ShapeDtypeStruct((4, 4 * c, oc), jnp.bfloat16)
        jax.jit(conv_lrelu_fused).lower(x_spec, w_spec).compile()
        return True
    except Exception:
        return False


# ----------------------------------------------------------------------------
# Parameters.
# ----------------------------------------------------------------------------
def init_discriminator_params(key):
    """DCGAN-style init: weights ~ N(0, 0.02), PyTorch layout (OC, IC, KH, KW)."""
    shapes = [
        (NDF, NC, 4, 4),
        (NDF * 2, NDF, 4, 4),
        (NDF * 4, NDF * 2, 4, 4),
        (NDF * 8, NDF * 4, 4, 4),
        (1, NDF * 8, 4, 4),
    ]
    keys = jax.random.split(key, len(shapes))
    return [0.02 * jax.random.normal(k, s, jnp.float32) for k, s in zip(keys, shapes)]


def prepare_params(raw_params):
    """One-time weight prep (outside the forward). Two bf16 layouts per conv:
      * "flat": (KH*KW*C, OC), feature order (kh, kw, c)     -> im2col GEMM path
      * "s2d" : (4, 4*C, OC), taps (dy, dx), feats (sy, sx, c) -> fused path
    The final conv's weight is a (1, KH*KW*C) row for the reduction kernel."""
    prepared = []
    last = len(raw_params) - 1
    for idx, wgt in enumerate(raw_params):
        oc, ic, kh, kw = wgt.shape
        w_hwio = jnp.transpose(wgt, (2, 3, 1, 0))                  # (KH,KW,C,OC)
        flat = w_hwio.reshape(kh * kw * ic, oc).astype(jnp.bfloat16)
        if idx == last:
            prepared.append(flat.reshape(1, kh * kw * ic))         # (1, 8192)
        else:
            w_s2d = (w_hwio.reshape(2, 2, 2, 2, ic, oc)            # (dy,sy,dx,sx,c,oc)
                     .transpose(0, 2, 1, 3, 4, 5)                  # (dy,dx,sy,sx,c,oc)
                     .reshape(4, 4 * ic, oc).astype(jnp.bfloat16))
            prepared.append({"flat": flat, "s2d": w_s2d})
    return prepared


# ----------------------------------------------------------------------------
# Forward pass (same semantics as the PyTorch Discriminator).
# ----------------------------------------------------------------------------
def build_discriminator_forward(x_shape, params):
    """Probe the fused path per layer geometry once, return a jitted forward."""
    n, _, h, w = x_shape
    flags = []
    c = NC
    for layer in params[:-1]:
        oc = layer["s2d"].shape[-1]
        flags.append(_fused_conv_compiles(n, h, w, c, oc))
        h, w, c = h // 2, w // 2, oc
    flags = tuple(flags)

    @jax.jit
    def forward(x_nchw, params):
        # Single NCHW->NHWC transpose at the boundary; channels-last
        # (lane-dense OC) everywhere downstream.
        x = jnp.transpose(x_nchw, (0, 2, 3, 1)).astype(jnp.bfloat16)
        for layer, fused in zip(params[:-1], flags):
            if fused:
                x = conv_lrelu_fused(x, layer["s2d"])
            else:
                x = conv_lrelu_gemm(x, layer["flat"])
        nb = x.shape[0]
        y = final_conv_sigmoid(x.reshape(nb, -1), params[-1])     # (N, 1) f32
        return y.reshape(nb, 1, 1, 1)

    return forward, flags


# ----------------------------------------------------------------------------
# Pure-JAX f32 reference (lax.conv) for the correctness check.
# ----------------------------------------------------------------------------
def discriminator_ref(x, raw_params):
    def conv(x, w, stride, pad):
        return lax.conv_general_dilated(
            x, w, window_strides=(stride, stride),
            padding=((pad, pad), (pad, pad)),
            dimension_numbers=("NCHW", "OIHW", "NCHW"),
        )
    w1, w2, w3, w4, w5 = raw_params
    x = conv(x, w1, 2, 1); x = jnp.where(x >= 0, x, 0.2 * x)
    x = conv(x, w2, 2, 1); x = jnp.where(x >= 0, x, 0.2 * x)
    x = conv(x, w3, 2, 1); x = jnp.where(x >= 0, x, 0.2 * x)
    x = conv(x, w4, 2, 1); x = jnp.where(x >= 0, x, 0.2 * x)
    x = conv(x, w5, 1, 0)
    return jax.nn.sigmoid(x)


if __name__ == "__main__":
    key = jax.random.PRNGKey(0)
    k_x, k_w = jax.random.split(key)

    # DCGAN discriminator requires 64x64 spatial input for the final 4x4 conv.
    x = jax.random.normal(k_x, (2, NC, 64, 64), jnp.float32)
    raw_params = init_discriminator_params(k_w)
    params = prepare_params(raw_params)                 # one-time weight prep

    fwd, _fused_flags = build_discriminator_forward(x.shape, params)
    out = jax.block_until_ready(fwd(x, params))
    assert out.shape == (2, 1, 1, 1), out.shape

    ref = jax.block_until_ready(discriminator_ref(x, raw_params))
    # bf16 activations/weights (f32 accumulation) vs. the f32 reference.
    np.testing.assert_allclose(np.asarray(out), np.asarray(ref),
                               rtol=5e-2, atol=2e-2)

    print("KERNEL_OK")
</pallas_src>

<mosaic_0001>
module attributes {stable_mosaic.version = 11 : i64} {
  func.func @_mm_act_kernel(%arg0: i32, %arg1: i32, %arg2: memref<1024x48xbf16, #tpu.memory_space<vmem>>, %arg3: memref<48x64xbf16, #tpu.memory_space<vmem>>, %arg4: memref<1024x64xbf16, #tpu.memory_space<vmem>>) attributes {dimension_semantics = [#tpu.dimension_semantics<parallel>, #tpu.dimension_semantics<parallel>], iteration_bounds = array<i64: 1, 2>, scalar_prefetch = 0 : i64, scratch_operands = 0 : i64, tpu.core_type = #tpu.core_type<tc>, window_params = [{transform_indices = @transform_0, window_bounds = array<i64: 1024, 48>}, {transform_indices = @transform_1, window_bounds = array<i64: 48, 64>}, {transform_indices = @transform_2, window_bounds = array<i64: 1024, 64>}]} {
    %c0 = arith.constant 0 : index
    %c0_0 = arith.constant 0 : index
    %0 = vector.load %arg2[%c0, %c0_0] : memref<1024x48xbf16, #tpu.memory_space<vmem>>, vector<1024x48xbf16>
    %c0_1 = arith.constant 0 : index
    %c0_2 = arith.constant 0 : index
    %1 = vector.load %arg3[%c0_1, %c0_2] : memref<48x64xbf16, #tpu.memory_space<vmem>>, vector<48x64xbf16>
    %cst = arith.constant dense<0.000000e+00> : vector<1024x64xf32>
    %2 = tpu.matmul %0, %1, %cst {dimension_numbers = #tpu.dot_dimension_numbers<[1], [0], [0], [1], [0, 0, 1, 1], [], []>} : vector<1024x48xbf16>, vector<48x64xbf16>, vector<1024x64xf32> -> vector<1024x64xf32>
    %cst_3 = arith.constant 0.000000e+00 : f32
    %3 = vector.broadcast %cst_3 : f32 to vector<1024x64xf32>
    %4 = arith.cmpf oge, %2, %3 : vector<1024x64xf32>
    %cst_4 = arith.constant 2.000000e-01 : f32
    %5 = vector.broadcast %cst_4 : f32 to vector<1024x64xf32>
    %6 = arith.mulf %5, %2 : vector<1024x64xf32>
    %7 = arith.select %4, %2, %6 : vector<1024x64xi1>, vector<1024x64xf32>
    %8 = arith.truncf %7 : vector<1024x64xf32> to vector<1024x64xbf16>
    %c0_5 = arith.constant 0 : index
    %c0_6 = arith.constant 0 : index
    %9 = vector.load %arg4[%c0_5, %c0_6] : memref<1024x64xbf16, #tpu.memory_space<vmem>>, vector<1024x64xbf16>
    tpu.vector_store %arg4[%c0_5, %c0_6], %8 {strides = array<i32>} : memref<1024x64xbf16, #tpu.memory_space<vmem>>, vector<1024x64xbf16>,
    return
  }
  func.func @transform_0(%arg0: i32, %arg1: i32) -> (i32, i32) {
    %c0_i32 = arith.constant 0 : i32
    %c0_i32_0 = arith.constant 0 : i32
    return %arg1, %c0_i32 : i32, i32
  }
  func.func @transform_1(%arg0: i32, %arg1: i32) -> (i32, i32) {
    %c0_i32 = arith.constant 0 : i32
    %c0_i32_0 = arith.constant 0 : i32
    return %c0_i32, %arg0 : i32, i32
  }
  func.func @transform_2(%arg0: i32, %arg1: i32) -> (i32, i32) {
    %c0_i32 = arith.constant 0 : i32
    return %arg1, %arg0 : i32, i32
  }
}

module attributes {stable_mosaic.version = 11 : i64} {
  func.func @_mm_act_kernel(%arg0: i32, %arg1: i32, %arg2: memref<256x1024xbf16, #tpu.memory_space<vmem>>, %arg3: memref<1024x128xbf16, #tpu.memory_space<vmem>>, %arg4: memref<256x128xbf16, #tpu.memory_space<vmem>>) attributes {dimension_semantics = [#tpu.dimension_semantics<parallel>, #tpu.dimension_semantics<parallel>], iteration_bounds = array<i64: 1, 2>, scalar_prefetch = 0 : i64, scratch_operands = 0 : i64, tpu.core_type = #tpu.core_type<tc>, window_params = [{transform_indices = @transform_0, window_bounds = array<i64: 256, 1024>}, {transform_indices = @transform_1, window_bounds = array<i64: 1024, 128>}, {transform_indices = @transform_2, window_bounds = array<i64: 256, 128>}]} {
    %c0 = arith.constant 0 : index
    %c0_0 = arith.constant 0 : index
    %0 = vector.load %arg2[%c0, %c0_0] : memref<256x1024xbf16, #tpu.memory_space<vmem>>, vector<256x1024xbf16>
    %c0_1 = arith.constant 0 : index
    %c0_2 = arith.constant 0 : index
    %1 = vector.load %arg3[%c0_1, %c0_2] : memref<1024x128xbf16, #tpu.memory_space<vmem>>, vector<1024x128xbf16>
    %cst = arith.constant dense<0.000000e+00> : vector<256x128xf32>
    %2 = tpu.matmul %0, %1, %cst {dimension_numbers = #tpu.dot_dimension_numbers<[1], [0], [0], [1], [0, 0, 1, 1], [], []>} : vector<256x1024xbf16>, vector<1024x128xbf16>, vector<256x128xf32> -> vector<256x128xf32>
    %cst_3 = arith.constant 0.000000e+00 : f32
    %3 = vector.broadcast %cst_3 : f32 to vector<256x128xf32>
    %4 = arith.cmpf oge, %2, %3 : vector<256x128xf32>
    %cst_4 = arith.constant 2.000000e-01 : f32
    %5 = vector.broadcast %cst_4 : f32 to vector<256x128xf32>
    %6 = arith.mulf %5, %2 : vector<256x128xf32>
    %7 = arith.select %4, %2, %6 : vector<256x128xi1>, vector<256x128xf32>
    %8 = arith.truncf %7 : vector<256x128xf32> to vector<256x128xbf16>
    %c0_5 = arith.constant 0 : index
    %c0_6 = arith.constant 0 : index
    %9 = vector.load %arg4[%c0_5, %c0_6] : memref<256x128xbf16, #tpu.memory_space<vmem>>, vector<256x128xbf16>
    tpu.vector_store %arg4[%c0_5, %c0_6], %8 {strides = array<i32>} : memref<256x128xbf16, #tpu.memory_space<vmem>>, vector<256x128xbf16>,
    return
  }
  func.func @transform_0(%arg0: i32, %arg1: i32) -> (i32, i32) {
    %c0_i32 = arith.constant 0 : i32
    %c0_i32_0 = arith.constant 0 : i32
    return %arg1, %c0_i32 : i32, i32
  }
  func.func @transform_1(%arg0: i32, %arg1: i32) -> (i32, i32) {
    %c0_i32 = arith.constant 0 : i32
    %c0_i32_0 = arith.constant 0 : i32
    return %c0_i32, %arg0 : i32, i32
  }
  func.func @transform_2(%arg0: i32, %arg1: i32) -> (i32, i32) {
    %c0_i32 = arith.constant 0 : i32
    return %arg1, %arg0 : i32, i32
  }
}

module attributes {stable_mosaic.version = 11 : i64} {
  func.func @_mm_act_kernel(%arg0: i32, %arg1: i32, %arg2: memref<128x2048xbf16, #tpu.memory_space<vmem>>, %arg3: memref<2048x128xbf16, #tpu.memory_space<vmem>>, %arg4: memref<128x128xbf16, #tpu.memory_space<vmem>>) attributes {dimension_semantics = [#tpu.dimension_semantics<parallel>, #tpu.dimension_semantics<parallel>], iteration_bounds = array<i64: 2, 1>, scalar_prefetch = 0 : i64, scratch_operands = 0 : i64, tpu.core_type = #tpu.core_type<tc>, window_params = [{transform_indices = @transform_0, window_bounds = array<i64: 128, 2048>}, {transform_indices = @transform_1, window_bounds = array<i64: 2048, 128>}, {transform_indices = @transform_2, window_bounds = array<i64: 128, 128>}]} {
    %c0 = arith.constant 0 : index
    %c0_0 = arith.constant 0 : index
    %0 = vector.load %arg2[%c0, %c0_0] : memref<128x2048xbf16, #tpu.memory_space<vmem>>, vector<128x2048xbf16>
    %c0_1 = arith.constant 0 : index
    %c0_2 = arith.constant 0 : index
    %1 = vector.load %arg3[%c0_1, %c0_2] : memref<2048x128xbf16, #tpu.memory_space<vmem>>, vector<2048x128xbf16>
    %cst = arith.constant dense<0.000000e+00> : vector<128x128xf32>
    %2 = tpu.matmul %0, %1, %cst {dimension_numbers = #tpu.dot_dimension_numbers<[1], [0], [0], [1], [0, 0, 1, 1], [], []>} : vector<128x2048xbf16>, vector<2048x128xbf16>, vector<128x128xf32> -> vector<128x128xf32>
    %cst_3 = arith.constant 0.000000e+00 : f32
    %3 = vector.broadcast %cst_3 : f32 to vector<128x128xf32>
    %4 = arith.cmpf oge, %2, %3 : vector<128x128xf32>
    %cst_4 = arith.constant 2.000000e-01 : f32
    %5 = vector.broadcast %cst_4 : f32 to vector<128x128xf32>
    %6 = arith.mulf %5, %2 : vector<128x128xf32>
    %7 = arith.select %4, %2, %6 : vector<128x128xi1>, vector<128x128xf32>
    %8 = arith.truncf %7 : vector<128x128xf32> to vector<128x128xbf16>
    %c0_5 = arith.constant 0 : index
    %c0_6 = arith.constant 0 : index
    %9 = vector.load %arg4[%c0_5, %c0_6] : memref<128x128xbf16, #tpu.memory_space<vmem>>, vector<128x128xbf16>
    tpu.vector_store %arg4[%c0_5, %c0_6], %8 {strides = array<i32>} : memref<128x128xbf16, #tpu.memory_space<vmem>>, vector<128x128xbf16>,
    return
  }
  func.func @transform_0(%arg0: i32, %arg1: i32) -> (i32, i32) {
    %c0_i32 = arith.constant 0 : i32
    %c0_i32_0 = arith.constant 0 : i32
    return %arg1, %c0_i32 : i32, i32
  }
  func.func @transform_1(%arg0: i32, %arg1: i32) -> (i32, i32) {
    %c0_i32 = arith.constant 0 : i32
    %c0_i32_0 = arith.constant 0 : i32
    return %c0_i32, %arg0 : i32, i32
  }
  func.func @transform_2(%arg0: i32, %arg1: i32) -> (i32, i32) {
    %c0_i32 = arith.constant 0 : i32
    return %arg1, %arg0 : i32, i32
  }
}

module attributes {stable_mosaic.version = 11 : i64} {
  func.func @_mm_act_kernel(%arg0: i32, %arg1: i32, %arg2: memref<32x4096xbf16, #tpu.memory_space<vmem>>, %arg3: memref<4096x256xbf16, #tpu.memory_space<vmem>>, %arg4: memref<32x256xbf16, #tpu.memory_space<vmem>>) attributes {dimension_semantics = [#tpu.dimension_semantics<parallel>, #tpu.dimension_semantics<parallel>], iteration_bounds = array<i64: 2, 1>, scalar_prefetch = 0 : i64, scratch_operands = 0 : i64, tpu.core_type = #tpu.core_type<tc>, window_params = [{transform_indices = @transform_0, window_bounds = array<i64: 32, 4096>}, {transform_indices = @transform_1, window_bounds = array<i64: 4096, 256>}, {transform_indices = @transform_2, window_bounds = array<i64: 32, 256>}]} {
    %c0 = arith.constant 0 : index
    %c0_0 = arith.constant 0 : index
    %0 = vector.load %arg2[%c0, %c0_0] : memref<32x4096xbf16, #tpu.memory_space<vmem>>, vector<32x4096xbf16>
    %c0_1 = arith.constant 0 : index
    %c0_2 = arith.constant 0 : index
    %1 = vector.load %arg3[%c0_1, %c0_2] : memref<4096x256xbf16, #tpu.memory_space<vmem>>, vector<4096x256xbf16>
    %cst = arith.constant dense<0.000000e+00> : vector<32x256xf32>
    %2 = tpu.matmul %0, %1, %cst {dimension_numbers = #tpu.dot_dimension_numbers<[1], [0], [0], [1], [0, 0, 1, 1], [], []>} : vector<32x4096xbf16>, vector<4096x256xbf16>, vector<32x256xf32> -> vector<32x256xf32>
    %cst_3 = arith.constant 0.000000e+00 : f32
    %3 = vector.broadcast %cst_3 : f32 to vector<32x256xf32>
    %4 = arith.cmpf oge, %2, %3 : vector<32x256xf32>
    %cst_4 = arith.constant 2.000000e-01 : f32
    %5 = vector.broadcast %cst_4 : f32 to vector<32x256xf32>
    %6 = arith.mulf %5, %2 : vector<32x256xf32>
    %7 = arith.select %4, %2, %6 : vector<32x256xi1>, vector<32x256xf32>
    %8 = arith.truncf %7 : vector<32x256xf32> to vector<32x256xbf16>
    %c0_5 = arith.constant 0 : index
    %c0_6 = arith.constant 0 : index
    %9 = vector.load %arg4[%c0_5, %c0_6] : memref<32x256xbf16, #tpu.memory_space<vmem>>, vector<32x256xbf16>
    tpu.vector_store %arg4[%c0_5, %c0_6], %8 {strides = array<i32>} : memref<32x256xbf16, #tpu.memory_space<vmem>>, vector<32x256xbf16>,
    return
  }
  func.func @transform_0(%arg0: i32, %arg1: i32) -> (i32, i32) {
    %c0_i32 = arith.constant 0 : i32
    %c0_i32_0 = arith.constant 0 : i32
    return %arg1, %c0_i32 : i32, i32
  }
  func.func @transform_1(%arg0: i32, %arg1: i32) -> (i32, i32) {
    %c0_i32 = arith.constant 0 : i32
    %c0_i32_0 = arith.constant 0 : i32
    return %c0_i32, %arg0 : i32, i32
  }
  func.func @transform_2(%arg0: i32, %arg1: i32) -> (i32, i32) {
    %c0_i32 = arith.constant 0 : i32
    return %arg1, %arg0 : i32, i32
  }
}

module attributes {stable_mosaic.version = 11 : i64} {
  func.func @_final_kernel(%arg0: i32, %arg1: memref<2x8192xbf16, #tpu.memory_space<vmem>>, %arg2: memref<1x8192xbf16, #tpu.memory_space<vmem>>, %arg3: memref<2x1xf32, #tpu.memory_space<vmem>>) attributes {dimension_semantics = [#tpu.dimension_semantics<parallel>], iteration_bounds = array<i64: 1>, scalar_prefetch = 0 : i64, scratch_operands = 0 : i64, tpu.core_type = #tpu.core_type<tc>, window_params = [{transform_indices = @transform_0, window_bounds = array<i64: 2, 8192>}, {pipeline_mode = #tpu.pipeline_mode<synchronous>, transform_indices = @transform_1, window_bounds = array<i64: 1, 8192>}, {transform_indices = @transform_2, window_bounds = array<i64: 2, 1>}]} {
    %c0 = arith.constant 0 : index
    %c0_0 = arith.constant 0 : index
    %0 = vector.load %arg1[%c0, %c0_0] : memref<2x8192xbf16, #tpu.memory_space<vmem>>, vector<2x8192xbf16>
    %1 = arith.extf %0 : vector<2x8192xbf16> to vector<2x8192xf32>
    %c0_1 = arith.constant 0 : index
    %c0_2 = arith.constant 0 : index
    %2 = vector.load %arg2[%c0_1, %c0_2] : memref<1x8192xbf16, #tpu.memory_space<vmem>>, vector<1x8192xbf16>
    %3 = arith.extf %2 : vector<1x8192xbf16> to vector<1x8192xf32>
    %4 = vector.broadcast %3 : vector<1x8192xf32> to vector<2x8192xf32>
    %5 = arith.mulf %1, %4 : vector<2x8192xf32>
    %cst = arith.constant dense<0.000000e+00> : vector<2xf32>
    %6 = vector.multi_reduction <add>, %5, %cst [1] : vector<2x8192xf32> to vector<2xf32>
    %7 = vector.shape_cast %6 : vector<2xf32> to vector<2x1xf32>
    %8 = arith.negf %7 : vector<2x1xf32>
    %9 = math.exp %8 : vector<2x1xf32>
    %cst_3 = arith.constant 1.000000e+00 : f32
    %10 = vector.broadcast %cst_3 : f32 to vector<2x1xf32>
    %11 = arith.addf %10, %9 : vector<2x1xf32>
    %12 = arith.divf %10, %11 : vector<2x1xf32>
    %c0_4 = arith.constant 0 : index
    %c0_5 = arith.constant 0 : index
    %13 = vector.load %arg3[%c0_4, %c0_5] : memref<2x1xf32, #tpu.memory_space<vmem>>, vector<2x1xf32>
    tpu.vector_store %arg3[%c0_4, %c0_5], %12 {strides = array<i32>} : memref<2x1xf32, #tpu.memory_space<vmem>>, vector<2x1xf32>,
    return
  }
  func.func @transform_0(%arg0: i32) -> (i32, i32) {
    %c0_i32 = arith.constant 0 : i32
    %c0_i32_0 = arith.constant 0 : i32
    return %arg0, %c0_i32 : i32, i32
  }
  func.func @transform_1(%arg0: i32) -> (i32, i32) {
    %c0_i32 = arith.constant 0 : i32
    %c0_i32_0 = arith.constant 0 : i32
    %c0_i32_1 = arith.constant 0 : i32
    return %c0_i32, %c0_i32_0 : i32, i32
  }
  func.func @transform_2(%arg0: i32) -> (i32, i32) {
    %c0_i32 = arith.constant 0 : i32
    %c0_i32_0 = arith.constant 0 : i32
    return %arg0, %c0_i32 : i32, i32
  }
}

</mosaic_0001>

<bundles_post_ra>
// kernel: forward.5
= control target key start
LH: loop header
LB: loop body
LE: loop exit
PB: predicated region body
PF: predicated region fallthrough
CT: control target
= control target key end

     0   :  { %s3246_s9 = smov 0   ;;  %s3248_s10 = smov 0   ;;  %s3684_s0 = inlined_call_operand.vmem [shape: bf16[2048,48], index: 0, kind: input, shape index: {}]   ;;  %s3685_s1 = inlined_call_operand.vmem [shape: bf16[48,64], index: 1, kind: input, shape index: {}]   ;;  %s3686_s2 = inlined_call_operand.vmem [shape: bf16[2048,64], index: 2, kind: output, shape index: {}]  }
   0x1   :  { %s3250_s11 = smov 0  }
   0x2 LB: > { %s21_s12 = sadd.s32 1, %s3225_s10  ;;  %p2515_p0 = scmp.ge.s32.totalorder %s3229_s11, 1  ;;  %s3229_s11 = sphi %s3250_s11, %s12_s11   ;;  %s3225_s10 = sphi %s3248_s10, %s3688_s10   ;;  %s3221_s9 = sphi %s3246_s9, %s3687_s9  }
   0x3   : > { %p22_p1 = scmp.ge.s32.totalorder %s21_s12, 2  ;;  %p136_p2 = scmp.lt.s32.totalorder %s3229_s11, 3 }
   0x5   : > { %s3690_s12 = smov (%p22_p1, %s21_s12), 0  ;;  %p137_p3 = pnand %p2515_p0, %p136_p2 }
   0x6   : > { %v3140_v0 = vld [vmem:[%s3685_s1] sm:$0xff] (!%p137_p3)   ;;  %s2516_s15 = sshll.u32 (!%p137_p3), %s3221_s9, 7  ;;  %v3141_v1 = vld [vmem:[%s3685_s1 + $0x8] sm:$0xff] (!%p137_p3)   ;;  %v3142_v2 = vld [vmem:[%s3685_s1 + $0x10] sm:$0xff] (!%p137_p3)   ;;  %vm657_vm0 = vcmask (!%p137_p3), 392192   ;;  %vm2291_vm3 = vcmask (!%p137_p3), 519168  }
   0x7   : > { %140 = sbr.rel (%p137_p3) target bundleno = 367 (0x16f), region = 28  ;;  %p166_p4 = scmp.lt.s32.totalorder (!%p137_p3), %s2516_s15, 255  ;;  %2976 = vmatprep.subr.bf16.mxu0 (!%p137_p3), %v3140_v0  ;;  %3110 = vmatprep.subr.bf16.mxu1 (!%p137_p3), %v3140_v0 }
   0x8   : > { %2977 = vmatpush3.bf16.msra.mxu0 (!%p137_p3), %v3140_v0  ;;  %3113 = vmatpush3.bf16.msra.mxu1 (!%p137_p3), %v3140_v0 }
   0x9   : > { %2978 = vmatprep.subr.bf16.mxu0 (!%p137_p3), %v3141_v1  ;;  %3111 = vmatprep.subr.bf16.mxu1 (!%p137_p3), %v3141_v1 }
   0xc   : > { %2979 = vmatpush3.bf16.msra.mxu0 (!%p137_p3), %v3141_v1  ;;  %3114 = vmatpush3.bf16.msra.mxu1 (!%p137_p3), %v3141_v1 }
   0xd   : > { %2980 = vmatprep.subr.bf16.mxu0 (!%p137_p3), %v3142_v2  ;;  %3112 = vmatprep.subr.bf16.mxu1 (!%p137_p3), %v3142_v2 }
   0xe   : > { %s3692_s15 = smov (!%p166_p4, %s2516_s15), 255 }
   0xf   : > { %s2517_s20 = sshll.u32 %s3692_s15, 2 }
  0x10   : > { %s3281_s23 = scalar_lea.vmem %s3684_s0, %s2517_s20  ;;  %2981 = vmatpush3.bf16.msra.mxu0 %v3142_v2  ;;  %3115 = vmatpush3.bf16.msra.mxu1 %v3142_v2  ;;  %s3416_s26 = scalar_lea.vmem %s3686_s2, %s2517_s20 }
  0x11   : > { %v3143_v3 = vld [vmem:[%s3281_s23] sm:$0xff]   ;;  %v3145_v5 = vld [vmem:[%s3281_s23 + $0x8] sm:$0xff]   ;;  %v3147_v7 = vld [vmem:[%s3281_s23 + $0x10] sm:$0xff]  }
  0x12   : > { %v3144_v4 = vld [vmem:[%s3281_s23 + $0x100] sm:$0xff]   ;;  %2982 = vmatprep.mubr.msk.bf16.mxu0 %vm657_vm0, %v3143_v3  ;;  %v3146_v6 = vld [vmem:[%s3281_s23 + $0x108] sm:$0xff]   ;;  %v3148_v8 = vld [vmem:[%s3281_s23 + $0x110] sm:$0xff]  }
  0x13   : > { %3046 = vmatprep.mubr.msk.bf16.mxu1 %vm657_vm0, %v3144_v4  ;;  %2983 = vmatmul.mubr.msk.bf16.vlgmr.msra.gmra.mrb[0].mxu0 %vm657_vm0, %v3145_v5  ;;  %v3149_v9 = vld [vmem:[%s3281_s23 + $0x18] sm:$0xff]   ;;  %v3151_v11 = vld [vmem:[%s3281_s23 + $0x20] sm:$0xff]   ;;  %v3153_v13 = vld [vmem:[%s3281_s23 + $0x28] sm:$0xff]  }
  0x14   : > { %3047 = vmatmul.mubr.msk.bf16.vlgmr.msra.gmra.mrb[0].mxu1 %vm657_vm0, %v3146_v6  ;;  %2986 = vmatprep.mubr.msk.bf16.mxu0 %vm657_vm0, %v3147_v7  ;;  %v3150_v10 = vld [vmem:[%s3281_s23 + $0x118] sm:$0xff]   ;;  %v3152_v12 = vld [vmem:[%s3281_s23 + $0x120] sm:$0xff]   ;;  %v3154_v14 = vld [vmem:[%s3281_s23 + $0x128] sm:$0xff]  }
  0x15   : > { %3050 = vmatprep.mubr.msk.bf16.mxu1 %vm657_vm0, %v3148_v8  ;;  %v3155_v15 = vld [vmem:[%s3281_s23 + $0x30] sm:$0xff]   ;;  %v3157_v17 = vld [vmem:[%s3281_s23 + $0x38] sm:$0xff]   ;;  %v3159_v19 = vld [vmem:[%s3281_s23 + $0x40] sm:$0xff]  }
  0x16   : > { %v3156_v16 = vld [vmem:[%s3281_s23 + $0x130] sm:$0xff]   ;;  %v3158_v18 = vld [vmem:[%s3281_s23 + $0x138] sm:$0xff]   ;;  %v3160_v20 = vld [vmem:[%s3281_s23 + $0x140] sm:$0xff]  }
  0x17   : > { %v3161_v21 = vld [vmem:[%s3281_s23 + $0x48] sm:$0xff]   ;;  %v3163_v23 = vld [vmem:[%s3281_s23 + $0x50] sm:$0xff]   ;;  %v3165_v25 = vld [vmem:[%s3281_s23 + $0x58] sm:$0xff]  }
  0x18   : > { %v3162_v22 = vld [vmem:[%s3281_s23 + $0x148] sm:$0xff]   ;;  %v3164_v24 = vld [vmem:[%s3281_s23 + $0x150] sm:$0xff]   ;;  %v3166_v26 = vld [vmem:[%s3281_s23 + $0x158] sm:$0xff]  }
  0x19   : > { %v3167_v27 = vld [vmem:[%s3281_s23 + $0x60] sm:$0xff]   ;;  %v3169_v29 = vld [vmem:[%s3281_s23 + $0x68] sm:$0xff]   ;;  %v3171_v31 = vld [vmem:[%s3281_s23 + $0x70] sm:$0xff]  }
  0x1a   : > { %v3168_v28 = vld [vmem:[%s3281_s23 + $0x160] sm:$0xff]   ;;  %v3170_v30 = vld [vmem:[%s3281_s23 + $0x168] sm:$0xff]   ;;  %v3172_v32 = vld [vmem:[%s3281_s23 + $0x170] sm:$0xff]  }
  0x1b   : > { %2987 = vmatmul.mubr.msk.bf16.gmra.mrb[4].mxu0 %vm657_vm0, %v3149_v9  ;;  %v3173_v33 = vld [vmem:[%s3281_s23 + $0x78] sm:$0xff]   ;;  %v3175_v35 = vld [vmem:[%s3281_s23 + $0x80] sm:$0xff]   ;;  %v3177_v37 = vld [vmem:[%s3281_s23 + $0x88] sm:$0xff]  }
  0x1c   : > { %3051 = vmatmul.mubr.msk.bf16.gmra.mrb[4].mxu1 %vm657_vm0, %v3150_v10  ;;  %2990 = vmatprep.mubr.msk.bf16.mxu0 %vm657_vm0, %v3151_v11  ;;  %v3174_v34 = vld [vmem:[%s3281_s23 + $0x178] sm:$0xff]   ;;  %v3176_v36 = vld [vmem:[%s3281_s23 + $0x180] sm:$0xff]   ;;  %v3178_v38 = vld [vmem:[%s3281_s23 + $0x188] sm:$0xff]  }
  0x1d   : > { %3054 = vmatprep.mubr.msk.bf16.mxu1 %vm657_vm0, %v3152_v12  ;;  %v3179_v39 = vld [vmem:[%s3281_s23 + $0x90] sm:$0xff]   ;;  %v3181_v41 = vld [vmem:[%s3281_s23 + $0x98] sm:$0xff]   ;;  %v3183_v43 = vld [vmem:[%s3281_s23 + $0xa0] sm:$0xff]  }
  0x1e   : > { %v3180_v40 = vld [vmem:[%s3281_s23 + $0x190] sm:$0xff]   ;;  %v3182_v42 = vld [vmem:[%s3281_s23 + $0x198] sm:$0xff]   ;;  %v3184_v44 = vld [vmem:[%s3281_s23 + $0x1a0] sm:$0xff]  }
  0x1f   : > { %v3185_v45 = vld [vmem:[%s3281_s23 + $0xa8] sm:$0xff]   ;;  %v3187_v47 = vld [vmem:[%s3281_s23 + $0xb0] sm:$0xff]   ;;  %v3189_v49 = vld [vmem:[%s3281_s23 + $0xb8] sm:$0xff]  }
  0x20   : > { %v3186_v46 = vld [vmem:[%s3281_s23 + $0x1a8] sm:$0xff]   ;;  %v3188_v48 = vld [vmem:[%s3281_s23 + $0x1b0] sm:$0xff]   ;;  %v3190_v50 = vld [vmem:[%s3281_s23 + $0x1b8] sm:$0xff]  }
  0x21   : > { %v3191_v51 = vld [vmem:[%s3281_s23 + $0xc0] sm:$0xff]   ;;  %v3193_v53 = vld [vmem:[%s3281_s23 + $0xc8] sm:$0xff]   ;;  %v3195_v55 = vld [vmem:[%s3281_s23 + $0xd0] sm:$0xff]  }
  0x22   : > { %v3192_v52 = vld [vmem:[%s3281_s23 + $0x1c0] sm:$0xff]   ;;  %v3194_v54 = vld [vmem:[%s3281_s23 + $0x1c8] sm:$0xff]   ;;  %v3196_v56 = vld [vmem:[%s3281_s23 + $0x1d0] sm:$0xff]  }
  0x23   : > { %2991 = vmatmul.mubr.msk.bf16.gmra.mrb[8].mxu0 %vm657_vm0, %v3153_v13  ;;  %v3197_v57 = vld [vmem:[%s3281_s23 + $0xd8] sm:$0xff]   ;;  %v3199_v59 = vld [vmem:[%s3281_s23 + $0xe0] sm:$0xff]   ;;  %v3201_v61 = vld [vmem:[%s3281_s23 + $0xe8] sm:$0xff]  }
  0x24   : > { %3055 = vmatmul.mubr.msk.bf16.gmra.mrb[8].mxu1 %vm657_vm0, %v3154_v14  ;;  %2994 = vmatprep.mubr.msk.bf16.mxu0 %vm657_vm0, %v3155_v15  ;;  %v3198_v58 = vld [vmem:[%s3281_s23 + $0x1d8] sm:$0xff]   ;;  %v3200_v60 = vld [vmem:[%s3281_s23 + $0x1e0] sm:$0xff]   ;;  %v3202_v62 = vld [vmem:[%s3281_s23 + $0x1e8] sm:$0xff]  }
  0x25   : > { %3058 = vmatprep.mubr.msk.bf16.mxu1 %vm657_vm0, %v3156_v16  ;;  %v3203_v63 = vld [vmem:[%s3281_s23 + $0xf0] sm:$0xff]   ;;  %v3205_v1 = vld [vmem:[%s3281_s23 + $0xf8] sm:$0xff]  }
  0x26   : > { %v3204_v0 = vld [vmem:[%s3281_s23 + $0x1f0] sm:$0xff]   ;;  %v3206_v2 = vld [vmem:[%s3281_s23 + $0x1f8] sm:$0xff]  }
  0x2b   : > { %2995 = vmatmul.mubr.msk.bf16.gmra.mrb[12].mxu0 %vm657_vm0, %v3157_v17 }
  0x2c   : > { %3059 = vmatmul.mubr.msk.bf16.gmra.mrb[12].mxu1 %vm657_vm0, %v3158_v18  ;;  %2998 = vmatprep.mubr.msk.bf16.mxu0 %vm657_vm0, %v3159_v19 }
  0x2d   : > { %3062 = vmatprep.mubr.msk.bf16.mxu1 %vm657_vm0, %v3160_v20 }
  0x33   : > { %2999 = vmatmul.mubr.msk.bf16.gmra.mrb[16].mxu0 %vm657_vm0, %v3161_v21 }
  0x34   : > { %3063 = vmatmul.mubr.msk.bf16.gmra.mrb[16].mxu1 %vm657_vm0, %v3162_v22  ;;  %3002 = vmatprep.mubr.msk.bf16.mxu0 %vm657_vm0, %v3163_v23 }
  0x35   : > { %3066 = vmatprep.mubr.msk.bf16.mxu1 %vm657_vm0, %v3164_v24 }
  0x3b   : > { %3003 = vmatmul.mubr.msk.bf16.gmra.mrb[20].mxu0 %vm657_vm0, %v3165_v25 }
  0x3c   : > { %3067 = vmatmul.mubr.msk.bf16.gmra.mrb[20].mxu1 %vm657_vm0, %v3166_v26  ;;  %3006 = vmatprep.mubr.msk.bf16.mxu0 %vm657_vm0, %v3167_v27 }
  0x3d   : > { %3070 = vmatprep.mubr.msk.bf16.mxu1 %vm657_vm0, %v3168_v28 }
  0x43   : > { %3007 = vmatmul.mubr.msk.bf16.gmra.mrb[24].mxu0 %vm657_vm0, %v3169_v29 }
  0x44   : > { %3071 = vmatmul.mubr.msk.bf16.gmra.mrb[24].mxu1 %vm657_vm0, %v3170_v30  ;;  %3010 = vmatprep.mubr.msk.bf16.mxu0 %vm657_vm0, %v3171_v31 }
  0x45   : > { %3074 = vmatprep.mubr.msk.bf16.mxu1 %vm657_vm0, %v3172_v32 }
  0x4b   : > { %3011 = vmatmul.mubr.msk.bf16.gmra.mrb[28].mxu0 %vm657_vm0, %v3173_v33 }
  0x4c   : > { %3075 = vmatmul.mubr.msk.bf16.gmra.mrb[28].mxu1 %vm657_vm0, %v3174_v34  ;;  %3014 = vmatprep.mubr.msk.bf16.mxu0 %vm657_vm0, %v3175_v35 }
  0x4d   : > { %3078 = vmatprep.mubr.msk.bf16.mxu1 %vm657_vm0, %v3176_v36 }
  0x53   : > { %3015 = vmatmul.mubr.msk.bf16.gmra.mrb[32].mxu0 %vm657_vm0, %v3177_v37 }
  0x54   : > { %3079 = vmatmul.mubr.msk.bf16.gmra.mrb[32].mxu1 %vm657_vm0, %v3178_v38  ;;  %3018 = vmatprep.mubr.msk.bf16.mxu0 %vm657_vm0, %v3179_v39 }
  0x55   : > { %3082 = vmatprep.mubr.msk.bf16.mxu1 %vm657_vm0, %v3180_v40 }
  0x5b   : > { %3019 = vmatmul.mubr.msk.bf16.gmra.mrb[36].mxu0 %vm657_vm0, %v3181_v41 }
  0x5c   : > { %3083 = vmatmul.mubr.msk.bf16.gmra.mrb[36].mxu1 %vm657_vm0, %v3182_v42  ;;  %3022 = vmatprep.mubr.msk.bf16.mxu0 %vm657_vm0, %v3183_v43 }
  0x5d   : > { %3086 = vmatprep.mubr.msk.bf16.mxu1 %vm657_vm0, %v3184_v44 }
  0x63   : > { %3023 = vmatmul.mubr.msk.bf16.gmra.mrb[40].mxu0 %vm657_vm0, %v3185_v45 }
  0x64   : > { %3087 = vmatmul.mubr.msk.bf16.gmra.mrb[40].mxu1 %vm657_vm0, %v3186_v46  ;;  %3026 = vmatprep.mubr.msk.bf16.mxu0 %vm657_vm0, %v3187_v47 }
  0x65   : > { %3090 = vmatprep.mubr.msk.bf16.mxu1 %vm657_vm0, %v3188_v48 }
  0x6b   : > { %3027 = vmatmul.mubr.msk.bf16.gmra.mrb[44].mxu0 %vm657_vm0, %v3189_v49 }
  0x6c   : > { %3091 = vmatmul.mubr.msk.bf16.gmra.mrb[44].mxu1 %vm657_vm0, %v3190_v50  ;;  %3030 = vmatprep.mubr.msk.bf16.mxu0 %vm657_vm0, %v3191_v51 }
  0x6d   : > { %3094 = vmatprep.mubr.msk.bf16.mxu1 %vm657_vm0, %v3192_v52 }
  0x73   : > { %3031 = vmatmul.mubr.msk.bf16.gmra.mrb[48].mxu0 %vm657_vm0, %v3193_v53 }
  0x74   : > { %3095 = vmatmul.mubr.msk.bf16.gmra.mrb[48].mxu1 %vm657_vm0, %v3194_v54  ;;  %3034 = vmatprep.mubr.msk.bf16.mxu0 %vm657_vm0, %v3195_v55 }
  0x75   : > { %3098 = vmatprep.mubr.msk.bf16.mxu1 %vm657_vm0, %v3196_v56 }
  0x7b   : > { %3035 = vmatmul.mubr.msk.bf16.gmra.mrb[52].mxu0 %vm657_vm0, %v3197_v57 }
  0x7c   : > { %3099 = vmatmul.mubr.msk.bf16.gmra.mrb[52].mxu1 %vm657_vm0, %v3198_v58  ;;  %3038 = vmatprep.mubr.msk.bf16.mxu0 %vm657_vm0, %v3199_v59 }
  0x7d   : > { %3102 = vmatprep.mubr.msk.bf16.mxu1 %vm657_vm0, %v3200_v60 }
  0x83   : > { %3039 = vmatmul.mubr.msk.bf16.gmra.mrb[56].mxu0 %vm657_vm0, %v3201_v61 }
  0x84   : > { %3103 = vmatmul.mubr.msk.bf16.gmra.mrb[56].mxu1 %vm657_vm0, %v3202_v62  ;;  %3042 = vmatprep.mubr.msk.bf16.mxu0 %vm657_vm0, %v3203_v63 }
  0x85   : > { %3106 = vmatprep.mubr.msk.bf16.mxu1 %vm657_vm0, %v3204_v0 }
  0x8b   : > { %3043 = vmatmul.mubr.msk.bf16.gmra.mrb[60].mxu0 %vm657_vm0, %v3205_v1 }
  0x8c   : > { %3107 = vmatmul.mubr.msk.bf16.gmra.mrb[60].mxu1 %vm657_vm0, %v3206_v2 }
  0xe6   : > { %v2984_v3 = vpop.f32.mrb[0].mxu0 }
  0xe7   : > { %v3048_v4 = vpop.f32.mrb[0].mxu1  ;;  %vm1397_vm1 = vcmp.ge.f32.partialorder %v2984_v3, 0.0  ;;  %v1525_v5 = vmul.f32 0.2, %v2984_v3  ;;  %v884_v7 = vpop.f32.mrb[1].mxu0 }
  0xe8   : > { %vm1461_vm2 = vcmp.ge.f32.partialorder %v3048_v4, 0.0  ;;  %v1589_v6 = vmul.f32 0.2, %v3048_v4  ;;  %v1140_v8 = vpop.f32.mrb[1].mxu1  ;;  %vm1395_vm4 = vcmp.ge.f32.partialorder %v884_v7, 0.0  ;;  %v2985_v12 = vpop.f32.mrb[2].mxu0 }
  0xe9   : > { %v1653_v9 = vsel %vm1397_vm1, %v2984_v3, %v1525_v5  ;;  %v1523_v11 = vmul.f32 0.2, %v884_v7  ;;  %v3049_v13 = vpop.f32.mrb[2].mxu1  ;;  %vm1459_vm5 = vcmp.ge.f32.partialorder %v1140_v8, 0.0  ;;  %v1587_v16 = vmul.f32 0.2, %v1140_v8 }
  0xea   : > { %v1717_v10 = vsel %vm1461_vm2, %v3048_v4, %v1589_v6  ;;  %v2783_v14 = vpack.c.bf16 %v1653_v9, %v1653_v9  ;;  %v887_v17 = vpop.f32.mrb[3].mxu0  ;;  %v1143_v18 = vpop.f32.mrb[3].mxu1  ;;  %vm1398_vm6 = vcmp.ge.f32.partialorder %v2985_v12, 0.0  ;;  %v1526_v20 = vmul.f32 0.2, %v2985_v12 }
  0xeb   : > { %v2847_v15 = vpack.c.bf16 %v1717_v10, %v1717_v10  ;;  %v1651_v19 = vsel %vm1395_vm4, %v884_v7, %v1523_v11  ;;  %vm1462_vm7 = vcmp.ge.f32.partialorder %v3049_v13, 0.0  ;;  %v1715_v22 = vsel %vm1459_vm5, %v1140_v8, %v1587_v16 }
  0xec   : > { %2294 = vst.msk [vmem:[%s3416_s26 + $0x8] sm:$0xf] %vm2291_vm3, %v2783_v14  ;;  %v2781_v21 = vpack.c.bf16 %v1651_v19, %v1651_v19  ;;  %v1590_v23 = vmul.f32 0.2, %v3049_v13  ;;  %vm1396_vm8 = vcmp.ge.f32.partialorder %v887_v17, 0.0  ;;  %v2845_v24 = vpack.c.bf16 %v1715_v22, %v1715_v22 }
  0xed   : > { %2358 = vst.msk [vmem:[%s3416_s26 + $0x108] sm:$0xf] %vm2291_vm3, %v2847_v15  ;;  %v1654_v25 = vsel %vm1398_vm6, %v2985_v12, %v1526_v20  ;;  %v1524_v26 = vmul.f32 0.2, %v887_v17  ;;  %vm1460_vm9 = vcmp.ge.f32.partialorder %v1143_v18, 0.0 }
  0xee   : > { %2292 = vst.msk [vmem:[%s3416_s26] sm:$0xf] %vm2291_vm3, %v2781_v21  ;;  %v2784_v27 = vpack.c.bf16 %v1654_v25, %v1654_v25  ;;  %v1718_v28 = vsel %vm1462_vm7, %v3049_v13, %v1590_v23  ;;  %v1588_v29 = vmul.f32 0.2, %v1143_v18  ;;  %v2988_v30 = vpop.f32.mrb[4].mxu0 }
  0xef   : > { %v3052_v31 = vpop.f32.mrb[4].mxu1  ;;  %2356 = vst.msk [vmem:[%s3416_s26 + $0x100] sm:$0xf] %vm2291_vm3, %v2845_v24  ;;  %v2848_v32 = vpack.c.bf16 %v1718_v28, %v1718_v28  ;;  %v1652_v33 = vsel %vm1396_vm8, %v887_v17, %v1524_v26  ;;  %vm1401_vm10 = vcmp.ge.f32.partialorder %v2988_v30, 0.0  ;;  %v1529_v34 = vmul.f32 0.2, %v2988_v30 }
  0xf0   : > { %v900_v35 = vpop.f32.mrb[5].mxu0  ;;  %v1156_v36 = vpop.f32.mrb[5].mxu1  ;;  %2295 = vst.msk [vmem:[%s3416_s26 + $0xc] sm:$0xf] %vm2291_vm3, %v2784_v27  ;;  %v2782_v37 = vpack.c.bf16 %v1652_v33, %v1652_v33  ;;  %v1716_v38 = vsel %vm1460_vm9, %v1143_v18, %v1588_v29  ;;  %vm1465_vm11 = vcmp.ge.f32.partialorder %v3052_v31, 0.0 }
  0xf1   : > { %v1593_v39 = vmul.f32 0.2, %v3052_v31  ;;  %v2989_v40 = vpop.f32.mrb[6].mxu0  ;;  %v3053_v41 = vpop.f32.mrb[6].mxu1  ;;  %2359 = vst.msk [vmem:[%s3416_s26 + $0x10c] sm:$0xf] %vm2291_vm3, %v2848_v32  ;;  %v2846_v42 = vpack.c.bf16 %v1716_v38, %v1716_v38  ;;  %v1657_v43 = vsel %vm1401_vm10, %v2988_v30, %v1529_v34 }
  0xf2   : > { %vm1399_vm12 = vcmp.ge.f32.partialorder %v900_v35, 0.0  ;;  %v1527_v44 = vmul.f32 0.2, %v900_v35  ;;  %v903_v45 = vpop.f32.mrb[7].mxu0  ;;  %v1159_v46 = vpop.f32.mrb[7].mxu1  ;;  %v2787_v47 = vpack.c.bf16 %v1657_v43, %v1657_v43  ;;  %vm1463_vm13 = vcmp.ge.f32.partialorder %v1156_v36, 0.0 }
  0xf3   : > { %2293 = vst.msk [vmem:[%s3416_s26 + $0x4] sm:$0xf] %vm2291_vm3, %v2782_v37  ;;  %v1721_v48 = vsel %vm1465_vm11, %v3052_v31, %v1593_v39  ;;  %v1591_v49 = vmul.f32 0.2, %v1156_v36  ;;  %2357 = vst.msk [vmem:[%s3416_s26 + $0x104] sm:$0xf] %vm2291_vm3, %v2846_v42 }
  0xf4   : > { %v2851_v50 = vpack.c.bf16 %v1721_v48, %v1721_v48  ;;  %v1655_v51 = vsel %vm1399_vm12, %v900_v35, %v1527_v44  ;;  %vm1402_vm14 = vcmp.ge.f32.partialorder %v2989_v40, 0.0  ;;  %v1530_v52 = vmul.f32 0.2, %v2989_v40  ;;  %2298 = vst.msk [vmem:[%s3416_s26 + $0x18] sm:$0xf] %vm2291_vm3, %v2787_v47 }
  0xf5   : > { %v2785_v53 = vpack.c.bf16 %v1655_v51, %v1655_v51  ;;  %v1719_v54 = vsel %vm1463_vm13, %v1156_v36, %v1591_v49  ;;  %vm1466_vm15 = vcmp.ge.f32.partialorder %v3053_v41, 0.0  ;;  %v1594_v55 = vmul.f32 0.2, %v3053_v41 }
  0xf6   : > { %2362 = vst.msk [vmem:[%s3416_s26 + $0x118] sm:$0xf] %vm2291_vm3, %v2851_v50  ;;  %v2849_v56 = vpack.c.bf16 %v1719_v54, %v1719_v54  ;;  %v1658_v57 = vsel %vm1402_vm14, %v2989_v40, %v1530_v52  ;;  %vm1400_vm0 = vcmp.ge.f32.partialorder %v903_v45, 0.0  ;;  %v1528_v58 = vmul.f32 0.2, %v903_v45  ;;  %v2992_v62 = vpop.f32.mrb[8].mxu0 }
  0xf7   : > { %2296 = vst.msk [vmem:[%s3416_s26 + $0x10] sm:$0xf] %vm2291_vm3, %v2785_v53  ;;  %v2788_v59 = vpack.c.bf16 %v1658_v57, %v1658_v57  ;;  %v1722_v60 = vsel %vm1466_vm15, %v3053_v41, %v1594_v55  ;;  %vm1464_vm1 = vcmp.ge.f32.partialorder %v1159_v46, 0.0  ;;  %v1592_v61 = vmul.f32 0.2, %v1159_v46  ;;  %v3056_v63 = vpop.f32.mrb[8].mxu1 }
  0xf8   : > { %2360 = vst.msk [vmem:[%s3416_s26 + $0x110] sm:$0xf] %vm2291_vm3, %v2849_v56  ;;  %v2852_v0 = vpack.c.bf16 %v1722_v60, %v1722_v60  ;;  %v1656_v1 = vsel %vm1400_vm0, %v903_v45, %v1528_v58  ;;  %vm1405_vm2 = vcmp.ge.f32.partialorder %v2992_v62, 0.0  ;;  %v1533_v2 = vmul.f32 0.2, %v2992_v62  ;;  %v916_v3 = vpop.f32.mrb[9].mxu0 }
  0xf9   : > { %v1172_v4 = vpop.f32.mrb[9].mxu1  ;;  %2299 = vst.msk [vmem:[%s3416_s26 + $0x1c] sm:$0xf] %vm2291_vm3, %v2788_v59  ;;  %v2786_v5 = vpack.c.bf16 %v1656_v1, %v1656_v1  ;;  %v1720_v6 = vsel %vm1464_vm1, %v1159_v46, %v1592_v61  ;;  %vm1469_vm4 = vcmp.ge.f32.partialorder %v3056_v63, 0.0  ;;  %v1597_v7 = vmul.f32 0.2, %v3056_v63 }
  0xfa   : > { %v2993_v8 = vpop.f32.mrb[10].mxu0  ;;  %v3057_v9 = vpop.f32.mrb[10].mxu1  ;;  %2363 = vst.msk [vmem:[%s3416_s26 + $0x11c] sm:$0xf] %vm2291_vm3, %v2852_v0  ;;  %v2850_v10 = vpack.c.bf16 %v1720_v6, %v1720_v6  ;;  %v1661_v11 = vsel %vm1405_vm2, %v2992_v62, %v1533_v2  ;;  %vm1403_vm5 = vcmp.ge.f32.partialorder %v916_v3, 0.0  ;;  %vm1467_vm6 = vcmp.ge.f32.partialorder %v1172_v4, 0.0 }
  0xfb   : > { %v1531_v12 = vmul.f32 0.2, %v916_v3  ;;  %v919_v13 = vpop.f32.mrb[11].mxu0  ;;  %v1175_v14 = vpop.f32.mrb[11].mxu1  ;;  %2297 = vst.msk [vmem:[%s3416_s26 + $0x14] sm:$0xf] %vm2291_vm3, %v2786_v5  ;;  %v2791_v15 = vpack.c.bf16 %v1661_v11, %v1661_v11  ;;  %v1725_v16 = vsel %vm1469_vm4, %v3056_v63, %v1597_v7 }
  0xfc   : > { %v1595_v17 = vmul.f32 0.2, %v1172_v4  ;;  %2361 = vst.msk [vmem:[%s3416_s26 + $0x114] sm:$0xf] %vm2291_vm3, %v2850_v10  ;;  %v2855_v18 = vpack.c.bf16 %v1725_v16, %v1725_v16  ;;  %vm1406_vm7 = vcmp.ge.f32.partialorder %v2993_v8, 0.0  ;;  %vm1470_vm8 = vcmp.ge.f32.partialorder %v3057_v9, 0.0 }
  0xfd   : > { %v1659_v19 = vsel %vm1403_vm5, %v916_v3, %v1531_v12  ;;  %v1534_v20 = vmul.f32 0.2, %v2993_v8  ;;  %2302 = vst.msk [vmem:[%s3416_s26 + $0x28] sm:$0xf] %vm2291_vm3, %v2791_v15  ;;  %v1598_v23 = vmul.f32 0.2, %v3057_v9 }
  0xfe   : > { %v2789_v21 = vpack.c.bf16 %v1659_v19, %v1659_v19  ;;  %v1723_v22 = vsel %vm1467_vm6, %v1172_v4, %v1595_v17  ;;  %2366 = vst.msk [vmem:[%s3416_s26 + $0x128] sm:$0xf] %vm2291_vm3, %v2855_v18  ;;  %vm1404_vm9 = vcmp.ge.f32.partialorder %v919_v13, 0.0  ;;  %v1532_v26 = vmul.f32 0.2, %v919_v13  ;;  %v2996_v30 = vpop.f32.mrb[12].mxu0 }
  0xff   : > { %v2853_v24 = vpack.c.bf16 %v1723_v22, %v1723_v22  ;;  %v1662_v25 = vsel %vm1406_vm7, %v2993_v8, %v1534_v20  ;;  %v1726_v28 = vsel %vm1470_vm8, %v3057_v9, %v1598_v23  ;;  %vm1468_vm10 = vcmp.ge.f32.partialorder %v1175_v14, 0.0  ;;  %v3060_v31 = vpop.f32.mrb[12].mxu1  ;;  %v932_v35 = vpop.f32.mrb[13].mxu0 }
 0x100   : > { %2300 = vst.msk [vmem:[%s3416_s26 + $0x20] sm:$0xf] %vm2291_vm3, %v2789_v21  ;;  %v2792_v27 = vpack.c.bf16 %v1662_v25, %v1662_v25  ;;  %v1596_v29 = vmul.f32 0.2, %v1175_v14  ;;  %v2856_v32 = vpack.c.bf16 %v1726_v28, %v1726_v28  ;;  %v1660_v33 = vsel %vm1404_vm9, %v919_v13, %v1532_v26  ;;  %v1188_v36 = vpop.f32.mrb[13].mxu1  ;;  %v2997_v40 = vpop.f32.mrb[14].mxu0 }
 0x101   : > { %2364 = vst.msk [vmem:[%s3416_s26 + $0x120] sm:$0xf] %vm2291_vm3, %v2853_v24  ;;  %vm1409_vm11 = vcmp.ge.f32.partialorder %v2996_v30, 0.0  ;;  %v1537_v34 = vmul.f32 0.2, %v2996_v30  ;;  %v2790_v37 = vpack.c.bf16 %v1660_v33, %v1660_v33  ;;  %vm1473_vm12 = vcmp.ge.f32.partialorder %v3060_v31, 0.0 }
 0x102   : > { %2303 = vst.msk [vmem:[%s3416_s26 + $0x2c] sm:$0xf] %vm2291_vm3, %v2792_v27  ;;  %v1724_v38 = vsel %vm1468_vm10, %v1175_v14, %v1596_v29  ;;  %v1601_v39 = vmul.f32 0.2, %v3060_v31  ;;  %v3061_v41 = vpop.f32.mrb[14].mxu1  ;;  %vm1407_vm13 = vcmp.ge.f32.partialorder %v932_v35, 0.0 }
 0x103   : > { %2367 = vst.msk [vmem:[%s3416_s26 + $0x12c] sm:$0xf] %vm2291_vm3, %v2856_v32  ;;  %v2854_v42 = vpack.c.bf16 %v1724_v38, %v1724_v38  ;;  %v1665_v43 = vsel %vm1409_vm11, %v2996_v30, %v1537_v34  ;;  %v1535_v44 = vmul.f32 0.2, %v932_v35  ;;  %v935_v45 = vpop.f32.mrb[15].mxu0  ;;  %v1191_v46 = vpop.f32.mrb[15].mxu1 }
 0x104   : > { %2301 = vst.msk [vmem:[%s3416_s26 + $0x24] sm:$0xf] %vm2291_vm3, %v2790_v37  ;;  %v2795_v47 = vpack.c.bf16 %v1665_v43, %v1665_v43  ;;  %v1729_v48 = vsel %vm1473_vm12, %v3060_v31, %v1601_v39  ;;  %vm1471_vm14 = vcmp.ge.f32.partialorder %v1188_v36, 0.0  ;;  %v1599_v49 = vmul.f32 0.2, %v1188_v36 }
 0x105   : > { %2365 = vst.msk [vmem:[%s3416_s26 + $0x124] sm:$0xf] %vm2291_vm3, %v2854_v42  ;;  %v2859_v50 = vpack.c.bf16 %v1729_v48, %v1729_v48  ;;  %v1663_v51 = vsel %vm1407_vm13, %v932_v35, %v1535_v44  ;;  %vm1410_vm15 = vcmp.ge.f32.partialorder %v2997_v40, 0.0  ;;  %v1538_v52 = vmul.f32 0.2, %v2997_v40 }
 0x106   : > { %2306 = vst.msk [vmem:[%s3416_s26 + $0x38] sm:$0xf] %vm2291_vm3, %v2795_v47  ;;  %v2793_v53 = vpack.c.bf16 %v1663_v51, %v1663_v51  ;;  %v1727_v54 = vsel %vm1471_vm14, %v1188_v36, %v1599_v49  ;;  %vm1474_vm0 = vcmp.ge.f32.partialorder %v3061_v41, 0.0  ;;  %v1602_v55 = vmul.f32 0.2, %v3061_v41  ;;  %v3000_v62 = vpop.f32.mrb[16].mxu0 }
 0x107   : > { %2370 = vst.msk [vmem:[%s3416_s26 + $0x138] sm:$0xf] %vm2291_vm3, %v2859_v50  ;;  %v2857_v56 = vpack.c.bf16 %v1727_v54, %v1727_v54  ;;  %v1666_v57 = vsel %vm1410_vm15, %v2997_v40, %v1538_v52  ;;  %vm1408_vm1 = vcmp.ge.f32.partialorder %v935_v45, 0.0  ;;  %v1536_v58 = vmul.f32 0.2, %v935_v45  ;;  %v3064_v63 = vpop.f32.mrb[16].mxu1 }
 0x108   : > { %2304 = vst.msk [vmem:[%s3416_s26 + $0x30] sm:$0xf] %vm2291_vm3, %v2793_v53  ;;  %v2796_v59 = vpack.c.bf16 %v1666_v57, %v1666_v57  ;;  %v1730_v60 = vsel %vm1474_vm0, %v3061_v41, %v1602_v55  ;;  %vm1472_vm2 = vcmp.ge.f32.partialorder %v1191_v46, 0.0  ;;  %v1600_v61 = vmul.f32 0.2, %v1191_v46  ;;  %v948_v3 = vpop.f32.mrb[17].mxu0 }
 0x109   : > { %2368 = vst.msk [vmem:[%s3416_s26 + $0x130] sm:$0xf] %vm2291_vm3, %v2857_v56  ;;  %v2860_v0 = vpack.c.bf16 %v1730_v60, %v1730_v60  ;;  %v1664_v1 = vsel %vm1408_vm1, %v935_v45, %v1536_v58  ;;  %vm1413_vm4 = vcmp.ge.f32.partialorder %v3000_v62, 0.0  ;;  %v1541_v2 = vmul.f32 0.2, %v3000_v62  ;;  %v1204_v4 = vpop.f32.mrb[17].mxu1 }
 0x10a   : > { %2307 = vst.msk [vmem:[%s3416_s26 + $0x3c] sm:$0xf] %vm2291_vm3, %v2796_v59  ;;  %v2794_v5 = vpack.c.bf16 %v1664_v1, %v1664_v1  ;;  %v1728_v6 = vsel %vm1472_vm2, %v1191_v46, %v1600_v61  ;;  %vm1477_vm5 = vcmp.ge.f32.partialorder %v3064_v63, 0.0  ;;  %v1605_v7 = vmul.f32 0.2, %v3064_v63  ;;  %v3001_v8 = vpop.f32.mrb[18].mxu0 }
 0x10b   : > { %v3065_v9 = vpop.f32.mrb[18].mxu1  ;;  %2371 = vst.msk [vmem:[%s3416_s26 + $0x13c] sm:$0xf] %vm2291_vm3, %v2860_v0  ;;  %v2858_v10 = vpack.c.bf16 %v1728_v6, %v1728_v6  ;;  %v1669_v11 = vsel %vm1413_vm4, %v3000_v62, %v1541_v2  ;;  %vm1411_vm6 = vcmp.ge.f32.partialorder %v948_v3, 0.0  ;;  %v1539_v12 = vmul.f32 0.2, %v948_v3 }
 0x10c   : > { %v951_v13 = vpop.f32.mrb[19].mxu0  ;;  %v1207_v14 = vpop.f32.mrb[19].mxu1  ;;  %2305 = vst.msk [vmem:[%s3416_s26 + $0x34] sm:$0xf] %vm2291_vm3, %v2794_v5  ;;  %v2799_v15 = vpack.c.bf16 %v1669_v11, %v1669_v11  ;;  %v1733_v16 = vsel %vm1477_vm5, %v3064_v63, %v1605_v7  ;;  %vm1475_vm7 = vcmp.ge.f32.partialorder %v1204_v4, 0.0  ;;  %vm1414_vm8 = vcmp.ge.f32.partialorder %v3001_v8, 0.0 }
 0x10d   : > { %v1603_v17 = vmul.f32 0.2, %v1204_v4  ;;  %2369 = vst.msk [vmem:[%s3416_s26 + $0x134] sm:$0xf] %vm2291_vm3, %v2858_v10  ;;  %v2863_v18 = vpack.c.bf16 %v1733_v16, %v1733_v16  ;;  %v1667_v19 = vsel %vm1411_vm6, %v948_v3, %v1539_v12  ;;  %v1542_v20 = vmul.f32 0.2, %v3001_v8 }
 0x10e   : > { %2310 = vst.msk [vmem:[%s3416_s26 + $0x48] sm:$0xf] %vm2291_vm3, %v2799_v15  ;;  %v2797_v21 = vpack.c.bf16 %v1667_v19, %v1667_v19  ;;  %vm1478_vm9 = vcmp.ge.f32.partialorder %v3065_v9, 0.0  ;;  %v1606_v23 = vmul.f32 0.2, %v3065_v9  ;;  %vm1412_vm10 = vcmp.ge.f32.partialorder %v951_v13, 0.0 }
 0x10f   : > { %v1731_v22 = vsel %vm1475_vm7, %v1204_v4, %v1603_v17  ;;  %2374 = vst.msk [vmem:[%s3416_s26 + $0x148] sm:$0xf] %vm2291_vm3, %v2863_v18  ;;  %v1670_v25 = vsel %vm1414_vm8, %v3001_v8, %v1542_v20  ;;  %v1540_v26 = vmul.f32 0.2, %v951_v13  ;;  %vm1476_vm11 = vcmp.ge.f32.partialorder %v1207_v14, 0.0  ;;  %v3004_v30 = vpop.f32.mrb[20].mxu0 }
 0x110   : > { %v2861_v24 = vpack.c.bf16 %v1731_v22, %v1731_v22  ;;  %2308 = vst.msk [vmem:[%s3416_s26 + $0x40] sm:$0xf] %vm2291_vm3, %v2797_v21  ;;  %v2800_v27 = vpack.c.bf16 %v1670_v25, %v1670_v25  ;;  %v1734_v28 = vsel %vm1478_vm9, %v3065_v9, %v1606_v23  ;;  %v1604_v29 = vmul.f32 0.2, %v1207_v14  ;;  %v3068_v31 = vpop.f32.mrb[20].mxu1  ;;  %v964_v35 = vpop.f32.mrb[21].mxu0 }
 0x111   : > { %v2864_v32 = vpack.c.bf16 %v1734_v28, %v1734_v28  ;;  %v1668_v33 = vsel %vm1412_vm10, %v951_v13, %v1540_v26  ;;  %vm1417_vm12 = vcmp.ge.f32.partialorder %v3004_v30, 0.0  ;;  %v1545_v34 = vmul.f32 0.2, %v3004_v30  ;;  %v1220_v36 = vpop.f32.mrb[21].mxu1  ;;  %v3005_v40 = vpop.f32.mrb[22].mxu0 }
 0x112   : > { %2372 = vst.msk [vmem:[%s3416_s26 + $0x140] sm:$0xf] %vm2291_vm3, %v2861_v24  ;;  %2311 = vst.msk [vmem:[%s3416_s26 + $0x4c] sm:$0xf] %vm2291_vm3, %v2800_v27  ;;  %v2798_v37 = vpack.c.bf16 %v1668_v33, %v1668_v33  ;;  %v1732_v38 = vsel %vm1476_vm11, %v1207_v14, %v1604_v29  ;;  %vm1481_vm13 = vcmp.ge.f32.partialorder %v3068_v31, 0.0  ;;  %v3069_v41 = vpop.f32.mrb[22].mxu1 }
 0x113   : > { %v1609_v39 = vmul.f32 0.2, %v3068_v31  ;;  %2375 = vst.msk [vmem:[%s3416_s26 + $0x14c] sm:$0xf] %vm2291_vm3, %v2864_v32  ;;  %v2862_v42 = vpack.c.bf16 %v1732_v38, %v1732_v38  ;;  %v1673_v43 = vsel %vm1417_vm12, %v3004_v30, %v1545_v34  ;;  %vm1415_vm14 = vcmp.ge.f32.partialorder %v964_v35, 0.0  ;;  %v967_v45 = vpop.f32.mrb[23].mxu0 }
 0x114   : > { %v1543_v44 = vmul.f32 0.2, %v964_v35  ;;  %v1223_v46 = vpop.f32.mrb[23].mxu1  ;;  %2309 = vst.msk [vmem:[%s3416_s26 + $0x44] sm:$0xf] %vm2291_vm3, %v2798_v37  ;;  %v2803_v47 = vpack.c.bf16 %v1673_v43, %v1673_v43  ;;  %vm1479_vm15 = vcmp.ge.f32.partialorder %v1220_v36, 0.0 }
 0x115   : > { %v1737_v48 = vsel %vm1481_vm13, %v3068_v31, %v1609_v39  ;;  %v1607_v49 = vmul.f32 0.2, %v1220_v36  ;;  %2373 = vst.msk [vmem:[%s3416_s26 + $0x144] sm:$0xf] %vm2291_vm3, %v2862_v42  ;;  %vm1418_vm0 = vcmp.ge.f32.partialorder %v3005_v40, 0.0  ;;  %vm1482_vm1 = vcmp.ge.f32.partialorder %v3069_v41, 0.0 }
 0x116   : > { %v2867_v50 = vpack.c.bf16 %v1737_v48, %v1737_v48  ;;  %v1671_v51 = vsel %vm1415_vm14, %v964_v35, %v1543_v44  ;;  %v1546_v52 = vmul.f32 0.2, %v3005_v40  ;;  %2314 = vst.msk [vmem:[%s3416_s26 + $0x58] sm:$0xf] %vm2291_vm3, %v2803_v47  ;;  %v1610_v55 = vmul.f32 0.2, %v3069_v41 }
 0x117   : > { %v2801_v53 = vpack.c.bf16 %v1671_v51, %v1671_v51  ;;  %v1735_v54 = vsel %vm1479_vm15, %v1220_v36, %v1607_v49  ;;  %vm1416_vm2 = vcmp.ge.f32.partialorder %v967_v45, 0.0  ;;  %v1544_v58 = vmul.f32 0.2, %v967_v45  ;;  %v3008_v62 = vpop.f32.mrb[24].mxu0  ;;  %v3072_v63 = vpop.f32.mrb[24].mxu1 }
 0x118   : > { %2378 = vst.msk [vmem:[%s3416_s26 + $0x158] sm:$0xf] %vm2291_vm3, %v2867_v50  ;;  %v2865_v56 = vpack.c.bf16 %v1735_v54, %v1735_v54  ;;  %v1674_v57 = vsel %vm1418_vm0, %v3005_v40, %v1546_v52  ;;  %v1738_v60 = vsel %vm1482_vm1, %v3069_v41, %v1610_v55  ;;  %vm1480_vm4 = vcmp.ge.f32.partialorder %v1223_v46, 0.0  ;;  %v980_v3 = vpop.f32.mrb[25].mxu0  ;;  %v1236_v4 = vpop.f32.mrb[25].mxu1 }
 0x119   : > { %2312 = vst.msk [vmem:[%s3416_s26 + $0x50] sm:$0xf] %vm2291_vm3, %v2801_v53  ;;  %v2804_v59 = vpack.c.bf16 %v1674_v57, %v1674_v57  ;;  %v1608_v61 = vmul.f32 0.2, %v1223_v46  ;;  %v2868_v0 = vpack.c.bf16 %v1738_v60, %v1738_v60  ;;  %v1672_v1 = vsel %vm1416_vm2, %v967_v45, %v1544_v58  ;;  %v3009_v8 = vpop.f32.mrb[26].mxu0  ;;  %v3073_v9 = vpop.f32.mrb[26].mxu1 }
 0x11a   : > { %2376 = vst.msk [vmem:[%s3416_s26 + $0x150] sm:$0xf] %vm2291_vm3, %v2865_v56  ;;  %vm1421_vm5 = vcmp.ge.f32.partialorder %v3008_v62, 0.0  ;;  %v1549_v2 = vmul.f32 0.2, %v3008_v62  ;;  %v2802_v5 = vpack.c.bf16 %v1672_v1, %v1672_v1  ;;  %vm1485_vm6 = vcmp.ge.f32.partialorder %v3072_v63, 0.0 }
 0x11b   : > { %2315 = vst.msk [vmem:[%s3416_s26 + $0x5c] sm:$0xf] %vm2291_vm3, %v2804_v59  ;;  %v1736_v6 = vsel %vm1480_vm4, %v1223_v46, %v1608_v61  ;;  %v1613_v7 = vmul.f32 0.2, %v3072_v63  ;;  %2379 = vst.msk [vmem:[%s3416_s26 + $0x15c] sm:$0xf] %vm2291_vm3, %v2868_v0 }
 0x11c   : > { %v2866_v10 = vpack.c.bf16 %v1736_v6, %v1736_v6  ;;  %v1677_v11 = vsel %vm1421_vm5, %v3008_v62, %v1549_v2  ;;  %vm1419_vm7 = vcmp.ge.f32.partialorder %v980_v3, 0.0  ;;  %v1547_v12 = vmul.f32 0.2, %v980_v3  ;;  %v983_v13 = vpop.f32.mrb[27].mxu0  ;;  %v1239_v14 = vpop.f32.mrb[27].mxu1 }
 0x11d   : > { %2313 = vst.msk [vmem:[%s3416_s26 + $0x54] sm:$0xf] %vm2291_vm3, %v2802_v5  ;;  %v2807_v15 = vpack.c.bf16 %v1677_v11, %v1677_v11  ;;  %v1741_v16 = vsel %vm1485_vm6, %v3072_v63, %v1613_v7  ;;  %vm1483_vm8 = vcmp.ge.f32.partialorder %v1236_v4, 0.0  ;;  %v1611_v17 = vmul.f32 0.2, %v1236_v4 }
 0x11e   : > { %2377 = vst.msk [vmem:[%s3416_s26 + $0x154] sm:$0xf] %vm2291_vm3, %v2866_v10  ;;  %v2871_v18 = vpack.c.bf16 %v1741_v16, %v1741_v16  ;;  %v1675_v19 = vsel %vm1419_vm7, %v980_v3, %v1547_v12  ;;  %vm1422_vm9 = vcmp.ge.f32.partialorder %v3009_v8, 0.0  ;;  %v1550_v20 = vmul.f32 0.2, %v3009_v8  ;;  %v3012_v30 = vpop.f32.mrb[28].mxu0 }
 0x11f   : > { %2318 = vst.msk [vmem:[%s3416_s26 + $0x68] sm:$0xf] %vm2291_vm3, %v2807_v15  ;;  %v2805_v21 = vpack.c.bf16 %v1675_v19, %v1675_v19  ;;  %v1739_v22 = vsel %vm1483_vm8, %v1236_v4, %v1611_v17  ;;  %vm1486_vm10 = vcmp.ge.f32.partialorder %v3073_v9, 0.0  ;;  %v1614_v23 = vmul.f32 0.2, %v3073_v9  ;;  %v3076_v31 = vpop.f32.mrb[28].mxu1 }
 0x120   : > { %2382 = vst.msk [vmem:[%s3416_s26 + $0x168] sm:$0xf] %vm2291_vm3, %v2871_v18  ;;  %v2869_v24 = vpack.c.bf16 %v1739_v22, %v1739_v22  ;;  %v1678_v25 = vsel %vm1422_vm9, %v3009_v8, %v1550_v20  ;;  %vm1420_vm11 = vcmp.ge.f32.partialorder %v983_v13, 0.0  ;;  %v1548_v26 = vmul.f32 0.2, %v983_v13  ;;  %v996_v35 = vpop.f32.mrb[29].mxu0 }
 0x121   : > { %2316 = vst.msk [vmem:[%s3416_s26 + $0x60] sm:$0xf] %vm2291_vm3, %v2805_v21  ;;  %v2808_v27 = vpack.c.bf16 %v1678_v25, %v1678_v25  ;;  %v1742_v28 = vsel %vm1486_vm10, %v3073_v9, %v1614_v23  ;;  %vm1484_vm12 = vcmp.ge.f32.partialorder %v1239_v14, 0.0  ;;  %v1612_v29 = vmul.f32 0.2, %v1239_v14  ;;  %v1252_v36 = vpop.f32.mrb[29].mxu1 }
 0x122   : > { %2380 = vst.msk [vmem:[%s3416_s26 + $0x160] sm:$0xf] %vm2291_vm3, %v2869_v24  ;;  %v2872_v32 = vpack.c.bf16 %v1742_v28, %v1742_v28  ;;  %v1676_v33 = vsel %vm1420_vm11, %v983_v13, %v1548_v26  ;;  %vm1425_vm13 = vcmp.ge.f32.partialorder %v3012_v30, 0.0  ;;  %v1553_v34 = vmul.f32 0.2, %v3012_v30  ;;  %v3013_v40 = vpop.f32.mrb[30].mxu0 }
 0x123   : > { %2319 = vst.msk [vmem:[%s3416_s26 + $0x6c] sm:$0xf] %vm2291_vm3, %v2808_v27  ;;  %v2806_v37 = vpack.c.bf16 %v1676_v33, %v1676_v33  ;;  %v1740_v38 = vsel %vm1484_vm12, %v1239_v14, %v1612_v29  ;;  %vm1489_vm14 = vcmp.ge.f32.partialorder %v3076_v31, 0.0  ;;  %v1617_v39 = vmul.f32 0.2, %v3076_v31  ;;  %v3077_v41 = vpop.f32.mrb[30].mxu1 }
 0x124   : > { %2383 = vst.msk [vmem:[%s3416_s26 + $0x16c] sm:$0xf] %vm2291_vm3, %v2872_v32  ;;  %v2870_v42 = vpack.c.bf16 %v1740_v38, %v1740_v38  ;;  %v1681_v43 = vsel %vm1425_vm13, %v3012_v30, %v1553_v34  ;;  %vm1423_vm15 = vcmp.ge.f32.partialorder %v996_v35, 0.0  ;;  %v1551_v44 = vmul.f32 0.2, %v996_v35  ;;  %v999_v45 = vpop.f32.mrb[31].mxu0 }
 0x125   : > { %v1255_v46 = vpop.f32.mrb[31].mxu1  ;;  %2317 = vst.msk [vmem:[%s3416_s26 + $0x64] sm:$0xf] %vm2291_vm3, %v2806_v37  ;;  %v2811_v47 = vpack.c.bf16 %v1681_v43, %v1681_v43  ;;  %v1745_v48 = vsel %vm1489_vm14, %v3076_v31, %v1617_v39  ;;  %vm1487_vm0 = vcmp.ge.f32.partialorder %v1252_v36, 0.0  ;;  %v1615_v49 = vmul.f32 0.2, %v1252_v36 }
 0x126   : > { %2381 = vst.msk [vmem:[%s3416_s26 + $0x164] sm:$0xf] %vm2291_vm3, %v2870_v42  ;;  %v2875_v50 = vpack.c.bf16 %v1745_v48, %v1745_v48  ;;  %v1679_v51 = vsel %vm1423_vm15, %v996_v35, %v1551_v44  ;;  %vm1426_vm1 = vcmp.ge.f32.partialorder %v3013_v40, 0.0  ;;  %v1554_v52 = vmul.f32 0.2, %v3013_v40  ;;  %v3016_v62 = vpop.f32.mrb[32].mxu0 }
 0x127   : > { %2322 = vst.msk [vmem:[%s3416_s26 + $0x78] sm:$0xf] %vm2291_vm3, %v2811_v47  ;;  %v2809_v53 = vpack.c.bf16 %v1679_v51, %v1679_v51  ;;  %v1743_v54 = vsel %vm1487_vm0, %v1252_v36, %v1615_v49  ;;  %vm1490_vm2 = vcmp.ge.f32.partialorder %v3077_v41, 0.0  ;;  %v1618_v55 = vmul.f32 0.2, %v3077_v41  ;;  %v3080_v63 = vpop.f32.mrb[32].mxu1 }
 0x128   : > { %2386 = vst.msk [vmem:[%s3416_s26 + $0x178] sm:$0xf] %vm2291_vm3, %v2875_v50  ;;  %v2873_v56 = vpack.c.bf16 %v1743_v54, %v1743_v54  ;;  %v1682_v57 = vsel %vm1426_vm1, %v3013_v40, %v1554_v52  ;;  %vm1424_vm4 = vcmp.ge.f32.partialorder %v999_v45, 0.0  ;;  %v1552_v58 = vmul.f32 0.2, %v999_v45  ;;  %v1012_v3 = vpop.f32.mrb[33].mxu0 }
 0x129   : > { %2320 = vst.msk [vmem:[%s3416_s26 + $0x70] sm:$0xf] %vm2291_vm3, %v2809_v53  ;;  %v2812_v59 = vpack.c.bf16 %v1682_v57, %v1682_v57  ;;  %v1746_v60 = vsel %vm1490_vm2, %v3077_v41, %v1618_v55  ;;  %vm1488_vm5 = vcmp.ge.f32.partialorder %v1255_v46, 0.0  ;;  %v1616_v61 = vmul.f32 0.2, %v1255_v46  ;;  %v1268_v4 = vpop.f32.mrb[33].mxu1 }
 0x12a   : > { %2384 = vst.msk [vmem:[%s3416_s26 + $0x170] sm:$0xf] %vm2291_vm3, %v2873_v56  ;;  %v2876_v0 = vpack.c.bf16 %v1746_v60, %v1746_v60  ;;  %v1680_v1 = vsel %vm1424_vm4, %v999_v45, %v1552_v58  ;;  %vm1429_vm6 = vcmp.ge.f32.partialorder %v3016_v62, 0.0  ;;  %v1557_v2 = vmul.f32 0.2, %v3016_v62  ;;  %v3017_v8 = vpop.f32.mrb[34].mxu0 }
 0x12b   : > { %2323 = vst.msk [vmem:[%s3416_s26 + $0x7c] sm:$0xf] %vm2291_vm3, %v2812_v59  ;;  %v2810_v5 = vpack.c.bf16 %v1680_v1, %v1680_v1  ;;  %v1744_v6 = vsel %vm1488_vm5, %v1255_v46, %v1616_v61  ;;  %vm1493_vm7 = vcmp.ge.f32.partialorder %v3080_v63, 0.0  ;;  %v1621_v7 = vmul.f32 0.2, %v3080_v63  ;;  %v3081_v9 = vpop.f32.mrb[34].mxu1 }
 0x12c   : > { %2387 = vst.msk [vmem:[%s3416_s26 + $0x17c] sm:$0xf] %vm2291_vm3, %v2876_v0  ;;  %v2874_v10 = vpack.c.bf16 %v1744_v6, %v1744_v6  ;;  %v1685_v11 = vsel %vm1429_vm6, %v3016_v62, %v1557_v2  ;;  %vm1427_vm8 = vcmp.ge.f32.partialorder %v1012_v3, 0.0  ;;  %v1555_v12 = vmul.f32 0.2, %v1012_v3  ;;  %v1015_v13 = vpop.f32.mrb[35].mxu0 }
 0x12d   : > { %v1271_v14 = vpop.f32.mrb[35].mxu1  ;;  %2321 = vst.msk [vmem:[%s3416_s26 + $0x74] sm:$0xf] %vm2291_vm3, %v2810_v5  ;;  %v2815_v15 = vpack.c.bf16 %v1685_v11, %v1685_v11  ;;  %v1749_v16 = vsel %vm1493_vm7, %v3080_v63, %v1621_v7  ;;  %vm1491_vm9 = vcmp.ge.f32.partialorder %v1268_v4, 0.0  ;;  %v1619_v17 = vmul.f32 0.2, %v1268_v4 }
 0x12e   : > { %2385 = vst.msk [vmem:[%s3416_s26 + $0x174] sm:$0xf] %vm2291_vm3, %v2874_v10  ;;  %v2879_v18 = vpack.c.bf16 %v1749_v16, %v1749_v16  ;;  %v1683_v19 = vsel %vm1427_vm8, %v1012_v3, %v1555_v12  ;;  %vm1430_vm10 = vcmp.ge.f32.partialorder %v3017_v8, 0.0  ;;  %v1558_v20 = vmul.f32 0.2, %v3017_v8  ;;  %v3020_v30 = vpop.f32.mrb[36].mxu0 }
 0x12f   : > { %2326 = vst.msk [vmem:[%s3416_s26 + $0x88] sm:$0xf] %vm2291_vm3, %v2815_v15  ;;  %v2813_v21 = vpack.c.bf16 %v1683_v19, %v1683_v19  ;;  %v1747_v22 = vsel %vm1491_vm9, %v1268_v4, %v1619_v17  ;;  %vm1494_vm11 = vcmp.ge.f32.partialorder %v3081_v9, 0.0  ;;  %v1622_v23 = vmul.f32 0.2, %v3081_v9  ;;  %v3084_v31 = vpop.f32.mrb[36].mxu1 }
 0x130   : > { %2390 = vst.msk [vmem:[%s3416_s26 + $0x188] sm:$0xf] %vm2291_vm3, %v2879_v18  ;;  %v2877_v24 = vpack.c.bf16 %v1747_v22, %v1747_v22  ;;  %v1686_v25 = vsel %vm1430_vm10, %v3017_v8, %v1558_v20  ;;  %vm1428_vm12 = vcmp.ge.f32.partialorder %v1015_v13, 0.0  ;;  %v1556_v26 = vmul.f32 0.2, %v1015_v13  ;;  %v1028_v35 = vpop.f32.mrb[37].mxu0 }
 0x131   : > { %2324 = vst.msk [vmem:[%s3416_s26 + $0x80] sm:$0xf] %vm2291_vm3, %v2813_v21  ;;  %v2816_v27 = vpack.c.bf16 %v1686_v25, %v1686_v25  ;;  %v1750_v28 = vsel %vm1494_vm11, %v3081_v9, %v1622_v23  ;;  %vm1492_vm13 = vcmp.ge.f32.partialorder %v1271_v14, 0.0  ;;  %v1620_v29 = vmul.f32 0.2, %v1271_v14  ;;  %v1284_v36 = vpop.f32.mrb[37].mxu1 }
 0x132   : > { %2388 = vst.msk [vmem:[%s3416_s26 + $0x180] sm:$0xf] %vm2291_vm3, %v2877_v24  ;;  %v2880_v32 = vpack.c.bf16 %v1750_v28, %v1750_v28  ;;  %v1684_v33 = vsel %vm1428_vm12, %v1015_v13, %v1556_v26  ;;  %vm1433_vm14 = vcmp.ge.f32.partialorder %v3020_v30, 0.0  ;;  %v1561_v34 = vmul.f32 0.2, %v3020_v30  ;;  %v3021_v40 = vpop.f32.mrb[38].mxu0 }
 0x133   : > { %2327 = vst.msk [vmem:[%s3416_s26 + $0x8c] sm:$0xf] %vm2291_vm3, %v2816_v27  ;;  %v2814_v37 = vpack.c.bf16 %v1684_v33, %v1684_v33  ;;  %v1748_v38 = vsel %vm1492_vm13, %v1271_v14, %v1620_v29  ;;  %vm1497_vm15 = vcmp.ge.f32.partialorder %v3084_v31, 0.0  ;;  %v1625_v39 = vmul.f32 0.2, %v3084_v31  ;;  %v3085_v41 = vpop.f32.mrb[38].mxu1 }
 0x134   : > { %2391 = vst.msk [vmem:[%s3416_s26 + $0x18c] sm:$0xf] %vm2291_vm3, %v2880_v32  ;;  %v2878_v42 = vpack.c.bf16 %v1748_v38, %v1748_v38  ;;  %v1689_v43 = vsel %vm1433_vm14, %v3020_v30, %v1561_v34  ;;  %vm1431_vm0 = vcmp.ge.f32.partialorder %v1028_v35, 0.0  ;;  %v1559_v44 = vmul.f32 0.2, %v1028_v35  ;;  %v1031_v45 = vpop.f32.mrb[39].mxu0 }
 0x135   : > { %v1287_v46 = vpop.f32.mrb[39].mxu1  ;;  %2325 = vst.msk [vmem:[%s3416_s26 + $0x84] sm:$0xf] %vm2291_vm3, %v2814_v37  ;;  %v2819_v47 = vpack.c.bf16 %v1689_v43, %v1689_v43  ;;  %v1753_v48 = vsel %vm1497_vm15, %v3084_v31, %v1625_v39  ;;  %vm1495_vm1 = vcmp.ge.f32.partialorder %v1284_v36, 0.0  ;;  %v1623_v49 = vmul.f32 0.2, %v1284_v36 }
 0x136   : > { %2389 = vst.msk [vmem:[%s3416_s26 + $0x184] sm:$0xf] %vm2291_vm3, %v2878_v42  ;;  %v2883_v50 = vpack.c.bf16 %v1753_v48, %v1753_v48  ;;  %v1687_v51 = vsel %vm1431_vm0, %v1028_v35, %v1559_v44  ;;  %vm1434_vm2 = vcmp.ge.f32.partialorder %v3021_v40, 0.0  ;;  %v1562_v52 = vmul.f32 0.2, %v3021_v40  ;;  %v3024_v62 = vpop.f32.mrb[40].mxu0 }
 0x137   : > { %2330 = vst.msk [vmem:[%s3416_s26 + $0x98] sm:$0xf] %vm2291_vm3, %v2819_v47  ;;  %v2817_v53 = vpack.c.bf16 %v1687_v51, %v1687_v51  ;;  %v1751_v54 = vsel %vm1495_vm1, %v1284_v36, %v1623_v49  ;;  %vm1498_vm4 = vcmp.ge.f32.partialorder %v3085_v41, 0.0  ;;  %v1626_v55 = vmul.f32 0.2, %v3085_v41  ;;  %v3088_v63 = vpop.f32.mrb[40].mxu1 }
 0x138   : > { %2394 = vst.msk [vmem:[%s3416_s26 + $0x198] sm:$0xf] %vm2291_vm3, %v2883_v50  ;;  %v2881_v56 = vpack.c.bf16 %v1751_v54, %v1751_v54  ;;  %v1690_v57 = vsel %vm1434_vm2, %v3021_v40, %v1562_v52  ;;  %vm1432_vm5 = vcmp.ge.f32.partialorder %v1031_v45, 0.0  ;;  %v1560_v58 = vmul.f32 0.2, %v1031_v45  ;;  %v1044_v3 = vpop.f32.mrb[41].mxu0 }
 0x139   : > { %2328 = vst.msk [vmem:[%s3416_s26 + $0x90] sm:$0xf] %vm2291_vm3, %v2817_v53  ;;  %v2820_v59 = vpack.c.bf16 %v1690_v57, %v1690_v57  ;;  %v1754_v60 = vsel %vm1498_vm4, %v3085_v41, %v1626_v55  ;;  %vm1496_vm6 = vcmp.ge.f32.partialorder %v1287_v46, 0.0  ;;  %v1624_v61 = vmul.f32 0.2, %v1287_v46  ;;  %v1300_v4 = vpop.f32.mrb[41].mxu1 }
 0x13a   : > { %2392 = vst.msk [vmem:[%s3416_s26 + $0x190] sm:$0xf] %vm2291_vm3, %v2881_v56  ;;  %v2884_v0 = vpack.c.bf16 %v1754_v60, %v1754_v60  ;;  %v1688_v1 = vsel %vm1432_vm5, %v1031_v45, %v1560_v58  ;;  %vm1437_vm7 = vcmp.ge.f32.partialorder %v3024_v62, 0.0  ;;  %v1565_v2 = vmul.f32 0.2, %v3024_v62  ;;  %v3025_v8 = vpop.f32.mrb[42].mxu0 }
 0x13b   : > { %2331 = vst.msk [vmem:[%s3416_s26 + $0x9c] sm:$0xf] %vm2291_vm3, %v2820_v59  ;;  %v2818_v5 = vpack.c.bf16 %v1688_v1, %v1688_v1  ;;  %v1752_v6 = vsel %vm1496_vm6, %v1287_v46, %v1624_v61  ;;  %vm1501_vm8 = vcmp.ge.f32.partialorder %v3088_v63, 0.0  ;;  %v1629_v7 = vmul.f32 0.2, %v3088_v63  ;;  %v3089_v9 = vpop.f32.mrb[42].mxu1 }
 0x13c   : > { %2395 = vst.msk [vmem:[%s3416_s26 + $0x19c] sm:$0xf] %vm2291_vm3, %v2884_v0  ;;  %v2882_v10 = vpack.c.bf16 %v1752_v6, %v1752_v6  ;;  %v1693_v11 = vsel %vm1437_vm7, %v3024_v62, %v1565_v2  ;;  %vm1435_vm9 = vcmp.ge.f32.partialorder %v1044_v3, 0.0  ;;  %v1563_v12 = vmul.f32 0.2, %v1044_v3  ;;  %v1047_v13 = vpop.f32.mrb[43].mxu0 }
 0x13d   : > { %v1303_v14 = vpop.f32.mrb[43].mxu1  ;;  %2329 = vst.msk [vmem:[%s3416_s26 + $0x94] sm:$0xf] %vm2291_vm3, %v2818_v5  ;;  %v2823_v15 = vpack.c.bf16 %v1693_v11, %v1693_v11  ;;  %v1757_v16 = vsel %vm1501_vm8, %v3088_v63, %v1629_v7  ;;  %vm1499_vm10 = vcmp.ge.f32.partialorder %v1300_v4, 0.0  ;;  %v1627_v17 = vmul.f32 0.2, %v1300_v4 }
 0x13e   : > { %2393 = vst.msk [vmem:[%s3416_s26 + $0x194] sm:$0xf] %vm2291_vm3, %v2882_v10  ;;  %v2887_v18 = vpack.c.bf16 %v1757_v16, %v1757_v16  ;;  %v1691_v19 = vsel %vm1435_vm9, %v1044_v3, %v1563_v12  ;;  %vm1438_vm11 = vcmp.ge.f32.partialorder %v3025_v8, 0.0  ;;  %v1566_v20 = vmul.f32 0.2, %v3025_v8  ;;  %v3028_v30 = vpop.f32.mrb[44].mxu0 }
 0x13f   : > { %2334 = vst.msk [vmem:[%s3416_s26 + $0xa8] sm:$0xf] %vm2291_vm3, %v2823_v15  ;;  %v2821_v21 = vpack.c.bf16 %v1691_v19, %v1691_v19  ;;  %v1755_v22 = vsel %vm1499_vm10, %v1300_v4, %v1627_v17  ;;  %vm1502_vm12 = vcmp.ge.f32.partialorder %v3089_v9, 0.0  ;;  %v1630_v23 = vmul.f32 0.2, %v3089_v9  ;;  %v3092_v31 = vpop.f32.mrb[44].mxu1 }
 0x140   : > { %2398 = vst.msk [vmem:[%s3416_s26 + $0x1a8] sm:$0xf] %vm2291_vm3, %v2887_v18  ;;  %v2885_v24 = vpack.c.bf16 %v1755_v22, %v1755_v22  ;;  %v1694_v25 = vsel %vm1438_vm11, %v3025_v8, %v1566_v20  ;;  %vm1436_vm13 = vcmp.ge.f32.partialorder %v1047_v13, 0.0  ;;  %v1564_v26 = vmul.f32 0.2, %v1047_v13  ;;  %v1060_v35 = vpop.f32.mrb[45].mxu0 }
 0x141   : > { %2332 = vst.msk [vmem:[%s3416_s26 + $0xa0] sm:$0xf] %vm2291_vm3, %v2821_v21  ;;  %v2824_v27 = vpack.c.bf16 %v1694_v25, %v1694_v25  ;;  %v1758_v28 = vsel %vm1502_vm12, %v3089_v9, %v1630_v23  ;;  %vm1500_vm14 = vcmp.ge.f32.partialorder %v1303_v14, 0.0  ;;  %v1628_v29 = vmul.f32 0.2, %v1303_v14  ;;  %v1316_v36 = vpop.f32.mrb[45].mxu1 }
 0x142   : > { %2396 = vst.msk [vmem:[%s3416_s26 + $0x1a0] sm:$0xf] %vm2291_vm3, %v2885_v24  ;;  %v2888_v32 = vpack.c.bf16 %v1758_v28, %v1758_v28  ;;  %v1692_v33 = vsel %vm1436_vm13, %v1047_v13, %v1564_v26  ;;  %vm1441_vm15 = vcmp.ge.f32.partialorder %v3028_v30, 0.0  ;;  %v1569_v34 = vmul.f32 0.2, %v3028_v30  ;;  %v3029_v40 = vpop.f32.mrb[46].mxu0 }
 0x143   : > { %2335 = vst.msk [vmem:[%s3416_s26 + $0xac] sm:$0xf] %vm2291_vm3, %v2824_v27  ;;  %v2822_v37 = vpack.c.bf16 %v1692_v33, %v1692_v33  ;;  %v1756_v38 = vsel %vm1500_vm14, %v1303_v14, %v1628_v29  ;;  %vm1505_vm0 = vcmp.ge.f32.partialorder %v3092_v31, 0.0  ;;  %v1633_v39 = vmul.f32 0.2, %v3092_v31  ;;  %v3093_v41 = vpop.f32.mrb[46].mxu1 }
 0x144   : > { %2399 = vst.msk [vmem:[%s3416_s26 + $0x1ac] sm:$0xf] %vm2291_vm3, %v2888_v32  ;;  %v2886_v42 = vpack.c.bf16 %v1756_v38, %v1756_v38  ;;  %v1697_v43 = vsel %vm1441_vm15, %v3028_v30, %v1569_v34  ;;  %vm1439_vm1 = vcmp.ge.f32.partialorder %v1060_v35, 0.0  ;;  %v1567_v44 = vmul.f32 0.2, %v1060_v35  ;;  %v1063_v45 = vpop.f32.mrb[47].mxu0 }
 0x145   : > { %v1319_v46 = vpop.f32.mrb[47].mxu1  ;;  %2333 = vst.msk [vmem:[%s3416_s26 + $0xa4] sm:$0xf] %vm2291_vm3, %v2822_v37  ;;  %v2827_v47 = vpack.c.bf16 %v1697_v43, %v1697_v43  ;;  %v1761_v48 = vsel %vm1505_vm0, %v3092_v31, %v1633_v39  ;;  %vm1503_vm2 = vcmp.ge.f32.partialorder %v1316_v36, 0.0  ;;  %v1631_v49 = vmul.f32 0.2, %v1316_v36 }
 0x146   : > { %2397 = vst.msk [vmem:[%s3416_s26 + $0x1a4] sm:$0xf] %vm2291_vm3, %v2886_v42  ;;  %v2891_v50 = vpack.c.bf16 %v1761_v48, %v1761_v48  ;;  %v1695_v51 = vsel %vm1439_vm1, %v1060_v35, %v1567_v44  ;;  %vm1442_vm4 = vcmp.ge.f32.partialorder %v3029_v40, 0.0  ;;  %v1570_v52 = vmul.f32 0.2, %v3029_v40  ;;  %v3032_v62 = vpop.f32.mrb[48].mxu0 }
 0x147   : > { %2338 = vst.msk [vmem:[%s3416_s26 + $0xb8] sm:$0xf] %vm2291_vm3, %v2827_v47  ;;  %v2825_v53 = vpack.c.bf16 %v1695_v51, %v1695_v51  ;;  %v1759_v54 = vsel %vm1503_vm2, %v1316_v36, %v1631_v49  ;;  %vm1506_vm5 = vcmp.ge.f32.partialorder %v3093_v41, 0.0  ;;  %v1634_v55 = vmul.f32 0.2, %v3093_v41  ;;  %v3096_v63 = vpop.f32.mrb[48].mxu1 }
 0x148   : > { %2402 = vst.msk [vmem:[%s3416_s26 + $0x1b8] sm:$0xf] %vm2291_vm3, %v2891_v50  ;;  %v2889_v56 = vpack.c.bf16 %v1759_v54, %v1759_v54  ;;  %v1698_v57 = vsel %vm1442_vm4, %v3029_v40, %v1570_v52  ;;  %vm1440_vm6 = vcmp.ge.f32.partialorder %v1063_v45, 0.0  ;;  %v1568_v58 = vmul.f32 0.2, %v1063_v45  ;;  %v1076_v3 = vpop.f32.mrb[49].mxu0 }
 0x149   : > { %2336 = vst.msk [vmem:[%s3416_s26 + $0xb0] sm:$0xf] %vm2291_vm3, %v2825_v53  ;;  %v2828_v59 = vpack.c.bf16 %v1698_v57, %v1698_v57  ;;  %v1762_v60 = vsel %vm1506_vm5, %v3093_v41, %v1634_v55  ;;  %vm1504_vm7 = vcmp.ge.f32.partialorder %v1319_v46, 0.0  ;;  %v1632_v61 = vmul.f32 0.2, %v1319_v46  ;;  %v1332_v4 = vpop.f32.mrb[49].mxu1 }
 0x14a   : > { %2400 = vst.msk [vmem:[%s3416_s26 + $0x1b0] sm:$0xf] %vm2291_vm3, %v2889_v56  ;;  %v2892_v0 = vpack.c.bf16 %v1762_v60, %v1762_v60  ;;  %v1696_v1 = vsel %vm1440_vm6, %v1063_v45, %v1568_v58  ;;  %vm1445_vm8 = vcmp.ge.f32.partialorder %v3032_v62, 0.0  ;;  %v1573_v2 = vmul.f32 0.2, %v3032_v62  ;;  %v3033_v8 = vpop.f32.mrb[50].mxu0 }
 0x14b   : > { %2339 = vst.msk [vmem:[%s3416_s26 + $0xbc] sm:$0xf] %vm2291_vm3, %v2828_v59  ;;  %v2826_v5 = vpack.c.bf16 %v1696_v1, %v1696_v1  ;;  %v1760_v6 = vsel %vm1504_vm7, %v1319_v46, %v1632_v61  ;;  %vm1509_vm9 = vcmp.ge.f32.partialorder %v3096_v63, 0.0  ;;  %v1637_v7 = vmul.f32 0.2, %v3096_v63  ;;  %v3097_v9 = vpop.f32.mrb[50].mxu1 }
 0x14c   : > { %2403 = vst.msk [vmem:[%s3416_s26 + $0x1bc] sm:$0xf] %vm2291_vm3, %v2892_v0  ;;  %v2890_v10 = vpack.c.bf16 %v1760_v6, %v1760_v6  ;;  %v1701_v11 = vsel %vm1445_vm8, %v3032_v62, %v1573_v2  ;;  %vm1443_vm10 = vcmp.ge.f32.partialorder %v1076_v3, 0.0  ;;  %v1571_v12 = vmul.f32 0.2, %v1076_v3  ;;  %v1079_v13 = vpop.f32.mrb[51].mxu0 }
 0x14d   : > { %v1335_v14 = vpop.f32.mrb[51].mxu1  ;;  %2337 = vst.msk [vmem:[%s3416_s26 + $0xb4] sm:$0xf] %vm2291_vm3, %v2826_v5  ;;  %v2831_v15 = vpack.c.bf16 %v1701_v11, %v1701_v11  ;;  %v1765_v16 = vsel %vm1509_vm9, %v3096_v63, %v1637_v7  ;;  %vm1507_vm11 = vcmp.ge.f32.partialorder %v1332_v4, 0.0  ;;  %v1635_v17 = vmul.f32 0.2, %v1332_v4 }
 0x14e   : > { %2401 = vst.msk [vmem:[%s3416_s26 + $0x1b4] sm:$0xf] %vm2291_vm3, %v2890_v10  ;;  %v2895_v18 = vpack.c.bf16 %v1765_v16, %v1765_v16  ;;  %v1699_v19 = vsel %vm1443_vm10, %v1076_v3, %v1571_v12  ;;  %vm1446_vm12 = vcmp.ge.f32.partialorder %v3033_v8, 0.0  ;;  %v1574_v20 = vmul.f32 0.2, %v3033_v8  ;;  %v3036_v30 = vpop.f32.mrb[52].mxu0 }
 0x14f   : > { %2342 = vst.msk [vmem:[%s3416_s26 + $0xc8] sm:$0xf] %vm2291_vm3, %v2831_v15  ;;  %v2829_v21 = vpack.c.bf16 %v1699_v19, %v1699_v19  ;;  %v1763_v22 = vsel %vm1507_vm11, %v1332_v4, %v1635_v17  ;;  %vm1510_vm13 = vcmp.ge.f32.partialorder %v3097_v9, 0.0  ;;  %v1638_v23 = vmul.f32 0.2, %v3097_v9  ;;  %v3100_v31 = vpop.f32.mrb[52].mxu1 }
 0x150   : > { %2406 = vst.msk [vmem:[%s3416_s26 + $0x1c8] sm:$0xf] %vm2291_vm3, %v2895_v18  ;;  %v2893_v24 = vpack.c.bf16 %v1763_v22, %v1763_v22  ;;  %v1702_v25 = vsel %vm1446_vm12, %v3033_v8, %v1574_v20  ;;  %vm1444_vm14 = vcmp.ge.f32.partialorder %v1079_v13, 0.0  ;;  %v1572_v26 = vmul.f32 0.2, %v1079_v13  ;;  %v1092_v35 = vpop.f32.mrb[53].mxu0 }
 0x151   : > { %2340 = vst.msk [vmem:[%s3416_s26 + $0xc0] sm:$0xf] %vm2291_vm3, %v2829_v21  ;;  %v2832_v27 = vpack.c.bf16 %v1702_v25, %v1702_v25  ;;  %v1766_v28 = vsel %vm1510_vm13, %v3097_v9, %v1638_v23  ;;  %vm1508_vm15 = vcmp.ge.f32.partialorder %v1335_v14, 0.0  ;;  %v1636_v29 = vmul.f32 0.2, %v1335_v14  ;;  %v1348_v36 = vpop.f32.mrb[53].mxu1 }
 0x152   : > { %2404 = vst.msk [vmem:[%s3416_s26 + $0x1c0] sm:$0xf] %vm2291_vm3, %v2893_v24  ;;  %v2896_v32 = vpack.c.bf16 %v1766_v28, %v1766_v28  ;;  %v1700_v33 = vsel %vm1444_vm14, %v1079_v13, %v1572_v26  ;;  %vm1449_vm0 = vcmp.ge.f32.partialorder %v3036_v30, 0.0  ;;  %v1577_v34 = vmul.f32 0.2, %v3036_v30  ;;  %v3037_v40 = vpop.f32.mrb[54].mxu0 }
 0x153   : > { %2343 = vst.msk [vmem:[%s3416_s26 + $0xcc] sm:$0xf] %vm2291_vm3, %v2832_v27  ;;  %v2830_v37 = vpack.c.bf16 %v1700_v33, %v1700_v33  ;;  %v1764_v38 = vsel %vm1508_vm15, %v1335_v14, %v1636_v29  ;;  %vm1513_vm1 = vcmp.ge.f32.partialorder %v3100_v31, 0.0  ;;  %v1641_v39 = vmul.f32 0.2, %v3100_v31  ;;  %v3101_v41 = vpop.f32.mrb[54].mxu1 }
 0x154   : > { %2407 = vst.msk [vmem:[%s3416_s26 + $0x1cc] sm:$0xf] %vm2291_vm3, %v2896_v32  ;;  %v2894_v42 = vpack.c.bf16 %v1764_v38, %v1764_v38  ;;  %v1705_v43 = vsel %vm1449_vm0, %v3036_v30, %v1577_v34  ;;  %vm1447_vm2 = vcmp.ge.f32.partialorder %v1092_v35, 0.0  ;;  %v1575_v44 = vmul.f32 0.2, %v1092_v35  ;;  %v1095_v45 = vpop.f32.mrb[55].mxu0 }
 0x155   : > { %v1351_v46 = vpop.f32.mrb[55].mxu1  ;;  %2341 = vst.msk [vmem:[%s3416_s26 + $0xc4] sm:$0xf] %vm2291_vm3, %v2830_v37  ;;  %v2835_v47 = vpack.c.bf16 %v1705_v43, %v1705_v43  ;;  %v1769_v48 = vsel %vm1513_vm1, %v3100_v31, %v1641_v39  ;;  %vm1511_vm4 = vcmp.ge.f32.partialorder %v1348_v36, 0.0  ;;  %v1639_v49 = vmul.f32 0.2, %v1348_v36 }
 0x156   : > { %2405 = vst.msk [vmem:[%s3416_s26 + $0x1c4] sm:$0xf] %vm2291_vm3, %v2894_v42  ;;  %v2899_v50 = vpack.c.bf16 %v1769_v48, %v1769_v48  ;;  %v1703_v51 = vsel %vm1447_vm2, %v1092_v35, %v1575_v44  ;;  %vm1450_vm5 = vcmp.ge.f32.partialorder %v3037_v40, 0.0  ;;  %v1578_v52 = vmul.f32 0.2, %v3037_v40  ;;  %v3040_v62 = vpop.f32.mrb[56].mxu0 }
 0x157   : > { %2346 = vst.msk [vmem:[%s3416_s26 + $0xd8] sm:$0xf] %vm2291_vm3, %v2835_v47  ;;  %v2833_v53 = vpack.c.bf16 %v1703_v51, %v1703_v51  ;;  %v1767_v54 = vsel %vm1511_vm4, %v1348_v36, %v1639_v49  ;;  %vm1514_vm6 = vcmp.ge.f32.partialorder %v3101_v41, 0.0  ;;  %v1642_v55 = vmul.f32 0.2, %v3101_v41  ;;  %v3104_v63 = vpop.f32.mrb[56].mxu1 }
 0x158   : > { %2410 = vst.msk [vmem:[%s3416_s26 + $0x1d8] sm:$0xf] %vm2291_vm3, %v2899_v50  ;;  %v2897_v56 = vpack.c.bf16 %v1767_v54, %v1767_v54  ;;  %v1706_v57 = vsel %vm1450_vm5, %v3037_v40, %v1578_v52  ;;  %vm1448_vm7 = vcmp.ge.f32.partialorder %v1095_v45, 0.0  ;;  %v1576_v58 = vmul.f32 0.2, %v1095_v45  ;;  %v1108_v3 = vpop.f32.mrb[57].mxu0 }
 0x159   : > { %2344 = vst.msk [vmem:[%s3416_s26 + $0xd0] sm:$0xf] %vm2291_vm3, %v2833_v53  ;;  %v2836_v59 = vpack.c.bf16 %v1706_v57, %v1706_v57  ;;  %v1770_v60 = vsel %vm1514_vm6, %v3101_v41, %v1642_v55  ;;  %vm1512_vm8 = vcmp.ge.f32.partialorder %v1351_v46, 0.0  ;;  %v1640_v61 = vmul.f32 0.2, %v1351_v46  ;;  %v1364_v4 = vpop.f32.mrb[57].mxu1 }
 0x15a   : > { %2408 = vst.msk [vmem:[%s3416_s26 + $0x1d0] sm:$0xf] %vm2291_vm3, %v2897_v56  ;;  %v2900_v0 = vpack.c.bf16 %v1770_v60, %v1770_v60  ;;  %v1704_v1 = vsel %vm1448_vm7, %v1095_v45, %v1576_v58  ;;  %vm1453_vm9 = vcmp.ge.f32.partialorder %v3040_v62, 0.0  ;;  %v1581_v2 = vmul.f32 0.2, %v3040_v62  ;;  %v3041_v8 = vpop.f32.mrb[58].mxu0 }
 0x15b   : > { %2347 = vst.msk [vmem:[%s3416_s26 + $0xdc] sm:$0xf] %vm2291_vm3, %v2836_v59  ;;  %v2834_v5 = vpack.c.bf16 %v1704_v1, %v1704_v1  ;;  %v1768_v6 = vsel %vm1512_vm8, %v1351_v46, %v1640_v61  ;;  %vm1517_vm10 = vcmp.ge.f32.partialorder %v3104_v63, 0.0  ;;  %v1645_v7 = vmul.f32 0.2, %v3104_v63  ;;  %v3105_v9 = vpop.f32.mrb[58].mxu1 }
 0x15c   : > { %2411 = vst.msk [vmem:[%s3416_s26 + $0x1dc] sm:$0xf] %vm2291_vm3, %v2900_v0  ;;  %v2898_v10 = vpack.c.bf16 %v1768_v6, %v1768_v6  ;;  %v1709_v11 = vsel %vm1453_vm9, %v3040_v62, %v1581_v2  ;;  %vm1451_vm11 = vcmp.ge.f32.partialorder %v1108_v3, 0.0  ;;  %v1579_v12 = vmul.f32 0.2, %v1108_v3  ;;  %v1111_v13 = vpop.f32.mrb[59].mxu0 }
 0x15d   : > { %v1367_v14 = vpop.f32.mrb[59].mxu1  ;;  %2345 = vst.msk [vmem:[%s3416_s26 + $0xd4] sm:$0xf] %vm2291_vm3, %v2834_v5  ;;  %v2839_v15 = vpack.c.bf16 %v1709_v11, %v1709_v11  ;;  %v1773_v16 = vsel %vm1517_vm10, %v3104_v63, %v1645_v7  ;;  %vm1515_vm12 = vcmp.ge.f32.partialorder %v1364_v4, 0.0  ;;  %v1643_v17 = vmul.f32 0.2, %v1364_v4 }
 0x15e   : > { %2409 = vst.msk [vmem:[%s3416_s26 + $0x1d4] sm:$0xf] %vm2291_vm3, %v2898_v10  ;;  %v2903_v18 = vpack.c.bf16 %v1773_v16, %v1773_v16  ;;  %v1707_v19 = vsel %vm1451_vm11, %v1108_v3, %v1579_v12  ;;  %vm1454_vm13 = vcmp.ge.f32.partialorder %v3041_v8, 0.0  ;;  %v1582_v20 = vmul.f32 0.2, %v3041_v8  ;;  %v3044_v30 = vpop.f32.mrb[60].mxu0 }
 0x15f   : > { %2350 = vst.msk [vmem:[%s3416_s26 + $0xe8] sm:$0xf] %vm2291_vm3, %v2839_v15  ;;  %v2837_v21 = vpack.c.bf16 %v1707_v19, %v1707_v19  ;;  %v1771_v22 = vsel %vm1515_vm12, %v1364_v4, %v1643_v17  ;;  %vm1518_vm14 = vcmp.ge.f32.partialorder %v3105_v9, 0.0  ;;  %v1646_v23 = vmul.f32 0.2, %v3105_v9  ;;  %v3108_v31 = vpop.f32.mrb[60].mxu1 }
 0x160   : > { %2414 = vst.msk [vmem:[%s3416_s26 + $0x1e8] sm:$0xf] %vm2291_vm3, %v2903_v18  ;;  %v2901_v24 = vpack.c.bf16 %v1771_v22, %v1771_v22  ;;  %v1710_v25 = vsel %vm1454_vm13, %v3041_v8, %v1582_v20  ;;  %vm1452_vm15 = vcmp.ge.f32.partialorder %v1111_v13, 0.0  ;;  %v1580_v26 = vmul.f32 0.2, %v1111_v13  ;;  %v1124_v35 = vpop.f32.mrb[61].mxu0 }
 0x161   : > { %2348 = vst.msk [vmem:[%s3416_s26 + $0xe0] sm:$0xf] %vm2291_vm3, %v2837_v21  ;;  %v2840_v27 = vpack.c.bf16 %v1710_v25, %v1710_v25  ;;  %v1774_v28 = vsel %vm1518_vm14, %v3105_v9, %v1646_v23  ;;  %vm1516_vm0 = vcmp.ge.f32.partialorder %v1367_v14, 0.0  ;;  %v1644_v29 = vmul.f32 0.2, %v1367_v14  ;;  %v1380_v36 = vpop.f32.mrb[61].mxu1 }
 0x162   : > { %2412 = vst.msk [vmem:[%s3416_s26 + $0x1e0] sm:$0xf] %vm2291_vm3, %v2901_v24  ;;  %v2904_v32 = vpack.c.bf16 %v1774_v28, %v1774_v28  ;;  %v1708_v33 = vsel %vm1452_vm15, %v1111_v13, %v1580_v26  ;;  %vm1457_vm1 = vcmp.ge.f32.partialorder %v3044_v30, 0.0  ;;  %v1585_v34 = vmul.f32 0.2, %v3044_v30  ;;  %v3045_v40 = vpop.f32.mrb[62].mxu0 }
 0x163   : > { %2351 = vst.msk [vmem:[%s3416_s26 + $0xec] sm:$0xf] %vm2291_vm3, %v2840_v27  ;;  %v2838_v37 = vpack.c.bf16 %v1708_v33, %v1708_v33  ;;  %v1772_v38 = vsel %vm1516_vm0, %v1367_v14, %v1644_v29  ;;  %vm1521_vm2 = vcmp.ge.f32.partialorder %v3108_v31, 0.0  ;;  %v1649_v39 = vmul.f32 0.2, %v3108_v31  ;;  %v3109_v41 = vpop.f32.mrb[62].mxu1 }
 0x164   : > { %2415 = vst.msk [vmem:[%s3416_s26 + $0x1ec] sm:$0xf] %vm2291_vm3, %v2904_v32  ;;  %v2902_v42 = vpack.c.bf16 %v1772_v38, %v1772_v38  ;;  %v1713_v43 = vsel %vm1457_vm1, %v3044_v30, %v1585_v34  ;;  %vm1455_vm4 = vcmp.ge.f32.partialorder %v1124_v35, 0.0  ;;  %v1583_v44 = vmul.f32 0.2, %v1124_v35  ;;  %v1127_v45 = vpop.f32.mrb[63].mxu0 }
 0x165   : > { %v1383_v46 = vpop.f32.mrb[63].mxu1  ;;  %2349 = vst.msk [vmem:[%s3416_s26 + $0xe4] sm:$0xf] %vm2291_vm3, %v2838_v37  ;;  %v2843_v47 = vpack.c.bf16 %v1713_v43, %v1713_v43  ;;  %v1777_v48 = vsel %vm1521_vm2, %v3108_v31, %v1649_v39  ;;  %vm1519_vm5 = vcmp.ge.f32.partialorder %v1380_v36, 0.0  ;;  %v1647_v49 = vmul.f32 0.2, %v1380_v36 }
 0x166   : > { %2413 = vst.msk [vmem:[%s3416_s26 + $0x1e4] sm:$0xf] %vm2291_vm3, %v2902_v42  ;;  %v2907_v50 = vpack.c.bf16 %v1777_v48, %v1777_v48  ;;  %v1711_v51 = vsel %vm1455_vm4, %v1124_v35, %v1583_v44  ;;  %vm1458_vm6 = vcmp.ge.f32.partialorder %v3045_v40, 0.0  ;;  %v1586_v52 = vmul.f32 0.2, %v3045_v40 }
 0x167   : > { %2354 = vst.msk [vmem:[%s3416_s26 + $0xf8] sm:$0xf] %vm2291_vm3, %v2843_v47  ;;  %v2841_v53 = vpack.c.bf16 %v1711_v51, %v1711_v51  ;;  %v1775_v54 = vsel %vm1519_vm5, %v1380_v36, %v1647_v49  ;;  %vm1522_vm7 = vcmp.ge.f32.partialorder %v3109_v41, 0.0  ;;  %v1650_v55 = vmul.f32 0.2, %v3109_v41 }
 0x168   : > { %2418 = vst.msk [vmem:[%s3416_s26 + $0x1f8] sm:$0xf] %vm2291_vm3, %v2907_v50  ;;  %v2905_v56 = vpack.c.bf16 %v1775_v54, %v1775_v54  ;;  %v1714_v57 = vsel %vm1458_vm6, %v3045_v40, %v1586_v52  ;;  %vm1456_vm8 = vcmp.ge.f32.partialorder %v1127_v45, 0.0  ;;  %v1584_v58 = vmul.f32 0.2, %v1127_v45 }
 0x169   : > { %2352 = vst.msk [vmem:[%s3416_s26 + $0xf0] sm:$0xf] %vm2291_vm3, %v2841_v53  ;;  %v2844_v59 = vpack.c.bf16 %v1714_v57, %v1714_v57  ;;  %v1778_v60 = vsel %vm1522_vm7, %v3109_v41, %v1650_v55  ;;  %vm1520_vm9 = vcmp.ge.f32.partialorder %v1383_v46, 0.0  ;;  %v1648_v61 = vmul.f32 0.2, %v1383_v46 }
 0x16a   : > { %2416 = vst.msk [vmem:[%s3416_s26 + $0x1f0] sm:$0xf] %vm2291_vm3, %v2905_v56  ;;  %v2908_v62 = vpack.c.bf16 %v1778_v60, %v1778_v60  ;;  %v1712_v63 = vsel %vm1456_vm8, %v1127_v45, %v1584_v58 }
 0x16b   : > { %2355 = vst.msk [vmem:[%s3416_s26 + $0xfc] sm:$0xf] %vm2291_vm3, %v2844_v59  ;;  %v2842_v0 = vpack.c.bf16 %v1712_v63, %v1712_v63  ;;  %v1776_v1 = vsel %vm1520_vm9, %v1383_v46, %v1648_v61 }
 0x16c   : > { %2419 = vst.msk [vmem:[%s3416_s26 + $0x1fc] sm:$0xf] %vm2291_vm3, %v2908_v62  ;;  %v2906_v2 = vpack.c.bf16 %v1776_v1, %v1776_v1 }
 0x16d   : > { %2353 = vst.msk [vmem:[%s3416_s26 + $0xf4] sm:$0xf] %vm2291_vm3, %v2842_v0 }
 0x16e   : > { %2417 = vst.msk [vmem:[%s3416_s26 + $0x1f4] sm:$0xf] %vm2291_vm3, %v2906_v2 }
 0x16f PF: > { %s12_s11 = sadd.s32 1, %s3229_s11   ;;  %s3687_s9 = smov %s3225_s10 }
 0x170   : > { %p9_p5 = scmp.ge.s32.totalorder %s12_s11, 4   ;;  %s3688_s10 = smov %s3690_s12 }
 0x172   :  { %11 = sbr.rel (!%p9_p5) target bundleno = 2 (0x2), region = 61 }

// kernel: forward.6
= control target key start
LH: loop header
LB: loop body
LE: loop exit
PB: predicated region body
PF: predicated region fallthrough
CT: control target
= control target key end

     0   :  { %s3398_s9 = smov 0   ;;  %s3400_s10 = smov 0   ;;  %s3874_s0 = inlined_call_operand.vmem [shape: bf16[512,1024], index: 0, kind: input, shape index: {}]   ;;  %s3875_s1 = inlined_call_operand.vmem [shape: bf16[1024,128], index: 1, kind: input, shape index: {}]   ;;  %s3876_s2 = inlined_call_operand.vmem [shape: bf16[512,128], index: 2, kind: output, shape index: {}]  }
   0x1   :  { %s3402_s11 = smov 0  }
   0x2 LB: > { %s21_s12 = sadd.s32 1, %s3377_s10  ;;  %p2463_p0 = scmp.ge.s32.totalorder %s3381_s11, 1  ;;  %s3381_s11 = sphi %s3402_s11, %s12_s11   ;;  %s3377_s10 = sphi %s3400_s10, %s3878_s10   ;;  %s3373_s9 = sphi %s3398_s9, %s3877_s9  }
   0x3   : > { %p22_p1 = scmp.ge.s32.totalorder %s21_s12, 2  ;;  %p137_p2 = scmp.lt.s32.totalorder %s3381_s11, 3 }
   0x5   : > { %s3880_s12 = smov (%p22_p1, %s21_s12), 0  ;;  %p138_p3 = pnand %p2463_p0, %p137_p2 }
   0x6   : > { %v3295_v0 = vld [vmem:[%s3875_s1 + $0x40] sm:$0xff] (!%p138_p3)   ;;  %v3299_v4 = vld [vmem:[%s3875_s1 + $0x48] sm:$0xff] (!%p138_p3)   ;;  %v3303_v8 = vld [vmem:[%s3875_s1 + $0x50] sm:$0xff] (!%p138_p3)   ;;  %s2464_s21 = sshll.u32 (!%p138_p3), %s3373_s9, 5 }
   0x7   : > { %141 = sbr.rel (%p138_p3) target bundleno = 515 (0x203), region = 28  ;;  %v3296_v1 = vld [vmem:[%s3875_s1 + $0xc0] sm:$0xff] (!%p138_p3)   ;;  %2823 = vmatprep.subr.bf16.mxu0 (!%p138_p3), %v3295_v0  ;;  %v3300_v5 = vld [vmem:[%s3875_s1 + $0xc8] sm:$0xff] (!%p138_p3)   ;;  %v3304_v9 = vld [vmem:[%s3875_s1 + $0xd0] sm:$0xff] (!%p138_p3)   ;;  %p168_p4 = scmp.lt.s32.totalorder (!%p138_p3), %s2464_s21, 63 }
   0x8   : > { %v3297_v2 = vld [vmem:[%s3875_s1] sm:$0xff] (!%p138_p3)   ;;  %2935 = vmatprep.subr.bf16.mxu1 (!%p138_p3), %v3296_v1  ;;  %v3301_v6 = vld [vmem:[%s3875_s1 + $0x8] sm:$0xff] (!%p138_p3)   ;;  %v3305_v10 = vld [vmem:[%s3875_s1 + $0x10] sm:$0xff] (!%p138_p3)  }
   0x9   : > { %v3298_v3 = vld [vmem:[%s3875_s1 + $0x80] sm:$0xff] (!%p138_p3)   ;;  %2824 = vmatpush3.bf16.msra.mxu0 (!%p138_p3), %v3297_v2  ;;  %v3302_v7 = vld [vmem:[%s3875_s1 + $0x88] sm:$0xff] (!%p138_p3)   ;;  %v3306_v11 = vld [vmem:[%s3875_s1 + $0x90] sm:$0xff] (!%p138_p3)  }
   0xa   : > { %2936 = vmatpush3.bf16.msra.mxu1 (!%p138_p3), %v3298_v3  ;;  %2825 = vmatprep.subr.bf16.mxu0 (!%p138_p3), %v3299_v4  ;;  %v3307_v12 = vld [vmem:[%s3875_s1 + $0x58] sm:$0xff] (!%p138_p3)   ;;  %v3311_v16 = vld [vmem:[%s3875_s1 + $0x60] sm:$0xff] (!%p138_p3)   ;;  %v3315_v20 = vld [vmem:[%s3875_s1 + $0x68] sm:$0xff] (!%p138_p3)  }
   0xb   : > { %2937 = vmatprep.subr.bf16.mxu1 (!%p138_p3), %v3300_v5  ;;  %v3308_v13 = vld [vmem:[%s3875_s1 + $0xd8] sm:$0xff] (!%p138_p3)   ;;  %v3312_v17 = vld [vmem:[%s3875_s1 + $0xe0] sm:$0xff] (!%p138_p3)   ;;  %v3316_v21 = vld [vmem:[%s3875_s1 + $0xe8] sm:$0xff] (!%p138_p3)  }
   0xc   : > { %v3309_v14 = vld [vmem:[%s3875_s1 + $0x18] sm:$0xff] (!%p138_p3)   ;;  %v3313_v18 = vld [vmem:[%s3875_s1 + $0x20] sm:$0xff] (!%p138_p3)   ;;  %v3317_v22 = vld [vmem:[%s3875_s1 + $0x28] sm:$0xff] (!%p138_p3)  }
   0xd   : > { %2826 = vmatpush3.bf16.msra.mxu0 (!%p138_p3), %v3301_v6  ;;  %v3310_v15 = vld [vmem:[%s3875_s1 + $0x98] sm:$0xff] (!%p138_p3)   ;;  %v3314_v19 = vld [vmem:[%s3875_s1 + $0xa0] sm:$0xff] (!%p138_p3)   ;;  %v3318_v23 = vld [vmem:[%s3875_s1 + $0xa8] sm:$0xff] (!%p138_p3)  }
   0xe   : > { %2938 = vmatpush3.bf16.msra.mxu1 %v3302_v7  ;;  %2827 = vmatprep.subr.bf16.mxu0 %v3303_v8  ;;  %s3882_s21 = smov (!%p168_p4, %s2464_s21), 63  ;;  %v3319_v24 = vld [vmem:[%s3875_s1 + $0x70] sm:$0xff]   ;;  %v3323_v28 = vld [vmem:[%s3875_s1 + $0x78] sm:$0xff]   ;;  %v3327_v40 = vld [vmem:[%s3875_s1 + $0x140] sm:$0xff]  }
   0xf   : > { %2939 = vmatprep.subr.bf16.mxu1 %v3304_v9  ;;  %v3320_v25 = vld [vmem:[%s3875_s1 + $0xf0] sm:$0xff]   ;;  %s2695_s19 = sshll.u32 %s3882_s21, 5  ;;  %v3324_v29 = vld [vmem:[%s3875_s1 + $0xf8] sm:$0xff]   ;;  %v3328_v41 = vld [vmem:[%s3875_s1 + $0x100] sm:$0xff]  }
  0x10   : > { %v3321_v26 = vld [vmem:[%s3875_s1 + $0x30] sm:$0xff]   ;;  %s3515_s29 = scalar_lea.vmem %s3874_s0, %s2695_s19  ;;  %v3325_v30 = vld [vmem:[%s3875_s1 + $0x38] sm:$0xff]   ;;  %v3329_v42 = vld [vmem:[%s3875_s1 + $0x1c0] sm:$0xff]  }
  0x11   : > { %2828 = vmatpush3.bf16.msra.mxu0 %v3305_v10  ;;  %v3322_v27 = vld [vmem:[%s3875_s1 + $0xb0] sm:$0xff]   ;;  %v3326_v31 = vld [vmem:[%s3875_s1 + $0xb8] sm:$0xff]   ;;  %v188_v32 = vld [vmem:[%s3515_s29] sm:$0xff] }
  0x12   : > { %2940 = vmatpush3.bf16.msra.mxu1 %v3306_v11  ;;  %2829 = vmatprep.subr.bf16.mxu0 %v3307_v12  ;;  %v192_v33 = vld [vmem:[%s3515_s29 + $0x20] sm:$0xff]  ;;  %v189_v34 = vld [vmem:[%s3515_s29 + $0x8] sm:$0xff]  ;;  %v3335_v2 = vld [vmem:[%s3875_s1 + $0x150] sm:$0xff]  }
  0x13   : > { %2941 = vmatprep.subr.bf16.mxu1 %v3308_v13  ;;  %v2469_v35 = vcombine.low %v188_v32, %v192_v33  ;;  %v2470_v36 = vcombine.high %v188_v32, %v192_v33  ;;  %v193_v37 = vld [vmem:[%s3515_s29 + $0x28] sm:$0xff]  ;;  %v3330_v43 = vld [vmem:[%s3875_s1 + $0x180] sm:$0xff]   ;;  %v3336_v4 = vld [vmem:[%s3875_s1 + $0x110] sm:$0xff]  }
  0x14   : > { %v2471_v38 = vcombine.low %v189_v34, %v193_v37  ;;  %v2472_v39 = vcombine.high %v189_v34, %v193_v37  ;;  %v196_v44 = vld [vmem:[%s3515_s29 + $0x40] sm:$0xff]  ;;  %v197_v47 = vld [vmem:[%s3515_s29 + $0x48] sm:$0xff]  ;;  %v3337_v7 = vld [vmem:[%s3875_s1 + $0x1d0] sm:$0xff]  }
  0x15   : > { %2830 = vmatpush3.bf16.msra.mxu0 %v3309_v14  ;;  %1500 = vmatprep.mubr.bf16.mxu0 %v2470_v36  ;;  %v200_v45 = vld [vmem:[%s3515_s29 + $0x60] sm:$0xff]  ;;  %v201_v48 = vld [vmem:[%s3515_s29 + $0x68] sm:$0xff]  ;;  %v3338_v9 = vld [vmem:[%s3875_s1 + $0x190] sm:$0xff]  }
  0x16   : > { %2942 = vmatpush3.bf16.msra.mxu1 %v3310_v15  ;;  %2831 = vmatprep.subr.bf16.mxu0 %v3311_v16  ;;  %v2478_v46 = vcombine.high %v196_v44, %v200_v45  ;;  %v204_v49 = vld [vmem:[%s3515_s29 + $0x80] sm:$0xff]  ;;  %v2480_v50 = vcombine.high %v197_v47, %v201_v48  ;;  %v205_v52 = vld [vmem:[%s3515_s29 + $0x88] sm:$0xff]  ;;  %v2477_v54 = vcombine.low %v196_v44, %v200_v45  ;;  %v3339_v14 = vld [vmem:[%s3875_s1 + $0x158] sm:$0xff]  }
  0x17   : > { %2943 = vmatprep.subr.bf16.mxu1 %v3312_v17  ;;  %1661 = vmatprep.mubr.bf16.mxu1 %v2472_v39  ;;  %v208_v51 = vld [vmem:[%s3515_s29 + $0xa0] sm:$0xff]  ;;  %v209_v53 = vld [vmem:[%s3515_s29 + $0xa8] sm:$0xff]  ;;  %v2479_v56 = vcombine.low %v197_v47, %v201_v48  ;;  %v3340_v15 = vld [vmem:[%s3875_s1 + $0x118] sm:$0xff]  }
  0x18   : > { %v3331_v55 = vld [vmem:[%s3875_s1 + $0x148] sm:$0xff]   ;;  %v2486_v57 = vcombine.high %v204_v49, %v208_v51  ;;  %v2488_v59 = vcombine.high %v205_v52, %v209_v53  ;;  %v212_v62 = vld [vmem:[%s3515_s29 + $0xc0] sm:$0xff]  ;;  %v2485_v3 = vcombine.low %v204_v49, %v208_v51  ;;  %v2487_v5 = vcombine.low %v205_v52, %v209_v53  ;;  %v3341_v17 = vld [vmem:[%s3875_s1 + $0x1d8] sm:$0xff]  }
  0x19   : > { %2832 = vmatpush3.bf16.msra.mxu0 %v3313_v18  ;;  %v3332_v58 = vld [vmem:[%s3875_s1 + $0x108] sm:$0xff]   ;;  %v216_v63 = vld [vmem:[%s3515_s29 + $0xe0] sm:$0xff]  ;;  %v3352_v47 = vld [vmem:[%s3875_s1 + $0x130] sm:$0xff]  }
  0x1a   : > { %2944 = vmatpush3.bf16.msra.mxu1 %v3314_v19  ;;  %2833 = vmatprep.subr.bf16.mxu0 %v3315_v20  ;;  %v3333_v60 = vld [vmem:[%s3875_s1 + $0x1c8] sm:$0xff]   ;;  %v2494_v6 = vcombine.high %v212_v62, %v216_v63  ;;  %v220_v10 = vld [vmem:[%s3515_s29 + $0x100] sm:$0xff]  ;;  %v2493_v16 = vcombine.low %v212_v62, %v216_v63  ;;  %v3342_v20 = vld [vmem:[%s3875_s1 + $0x198] sm:$0xff]  }
  0x1b   : > { %2945 = vmatprep.subr.bf16.mxu1 %v3316_v21  ;;  %v3334_v61 = vld [vmem:[%s3875_s1 + $0x188] sm:$0xff]   ;;  %v224_v11 = vld [vmem:[%s3515_s29 + $0x120] sm:$0xff]  ;;  %v3353_v48 = vld [vmem:[%s3875_s1 + $0x1f0] sm:$0xff]  }
  0x1c   : > { %v213_v0 = vld [vmem:[%s3515_s29 + $0xc8] sm:$0xff]  ;;  %v2502_v19 = vcombine.high %v220_v10, %v224_v11  ;;  %v3354_v49 = vld [vmem:[%s3875_s1 + $0x1b0] sm:$0xff]   ;;  %v248_v51 = vld [vmem:[%s3515_s29 + $0x1e0] sm:$0xff] }
  0x1d   : > { %2834 = vmatpush3.bf16.msra.mxu0 %v3317_v22  ;;  %v217_v1 = vld [vmem:[%s3515_s29 + $0xe8] sm:$0xff]  ;;  %v228_v22 = vld [vmem:[%s3515_s29 + $0x140] sm:$0xff] }
  0x1e   : > { %2946 = vmatpush3.bf16.msra.mxu1 %v3318_v23  ;;  %2835 = vmatprep.subr.bf16.mxu0 %v3319_v24  ;;  %v2496_v8 = vcombine.high %v213_v0, %v217_v1  ;;  %v221_v12 = vld [vmem:[%s3515_s29 + $0x108] sm:$0xff]  ;;  %v2495_v18 = vcombine.low %v213_v0, %v217_v1  ;;  %v232_v23 = vld [vmem:[%s3515_s29 + $0x160] sm:$0xff] }
  0x1f   : > { %2947 = vmatprep.subr.bf16.mxu1 %v3320_v25  ;;  %v225_v13 = vld [vmem:[%s3515_s29 + $0x128] sm:$0xff]  ;;  %v3343_v24 = vld [vmem:[%s3875_s1 + $0x160] sm:$0xff]   ;;  %v2510_v32 = vcombine.high %v228_v22, %v232_v23 }
  0x20   : > { %v2504_v21 = vcombine.high %v221_v12, %v225_v13  ;;  %v229_v25 = vld [vmem:[%s3515_s29 + $0x148] sm:$0xff]  ;;  %v252_v62 = vld [vmem:[%s3515_s29 + $0x200] sm:$0xff] }
  0x21   : > { %2836 = vmatpush3.bf16.msra.mxu0 %v3321_v26  ;;  %v233_v26 = vld [vmem:[%s3515_s29 + $0x168] sm:$0xff]  ;;  %v256_v63 = vld [vmem:[%s3515_s29 + $0x220] sm:$0xff] }
  0x22   : > { %2948 = vmatpush3.bf16.msra.mxu1 %v3322_v27  ;;  %2837 = vmatprep.subr.bf16.mxu0 %v3323_v28  ;;  %v3344_v27 = vld [vmem:[%s3875_s1 + $0x120] sm:$0xff]   ;;  %v2512_v33 = vcombine.high %v229_v25, %v233_v26  ;;  %v3347_v34 = vld [vmem:[%s3875_s1 + $0x168] sm:$0xff]  }
  0x23   : > { %2949 = vmatprep.subr.bf16.mxu1 %v3324_v29  ;;  %v3345_v28 = vld [vmem:[%s3875_s1 + $0x1e0] sm:$0xff]   ;;  %v3348_v36 = vld [vmem:[%s3875_s1 + $0x128] sm:$0xff]  }
  0x24   : > { %v3346_v29 = vld [vmem:[%s3875_s1 + $0x1a0] sm:$0xff]   ;;  %v3349_v37 = vld [vmem:[%s3875_s1 + $0x1e8] sm:$0xff]  }
  0x25   : > { %2838 = vmatpush3.bf16.msra.mxu0 %v3325_v30  ;;  %v2501_v30 = vcombine.low %v220_v10, %v224_v11  ;;  %v3350_v39 = vld [vmem:[%s3875_s1 + $0x1a8] sm:$0xff]   ;;  %v2533_v10 = vcombine.low %v252_v62, %v256_v63 }
  0x26   : > { %2950 = vmatpush3.bf16.msra.mxu1 %v3326_v31  ;;  %3047 = vmatprep.subr.bf16.mxu0 %v3327_v40  ;;  %v2503_v31 = vcombine.low %v221_v12, %v225_v13  ;;  %v237_v40 = vld [vmem:[%s3515_s29 + $0x188] sm:$0xff] }
  0x27   : > { %3159 = vmatprep.subr.bf16.mxu1 %v3329_v42  ;;  %v2509_v42 = vcombine.low %v228_v22, %v232_v23  ;;  %v245_v52 = vld [vmem:[%s3515_s29 + $0x1c8] sm:$0xff]  ;;  %v276_v22 = vld [vmem:[%s3515_s29 + $0x2c0] sm:$0xff] }
  0x28   : > { %1501 = vmatmul.mubr.bf16.vlgmr.msra.gmra.mrb[0].mxu0 %v2469_v35  ;;  %v236_v35 = vld [vmem:[%s3515_s29 + $0x180] sm:$0xff]  ;;  %v249_v53 = vld [vmem:[%s3515_s29 + $0x1e8] sm:$0xff] }
  0x29   : > { %1662 = vmatmul.mubr.bf16.vlgmr.msra.gmra.mrb[0].mxu1 %v2471_v38  ;;  %3048 = vmatpush3.bf16.msra.mxu0 %v3328_v41  ;;  %v240_v38 = vld [vmem:[%s3515_s29 + $0x1a0] sm:$0xff]  ;;  %v241_v41 = vld [vmem:[%s3515_s29 + $0x1a8] sm:$0xff] }
  0x2a   : > { %3160 = vmatpush3.bf16.msra.mxu1 %v3330_v43  ;;  %1508 = vmatprep.mubr.bf16.mxu0 %v2478_v46  ;;  %v2511_v43 = vcombine.low %v229_v25, %v233_v26  ;;  %v2518_v44 = vcombine.high %v236_v35, %v240_v38  ;;  %v2520_v45 = vcombine.high %v237_v40, %v241_v41  ;;  %v3351_v46 = vld [vmem:[%s3875_s1 + $0x170] sm:$0xff]   ;;  %v253_v0 = vld [vmem:[%s3515_s29 + $0x208] sm:$0xff]  ;;  %v280_v23 = vld [vmem:[%s3515_s29 + $0x2e0] sm:$0xff] }
  0x2b   : > { %1669 = vmatprep.mubr.bf16.mxu1 %v2480_v50  ;;  %3049 = vmatprep.subr.bf16.mxu0 %v3331_v55  ;;  %v244_v50 = vld [vmem:[%s3515_s29 + $0x1c0] sm:$0xff]  ;;  %v3355_v55 = vld [vmem:[%s3875_s1 + $0x178] sm:$0xff]   ;;  %v257_v1 = vld [vmem:[%s3515_s29 + $0x228] sm:$0xff] }
  0x2c   : > { %3161 = vmatprep.subr.bf16.mxu1 %v3333_v60  ;;  %v3357_v60 = vld [vmem:[%s3875_s1 + $0x1f8] sm:$0xff]   ;;  %v2535_v11 = vcombine.low %v253_v0, %v257_v1  ;;  %v281_v25 = vld [vmem:[%s3515_s29 + $0x2e8] sm:$0xff] }
  0x2d   : > { %3050 = vmatpush3.bf16.msra.mxu0 %v3332_v58  ;;  %v3356_v58 = vld [vmem:[%s3875_s1 + $0x138] sm:$0xff]  }
  0x2e   : > { %3162 = vmatpush3.bf16.msra.mxu1 %v3334_v61  ;;  %3051 = vmatprep.subr.bf16.mxu0 %v3335_v2  ;;  %v3358_v61 = vld [vmem:[%s3875_s1 + $0x1b8] sm:$0xff]   ;;  %v2525_v2 = vcombine.low %v244_v50, %v248_v51 }
  0x2f   : > { %3163 = vmatprep.subr.bf16.mxu1 %v3337_v7  ;;  %v264_v7 = vld [vmem:[%s3515_s29 + $0x260] sm:$0xff] }
  0x30   : > { %1509 = vmatmul.mubr.bf16.gmra.mrb[4].mxu0 %v2477_v54  ;;  %v2517_v54 = vcombine.low %v236_v35, %v240_v38  ;;  %v292_v38 = vld [vmem:[%s3515_s29 + $0x340] sm:$0xff] }
  0x31   : > { %1670 = vmatmul.mubr.bf16.gmra.mrb[4].mxu1 %v2479_v56  ;;  %1516 = vmatprep.mubr.bf16.mxu0 %v2486_v57  ;;  %v2519_v56 = vcombine.low %v237_v40, %v241_v41  ;;  %v2526_v57 = vcombine.high %v244_v50, %v248_v51  ;;  %v293_v40 = vld [vmem:[%s3515_s29 + $0x348] sm:$0xff] }
  0x32   : > { %1677 = vmatprep.mubr.bf16.mxu1 %v2488_v59  ;;  %3052 = vmatpush3.bf16.msra.mxu0 %v3336_v4  ;;  %v2528_v59 = vcombine.high %v245_v52, %v249_v53  ;;  %v2534_v4 = vcombine.high %v252_v62, %v256_v63  ;;  %v297_v41 = vld [vmem:[%s3515_s29 + $0x368] sm:$0xff]  ;;  %v190_v62 = vld [vmem:[%s3515_s29 + $0x10] sm:$0xff] }
  0x33   : > { %3164 = vmatpush3.bf16.msra.mxu1 %v3338_v9  ;;  %3053 = vmatprep.subr.bf16.mxu0 %v3339_v14  ;;  %v265_v9 = vld [vmem:[%s3515_s29 + $0x268] sm:$0xff]  ;;  %v268_v14 = vld [vmem:[%s3515_s29 + $0x280] sm:$0xff]  ;;  %v2575_v51 = vcombine.low %v293_v40, %v297_v41  ;;  %v194_v63 = vld [vmem:[%s3515_s29 + $0x30] sm:$0xff] }
  0x34   : > { %3165 = vmatprep.subr.bf16.mxu1 %v3341_v17  ;;  %v273_v17 = vld [vmem:[%s3515_s29 + $0x2a8] sm:$0xff] }
  0x36   : > { %3054 = vmatpush3.bf16.msra.mxu0 %v3340_v15  ;;  %v272_v15 = vld [vmem:[%s3515_s29 + $0x2a0] sm:$0xff] }
  0x37   : > { %3166 = vmatpush3.bf16.msra.mxu1 %v3342_v20  ;;  %3055 = vmatprep.subr.bf16.mxu0 %v3343_v24  ;;  %v2550_v20 = vcombine.high %v268_v14, %v272_v15  ;;  %v277_v24 = vld [vmem:[%s3515_s29 + $0x2c8] sm:$0xff]  ;;  %v2549_v26 = vcombine.low %v268_v14, %v272_v15  ;;  %v206_v14 = vld [vmem:[%s3515_s29 + $0x90] sm:$0xff] }
  0x38   : > { %1517 = vmatmul.mubr.bf16.gmra.mrb[8].mxu0 %v2485_v3  ;;  %3167 = vmatprep.subr.bf16.mxu1 %v3345_v28  ;;  %v2527_v3 = vcombine.low %v245_v52, %v249_v53  ;;  %v2558_v28 = vcombine.high %v276_v22, %v280_v23  ;;  %v2559_v35 = vcombine.low %v277_v24, %v281_v25  ;;  %v210_v15 = vld [vmem:[%s3515_s29 + $0xb0] sm:$0xff] }
  0x39   : > { %1678 = vmatmul.mubr.bf16.gmra.mrb[8].mxu1 %v2487_v5  ;;  %1524 = vmatprep.mubr.bf16.mxu0 %v2494_v6  ;;  %v2536_v5 = vcombine.high %v253_v0, %v257_v1  ;;  %v260_v6 = vld [vmem:[%s3515_s29 + $0x240] sm:$0xff]  ;;  %v191_v0 = vld [vmem:[%s3515_s29 + $0x18] sm:$0xff] }
  0x3a   : > { %1685 = vmatprep.mubr.bf16.mxu1 %v2496_v8  ;;  %3056 = vmatpush3.bf16.msra.mxu0 %v3344_v27  ;;  %v261_v8 = vld [vmem:[%s3515_s29 + $0x248] sm:$0xff]  ;;  %v2542_v12 = vcombine.high %v260_v6, %v264_v7  ;;  %v195_v1 = vld [vmem:[%s3515_s29 + $0x38] sm:$0xff] }
  0x3b   : > { %3168 = vmatpush3.bf16.msra.mxu1 %v3346_v29  ;;  %3057 = vmatprep.subr.bf16.mxu0 %v3347_v34  ;;  %v2544_v13 = vcombine.high %v261_v8, %v265_v9  ;;  %v2560_v29 = vcombine.high %v277_v24, %v281_v25  ;;  %v2557_v34 = vcombine.low %v276_v22, %v280_v23  ;;  %v214_v22 = vld [vmem:[%s3515_s29 + $0xd0] sm:$0xff]  ;;  %v215_v24 = vld [vmem:[%s3515_s29 + $0xd8] sm:$0xff] }
  0x3c   : > { %3169 = vmatprep.subr.bf16.mxu1 %v3349_v37  ;;  %v218_v23 = vld [vmem:[%s3515_s29 + $0xf0] sm:$0xff]  ;;  %v219_v25 = vld [vmem:[%s3515_s29 + $0xf8] sm:$0xff] }
  0x3e   : > { %3058 = vmatpush3.bf16.msra.mxu0 %v3348_v36 }
  0x3f   : > { %3170 = vmatpush3.bf16.msra.mxu1 %v3350_v39  ;;  %3059 = vmatprep.subr.bf16.mxu0 %v3351_v46  ;;  %v296_v39 = vld [vmem:[%s3515_s29 + $0x360] sm:$0xff] }
  0x40   : > { %1525 = vmatmul.mubr.bf16.gmra.mrb[12].mxu0 %v2493_v16  ;;  %3171 = vmatprep.subr.bf16.mxu1 %v3353_v48  ;;  %v269_v16 = vld [vmem:[%s3515_s29 + $0x288] sm:$0xff]  ;;  %v300_v46 = vld [vmem:[%s3515_s29 + $0x380] sm:$0xff]  ;;  %v2573_v50 = vcombine.low %v292_v38, %v296_v39 }
  0x41   : > { %1686 = vmatmul.mubr.bf16.gmra.mrb[12].mxu1 %v2495_v18  ;;  %1532 = vmatprep.mubr.bf16.mxu0 %v2502_v19  ;;  %v2541_v18 = vcombine.low %v260_v6, %v264_v7  ;;  %v2543_v19 = vcombine.low %v261_v8, %v265_v9  ;;  %v2551_v27 = vcombine.low %v269_v16, %v273_v17  ;;  %v301_v48 = vld [vmem:[%s3515_s29 + $0x388] sm:$0xff]  ;;  %v198_v6 = vld [vmem:[%s3515_s29 + $0x50] sm:$0xff]  ;;  %v199_v8 = vld [vmem:[%s3515_s29 + $0x58] sm:$0xff] }
  0x42   : > { %1693 = vmatprep.mubr.bf16.mxu1 %v2504_v21  ;;  %3060 = vmatpush3.bf16.msra.mxu0 %v3352_v47  ;;  %v2552_v21 = vcombine.high %v269_v16, %v273_v17  ;;  %v304_v47 = vld [vmem:[%s3515_s29 + $0x3a0] sm:$0xff]  ;;  %v202_v7 = vld [vmem:[%s3515_s29 + $0x70] sm:$0xff]  ;;  %v203_v9 = vld [vmem:[%s3515_s29 + $0x78] sm:$0xff] }
  0x43   : > { %3172 = vmatpush3.bf16.msra.mxu1 %v3354_v49  ;;  %3061 = vmatprep.subr.bf16.mxu0 %v3355_v55  ;;  %v305_v49 = vld [vmem:[%s3515_s29 + $0x3a8] sm:$0xff]  ;;  %v2582_v52 = vcombine.high %v300_v46, %v304_v47  ;;  %v312_v55 = vld [vmem:[%s3515_s29 + $0x3e0] sm:$0xff]  ;;  %v207_v16 = vld [vmem:[%s3515_s29 + $0x98] sm:$0xff] }
  0x44   : > { %3173 = vmatprep.subr.bf16.mxu1 %v3357_v60  ;;  %v2584_v53 = vcombine.high %v301_v48, %v305_v49  ;;  %v211_v17 = vld [vmem:[%s3515_s29 + $0xb8] sm:$0xff] }
  0x46   : > { %3062 = vmatpush3.bf16.msra.mxu0 %v3356_v58  ;;  %v2581_v58 = vcombine.low %v300_v46, %v304_v47  ;;  %v238_v46 = vld [vmem:[%s3515_s29 + $0x190] sm:$0xff] }
  0x47   : > { %3174 = vmatpush3.bf16.msra.mxu1 %v3358_v61  ;;  %v242_v47 = vld [vmem:[%s3515_s29 + $0x1b0] sm:$0xff] }
  0x48   : > { %1533 = vmatmul.mubr.bf16.gmra.mrb[16].mxu0 %v2501_v30  ;;  %v284_v30 = vld [vmem:[%s3515_s29 + $0x300] sm:$0xff] }
  0x49   : > { %1694 = vmatmul.mubr.bf16.gmra.mrb[16].mxu1 %v2503_v31  ;;  %1540 = vmatprep.mubr.bf16.mxu0 %v2510_v32  ;;  %v288_v31 = vld [vmem:[%s3515_s29 + $0x320] sm:$0xff]  ;;  %v285_v32 = vld [vmem:[%s3515_s29 + $0x308] sm:$0xff] }
  0x4a   : > { %1701 = vmatprep.mubr.bf16.mxu1 %v2512_v33  ;;  %v289_v33 = vld [vmem:[%s3515_s29 + $0x328] sm:$0xff]  ;;  %v2566_v36 = vcombine.high %v284_v30, %v288_v31 }
  0x4b   : > { %v2568_v37 = vcombine.high %v285_v32, %v289_v33 }
  0x50   : > { %1541 = vmatmul.mubr.bf16.gmra.mrb[20].mxu0 %v2509_v42  ;;  %v2565_v42 = vcombine.low %v284_v30, %v288_v31  ;;  %v222_v30 = vld [vmem:[%s3515_s29 + $0x110] sm:$0xff] }
  0x51   : > { %1702 = vmatmul.mubr.bf16.gmra.mrb[20].mxu1 %v2511_v43  ;;  %1548 = vmatprep.mubr.bf16.mxu0 %v2518_v44  ;;  %v2567_v43 = vcombine.low %v285_v32, %v289_v33  ;;  %v2574_v44 = vcombine.high %v292_v38, %v296_v39  ;;  %v226_v31 = vld [vmem:[%s3515_s29 + $0x130] sm:$0xff]  ;;  %v223_v32 = vld [vmem:[%s3515_s29 + $0x118] sm:$0xff] }
  0x52   : > { %1709 = vmatprep.mubr.bf16.mxu1 %v2520_v45  ;;  %v2576_v45 = vcombine.high %v293_v40, %v297_v41  ;;  %v227_v33 = vld [vmem:[%s3515_s29 + $0x138] sm:$0xff]  ;;  %v230_v38 = vld [vmem:[%s3515_s29 + $0x150] sm:$0xff] }
  0x53   : > { %v234_v39 = vld [vmem:[%s3515_s29 + $0x170] sm:$0xff]  ;;  %v231_v40 = vld [vmem:[%s3515_s29 + $0x158] sm:$0xff] }
  0x54   : > { %v235_v41 = vld [vmem:[%s3515_s29 + $0x178] sm:$0xff] }
  0x58   : > { %1549 = vmatmul.mubr.bf16.gmra.mrb[24].mxu0 %v2517_v54  ;;  %v308_v54 = vld [vmem:[%s3515_s29 + $0x3c0] sm:$0xff] }
  0x59   : > { %1710 = vmatmul.mubr.bf16.gmra.mrb[24].mxu1 %v2519_v56  ;;  %1556 = vmatprep.mubr.bf16.mxu0 %v2526_v57  ;;  %v309_v56 = vld [vmem:[%s3515_s29 + $0x3c8] sm:$0xff]  ;;  %v2590_v60 = vcombine.high %v308_v54, %v312_v55 }
  0x5a   : > { %1717 = vmatprep.mubr.bf16.mxu1 %v2528_v59  ;;  %v313_v57 = vld [vmem:[%s3515_s29 + $0x3e8] sm:$0xff]  ;;  %v2583_v59 = vcombine.low %v301_v48, %v305_v49  ;;  %v239_v48 = vld [vmem:[%s3515_s29 + $0x198] sm:$0xff] }
  0x5b   : > { %v2592_v61 = vcombine.high %v309_v56, %v313_v57  ;;  %v243_v49 = vld [vmem:[%s3515_s29 + $0x1b8] sm:$0xff] }
  0x60   : > { %1557 = vmatmul.mubr.bf16.gmra.mrb[28].mxu0 %v2525_v2  ;;  %v2589_v2 = vcombine.low %v308_v54, %v312_v55  ;;  %v246_v54 = vld [vmem:[%s3515_s29 + $0x1d0] sm:$0xff] }
  0x61   : > { %1718 = vmatmul.mubr.bf16.gmra.mrb[28].mxu1 %v2527_v3  ;;  %1564 = vmatprep.mubr.bf16.mxu0 %v2534_v4  ;;  %v2591_v3 = vcombine.low %v309_v56, %v313_v57  ;;  %v2474_v4 = vcombine.high %v190_v62, %v194_v63  ;;  %v250_v55 = vld [vmem:[%s3515_s29 + $0x1f0] sm:$0xff]  ;;  %v247_v56 = vld [vmem:[%s3515_s29 + $0x1d8] sm:$0xff] }
  0x62   : > { %1725 = vmatprep.mubr.bf16.mxu1 %v2536_v5  ;;  %v2476_v5 = vcombine.high %v191_v0, %v195_v1  ;;  %v251_v57 = vld [vmem:[%s3515_s29 + $0x1f8] sm:$0xff] }
  0x68   : > { %1565 = vmatmul.mubr.bf16.gmra.mrb[32].mxu0 %v2533_v10  ;;  %v2473_v10 = vcombine.low %v190_v62, %v194_v63  ;;  %v254_v62 = vld [vmem:[%s3515_s29 + $0x210] sm:$0xff] }
  0x69   : > { %1726 = vmatmul.mubr.bf16.gmra.mrb[32].mxu1 %v2535_v11  ;;  %1572 = vmatprep.mubr.bf16.mxu0 %v2542_v12  ;;  %v2475_v11 = vcombine.low %v191_v0, %v195_v1  ;;  %v2482_v12 = vcombine.high %v198_v6, %v202_v7  ;;  %v258_v63 = vld [vmem:[%s3515_s29 + $0x230] sm:$0xff]  ;;  %v255_v0 = vld [vmem:[%s3515_s29 + $0x218] sm:$0xff] }
  0x6a   : > { %1733 = vmatprep.mubr.bf16.mxu1 %v2544_v13  ;;  %v2484_v13 = vcombine.high %v199_v8, %v203_v9  ;;  %v259_v1 = vld [vmem:[%s3515_s29 + $0x238] sm:$0xff] }
  0x70   : > { %1573 = vmatmul.mubr.bf16.gmra.mrb[36].mxu0 %v2541_v18  ;;  %v2481_v18 = vcombine.low %v198_v6, %v202_v7  ;;  %v262_v6 = vld [vmem:[%s3515_s29 + $0x250] sm:$0xff] }
  0x71   : > { %1734 = vmatmul.mubr.bf16.gmra.mrb[36].mxu1 %v2543_v19  ;;  %1580 = vmatprep.mubr.bf16.mxu0 %v2550_v20  ;;  %v2483_v19 = vcombine.low %v199_v8, %v203_v9  ;;  %v2490_v20 = vcombine.high %v206_v14, %v210_v15  ;;  %v266_v7 = vld [vmem:[%s3515_s29 + $0x270] sm:$0xff]  ;;  %v263_v8 = vld [vmem:[%s3515_s29 + $0x258] sm:$0xff] }
  0x72   : > { %1741 = vmatprep.mubr.bf16.mxu1 %v2552_v21  ;;  %v2492_v21 = vcombine.high %v207_v16, %v211_v17  ;;  %v267_v9 = vld [vmem:[%s3515_s29 + $0x278] sm:$0xff] }
  0x78   : > { %1581 = vmatmul.mubr.bf16.gmra.mrb[40].mxu0 %v2549_v26  ;;  %v2489_v26 = vcombine.low %v206_v14, %v210_v15  ;;  %v270_v14 = vld [vmem:[%s3515_s29 + $0x290] sm:$0xff] }
  0x79   : > { %1742 = vmatmul.mubr.bf16.gmra.mrb[40].mxu1 %v2551_v27  ;;  %1588 = vmatprep.mubr.bf16.mxu0 %v2558_v28  ;;  %v2491_v27 = vcombine.low %v207_v16, %v211_v17  ;;  %v2498_v28 = vcombine.high %v214_v22, %v218_v23  ;;  %v274_v15 = vld [vmem:[%s3515_s29 + $0x2b0] sm:$0xff]  ;;  %v271_v16 = vld [vmem:[%s3515_s29 + $0x298] sm:$0xff] }
  0x7a   : > { %1749 = vmatprep.mubr.bf16.mxu1 %v2560_v29  ;;  %v2500_v29 = vcombine.high %v215_v24, %v219_v25  ;;  %v275_v17 = vld [vmem:[%s3515_s29 + $0x2b8] sm:$0xff] }
  0x80   : > { %1589 = vmatmul.mubr.bf16.gmra.mrb[44].mxu0 %v2557_v34  ;;  %v2497_v34 = vcombine.low %v214_v22, %v218_v23  ;;  %v278_v22 = vld [vmem:[%s3515_s29 + $0x2d0] sm:$0xff] }
  0x81   : > { %1750 = vmatmul.mubr.bf16.gmra.mrb[44].mxu1 %v2559_v35  ;;  %1596 = vmatprep.mubr.bf16.mxu0 %v2566_v36  ;;  %v2499_v35 = vcombine.low %v215_v24, %v219_v25  ;;  %v2506_v36 = vcombine.high %v222_v30, %v226_v31  ;;  %v282_v23 = vld [vmem:[%s3515_s29 + $0x2f0] sm:$0xff]  ;;  %v279_v24 = vld [vmem:[%s3515_s29 + $0x2d8] sm:$0xff] }
  0x82   : > { %1757 = vmatprep.mubr.bf16.mxu1 %v2568_v37  ;;  %v2508_v37 = vcombine.high %v223_v32, %v227_v33  ;;  %v283_v25 = vld [vmem:[%s3515_s29 + $0x2f8] sm:$0xff] }
  0x88   : > { %1597 = vmatmul.mubr.bf16.gmra.mrb[48].mxu0 %v2565_v42  ;;  %v2505_v42 = vcombine.low %v222_v30, %v226_v31  ;;  %v286_v30 = vld [vmem:[%s3515_s29 + $0x310] sm:$0xff] }
  0x89   : > { %1758 = vmatmul.mubr.bf16.gmra.mrb[48].mxu1 %v2567_v43  ;;  %1604 = vmatprep.mubr.bf16.mxu0 %v2574_v44  ;;  %v2507_v43 = vcombine.low %v223_v32, %v227_v33  ;;  %v2514_v44 = vcombine.high %v230_v38, %v234_v39  ;;  %v290_v31 = vld [vmem:[%s3515_s29 + $0x330] sm:$0xff]  ;;  %v287_v33 = vld [vmem:[%s3515_s29 + $0x318] sm:$0xff] }
  0x8a   : > { %1765 = vmatprep.mubr.bf16.mxu1 %v2576_v45  ;;  %v2516_v45 = vcombine.high %v231_v40, %v235_v41 }
  0x90   : > { %1605 = vmatmul.mubr.bf16.gmra.mrb[52].mxu0 %v2573_v50  ;;  %v2513_v50 = vcombine.low %v230_v38, %v234_v39 }
  0x91   : > { %1766 = vmatmul.mubr.bf16.gmra.mrb[52].mxu1 %v2575_v51  ;;  %1612 = vmatprep.mubr.bf16.mxu0 %v2582_v52  ;;  %v2515_v51 = vcombine.low %v231_v40, %v235_v41  ;;  %v2522_v52 = vcombine.high %v238_v46, %v242_v47  ;;  %v2563_v41 = vcombine.low %v279_v24, %v283_v25 }
  0x92   : > { %1773 = vmatprep.mubr.bf16.mxu1 %v2584_v53  ;;  %v2524_v53 = vcombine.high %v239_v48, %v243_v49 }
  0x98   : > { %1613 = vmatmul.mubr.bf16.gmra.mrb[56].mxu0 %v2581_v58  ;;  %v2521_v58 = vcombine.low %v238_v46, %v242_v47 }
  0x99   : > { %1774 = vmatmul.mubr.bf16.gmra.mrb[56].mxu1 %v2583_v59  ;;  %1620 = vmatprep.mubr.bf16.mxu0 %v2590_v60  ;;  %v2523_v59 = vcombine.low %v239_v48, %v243_v49  ;;  %v2530_v60 = vcombine.high %v246_v54, %v250_v55 }
  0x9a   : > { %1781 = vmatprep.mubr.bf16.mxu1 %v2592_v61  ;;  %v2532_v61 = vcombine.high %v247_v56, %v251_v57 }
  0xa0   : > { %1621 = vmatmul.mubr.bf16.gmra.mrb[60].mxu0 %v2589_v2  ;;  %v2529_v2 = vcombine.low %v246_v54, %v250_v55  ;;  %v295_v55 = vld [vmem:[%s3515_s29 + $0x358] sm:$0xff] }
  0xa1   : > { %1782 = vmatmul.mubr.bf16.gmra.mrb[60].mxu1 %v2591_v3  ;;  %1822 = vmatprep.mubr.bf16.mxu0 %v2474_v4  ;;  %v2531_v3 = vcombine.low %v247_v56, %v251_v57  ;;  %v2538_v4 = vcombine.high %v254_v62, %v258_v63  ;;  %v299_v56 = vld [vmem:[%s3515_s29 + $0x378] sm:$0xff] }
  0xa2   : > { %1983 = vmatprep.mubr.bf16.mxu1 %v2476_v5  ;;  %v2540_v5 = vcombine.high %v255_v0, %v259_v1 }
  0xa8   : > { %1823 = vmatmul.mubr.bf16.vlgmr.msra.gmra.mrb[64].mxu0 %v2473_v10  ;;  %v2537_v10 = vcombine.low %v254_v62, %v258_v63 }
  0xa9   : > { %1984 = vmatmul.mubr.bf16.vlgmr.msra.gmra.mrb[64].mxu1 %v2475_v11  ;;  %1830 = vmatprep.mubr.bf16.mxu0 %v2482_v12  ;;  %v2539_v11 = vcombine.low %v255_v0, %v259_v1  ;;  %v2546_v12 = vcombine.high %v262_v6, %v266_v7 }
  0xaa   : > { %1991 = vmatprep.mubr.bf16.mxu1 %v2484_v13  ;;  %v2548_v13 = vcombine.high %v263_v8, %v267_v9 }
  0xb0   : > { %1831 = vmatmul.mubr.bf16.gmra.mrb[68].mxu0 %v2481_v18  ;;  %v2545_v18 = vcombine.low %v262_v6, %v266_v7 }
  0xb1   : > { %1992 = vmatmul.mubr.bf16.gmra.mrb[68].mxu1 %v2483_v19  ;;  %1838 = vmatprep.mubr.bf16.mxu0 %v2490_v20  ;;  %v2547_v19 = vcombine.low %v263_v8, %v267_v9  ;;  %v2554_v20 = vcombine.high %v270_v14, %v274_v15 }
  0xb2   : > { %1999 = vmatprep.mubr.bf16.mxu1 %v2492_v21  ;;  %v2556_v21 = vcombine.high %v271_v16, %v275_v17 }
  0xb8   : > { %1839 = vmatmul.mubr.bf16.gmra.mrb[72].mxu0 %v2489_v26  ;;  %v2553_v26 = vcombine.low %v270_v14, %v274_v15  ;;  %v307_v14 = vld [vmem:[%s3515_s29 + $0x3b8] sm:$0xff] }
  0xb9   : > { %2000 = vmatmul.mubr.bf16.gmra.mrb[72].mxu1 %v2491_v27  ;;  %1846 = vmatprep.mubr.bf16.mxu0 %v2498_v28  ;;  %v2555_v27 = vcombine.low %v271_v16, %v275_v17  ;;  %v2562_v28 = vcombine.high %v278_v22, %v282_v23 }
  0xba   : > { %2007 = vmatprep.mubr.bf16.mxu1 %v2500_v29  ;;  %v2564_v29 = vcombine.high %v279_v24, %v283_v25 }
  0xc0   : > { %1847 = vmatmul.mubr.bf16.gmra.mrb[76].mxu0 %v2497_v34  ;;  %v291_v34 = vld [vmem:[%s3515_s29 + $0x338] sm:$0xff] }
  0xc1   : > { %2008 = vmatmul.mubr.bf16.gmra.mrb[76].mxu1 %v2499_v35  ;;  %1854 = vmatprep.mubr.bf16.mxu0 %v2506_v36  ;;  %v2572_v46 = vcombine.high %v287_v33, %v291_v34  ;;  %v2571_v63 = vcombine.low %v287_v33, %v291_v34  ;;  %v314_v33 = vld [vmem:[%s3515_s29 + $0x3f0] sm:$0xff] }
  0xc2   : > { %2015 = vmatprep.mubr.bf16.mxu1 %v2508_v37  ;;  %v2561_v37 = vcombine.low %v278_v22, %v282_v23 }
  0xc8   : > { %1855 = vmatmul.mubr.bf16.gmra.mrb[80].mxu0 %v2505_v42  ;;  %v2570_v42 = vcombine.high %v286_v30, %v290_v31 }
  0xc9   : > { %2016 = vmatmul.mubr.bf16.gmra.mrb[80].mxu1 %v2507_v43  ;;  %1862 = vmatprep.mubr.bf16.mxu0 %v2514_v44 }
  0xca   : > { %2023 = vmatprep.mubr.bf16.mxu1 %v2516_v45 }
  0xd0   : > { %1863 = vmatmul.mubr.bf16.gmra.mrb[84].mxu0 %v2513_v50 }
  0xd1   : > { %2024 = vmatmul.mubr.bf16.gmra.mrb[84].mxu1 %v2515_v51  ;;  %1870 = vmatprep.mubr.bf16.mxu0 %v2522_v52  ;;  %v294_v52 = vld [vmem:[%s3515_s29 + $0x350] sm:$0xff] }
  0xd2   : > { %2031 = vmatprep.mubr.bf16.mxu1 %v2524_v53  ;;  %v298_v53 = vld [vmem:[%s3515_s29 + $0x370] sm:$0xff] }
  0xd3   : > { %v2578_v0 = vcombine.high %v294_v52, %v298_v53  ;;  %v2577_v17 = vcombine.low %v294_v52, %v298_v53 }
  0xd8   : > { %1871 = vmatmul.mubr.bf16.gmra.mrb[88].mxu0 %v2521_v58 }
  0xd9   : > { %2032 = vmatmul.mubr.bf16.gmra.mrb[88].mxu1 %v2523_v59  ;;  %1878 = vmatprep.mubr.bf16.mxu0 %v2530_v60  ;;  %v2569_v59 = vcombine.low %v286_v30, %v290_v31 }
  0xda   : > { %2039 = vmatprep.mubr.bf16.mxu1 %v2532_v61 }
  0xe0   : > { %1879 = vmatmul.mubr.bf16.gmra.mrb[92].mxu0 %v2529_v2 }
  0xe1   : > { %2040 = vmatmul.mubr.bf16.gmra.mrb[92].mxu1 %v2531_v3  ;;  %1886 = vmatprep.mubr.bf16.mxu0 %v2538_v4  ;;  %v2580_v4 = vcombine.high %v295_v55, %v299_v56 }
  0xe2   : > { %2047 = vmatprep.mubr.bf16.mxu1 %v2540_v5 }
  0xe8   : > { %1887 = vmatmul.mubr.bf16.gmra.mrb[96].mxu0 %v2537_v10  ;;  %v302_v10 = vld [vmem:[%s3515_s29 + $0x390] sm:$0xff] }
  0xe9   : > { %2048 = vmatmul.mubr.bf16.gmra.mrb[96].mxu1 %v2539_v11  ;;  %1894 = vmatprep.mubr.bf16.mxu0 %v2546_v12  ;;  %v306_v11 = vld [vmem:[%s3515_s29 + $0x3b0] sm:$0xff] }
  0xea   : > { %2055 = vmatprep.mubr.bf16.mxu1 %v2548_v13  ;;  %v303_v13 = vld [vmem:[%s3515_s29 + $0x398] sm:$0xff]  ;;  %v2586_v22 = vcombine.high %v302_v10, %v306_v11 }
  0xf0   : > { %1895 = vmatmul.mubr.bf16.gmra.mrb[100].mxu0 %v2545_v18 }
  0xf1   : > { %2056 = vmatmul.mubr.bf16.gmra.mrb[100].mxu1 %v2547_v19  ;;  %1902 = vmatprep.mubr.bf16.mxu0 %v2554_v20 }
  0xf2   : > { %2063 = vmatprep.mubr.bf16.mxu1 %v2556_v21  ;;  %v2579_v21 = vcombine.low %v295_v55, %v299_v56 }
  0xf8   : > { %1903 = vmatmul.mubr.bf16.gmra.mrb[104].mxu0 %v2553_v26  ;;  %v2588_v26 = vcombine.high %v303_v13, %v307_v14 }
  0xf9   : > { %2064 = vmatmul.mubr.bf16.gmra.mrb[104].mxu1 %v2555_v27  ;;  %1910 = vmatprep.mubr.bf16.mxu0 %v2562_v28 }
  0xfa   : > { %2071 = vmatprep.mubr.bf16.mxu1 %v2564_v29 }
  0xfb   : > { %v2839_v32 = vpop.f32.mrb[0].mxu0 }
  0xfc   : > { %v2951_v35 = vpop.f32.mrb[0].mxu1  ;;  %v2840_v36 = vpop.f32.mrb[1].mxu0 }
  0xfd   : > { %v2841_v38 = vadd.f32 %v2840_v36, %v2839_v32  ;;  %v2952_v39 = vpop.f32.mrb[1].mxu1  ;;  %v2842_v40 = vpop.f32.mrb[2].mxu0  ;;  %v310_v32 = vld [vmem:[%s3515_s29 + $0x3d0] sm:$0xff]  ;;  %v315_v36 = vld [vmem:[%s3515_s29 + $0x3f8] sm:$0xff] }
  0xfe   : > { %v2953_v43 = vadd.f32 %v2952_v39, %v2951_v35  ;;  %v2954_v44 = vpop.f32.mrb[2].mxu1  ;;  %v2843_v45 = vpop.f32.mrb[3].mxu0  ;;  %v311_v35 = vld [vmem:[%s3515_s29 + $0x3d8] sm:$0xff]  ;;  %v2585_v39 = vcombine.low %v302_v10, %v306_v11  ;;  %s2468_s29 = sshll.u32 %s3882_s21, 2 }
  0xff   : > { %v2844_v47 = vadd.f32 %v2843_v45, %v2842_v40  ;;  %v2955_v48 = vpop.f32.mrb[3].mxu1  ;;  %s3817_s30 = scalar_lea.vmem %s3876_s2, %s2468_s29 }
 0x100   : > { %v3735_v49 = vadd.f32 %v2953_v43, %v2841_v38  ;;  %v2956_v50 = vadd.f32 %v2955_v48, %v2954_v44  ;;  %1911 = vmatmul.mubr.bf16.gmra.mrb[108].mxu0 %v2561_v37  ;;  %v2587_v43 = vcombine.low %v303_v13, %v307_v14  ;;  %v2594_v44 = vcombine.high %v310_v32, %v314_v33 }
 0x101   : > { %2072 = vmatmul.mubr.bf16.gmra.mrb[108].mxu1 %v2563_v41  ;;  %1918 = vmatprep.mubr.bf16.mxu0 %v2570_v42  ;;  %v2596_v48 = vcombine.high %v311_v35, %v315_v36 }
 0x102   : > { %v3737_v51 = vadd.f32 %v2956_v50, %v2844_v47  ;;  %2079 = vmatprep.mubr.bf16.mxu1 %v2572_v46 }
 0x103   : > { %v2845_v54 = vpop.f32.mrb[4].mxu0 }
 0x104   : > { %v2957_v57 = vpop.f32.mrb[4].mxu1  ;;  %v2846_v58 = vpop.f32.mrb[5].mxu0 }
 0x105   : > { %v2847_v60 = vadd.f32 %v2846_v58, %v2845_v54  ;;  %v2958_v61 = vpop.f32.mrb[5].mxu1  ;;  %v2848_v62 = vpop.f32.mrb[6].mxu0 }
 0x106   : > { %v2959_v1 = vadd.f32 %v2958_v61, %v2957_v57  ;;  %v2960_v2 = vpop.f32.mrb[6].mxu1  ;;  %v2849_v3 = vpop.f32.mrb[7].mxu0 }
 0x107   : > { %v2850_v5 = vadd.f32 %v2849_v3, %v2848_v62  ;;  %v2961_v6 = vpop.f32.mrb[7].mxu1 }
 0x108   : > { %v3743_v7 = vadd.f32 %v2959_v1, %v2847_v60  ;;  %v2962_v8 = vadd.f32 %v2961_v6, %v2960_v2  ;;  %1919 = vmatmul.mubr.bf16.gmra.mrb[112].mxu0 %v2569_v59  ;;  %v2593_v59 = vcombine.low %v310_v32, %v314_v33 }
 0x109   : > { %2080 = vmatmul.mubr.bf16.gmra.mrb[112].mxu1 %v2571_v63  ;;  %1926 = vmatprep.mubr.bf16.mxu0 %v2578_v0  ;;  %v2595_v63 = vcombine.low %v311_v35, %v315_v36 }
 0x10a   : > { %v3745_v9 = vadd.f32 %v2962_v8, %v2850_v5  ;;  %2087 = vmatprep.mubr.bf16.mxu1 %v2580_v4 }
 0x10b   : > { %v2851_v12 = vpop.f32.mrb[8].mxu0 }
 0x10c   : > { %v2963_v15 = vpop.f32.mrb[8].mxu1  ;;  %v2852_v16 = vpop.f32.mrb[9].mxu0 }
 0x10d   : > { %v2853_v18 = vadd.f32 %v2852_v16, %v2851_v12  ;;  %v2964_v19 = vpop.f32.mrb[9].mxu1  ;;  %v2854_v20 = vpop.f32.mrb[10].mxu0 }
 0x10e   : > { %v2965_v23 = vadd.f32 %v2964_v19, %v2963_v15  ;;  %v2966_v24 = vpop.f32.mrb[10].mxu1  ;;  %v2855_v25 = vpop.f32.mrb[11].mxu0 }
 0x10f   : > { %v2856_v27 = vadd.f32 %v2855_v25, %v2854_v20  ;;  %v2967_v28 = vpop.f32.mrb[11].mxu1 }
 0x110   : > { %v3751_v29 = vadd.f32 %v2965_v23, %v2853_v18  ;;  %v2968_v30 = vadd.f32 %v2967_v28, %v2966_v24  ;;  %1927 = vmatmul.mubr.bf16.gmra.mrb[116].mxu0 %v2577_v17 }
 0x111   : > { %2088 = vmatmul.mubr.bf16.gmra.mrb[116].mxu1 %v2579_v21  ;;  %1934 = vmatprep.mubr.bf16.mxu0 %v2586_v22 }
 0x112   : > { %v3753_v31 = vadd.f32 %v2968_v30, %v2856_v27  ;;  %2095 = vmatprep.mubr.bf16.mxu1 %v2588_v26 }
 0x113   : > { %v2857_v34 = vpop.f32.mrb[12].mxu0 }
 0x114   : > { %v2969_v37 = vpop.f32.mrb[12].mxu1  ;;  %v2858_v38 = vpop.f32.mrb[13].mxu0 }
 0x115   : > { %v2859_v40 = vadd.f32 %v2858_v38, %v2857_v34  ;;  %v2970_v41 = vpop.f32.mrb[13].mxu1  ;;  %v2860_v42 = vpop.f32.mrb[14].mxu0 }
 0x116   : > { %v2971_v45 = vadd.f32 %v2970_v41, %v2969_v37  ;;  %v2972_v46 = vpop.f32.mrb[14].mxu1  ;;  %v2861_v47 = vpop.f32.mrb[15].mxu0 }
 0x117   : > { %v2862_v50 = vadd.f32 %v2861_v47, %v2860_v42  ;;  %v2973_v52 = vpop.f32.mrb[15].mxu1 }
 0x118   : > { %v3759_v53 = vadd.f32 %v2971_v45, %v2859_v40  ;;  %v2974_v54 = vadd.f32 %v2973_v52, %v2972_v46  ;;  %1935 = vmatmul.mubr.bf16.gmra.mrb[120].mxu0 %v2585_v39 }
 0x119   : > { %2096 = vmatmul.mubr.bf16.gmra.mrb[120].mxu1 %v2587_v43  ;;  %1942 = vmatprep.mubr.bf16.mxu0 %v2594_v44 }
 0x11a   : > { %v3761_v55 = vadd.f32 %v2974_v54, %v2862_v50  ;;  %2103 = vmatprep.mubr.bf16.mxu1 %v2596_v48 }
 0x11b   : > { %v2863_v56 = vpop.f32.mrb[16].mxu0 }
 0x11c   : > { %v2975_v57 = vpop.f32.mrb[16].mxu1  ;;  %v2864_v58 = vpop.f32.mrb[17].mxu0 }
 0x11d   : > { %v2865_v60 = vadd.f32 %v2864_v58, %v2863_v56  ;;  %v2976_v61 = vpop.f32.mrb[17].mxu1  ;;  %v2866_v62 = vpop.f32.mrb[18].mxu0 }
 0x11e   : > { %v2977_v0 = vadd.f32 %v2976_v61, %v2975_v57  ;;  %v2978_v1 = vpop.f32.mrb[18].mxu1  ;;  %v2867_v2 = vpop.f32.mrb[19].mxu0 }
 0x11f   : > { %v2868_v3 = vadd.f32 %v2867_v2, %v2866_v62  ;;  %v2979_v4 = vpop.f32.mrb[19].mxu1 }
 0x120   : > { %v3763_v5 = vadd.f32 %v2977_v0, %v2865_v60  ;;  %v2980_v6 = vadd.f32 %v2979_v4, %v2978_v1  ;;  %1943 = vmatmul.mubr.bf16.gmra.mrb[124].mxu0 %v2593_v59 }
 0x121   : > { %2104 = vmatmul.mubr.bf16.gmra.mrb[124].mxu1 %v2595_v63 }
 0x122   : > { %v3765_v8 = vadd.f32 %v2980_v6, %v2868_v3 }
 0x123   : > { %v2869_v10 = vpop.f32.mrb[20].mxu0 }
 0x124   : > { %v2981_v11 = vpop.f32.mrb[20].mxu1  ;;  %v2870_v12 = vpop.f32.mrb[21].mxu0 }
 0x125   : > { %v2871_v13 = vadd.f32 %v2870_v12, %v2869_v10  ;;  %v2982_v14 = vpop.f32.mrb[21].mxu1  ;;  %v2872_v15 = vpop.f32.mrb[22].mxu0 }
 0x126   : > { %v2983_v16 = vadd.f32 %v2982_v14, %v2981_v11  ;;  %v2984_v17 = vpop.f32.mrb[22].mxu1  ;;  %v2873_v18 = vpop.f32.mrb[23].mxu0 }
 0x127   : > { %v2874_v19 = vadd.f32 %v2873_v18, %v2872_v15  ;;  %v2985_v20 = vpop.f32.mrb[23].mxu1 }
 0x128   : > { %v3767_v21 = vadd.f32 %v2983_v16, %v2871_v13  ;;  %v2986_v22 = vadd.f32 %v2985_v20, %v2984_v17 }
 0x12a   : > { %v3769_v23 = vadd.f32 %v2986_v22, %v2874_v19 }
 0x12b   : > { %v2875_v24 = vpop.f32.mrb[24].mxu0 }
 0x12c   : > { %v2987_v25 = vpop.f32.mrb[24].mxu1  ;;  %v2876_v26 = vpop.f32.mrb[25].mxu0 }
 0x12d   : > { %v2877_v27 = vadd.f32 %v2876_v26, %v2875_v24  ;;  %v2988_v28 = vpop.f32.mrb[25].mxu1  ;;  %v2878_v30 = vpop.f32.mrb[26].mxu0 }
 0x12e   : > { %v2989_v32 = vadd.f32 %v2988_v28, %v2987_v25  ;;  %v2990_v33 = vpop.f32.mrb[26].mxu1  ;;  %v2879_v34 = vpop.f32.mrb[27].mxu0 }
 0x12f   : > { %v2880_v35 = vadd.f32 %v2879_v34, %v2878_v30  ;;  %v2991_v36 = vpop.f32.mrb[27].mxu1 }
 0x130   : > { %v3771_v37 = vadd.f32 %v2989_v32, %v2877_v27  ;;  %v2992_v38 = vadd.f32 %v2991_v36, %v2990_v33 }
 0x132   : > { %v3773_v39 = vadd.f32 %v2992_v38, %v2880_v35 }
 0x133   : > { %v2881_v40 = vpop.f32.mrb[28].mxu0 }
 0x134   : > { %v2993_v41 = vpop.f32.mrb[28].mxu1  ;;  %v2882_v42 = vpop.f32.mrb[29].mxu0 }
 0x135   : > { %v2883_v43 = vadd.f32 %v2882_v42, %v2881_v40  ;;  %v2994_v44 = vpop.f32.mrb[29].mxu1  ;;  %v2884_v45 = vpop.f32.mrb[30].mxu0 }
 0x136   : > { %v2995_v46 = vadd.f32 %v2994_v44, %v2993_v41  ;;  %v2996_v47 = vpop.f32.mrb[30].mxu1  ;;  %v2885_v48 = vpop.f32.mrb[31].mxu0 }
 0x137   : > { %v2886_v50 = vadd.f32 %v2885_v48, %v2884_v45  ;;  %v2997_v52 = vpop.f32.mrb[31].mxu1 }
 0x138   : > { %v3775_v54 = vadd.f32 %v2995_v46, %v2883_v43  ;;  %v2998_v56 = vadd.f32 %v2997_v52, %v2996_v47 }
 0x13a   : > { %v3777_v57 = vadd.f32 %v2998_v56, %v2886_v50 }
 0x13b   : > { %v2887_v58 = vpop.f32.mrb[32].mxu0 }
 0x13c   : > { %v2999_v59 = vpop.f32.mrb[32].mxu1  ;;  %v2888_v60 = vpop.f32.mrb[33].mxu0 }
 0x13d   : > { %v2889_v61 = vadd.f32 %v2888_v60, %v2887_v58  ;;  %v3000_v62 = vpop.f32.mrb[33].mxu1  ;;  %v2890_v63 = vpop.f32.mrb[34].mxu0 }
 0x13e   : > { %v3001_v0 = vadd.f32 %v3000_v62, %v2999_v59  ;;  %v3002_v1 = vpop.f32.mrb[34].mxu1  ;;  %v2891_v2 = vpop.f32.mrb[35].mxu0 }
 0x13f   : > { %v2892_v3 = vadd.f32 %v2891_v2, %v2890_v63  ;;  %v3003_v4 = vpop.f32.mrb[35].mxu1 }
 0x140   : > { %v3779_v6 = vadd.f32 %v3001_v0, %v2889_v61  ;;  %v3004_v10 = vadd.f32 %v3003_v4, %v3002_v1 }
 0x142   : > { %v3781_v11 = vadd.f32 %v3004_v10, %v2892_v3 }
 0x143   : > { %v2893_v12 = vpop.f32.mrb[36].mxu0 }
 0x144   : > { %v3005_v13 = vpop.f32.mrb[36].mxu1  ;;  %v2894_v14 = vpop.f32.mrb[37].mxu0 }
 0x145   : > { %v2895_v15 = vadd.f32 %v2894_v14, %v2893_v12  ;;  %v3006_v16 = vpop.f32.mrb[37].mxu1  ;;  %v2896_v17 = vpop.f32.mrb[38].mxu0 }
 0x146   : > { %v3007_v18 = vadd.f32 %v3006_v16, %v3005_v13  ;;  %v3008_v19 = vpop.f32.mrb[38].mxu1  ;;  %v2897_v20 = vpop.f32.mrb[39].mxu0 }
 0x147   : > { %v2898_v22 = vadd.f32 %v2897_v20, %v2896_v17  ;;  %v3009_v24 = vpop.f32.mrb[39].mxu1 }
 0x148   : > { %v3783_v25 = vadd.f32 %v3007_v18, %v2895_v15  ;;  %v3010_v26 = vadd.f32 %v3009_v24, %v3008_v19 }
 0x14a   : > { %v3785_v27 = vadd.f32 %v3010_v26, %v2898_v22 }
 0x14b   : > { %v2899_v28 = vpop.f32.mrb[40].mxu0 }
 0x14c   : > { %v3011_v30 = vpop.f32.mrb[40].mxu1  ;;  %v2900_v32 = vpop.f32.mrb[41].mxu0 }
 0x14d   : > { %v2901_v33 = vadd.f32 %v2900_v32, %v2899_v28  ;;  %v3012_v34 = vpop.f32.mrb[41].mxu1  ;;  %v2902_v35 = vpop.f32.mrb[42].mxu0 }
 0x14e   : > { %v3013_v36 = vadd.f32 %v3012_v34, %v3011_v30  ;;  %v3014_v38 = vpop.f32.mrb[42].mxu1  ;;  %v2903_v40 = vpop.f32.mrb[43].mxu0 }
 0x14f   : > { %v2904_v41 = vadd.f32 %v2903_v40, %v2902_v35  ;;  %v3015_v42 = vpop.f32.mrb[43].mxu1 }
 0x150   : > { %v3787_v43 = vadd.f32 %v3013_v36, %v2901_v33  ;;  %v3016_v44 = vadd.f32 %v3015_v42, %v3014_v38 }
 0x152   : > { %v3789_v45 = vadd.f32 %v3016_v44, %v2904_v41 }
 0x153   : > { %v2905_v46 = vpop.f32.mrb[44].mxu0 }
 0x154   : > { %v3017_v47 = vpop.f32.mrb[44].mxu1  ;;  %v2906_v48 = vpop.f32.mrb[45].mxu0 }
 0x155   : > { %v2907_v50 = vadd.f32 %v2906_v48, %v2905_v46  ;;  %v3018_v52 = vpop.f32.mrb[45].mxu1  ;;  %v2908_v56 = vpop.f32.mrb[46].mxu0 }
 0x156   : > { %v3019_v58 = vadd.f32 %v3018_v52, %v3017_v47  ;;  %v3020_v59 = vpop.f32.mrb[46].mxu1  ;;  %v2909_v60 = vpop.f32.mrb[47].mxu0 }
 0x157   : > { %v2910_v61 = vadd.f32 %v2909_v60, %v2908_v56  ;;  %v3021_v62 = vpop.f32.mrb[47].mxu1 }
 0x158   : > { %v3791_v63 = vadd.f32 %v3019_v58, %v2907_v50  ;;  %v3022_v0 = vadd.f32 %v3021_v62, %v3020_v59 }
 0x15a   : > { %v3793_v1 = vadd.f32 %v3022_v0, %v2910_v61 }
 0x15b   : > { %v2911_v2 = vpop.f32.mrb[48].mxu0 }
 0x15c   : > { %v3023_v3 = vpop.f32.mrb[48].mxu1  ;;  %v2912_v4 = vpop.f32.mrb[49].mxu0 }
 0x15d   : > { %v2913_v10 = vadd.f32 %v2912_v4, %v2911_v2  ;;  %v3024_v12 = vpop.f32.mrb[49].mxu1  ;;  %v2914_v13 = vpop.f32.mrb[50].mxu0 }
 0x15e   : > { %v3025_v14 = vadd.f32 %v3024_v12, %v3023_v3  ;;  %v3026_v15 = vpop.f32.mrb[50].mxu1  ;;  %v2915_v16 = vpop.f32.mrb[51].mxu0 }
 0x15f   : > { %v2916_v17 = vadd.f32 %v2915_v16, %v2914_v13  ;;  %v3027_v18 = vpop.f32.mrb[51].mxu1 }
 0x160   : > { %v3795_v19 = vadd.f32 %v3025_v14, %v2913_v10  ;;  %v3028_v20 = vadd.f32 %v3027_v18, %v3026_v15 }
 0x162   : > { %v3797_v22 = vadd.f32 %v3028_v20, %v2916_v17 }
 0x163   : > { %v2917_v24 = vpop.f32.mrb[52].mxu0 }
 0x164   : > { %v3029_v26 = vpop.f32.mrb[52].mxu1  ;;  %v2918_v28 = vpop.f32.mrb[53].mxu0 }
 0x165   : > { %v2919_v30 = vadd.f32 %v2918_v28, %v2917_v24  ;;  %v3030_v32 = vpop.f32.mrb[53].mxu1  ;;  %v2920_v33 = vpop.f32.mrb[54].mxu0 }
 0x166   : > { %v3031_v34 = vadd.f32 %v3030_v32, %v3029_v26  ;;  %v3032_v35 = vpop.f32.mrb[54].mxu1  ;;  %v2921_v36 = vpop.f32.mrb[55].mxu0 }
 0x167   : > { %v2922_v38 = vadd.f32 %v2921_v36, %v2920_v33  ;;  %v3033_v40 = vpop.f32.mrb[55].mxu1 }
 0x168   : > { %v3799_v41 = vadd.f32 %v3031_v34, %v2919_v30  ;;  %v3034_v42 = vadd.f32 %v3033_v40, %v3032_v35 }
 0x16a   : > { %v3801_v44 = vadd.f32 %v3034_v42, %v2922_v38 }
 0x16b   : > { %v2923_v46 = vpop.f32.mrb[56].mxu0 }
 0x16c   : > { %v3035_v47 = vpop.f32.mrb[56].mxu1  ;;  %v2924_v48 = vpop.f32.mrb[57].mxu0 }
 0x16d   : > { %v2925_v50 = vadd.f32 %v2924_v48, %v2923_v46  ;;  %v3036_v52 = vpop.f32.mrb[57].mxu1  ;;  %v2926_v56 = vpop.f32.mrb[58].mxu0 }
 0x16e   : > { %v3037_v58 = vadd.f32 %v3036_v52, %v3035_v47  ;;  %v3038_v59 = vpop.f32.mrb[58].mxu1  ;;  %v2927_v60 = vpop.f32.mrb[59].mxu0 }
 0x16f   : > { %v2928_v61 = vadd.f32 %v2927_v60, %v2926_v56  ;;  %v3039_v62 = vpop.f32.mrb[59].mxu1 }
 0x170   : > { %v3803_v0 = vadd.f32 %v3037_v58, %v2925_v50  ;;  %v3040_v2 = vadd.f32 %v3039_v62, %v3038_v59 }
 0x172   : > { %v3805_v3 = vadd.f32 %v3040_v2, %v2928_v61 }
 0x173   : > { %v2929_v4 = vpop.f32.mrb[60].mxu0 }
 0x174   : > { %v3041_v10 = vpop.f32.mrb[60].mxu1  ;;  %v2930_v12 = vpop.f32.mrb[61].mxu0 }
 0x175   : > { %v2931_v13 = vadd.f32 %v2930_v12, %v2929_v4  ;;  %v3042_v14 = vpop.f32.mrb[61].mxu1  ;;  %v2932_v15 = vpop.f32.mrb[62].mxu0 }
 0x176   : > { %v3043_v16 = vadd.f32 %v3042_v14, %v3041_v10  ;;  %v3044_v17 = vpop.f32.mrb[62].mxu1  ;;  %v2933_v18 = vpop.f32.mrb[63].mxu0 }
 0x177   : > { %v2934_v20 = vadd.f32 %v2933_v18, %v2932_v15  ;;  %v3045_v24 = vpop.f32.mrb[63].mxu1 }
 0x178   : > { %v3807_v26 = vadd.f32 %v3043_v16, %v2931_v13  ;;  %v3046_v28 = vadd.f32 %v3045_v24, %v3044_v17 }
 0x17a   : > { %v3809_v30 = vadd.f32 %v3046_v28, %v2934_v20 }
 0x17b   : > { %v3063_v32 = vpop.f32.mrb[64].mxu0 }
 0x17c   : > { %v3175_v33 = vpop.f32.mrb[64].mxu1  ;;  %v3064_v34 = vpop.f32.mrb[65].mxu0 }
 0x17d   : > { %v3065_v35 = vadd.f32 %v3064_v34, %v3063_v32  ;;  %v3176_v36 = vpop.f32.mrb[65].mxu1  ;;  %v3066_v38 = vpop.f32.mrb[66].mxu0 }
 0x17e   : > { %v3177_v40 = vadd.f32 %v3176_v36, %v3175_v33  ;;  %v3178_v42 = vpop.f32.mrb[66].mxu1  ;;  %v3067_v46 = vpop.f32.mrb[67].mxu0 }
 0x17f   : > { %v1825_v47 = vadd.f32 %v3065_v35, %v3735_v49  ;;  %v3068_v48 = vadd.f32 %v3067_v46, %v3066_v38  ;;  %v3179_v50 = vpop.f32.mrb[67].mxu1 }
 0x180   : > { %v3180_v52 = vadd.f32 %v3179_v50, %v3178_v42 }
 0x181   : > { %v1986_v56 = vadd.f32 %v3177_v40, %v1825_v47  ;;  %v1828_v58 = vadd.f32 %v3068_v48, %v3737_v51 }
 0x183   : > { %v2144_v59 = vmul.f32 0.2, %v1986_v56  ;;  %v1989_v60 = vadd.f32 %v3180_v52, %v1828_v58  ;;  %v3069_v61 = vpop.f32.mrb[68].mxu0  ;;  %vm2112_vm0 = vcmp.ge.f32.partialorder %v1986_v56, 0.0 }
 0x184   : > { %v3181_v62 = vpop.f32.mrb[68].mxu1  ;;  %v3070_v2 = vpop.f32.mrb[69].mxu0 }
 0x185   : > { %vm2113_vm1 = vcmp.ge.f32.partialorder %v1989_v60, 0.0  ;;  %v2145_v4 = vmul.f32 0.2, %v1989_v60  ;;  %v3071_v10 = vadd.f32 %v3070_v2, %v3069_v61  ;;  %v3182_v12 = vpop.f32.mrb[69].mxu1  ;;  %v3072_v13 = vpop.f32.mrb[70].mxu0  ;;  %v2176_v16 = vsel %vm2112_vm0, %v1986_v56, %v2144_v59 }
 0x186   : > { %v3183_v14 = vadd.f32 %v3182_v12, %v3181_v62  ;;  %v3184_v49 = vpop.f32.mrb[70].mxu1  ;;  %v3073_v15 = vpop.f32.mrb[71].mxu0 }
 0x187   : > { %v2177_v51 = vsel %vm2113_vm1, %v1989_v60, %v2145_v4  ;;  %v1833_v17 = vadd.f32 %v3071_v10, %v3743_v7  ;;  %v3074_v18 = vadd.f32 %v3073_v15, %v3072_v13  ;;  %v3185_v20 = vpop.f32.mrb[71].mxu1 }
 0x188   : > { %v2731_v24 = vpack.c.bf16 %v2177_v51, %v2176_v16  ;;  %v3186_v28 = vadd.f32 %v3185_v20, %v3184_v49 }
 0x189   : > { %v1994_v32 = vadd.f32 %v3183_v14, %v1833_v17  ;;  %v1836_v33 = vadd.f32 %v3074_v18, %v3745_v9 }
 0x18a   : > { %2732 = vst [vmem:[%s3817_s30] sm:$0xff] %v2731_v24  }
 0x18b   : > { %v2146_v34 = vmul.f32 0.2, %v1994_v32  ;;  %v1997_v35 = vadd.f32 %v3186_v28, %v1836_v33  ;;  %v3075_v36 = vpop.f32.mrb[72].mxu0  ;;  %vm2114_vm2 = vcmp.ge.f32.partialorder %v1994_v32, 0.0 }
 0x18c   : > { %v3187_v38 = vpop.f32.mrb[72].mxu1  ;;  %v3076_v40 = vpop.f32.mrb[73].mxu0 }
 0x18d   : > { %vm2115_vm3 = vcmp.ge.f32.partialorder %v1997_v35, 0.0  ;;  %v2147_v42 = vmul.f32 0.2, %v1997_v35  ;;  %v3077_v46 = vadd.f32 %v3076_v40, %v3075_v36  ;;  %v3188_v47 = vpop.f32.mrb[73].mxu1  ;;  %v3078_v7 = vpop.f32.mrb[74].mxu0  ;;  %v2178_v56 = vsel %vm2114_vm2, %v1994_v32, %v2146_v34 }
 0x18e   : > { %v3189_v48 = vadd.f32 %v3188_v47, %v3187_v38  ;;  %v3190_v50 = vpop.f32.mrb[74].mxu1  ;;  %v3079_v52 = vpop.f32.mrb[75].mxu0 }
 0x18f   : > { %v2179_v58 = vsel %vm2115_vm3, %v1997_v35, %v2147_v42  ;;  %v1841_v9 = vadd.f32 %v3077_v46, %v3751_v29  ;;  %v3080_v59 = vadd.f32 %v3079_v52, %v3078_v7  ;;  %v3191_v60 = vpop.f32.mrb[75].mxu1 }
 0x190   : > { %v2736_v61 = vpack.c.bf16 %v2179_v58, %v2178_v56  ;;  %v3192_v62 = vadd.f32 %v3191_v60, %v3190_v50 }
 0x191   : > { %v2002_v2 = vadd.f32 %v3189_v48, %v1841_v9  ;;  %v1844_v4 = vadd.f32 %v3080_v59, %v3753_v31 }
 0x192   : > { %2808 = vst [vmem:[%s3817_s30 + $0x8] sm:$0xff] %v2736_v61  }
 0x193   : > { %v2148_v10 = vmul.f32 0.2, %v2002_v2  ;;  %v2005_v12 = vadd.f32 %v3192_v62, %v1844_v4  ;;  %v3081_v13 = vpop.f32.mrb[76].mxu0  ;;  %vm2116_vm4 = vcmp.ge.f32.partialorder %v2002_v2, 0.0 }
 0x194   : > { %v3193_v14 = vpop.f32.mrb[76].mxu1  ;;  %v3082_v49 = vpop.f32.mrb[77].mxu0 }
 0x195   : > { %vm2117_vm5 = vcmp.ge.f32.partialorder %v2005_v12, 0.0  ;;  %v2149_v15 = vmul.f32 0.2, %v2005_v12  ;;  %v3083_v16 = vadd.f32 %v3082_v49, %v3081_v13  ;;  %v3194_v51 = vpop.f32.mrb[77].mxu1  ;;  %v3084_v29 = vpop.f32.mrb[78].mxu0  ;;  %v2180_v24 = vsel %vm2116_vm4, %v2002_v2, %v2148_v10 }
 0x196   : > { %v3195_v17 = vadd.f32 %v3194_v51, %v3193_v14  ;;  %v3196_v18 = vpop.f32.mrb[78].mxu1  ;;  %v3085_v20 = vpop.f32.mrb[79].mxu0 }
 0x197   : > { %v2181_v28 = vsel %vm2117_vm5, %v2005_v12, %v2149_v15  ;;  %v1849_v31 = vadd.f32 %v3083_v16, %v3759_v53  ;;  %v3086_v32 = vadd.f32 %v3085_v20, %v3084_v29  ;;  %v3197_v33 = vpop.f32.mrb[79].mxu1 }
 0x198   : > { %v2741_v34 = vpack.c.bf16 %v2181_v28, %v2180_v24  ;;  %v3198_v35 = vadd.f32 %v3197_v33, %v3196_v18 }
 0x199   : > { %v2010_v36 = vadd.f32 %v3195_v17, %v1849_v31  ;;  %v1852_v38 = vadd.f32 %v3086_v32, %v3761_v55 }
 0x19a   : > { %2809 = vst [vmem:[%s3817_s30 + $0x10] sm:$0xff] %v2741_v34  }
 0x19b   : > { %v2150_v40 = vmul.f32 0.2, %v2010_v36  ;;  %v2013_v42 = vadd.f32 %v3198_v35, %v1852_v38  ;;  %v3087_v46 = vpop.f32.mrb[80].mxu0  ;;  %vm2118_vm6 = vcmp.ge.f32.partialorder %v2010_v36, 0.0 }
 0x19c   : > { %v3199_v47 = vpop.f32.mrb[80].mxu1  ;;  %v3088_v7 = vpop.f32.mrb[81].mxu0 }
 0x19d   : > { %vm2119_vm7 = vcmp.ge.f32.partialorder %v2013_v42, 0.0  ;;  %v2151_v48 = vmul.f32 0.2, %v2013_v42  ;;  %v3089_v50 = vadd.f32 %v3088_v7, %v3087_v46  ;;  %v3200_v52 = vpop.f32.mrb[81].mxu1  ;;  %v3090_v53 = vpop.f32.mrb[82].mxu0  ;;  %v2182_v59 = vsel %vm2118_vm6, %v2010_v36, %v2150_v40 }
 0x19e   : > { %v3201_v56 = vadd.f32 %v3200_v52, %v3199_v47  ;;  %v3202_v58 = vpop.f32.mrb[82].mxu1  ;;  %v3091_v9 = vpop.f32.mrb[83].mxu0 }
 0x19f   : > { %v2183_v60 = vsel %vm2119_vm7, %v2013_v42, %v2151_v48  ;;  %v1857_v55 = vadd.f32 %v3089_v50, %v3763_v5  ;;  %v3092_v61 = vadd.f32 %v3091_v9, %v3090_v53  ;;  %v3203_v62 = vpop.f32.mrb[83].mxu1 }
 0x1a0   : > { %v2746_v2 = vpack.c.bf16 %v2183_v60, %v2182_v59  ;;  %v3204_v4 = vadd.f32 %v3203_v62, %v3202_v58 }
 0x1a1   : > { %v2018_v10 = vadd.f32 %v3201_v56, %v1857_v55  ;;  %v1860_v12 = vadd.f32 %v3092_v61, %v3765_v8 }
 0x1a2   : > { %2810 = vst [vmem:[%s3817_s30 + $0x18] sm:$0xff] %v2746_v2  }
 0x1a3   : > { %v2152_v13 = vmul.f32 0.2, %v2018_v10  ;;  %v2021_v14 = vadd.f32 %v3204_v4, %v1860_v12  ;;  %v3093_v49 = vpop.f32.mrb[84].mxu0  ;;  %vm2120_vm8 = vcmp.ge.f32.partialorder %v2018_v10, 0.0 }
 0x1a4   : > { %v3205_v15 = vpop.f32.mrb[84].mxu1  ;;  %v3094_v16 = vpop.f32.mrb[85].mxu0 }
 0x1a5   : > { %vm2121_vm9 = vcmp.ge.f32.partialorder %v2021_v14, 0.0  ;;  %v2153_v51 = vmul.f32 0.2, %v2021_v14  ;;  %v3095_v29 = vadd.f32 %v3094_v16, %v3093_v49  ;;  %v3206_v17 = vpop.f32.mrb[85].mxu1  ;;  %v3096_v5 = vpop.f32.mrb[86].mxu0  ;;  %v2184_v28 = vsel %vm2120_vm8, %v2018_v10, %v2152_v13 }
 0x1a6   : > { %v3207_v18 = vadd.f32 %v3206_v17, %v3205_v15  ;;  %v3208_v20 = vpop.f32.mrb[86].mxu1  ;;  %v3097_v24 = vpop.f32.mrb[87].mxu0 }
 0x1a7   : > { %v2185_v31 = vsel %vm2121_vm9, %v2021_v14, %v2153_v51  ;;  %v1865_v8 = vadd.f32 %v3095_v29, %v3767_v21  ;;  %v3098_v32 = vadd.f32 %v3097_v24, %v3096_v5  ;;  %v3209_v33 = vpop.f32.mrb[87].mxu1 }
 0x1a8   : > { %v2751_v34 = vpack.c.bf16 %v2185_v31, %v2184_v28  ;;  %v3210_v35 = vadd.f32 %v3209_v33, %v3208_v20 }
 0x1a9   : > { %v2026_v36 = vadd.f32 %v3207_v18, %v1865_v8  ;;  %v1868_v38 = vadd.f32 %v3098_v32, %v3769_v23 }
 0x1aa   : > { %2811 = vst [vmem:[%s3817_s30 + $0x20] sm:$0xff] %v2751_v34  }
 0x1ab   : > { %v2154_v40 = vmul.f32 0.2, %v2026_v36  ;;  %v2029_v42 = vadd.f32 %v3210_v35, %v1868_v38  ;;  %v3099_v46 = vpop.f32.mrb[88].mxu0  ;;  %vm2122_vm10 = vcmp.ge.f32.partialorder %v2026_v36, 0.0 }
 0x1ac   : > { %v3211_v47 = vpop.f32.mrb[88].mxu1  ;;  %v3100_v7 = vpop.f32.mrb[89].mxu0 }
 0x1ad   : > { %vm2123_vm11 = vcmp.ge.f32.partialorder %v2029_v42, 0.0  ;;  %v2155_v48 = vmul.f32 0.2, %v2029_v42  ;;  %v3101_v50 = vadd.f32 %v3100_v7, %v3099_v46  ;;  %v3212_v52 = vpop.f32.mrb[89].mxu1  ;;  %v3102_v21 = vpop.f32.mrb[90].mxu0  ;;  %v2186_v9 = vsel %vm2122_vm10, %v2026_v36, %v2154_v40 }
 0x1ae   : > { %v3213_v53 = vadd.f32 %v3212_v52, %v3211_v47  ;;  %v3214_v56 = vpop.f32.mrb[90].mxu1  ;;  %v3103_v58 = vpop.f32.mrb[91].mxu0 }
 0x1af   : > { %v2187_v59 = vsel %vm2123_vm11, %v2029_v42, %v2155_v48  ;;  %v1873_v23 = vadd.f32 %v3101_v50, %v3771_v37  ;;  %v3104_v60 = vadd.f32 %v3103_v58, %v3102_v21  ;;  %v3215_v55 = vpop.f32.mrb[91].mxu1 }
 0x1b0   : > { %v2756_v61 = vpack.c.bf16 %v2187_v59, %v2186_v9  ;;  %v3216_v62 = vadd.f32 %v3215_v55, %v3214_v56 }
 0x1b1   : > { %v2034_v2 = vadd.f32 %v3213_v53, %v1873_v23  ;;  %v1876_v4 = vadd.f32 %v3104_v60, %v3773_v39 }
 0x1b2   : > { %2812 = vst [vmem:[%s3817_s30 + $0x28] sm:$0xff] %v2756_v61  }
 0x1b3   : > { %v2156_v10 = vmul.f32 0.2, %v2034_v2  ;;  %v2037_v12 = vadd.f32 %v3216_v62, %v1876_v4  ;;  %v3105_v13 = vpop.f32.mrb[92].mxu0  ;;  %vm2124_vm12 = vcmp.ge.f32.partialorder %v2034_v2, 0.0 }
 0x1b4   : > { %v3217_v14 = vpop.f32.mrb[92].mxu1  ;;  %v3106_v49 = vpop.f32.mrb[93].mxu0 }
 0x1b5   : > { %vm2125_vm13 = vcmp.ge.f32.partialorder %v2037_v12, 0.0  ;;  %v2157_v15 = vmul.f32 0.2, %v2037_v12  ;;  %v3107_v16 = vadd.f32 %v3106_v49, %v3105_v13  ;;  %v3218_v51 = vpop.f32.mrb[93].mxu1  ;;  %v3108_v37 = vpop.f32.mrb[94].mxu0  ;;  %v2188_v18 = vsel %vm2124_vm12, %v2034_v2, %v2156_v10 }
 0x1b6   : > { %v3219_v29 = vadd.f32 %v3218_v51, %v3217_v14  ;;  %v3220_v17 = vpop.f32.mrb[94].mxu1  ;;  %v3109_v5 = vpop.f32.mrb[95].mxu0 }
 0x1b7   : > { %v2189_v20 = vsel %vm2125_vm13, %v2037_v12, %v2157_v15  ;;  %v1881_v39 = vadd.f32 %v3107_v16, %v3775_v54  ;;  %v3110_v24 = vadd.f32 %v3109_v5, %v3108_v37  ;;  %v3221_v28 = vpop.f32.mrb[95].mxu1 }
 0x1b8   : > { %v2761_v31 = vpack.c.bf16 %v2189_v20, %v2188_v18  ;;  %v3222_v8 = vadd.f32 %v3221_v28, %v3220_v17 }
 0x1b9   : > { %v2042_v32 = vadd.f32 %v3219_v29, %v1881_v39  ;;  %v1884_v33 = vadd.f32 %v3110_v24, %v3777_v57 }
 0x1ba   : > { %2813 = vst [vmem:[%s3817_s30 + $0x30] sm:$0xff] %v2761_v31  }
 0x1bb   : > { %v2158_v34 = vmul.f32 0.2, %v2042_v32  ;;  %v2045_v35 = vadd.f32 %v3222_v8, %v1884_v33  ;;  %v3111_v36 = vpop.f32.mrb[96].mxu0  ;;  %vm2126_vm14 = vcmp.ge.f32.partialorder %v2042_v32, 0.0 }
 0x1bc   : > { %v3223_v38 = vpop.f32.mrb[96].mxu1  ;;  %v3112_v40 = vpop.f32.mrb[97].mxu0 }
 0x1bd   : > { %vm2127_vm15 = vcmp.ge.f32.partialorder %v2045_v35, 0.0  ;;  %v2159_v42 = vmul.f32 0.2, %v2045_v35  ;;  %v3113_v46 = vadd.f32 %v3112_v40, %v3111_v36  ;;  %v3224_v47 = vpop.f32.mrb[97].mxu1  ;;  %v3114_v54 = vpop.f32.mrb[98].mxu0  ;;  %v2190_v52 = vsel %vm2126_vm14, %v2042_v32, %v2158_v34 }
 0x1be   : > { %v3225_v7 = vadd.f32 %v3224_v47, %v3223_v38  ;;  %v3226_v48 = vpop.f32.mrb[98].mxu1  ;;  %v3115_v50 = vpop.f32.mrb[99].mxu0 }
 0x1bf   : > { %v2191_v21 = vsel %vm2127_vm15, %v2045_v35, %v2159_v42  ;;  %v1889_v57 = vadd.f32 %v3113_v46, %v3779_v6  ;;  %v3116_v53 = vadd.f32 %v3115_v50, %v3114_v54  ;;  %v3227_v56 = vpop.f32.mrb[99].mxu1 }
 0x1c0   : > { %v2766_v58 = vpack.c.bf16 %v2191_v21, %v2190_v52  ;;  %v3228_v9 = vadd.f32 %v3227_v56, %v3226_v48 }
 0x1c1   : > { %v2050_v59 = vadd.f32 %v3225_v7, %v1889_v57  ;;  %v1892_v23 = vadd.f32 %v3116_v53, %v3781_v11 }
 0x1c2   : > { %2814 = vst [vmem:[%s3817_s30 + $0x38] sm:$0xff] %v2766_v58  }
 0x1c3   : > { %v2160_v60 = vmul.f32 0.2, %v2050_v59  ;;  %v2053_v55 = vadd.f32 %v3228_v9, %v1892_v23  ;;  %v3117_v61 = vpop.f32.mrb[100].mxu0  ;;  %vm2128_vm0 = vcmp.ge.f32.partialorder %v2050_v59, 0.0 }
 0x1c4   : > { %v3229_v62 = vpop.f32.mrb[100].mxu1  ;;  %v3118_v2 = vpop.f32.mrb[101].mxu0 }
 0x1c5   : > { %vm2129_vm1 = vcmp.ge.f32.partialorder %v2053_v55, 0.0  ;;  %v2161_v4 = vmul.f32 0.2, %v2053_v55  ;;  %v3119_v10 = vadd.f32 %v3118_v2, %v3117_v61  ;;  %v3230_v12 = vpop.f32.mrb[101].mxu1  ;;  %v3120_v6 = vpop.f32.mrb[102].mxu0  ;;  %v2192_v15 = vsel %vm2128_vm0, %v2050_v59, %v2160_v60 }
 0x1c6   : > { %v3231_v13 = vadd.f32 %v3230_v12, %v3229_v62  ;;  %v3232_v14 = vpop.f32.mrb[102].mxu1  ;;  %v3121_v49 = vpop.f32.mrb[103].mxu0 }
 0x1c7   : > { %v2193_v16 = vsel %vm2129_vm1, %v2053_v55, %v2161_v4  ;;  %v1897_v11 = vadd.f32 %v3119_v10, %v3783_v25  ;;  %v3122_v51 = vadd.f32 %v3121_v49, %v3120_v6  ;;  %v3233_v37 = vpop.f32.mrb[103].mxu1 }
 0x1c8   : > { %v2771_v29 = vpack.c.bf16 %v2193_v16, %v2192_v15  ;;  %v3234_v17 = vadd.f32 %v3233_v37, %v3232_v14 }
 0x1c9   : > { %v2058_v5 = vadd.f32 %v3231_v13, %v1897_v11  ;;  %v1900_v18 = vadd.f32 %v3122_v51, %v3785_v27 }
 0x1ca   : > { %2815 = vst [vmem:[%s3817_s30 + $0x40] sm:$0xff] %v2771_v29  }
 0x1cb   : > { %v2162_v20 = vmul.f32 0.2, %v2058_v5  ;;  %v2061_v39 = vadd.f32 %v3234_v17, %v1900_v18  ;;  %v3123_v24 = vpop.f32.mrb[104].mxu0  ;;  %vm2130_vm2 = vcmp.ge.f32.partialorder %v2058_v5, 0.0 }
 0x1cc   : > { %v3235_v28 = vpop.f32.mrb[104].mxu1  ;;  %v3124_v31 = vpop.f32.mrb[105].mxu0 }
 0x1cd   : > { %vm2131_vm3 = vcmp.ge.f32.partialorder %v2061_v39, 0.0  ;;  %v2163_v8 = vmul.f32 0.2, %v2061_v39  ;;  %v3125_v32 = vadd.f32 %v3124_v31, %v3123_v24  ;;  %v3236_v33 = vpop.f32.mrb[105].mxu1  ;;  %v3126_v25 = vpop.f32.mrb[106].mxu0  ;;  %v2194_v38 = vsel %vm2130_vm2, %v2058_v5, %v2162_v20 }
 0x1ce   : > { %v3237_v34 = vadd.f32 %v3236_v33, %v3235_v28  ;;  %v3238_v35 = vpop.f32.mrb[106].mxu1  ;;  %v3127_v36 = vpop.f32.mrb[107].mxu0 }
 0x1cf   : > { %v2195_v40 = vsel %vm2131_vm3, %v2061_v39, %v2163_v8  ;;  %v1905_v27 = vadd.f32 %v3125_v32, %v3787_v43  ;;  %v3128_v42 = vadd.f32 %v3127_v36, %v3126_v25  ;;  %v3239_v46 = vpop.f32.mrb[107].mxu1 }
 0x1d0   : > { %v2776_v47 = vpack.c.bf16 %v2195_v40, %v2194_v38  ;;  %v3240_v54 = vadd.f32 %v3239_v46, %v3238_v35 }
 0x1d1   : > { %v2066_v7 = vadd.f32 %v3237_v34, %v1905_v27  ;;  %v1908_v48 = vadd.f32 %v3128_v42, %v3789_v45 }
 0x1d2   : > { %2816 = vst [vmem:[%s3817_s30 + $0x48] sm:$0xff] %v2776_v47  }
 0x1d3   : > { %v2164_v50 = vmul.f32 0.2, %v2066_v7  ;;  %v2069_v52 = vadd.f32 %v3240_v54, %v1908_v48  ;;  %v3129_v21 = vpop.f32.mrb[108].mxu0  ;;  %vm2132_vm4 = vcmp.ge.f32.partialorder %v2066_v7, 0.0 }
 0x1d4   : > { %v3241_v57 = vpop.f32.mrb[108].mxu1  ;;  %v3130_v53 = vpop.f32.mrb[109].mxu0 }
 0x1d5   : > { %vm2133_vm5 = vcmp.ge.f32.partialorder %v2069_v52, 0.0  ;;  %v2165_v56 = vmul.f32 0.2, %v2069_v52  ;;  %v3131_v58 = vadd.f32 %v3130_v53, %v3129_v21  ;;  %v3242_v9 = vpop.f32.mrb[109].mxu1  ;;  %v3132_v43 = vpop.f32.mrb[110].mxu0  ;;  %v2196_v55 = vsel %vm2132_vm4, %v2066_v7, %v2164_v50 }
 0x1d6   : > { %v3243_v59 = vadd.f32 %v3242_v9, %v3241_v57  ;;  %v3244_v23 = vpop.f32.mrb[110].mxu1  ;;  %v3133_v60 = vpop.f32.mrb[111].mxu0 }
 0x1d7   : > { %v2197_v61 = vsel %vm2133_vm5, %v2069_v52, %v2165_v56  ;;  %v1913_v45 = vadd.f32 %v3131_v58, %v3791_v63  ;;  %v3134_v62 = vadd.f32 %v3133_v60, %v3132_v43  ;;  %v3245_v2 = vpop.f32.mrb[111].mxu1 }
 0x1d8   : > { %v2781_v4 = vpack.c.bf16 %v2197_v61, %v2196_v55  ;;  %v3246_v10 = vadd.f32 %v3245_v2, %v3244_v23 }
 0x1d9   : > { %v2074_v12 = vadd.f32 %v3243_v59, %v1913_v45  ;;  %v1916_v6 = vadd.f32 %v3134_v62, %v3793_v1 }
 0x1da   : > { %2817 = vst [vmem:[%s3817_s30 + $0x50] sm:$0xff] %v2781_v4  }
 0x1db   : > { %v2166_v13 = vmul.f32 0.2, %v2074_v12  ;;  %v2077_v14 = vadd.f32 %v3246_v10, %v1916_v6  ;;  %v3135_v49 = vpop.f32.mrb[112].mxu0  ;;  %vm2134_vm6 = vcmp.ge.f32.partialorder %v2074_v12, 0.0 }
 0x1dc   : > { %v3247_v15 = vpop.f32.mrb[112].mxu1  ;;  %v3136_v16 = vpop.f32.mrb[113].mxu0 }
 0x1dd   : > { %vm2135_vm7 = vcmp.ge.f32.partialorder %v2077_v14, 0.0  ;;  %v2167_v11 = vmul.f32 0.2, %v2077_v14  ;;  %v3137_v51 = vadd.f32 %v3136_v16, %v3135_v49  ;;  %v3248_v37 = vpop.f32.mrb[113].mxu1  ;;  %v3138_v63 = vpop.f32.mrb[114].mxu0  ;;  %v2198_v18 = vsel %vm2134_vm6, %v2074_v12, %v2166_v13 }
 0x1de   : > { %v3249_v29 = vadd.f32 %v3248_v37, %v3247_v15  ;;  %v3250_v17 = vpop.f32.mrb[114].mxu1  ;;  %v3139_v5 = vpop.f32.mrb[115].mxu0 }
 0x1df   : > { %v2199_v20 = vsel %vm2135_vm7, %v2077_v14, %v2167_v11  ;;  %v1921_v1 = vadd.f32 %v3137_v51, %v3795_v19  ;;  %v3140_v39 = vadd.f32 %v3139_v5, %v3138_v63  ;;  %v3251_v24 = vpop.f32.mrb[115].mxu1 }
 0x1e0   : > { %v2786_v28 = vpack.c.bf16 %v2199_v20, %v2198_v18  ;;  %v3252_v31 = vadd.f32 %v3251_v24, %v3250_v17 }
 0x1e1   : > { %v2082_v8 = vadd.f32 %v3249_v29, %v1921_v1  ;;  %v1924_v32 = vadd.f32 %v3140_v39, %v3797_v22 }
 0x1e2   : > { %2818 = vst [vmem:[%s3817_s30 + $0x58] sm:$0xff] %v2786_v28  }
 0x1e3   : > { %v2168_v33 = vmul.f32 0.2, %v2082_v8  ;;  %v2085_v25 = vadd.f32 %v3252_v31, %v1924_v32  ;;  %v3141_v34 = vpop.f32.mrb[116].mxu0  ;;  %vm2136_vm8 = vcmp.ge.f32.partialorder %v2082_v8, 0.0 }
 0x1e4   : > { %v3253_v35 = vpop.f32.mrb[116].mxu1  ;;  %v3142_v36 = vpop.f32.mrb[117].mxu0 }
 0x1e5   : > { %vm2137_vm9 = vcmp.ge.f32.partialorder %v2085_v25, 0.0  ;;  %v2169_v38 = vmul.f32 0.2, %v2085_v25  ;;  %v3143_v40 = vadd.f32 %v3142_v36, %v3141_v34  ;;  %v3254_v27 = vpop.f32.mrb[117].mxu1  ;;  %v3144_v19 = vpop.f32.mrb[118].mxu0  ;;  %v2200_v54 = vsel %vm2136_vm8, %v2082_v8, %v2168_v33 }
 0x1e6   : > { %v3255_v42 = vadd.f32 %v3254_v27, %v3253_v35  ;;  %v3256_v46 = vpop.f32.mrb[118].mxu1  ;;  %v3145_v47 = vpop.f32.mrb[119].mxu0 }
 0x1e7   : > { %v2201_v7 = vsel %vm2137_vm9, %v2085_v25, %v2169_v38  ;;  %v1929_v22 = vadd.f32 %v3143_v40, %v3799_v41  ;;  %v3146_v48 = vadd.f32 %v3145_v47, %v3144_v19  ;;  %v3257_v50 = vpop.f32.mrb[119].mxu1 }
 0x1e8   : > { %v2791_v52 = vpack.c.bf16 %v2201_v7, %v2200_v54  ;;  %v3258_v21 = vadd.f32 %v3257_v50, %v3256_v46 }
 0x1e9   : > { %v2090_v57 = vadd.f32 %v3255_v42, %v1929_v22  ;;  %v1932_v53 = vadd.f32 %v3146_v48, %v3801_v44 }
 0x1ea   : > { %2819 = vst [vmem:[%s3817_s30 + $0x60] sm:$0xff] %v2791_v52  }
 0x1eb   : > { %v2170_v56 = vmul.f32 0.2, %v2090_v57  ;;  %v2093_v58 = vadd.f32 %v3258_v21, %v1932_v53  ;;  %v3147_v9 = vpop.f32.mrb[120].mxu0  ;;  %vm2138_vm10 = vcmp.ge.f32.partialorder %v2090_v57, 0.0 }
 0x1ec   : > { %v3259_v43 = vpop.f32.mrb[120].mxu1  ;;  %v3148_v59 = vpop.f32.mrb[121].mxu0 }
 0x1ed   : > { %vm2139_vm11 = vcmp.ge.f32.partialorder %v2093_v58, 0.0  ;;  %v2171_v23 = vmul.f32 0.2, %v2093_v58  ;;  %v3149_v60 = vadd.f32 %v3148_v59, %v3147_v9  ;;  %v3260_v55 = vpop.f32.mrb[121].mxu1  ;;  %v3150_v41 = vpop.f32.mrb[122].mxu0  ;;  %v2202_v2 = vsel %vm2138_vm10, %v2090_v57, %v2170_v56 }
 0x1ee   : > { %v3261_v61 = vadd.f32 %v3260_v55, %v3259_v43  ;;  %v3262_v45 = vpop.f32.mrb[122].mxu1  ;;  %v3151_v62 = vpop.f32.mrb[123].mxu0 }
 0x1ef   : > { %v2203_v4 = vsel %vm2139_vm11, %v2093_v58, %v2171_v23  ;;  %v1937_v44 = vadd.f32 %v3149_v60, %v3803_v0  ;;  %v3152_v10 = vadd.f32 %v3151_v62, %v3150_v41  ;;  %v3263_v12 = vpop.f32.mrb[123].mxu1 }
 0x1f0   : > { %v2796_v6 = vpack.c.bf16 %v2203_v4, %v2202_v2  ;;  %v3264_v13 = vadd.f32 %v3263_v12, %v3262_v45 }
 0x1f1   : > { %v2098_v14 = vadd.f32 %v3261_v61, %v1937_v44  ;;  %v1940_v49 = vadd.f32 %v3152_v10, %v3805_v3 }
 0x1f2   : > { %2820 = vst [vmem:[%s3817_s30 + $0x68] sm:$0xff] %v2796_v6  }
 0x1f3   : > { %v2172_v15 = vmul.f32 0.2, %v2098_v14  ;;  %v2101_v16 = vadd.f32 %v3264_v13, %v1940_v49  ;;  %v3153_v11 = vpop.f32.mrb[124].mxu0  ;;  %vm2140_vm12 = vcmp.ge.f32.partialorder %v2098_v14, 0.0 }
 0x1f4   : > { %v3265_v51 = vpop.f32.mrb[124].mxu1  ;;  %v3154_v37 = vpop.f32.mrb[125].mxu0 }
 0x1f5   : > { %vm2141_vm13 = vcmp.ge.f32.partialorder %v2101_v16, 0.0  ;;  %v2173_v63 = vmul.f32 0.2, %v2101_v16  ;;  %v3155_v29 = vadd.f32 %v3154_v37, %v3153_v11  ;;  %v3266_v17 = vpop.f32.mrb[125].mxu1  ;;  %v3156_v0 = vpop.f32.mrb[126].mxu0  ;;  %v2204_v1 = vsel %vm2140_vm12, %v2098_v14, %v2172_v15 }
 0x1f6   : > { %v3267_v5 = vadd.f32 %v3266_v17, %v3265_v51  ;;  %v3268_v18 = vpop.f32.mrb[126].mxu1  ;;  %v3157_v20 = vpop.f32.mrb[127].mxu0 }
 0x1f7   : > { %v2205_v39 = vsel %vm2141_vm13, %v2101_v16, %v2173_v63  ;;  %v1945_v3 = vadd.f32 %v3155_v29, %v3807_v26  ;;  %v3158_v24 = vadd.f32 %v3157_v20, %v3156_v0  ;;  %v3269_v28 = vpop.f32.mrb[127].mxu1 }
 0x1f8   : > { %v2801_v31 = vpack.c.bf16 %v2205_v39, %v2204_v1  ;;  %v3270_v8 = vadd.f32 %v3269_v28, %v3268_v18 }
 0x1f9   : > { %v2106_v32 = vadd.f32 %v3267_v5, %v1945_v3  ;;  %v1948_v33 = vadd.f32 %v3158_v24, %v3809_v30 }
 0x1fa   : > { %2821 = vst [vmem:[%s3817_s30 + $0x70] sm:$0xff] %v2801_v31  }
 0x1fb   : > { %v2174_v25 = vmul.f32 0.2, %v2106_v32  ;;  %v2109_v34 = vadd.f32 %v3270_v8, %v1948_v33  ;;  %vm2142_vm14 = vcmp.ge.f32.partialorder %v2106_v32, 0.0 }
 0x1fd   : > { %vm2143_vm15 = vcmp.ge.f32.partialorder %v2109_v34, 0.0  ;;  %v2175_v35 = vmul.f32 0.2, %v2109_v34  ;;  %v2206_v36 = vsel %vm2142_vm14, %v2106_v32, %v2174_v25 }
 0x1ff   : > { %v2207_v38 = vsel %vm2143_vm15, %v2109_v34, %v2175_v35 }
 0x200   : > { %v2806_v40 = vpack.c.bf16 %v2207_v38, %v2206_v36 }
 0x202   : > { %2822 = vst [vmem:[%s3817_s30 + $0x78] sm:$0xff] %v2806_v40  }
 0x203 PF: > { %s12_s11 = sadd.s32 1, %s3381_s11   ;;  %s3877_s9 = smov %s3377_s10 }
 0x204   : > { %p9_p5 = scmp.ge.s32.totalorder %s12_s11, 4   ;;  %s3878_s10 = smov %s3880_s12 }
 0x206   :  { %11 = sbr.rel (!%p9_p5) target bundleno = 2 (0x2), region = 61 }

// kernel: forward.7
= control target key start
LH: loop header
LB: loop body
LE: loop exit
PB: predicated region body
PF: predicated region fallthrough
CT: control target
= control target key end

     0   :  { %s5213_s9 = smov 0   ;;  %s5215_s10 = smov 0   ;;  %s6505_s0 = inlined_call_operand.vmem [shape: bf16[128,2048], index: 0, kind: input, shape index: {}]   ;;  %s6506_s1 = inlined_call_operand.vmem [shape: bf16[2048,256], index: 1, kind: input, shape index: {}]   ;;  %s6507_s2 = inlined_call_operand.vmem [shape: bf16[128,256], index: 2, kind: output, shape index: {}]  }
   0x1   :  { %s5217_s11 = smov 0   ;;  %s5219_s12 = smov 0  }
   0x2   :  { %s5221_s13 = smov 0  }
   0x3 LB: > { %s24_s14 = sadd.s32 1, %s5192_s12  ;;  %s4129_s15 = sadd.s32 4294967295, %s5196_s13   ;;  %s5196_s13 = sphi %s5221_s13, %s12_s13   ;;  %s5192_s12 = sphi %s5219_s12, %s6512_s12   ;;  %s5188_s11 = sphi %s5217_s11, %s6511_s11   ;;  %s5184_s10 = sphi %s5215_s10, %s6510_s10   ;;  %s5180_s9 = sphi %s5213_s9, %s6509_s9  }
   0x4   : > { %p26_p0 = scmp.ge.s32.totalorder %s24_s14, 2  ;;  %p64_p1 = scmp.ne.s32.totalorder %s5184_s10, %s5180_s9 }
   0x5   : > { %p65_p2 = scmp.eq.s32.totalorder %s5196_s13, 0  ;;  %p96_p4 = scmp.eq.s32.totalorder %s4129_s15, 1 }
   0x6   : > { %s6514_s14 = smov (%p26_p0, %s24_s14), 0  ;;  %s57_s17 = sadd.s32 1, %s5184_s10 }
   0x7   : > { %p66_p3 = por %p65_p2, %p64_p1  ;;  %s54_s16 = ssub.s32 %s5192_s12, %s6514_s14 }
   0x8   : > { %p55_p5 = scmp.eq.s32.totalorder %s54_s16, 0  ;;  %p5248_p6 = por %p96_p4, %p64_p1 }
   0x9   : > { %p4133_p7 = scmp.ge.s32.totalorder %s5196_s13, 2 }
   0xa   : > { %s5253_s19 = scalar_select %p55_p5, %s5184_s10, %s57_s17  }
   0xb   : > { %128 = sbr.rel (%p4133_p7) target bundleno = 192 (0xc0), region = 20 }
  0x12   : > { %131 = sbr.rel (!%p66_p3) target bundleno = 192 (0xc0), region = 24  ;;  %s133_s20 = sand.u32 (%p66_p3), 1, %s5184_s10  }
  0x13   : > { %s4135_s21 = sshll.u32 (%p66_p3), %s5192_s12, 2  ;;  %s4134_s22 = sshll.u32 (%p66_p3), %s133_s20, 10 }
  0x14   : > { %s5261_s25 = scalar_lea.vmem (%p66_p3), %s6506_s1, %s4135_s21  ;;  %s5265_s26 = scalar_lea.vmem (%p66_p3), [#allocation2], %s4134_s22 }
  0x15   : > { %v153_v0 = vld [vmem:[%s5261_s25] sm:$0xf] (%p66_p3)  ;;  %v155_v1 = vld [vmem:[%s5261_s25 + $0x8] sm:$0xf] (%p66_p3)  ;;  %v157_v2 = vld [vmem:[%s5261_s25 + $0x10] sm:$0xf] (%p66_p3) }
  0x16   : > { %154 = vst [vmem:[%s5265_s26] sm:$0xf] (%p66_p3), %v153_v0  ;;  %156 = vst [vmem:[%s5265_s26 + $0x4] sm:$0xf] (%p66_p3), %v155_v1  ;;  %v159_v3 = vld [vmem:[%s5261_s25 + $0x18] sm:$0xf] (%p66_p3) }
  0x17   : > { %v161_v4 = vld [vmem:[%s5261_s25 + $0x20] sm:$0xf] (%p66_p3)  ;;  %158 = vst [vmem:[%s5265_s26 + $0x8] sm:$0xf] (%p66_p3), %v157_v2  ;;  %160 = vst [vmem:[%s5265_s26 + $0xc] sm:$0xf] (%p66_p3), %v159_v3 }
  0x18   : > { %162 = vst [vmem:[%s5265_s26 + $0x10] sm:$0xf] (%p66_p3), %v161_v4  ;;  %v163_v5 = vld [vmem:[%s5261_s25 + $0x28] sm:$0xf] (%p66_p3)  ;;  %v165_v6 = vld [vmem:[%s5261_s25 + $0x30] sm:$0xf] (%p66_p3) }
  0x19   : > { %v167_v7 = vld [vmem:[%s5261_s25 + $0x38] sm:$0xf]  ;;  %164 = vst [vmem:[%s5265_s26 + $0x14] sm:$0xf] %v163_v5  ;;  %166 = vst [vmem:[%s5265_s26 + $0x18] sm:$0xf] %v165_v6 }
  0x1a   : > { %168 = vst [vmem:[%s5265_s26 + $0x1c] sm:$0xf] %v167_v7  ;;  %v169_v8 = vld [vmem:[%s5261_s25 + $0x40] sm:$0xf]  ;;  %v171_v9 = vld [vmem:[%s5261_s25 + $0x48] sm:$0xf] }
  0x1b   : > { %v173_v10 = vld [vmem:[%s5261_s25 + $0x50] sm:$0xf]  ;;  %170 = vst [vmem:[%s5265_s26 + $0x20] sm:$0xf] %v169_v8  ;;  %172 = vst [vmem:[%s5265_s26 + $0x24] sm:$0xf] %v171_v9 }
  0x1c   : > { %174 = vst [vmem:[%s5265_s26 + $0x28] sm:$0xf] %v173_v10  ;;  %v175_v11 = vld [vmem:[%s5261_s25 + $0x58] sm:$0xf]  ;;  %v177_v12 = vld [vmem:[%s5261_s25 + $0x60] sm:$0xf] }
  0x1d   : > { %v179_v13 = vld [vmem:[%s5261_s25 + $0x68] sm:$0xf]  ;;  %176 = vst [vmem:[%s5265_s26 + $0x2c] sm:$0xf] %v175_v11  ;;  %178 = vst [vmem:[%s5265_s26 + $0x30] sm:$0xf] %v177_v12 }
  0x1e   : > { %180 = vst [vmem:[%s5265_s26 + $0x34] sm:$0xf] %v179_v13  ;;  %v181_v14 = vld [vmem:[%s5261_s25 + $0x70] sm:$0xf]  ;;  %v183_v15 = vld [vmem:[%s5261_s25 + $0x78] sm:$0xf] }
  0x1f   : > { %v185_v16 = vld [vmem:[%s5261_s25 + $0x80] sm:$0xf]  ;;  %182 = vst [vmem:[%s5265_s26 + $0x38] sm:$0xf] %v181_v14  ;;  %184 = vst [vmem:[%s5265_s26 + $0x3c] sm:$0xf] %v183_v15 }
  0x20   : > { %186 = vst [vmem:[%s5265_s26 + $0x40] sm:$0xf] %v185_v16  ;;  %v187_v17 = vld [vmem:[%s5261_s25 + $0x88] sm:$0xf]  ;;  %v189_v18 = vld [vmem:[%s5261_s25 + $0x90] sm:$0xf] }
  0x21   : > { %v191_v19 = vld [vmem:[%s5261_s25 + $0x98] sm:$0xf]  ;;  %188 = vst [vmem:[%s5265_s26 + $0x44] sm:$0xf] %v187_v17  ;;  %190 = vst [vmem:[%s5265_s26 + $0x48] sm:$0xf] %v189_v18 }
  0x22   : > { %192 = vst [vmem:[%s5265_s26 + $0x4c] sm:$0xf] %v191_v19  ;;  %v193_v20 = vld [vmem:[%s5261_s25 + $0xa0] sm:$0xf]  ;;  %v195_v21 = vld [vmem:[%s5261_s25 + $0xa8] sm:$0xf] }
  0x23   : > { %v197_v22 = vld [vmem:[%s5261_s25 + $0xb0] sm:$0xf]  ;;  %194 = vst [vmem:[%s5265_s26 + $0x50] sm:$0xf] %v193_v20  ;;  %196 = vst [vmem:[%s5265_s26 + $0x54] sm:$0xf] %v195_v21 }
  0x24   : > { %198 = vst [vmem:[%s5265_s26 + $0x58] sm:$0xf] %v197_v22  ;;  %v199_v23 = vld [vmem:[%s5261_s25 + $0xb8] sm:$0xf]  ;;  %v201_v24 = vld [vmem:[%s5261_s25 + $0xc0] sm:$0xf] }
  0x25   : > { %v203_v25 = vld [vmem:[%s5261_s25 + $0xc8] sm:$0xf]  ;;  %200 = vst [vmem:[%s5265_s26 + $0x5c] sm:$0xf] %v199_v23  ;;  %202 = vst [vmem:[%s5265_s26 + $0x60] sm:$0xf] %v201_v24 }
  0x26   : > { %204 = vst [vmem:[%s5265_s26 + $0x64] sm:$0xf] %v203_v25  ;;  %v205_v26 = vld [vmem:[%s5261_s25 + $0xd0] sm:$0xf]  ;;  %v207_v27 = vld [vmem:[%s5261_s25 + $0xd8] sm:$0xf] }
  0x27   : > { %v209_v28 = vld [vmem:[%s5261_s25 + $0xe0] sm:$0xf]  ;;  %206 = vst [vmem:[%s5265_s26 + $0x68] sm:$0xf] %v205_v26  ;;  %208 = vst [vmem:[%s5265_s26 + $0x6c] sm:$0xf] %v207_v27 }
  0x28   : > { %210 = vst [vmem:[%s5265_s26 + $0x70] sm:$0xf] %v209_v28  ;;  %v211_v29 = vld [vmem:[%s5261_s25 + $0xe8] sm:$0xf]  ;;  %v213_v30 = vld [vmem:[%s5261_s25 + $0xf0] sm:$0xf] }
  0x29   : > { %v215_v31 = vld [vmem:[%s5261_s25 + $0xf8] sm:$0xf]  ;;  %212 = vst [vmem:[%s5265_s26 + $0x74] sm:$0xf] %v211_v29  ;;  %214 = vst [vmem:[%s5265_s26 + $0x78] sm:$0xf] %v213_v30 }
  0x2a   : > { %216 = vst [vmem:[%s5265_s26 + $0x7c] sm:$0xf] %v215_v31  ;;  %v217_v32 = vld [vmem:[%s5261_s25 + $0x100] sm:$0xf]  ;;  %v219_v33 = vld [vmem:[%s5261_s25 + $0x108] sm:$0xf] }
  0x2b   : > { %v221_v34 = vld [vmem:[%s5261_s25 + $0x110] sm:$0xf]  ;;  %218 = vst [vmem:[%s5265_s26 + $0x80] sm:$0xf] %v217_v32  ;;  %220 = vst [vmem:[%s5265_s26 + $0x84] sm:$0xf] %v219_v33 }
  0x2c   : > { %222 = vst [vmem:[%s5265_s26 + $0x88] sm:$0xf] %v221_v34  ;;  %v223_v35 = vld [vmem:[%s5261_s25 + $0x118] sm:$0xf]  ;;  %v225_v36 = vld [vmem:[%s5261_s25 + $0x120] sm:$0xf] }
  0x2d   : > { %v227_v37 = vld [vmem:[%s5261_s25 + $0x128] sm:$0xf]  ;;  %224 = vst [vmem:[%s5265_s26 + $0x8c] sm:$0xf] %v223_v35  ;;  %226 = vst [vmem:[%s5265_s26 + $0x90] sm:$0xf] %v225_v36 }
  0x2e   : > { %228 = vst [vmem:[%s5265_s26 + $0x94] sm:$0xf] %v227_v37  ;;  %v229_v38 = vld [vmem:[%s5261_s25 + $0x130] sm:$0xf]  ;;  %v231_v39 = vld [vmem:[%s5261_s25 + $0x138] sm:$0xf] }
  0x2f   : > { %v233_v40 = vld [vmem:[%s5261_s25 + $0x140] sm:$0xf]  ;;  %230 = vst [vmem:[%s5265_s26 + $0x98] sm:$0xf] %v229_v38  ;;  %232 = vst [vmem:[%s5265_s26 + $0x9c] sm:$0xf] %v231_v39 }
  0x30   : > { %234 = vst [vmem:[%s5265_s26 + $0xa0] sm:$0xf] %v233_v40  ;;  %v235_v41 = vld [vmem:[%s5261_s25 + $0x148] sm:$0xf]  ;;  %v237_v42 = vld [vmem:[%s5261_s25 + $0x150] sm:$0xf] }
  0x31   : > { %v239_v43 = vld [vmem:[%s5261_s25 + $0x158] sm:$0xf]  ;;  %236 = vst [vmem:[%s5265_s26 + $0xa4] sm:$0xf] %v235_v41  ;;  %238 = vst [vmem:[%s5265_s26 + $0xa8] sm:$0xf] %v237_v42 }
  0x32   : > { %240 = vst [vmem:[%s5265_s26 + $0xac] sm:$0xf] %v239_v43  ;;  %v241_v44 = vld [vmem:[%s5261_s25 + $0x160] sm:$0xf]  ;;  %v243_v45 = vld [vmem:[%s5261_s25 + $0x168] sm:$0xf] }
  0x33   : > { %v245_v46 = vld [vmem:[%s5261_s25 + $0x170] sm:$0xf]  ;;  %242 = vst [vmem:[%s5265_s26 + $0xb0] sm:$0xf] %v241_v44  ;;  %244 = vst [vmem:[%s5265_s26 + $0xb4] sm:$0xf] %v243_v45 }
  0x34   : > { %246 = vst [vmem:[%s5265_s26 + $0xb8] sm:$0xf] %v245_v46  ;;  %v247_v47 = vld [vmem:[%s5261_s25 + $0x178] sm:$0xf]  ;;  %v249_v48 = vld [vmem:[%s5261_s25 + $0x180] sm:$0xf] }
  0x35   : > { %v251_v49 = vld [vmem:[%s5261_s25 + $0x188] sm:$0xf]  ;;  %248 = vst [vmem:[%s5265_s26 + $0xbc] sm:$0xf] %v247_v47  ;;  %250 = vst [vmem:[%s5265_s26 + $0xc0] sm:$0xf] %v249_v48 }
  0x36   : > { %252 = vst [vmem:[%s5265_s26 + $0xc4] sm:$0xf] %v251_v49  ;;  %v253_v50 = vld [vmem:[%s5261_s25 + $0x190] sm:$0xf]  ;;  %v255_v51 = vld [vmem:[%s5261_s25 + $0x198] sm:$0xf] }
  0x37   : > { %v257_v52 = vld [vmem:[%s5261_s25 + $0x1a0] sm:$0xf]  ;;  %254 = vst [vmem:[%s5265_s26 + $0xc8] sm:$0xf] %v253_v50  ;;  %256 = vst [vmem:[%s5265_s26 + $0xcc] sm:$0xf] %v255_v51 }
  0x38   : > { %258 = vst [vmem:[%s5265_s26 + $0xd0] sm:$0xf] %v257_v52  ;;  %v259_v53 = vld [vmem:[%s5261_s25 + $0x1a8] sm:$0xf]  ;;  %v261_v54 = vld [vmem:[%s5261_s25 + $0x1b0] sm:$0xf] }
  0x39   : > { %v263_v55 = vld [vmem:[%s5261_s25 + $0x1b8] sm:$0xf]  ;;  %260 = vst [vmem:[%s5265_s26 + $0xd4] sm:$0xf] %v259_v53  ;;  %262 = vst [vmem:[%s5265_s26 + $0xd8] sm:$0xf] %v261_v54 }
  0x3a   : > { %264 = vst [vmem:[%s5265_s26 + $0xdc] sm:$0xf] %v263_v55  ;;  %v265_v56 = vld [vmem:[%s5261_s25 + $0x1c0] sm:$0xf]  ;;  %v267_v57 = vld [vmem:[%s5261_s25 + $0x1c8] sm:$0xf] }
  0x3b   : > { %v269_v58 = vld [vmem:[%s5261_s25 + $0x1d0] sm:$0xf]  ;;  %266 = vst [vmem:[%s5265_s26 + $0xe0] sm:$0xf] %v265_v56  ;;  %268 = vst [vmem:[%s5265_s26 + $0xe4] sm:$0xf] %v267_v57 }
  0x3c   : > { %270 = vst [vmem:[%s5265_s26 + $0xe8] sm:$0xf] %v269_v58  ;;  %v271_v59 = vld [vmem:[%s5261_s25 + $0x1d8] sm:$0xf]  ;;  %v273_v60 = vld [vmem:[%s5261_s25 + $0x1e0] sm:$0xf] }
  0x3d   : > { %v275_v61 = vld [vmem:[%s5261_s25 + $0x1e8] sm:$0xf]  ;;  %272 = vst [vmem:[%s5265_s26 + $0xec] sm:$0xf] %v271_v59  ;;  %274 = vst [vmem:[%s5265_s26 + $0xf0] sm:$0xf] %v273_v60 }
  0x3e   : > { %276 = vst [vmem:[%s5265_s26 + $0xf4] sm:$0xf] %v275_v61  ;;  %v277_v62 = vld [vmem:[%s5261_s25 + $0x1f0] sm:$0xf]  ;;  %v279_v63 = vld [vmem:[%s5261_s25 + $0x1f8] sm:$0xf] }
  0x3f   : > { %v281_v0 = vld [vmem:[%s5261_s25 + $0x200] sm:$0xf]  ;;  %278 = vst [vmem:[%s5265_s26 + $0xf8] sm:$0xf] %v277_v62  ;;  %280 = vst [vmem:[%s5265_s26 + $0xfc] sm:$0xf] %v279_v63 }
  0x40   : > { %282 = vst [vmem:[%s5265_s26 + $0x100] sm:$0xf] %v281_v0  ;;  %v283_v1 = vld [vmem:[%s5261_s25 + $0x208] sm:$0xf]  ;;  %v285_v2 = vld [vmem:[%s5261_s25 + $0x210] sm:$0xf] }
  0x41   : > { %v287_v3 = vld [vmem:[%s5261_s25 + $0x218] sm:$0xf]  ;;  %284 = vst [vmem:[%s5265_s26 + $0x104] sm:$0xf] %v283_v1  ;;  %286 = vst [vmem:[%s5265_s26 + $0x108] sm:$0xf] %v285_v2 }
  0x42   : > { %288 = vst [vmem:[%s5265_s26 + $0x10c] sm:$0xf] %v287_v3  ;;  %v289_v4 = vld [vmem:[%s5261_s25 + $0x220] sm:$0xf]  ;;  %v291_v5 = vld [vmem:[%s5261_s25 + $0x228] sm:$0xf] }
  0x43   : > { %v293_v6 = vld [vmem:[%s5261_s25 + $0x230] sm:$0xf]  ;;  %290 = vst [vmem:[%s5265_s26 + $0x110] sm:$0xf] %v289_v4  ;;  %292 = vst [vmem:[%s5265_s26 + $0x114] sm:$0xf] %v291_v5 }
  0x44   : > { %294 = vst [vmem:[%s5265_s26 + $0x118] sm:$0xf] %v293_v6  ;;  %v295_v7 = vld [vmem:[%s5261_s25 + $0x238] sm:$0xf]  ;;  %v297_v8 = vld [vmem:[%s5261_s25 + $0x240] sm:$0xf] }
  0x45   : > { %v299_v9 = vld [vmem:[%s5261_s25 + $0x248] sm:$0xf]  ;;  %296 = vst [vmem:[%s5265_s26 + $0x11c] sm:$0xf] %v295_v7  ;;  %298 = vst [vmem:[%s5265_s26 + $0x120] sm:$0xf] %v297_v8 }
  0x46   : > { %300 = vst [vmem:[%s5265_s26 + $0x124] sm:$0xf] %v299_v9  ;;  %v301_v10 = vld [vmem:[%s5261_s25 + $0x250] sm:$0xf]  ;;  %v303_v11 = vld [vmem:[%s5261_s25 + $0x258] sm:$0xf] }
  0x47   : > { %v305_v12 = vld [vmem:[%s5261_s25 + $0x260] sm:$0xf]  ;;  %302 = vst [vmem:[%s5265_s26 + $0x128] sm:$0xf] %v301_v10  ;;  %304 = vst [vmem:[%s5265_s26 + $0x12c] sm:$0xf] %v303_v11 }
  0x48   : > { %306 = vst [vmem:[%s5265_s26 + $0x130] sm:$0xf] %v305_v12  ;;  %v307_v13 = vld [vmem:[%s5261_s25 + $0x268] sm:$0xf]  ;;  %v309_v14 = vld [vmem:[%s5261_s25 + $0x270] sm:$0xf] }
  0x49   : > { %v311_v15 = vld [vmem:[%s5261_s25 + $0x278] sm:$0xf]  ;;  %308 = vst [vmem:[%s5265_s26 + $0x134] sm:$0xf] %v307_v13  ;;  %310 = vst [vmem:[%s5265_s26 + $0x138] sm:$0xf] %v309_v14 }
  0x4a   : > { %312 = vst [vmem:[%s5265_s26 + $0x13c] sm:$0xf] %v311_v15  ;;  %v313_v16 = vld [vmem:[%s5261_s25 + $0x280] sm:$0xf]  ;;  %v315_v17 = vld [vmem:[%s5261_s25 + $0x288] sm:$0xf] }
  0x4b   : > { %v317_v18 = vld [vmem:[%s5261_s25 + $0x290] sm:$0xf]  ;;  %314 = vst [vmem:[%s5265_s26 + $0x140] sm:$0xf] %v313_v16  ;;  %316 = vst [vmem:[%s5265_s26 + $0x144] sm:$0xf] %v315_v17 }
  0x4c   : > { %318 = vst [vmem:[%s5265_s26 + $0x148] sm:$0xf] %v317_v18  ;;  %v319_v19 = vld [vmem:[%s5261_s25 + $0x298] sm:$0xf]  ;;  %v321_v20 = vld [vmem:[%s5261_s25 + $0x2a0] sm:$0xf] }
  0x4d   : > { %v323_v21 = vld [vmem:[%s5261_s25 + $0x2a8] sm:$0xf]  ;;  %320 = vst [vmem:[%s5265_s26 + $0x14c] sm:$0xf] %v319_v19  ;;  %322 = vst [vmem:[%s5265_s26 + $0x150] sm:$0xf] %v321_v20 }
  0x4e   : > { %324 = vst [vmem:[%s5265_s26 + $0x154] sm:$0xf] %v323_v21  ;;  %v325_v22 = vld [vmem:[%s5261_s25 + $0x2b0] sm:$0xf]  ;;  %v327_v23 = vld [vmem:[%s5261_s25 + $0x2b8] sm:$0xf] }
  0x4f   : > { %v329_v24 = vld [vmem:[%s5261_s25 + $0x2c0] sm:$0xf]  ;;  %326 = vst [vmem:[%s5265_s26 + $0x158] sm:$0xf] %v325_v22  ;;  %328 = vst [vmem:[%s5265_s26 + $0x15c] sm:$0xf] %v327_v23 }
  0x50   : > { %330 = vst [vmem:[%s5265_s26 + $0x160] sm:$0xf] %v329_v24  ;;  %v331_v25 = vld [vmem:[%s5261_s25 + $0x2c8] sm:$0xf]  ;;  %v333_v26 = vld [vmem:[%s5261_s25 + $0x2d0] sm:$0xf] }
  0x51   : > { %v335_v27 = vld [vmem:[%s5261_s25 + $0x2d8] sm:$0xf]  ;;  %332 = vst [vmem:[%s5265_s26 + $0x164] sm:$0xf] %v331_v25  ;;  %334 = vst [vmem:[%s5265_s26 + $0x168] sm:$0xf] %v333_v26 }
  0x52   : > { %336 = vst [vmem:[%s5265_s26 + $0x16c] sm:$0xf] %v335_v27  ;;  %v337_v28 = vld [vmem:[%s5261_s25 + $0x2e0] sm:$0xf]  ;;  %v339_v29 = vld [vmem:[%s5261_s25 + $0x2e8] sm:$0xf] }
  0x53   : > { %v341_v30 = vld [vmem:[%s5261_s25 + $0x2f0] sm:$0xf]  ;;  %338 = vst [vmem:[%s5265_s26 + $0x170] sm:$0xf] %v337_v28  ;;  %340 = vst [vmem:[%s5265_s26 + $0x174] sm:$0xf] %v339_v29 }
  0x54   : > { %342 = vst [vmem:[%s5265_s26 + $0x178] sm:$0xf] %v341_v30  ;;  %v343_v31 = vld [vmem:[%s5261_s25 + $0x2f8] sm:$0xf]  ;;  %v345_v32 = vld [vmem:[%s5261_s25 + $0x300] sm:$0xf] }
  0x55   : > { %v347_v33 = vld [vmem:[%s5261_s25 + $0x308] sm:$0xf]  ;;  %344 = vst [vmem:[%s5265_s26 + $0x17c] sm:$0xf] %v343_v31  ;;  %346 = vst [vmem:[%s5265_s26 + $0x180] sm:$0xf] %v345_v32 }
  0x56   : > { %348 = vst [vmem:[%s5265_s26 + $0x184] sm:$0xf] %v347_v33  ;;  %v349_v34 = vld [vmem:[%s5261_s25 + $0x310] sm:$0xf]  ;;  %v351_v35 = vld [vmem:[%s5261_s25 + $0x318] sm:$0xf] }
  0x57   : > { %v353_v36 = vld [vmem:[%s5261_s25 + $0x320] sm:$0xf]  ;;  %350 = vst [vmem:[%s5265_s26 + $0x188] sm:$0xf] %v349_v34  ;;  %352 = vst [vmem:[%s5265_s26 + $0x18c] sm:$0xf] %v351_v35 }
  0x58   : > { %354 = vst [vmem:[%s5265_s26 + $0x190] sm:$0xf] %v353_v36  ;;  %v355_v37 = vld [vmem:[%s5261_s25 + $0x328] sm:$0xf]  ;;  %v357_v38 = vld [vmem:[%s5261_s25 + $0x330] sm:$0xf] }
  0x59   : > { %v359_v39 = vld [vmem:[%s5261_s25 + $0x338] sm:$0xf]  ;;  %356 = vst [vmem:[%s5265_s26 + $0x194] sm:$0xf] %v355_v37  ;;  %358 = vst [vmem:[%s5265_s26 + $0x198] sm:$0xf] %v357_v38 }
  0x5a   : > { %360 = vst [vmem:[%s5265_s26 + $0x19c] sm:$0xf] %v359_v39  ;;  %v361_v40 = vld [vmem:[%s5261_s25 + $0x340] sm:$0xf]  ;;  %v363_v41 = vld [vmem:[%s5261_s25 + $0x348] sm:$0xf] }
  0x5b   : > { %v365_v42 = vld [vmem:[%s5261_s25 + $0x350] sm:$0xf]  ;;  %362 = vst [vmem:[%s5265_s26 + $0x1a0] sm:$0xf] %v361_v40  ;;  %364 = vst [vmem:[%s5265_s26 + $0x1a4] sm:$0xf] %v363_v41 }
  0x5c   : > { %366 = vst [vmem:[%s5265_s26 + $0x1a8] sm:$0xf] %v365_v42  ;;  %v367_v43 = vld [vmem:[%s5261_s25 + $0x358] sm:$0xf]  ;;  %v369_v44 = vld [vmem:[%s5261_s25 + $0x360] sm:$0xf] }
  0x5d   : > { %v371_v45 = vld [vmem:[%s5261_s25 + $0x368] sm:$0xf]  ;;  %368 = vst [vmem:[%s5265_s26 + $0x1ac] sm:$0xf] %v367_v43  ;;  %370 = vst [vmem:[%s5265_s26 + $0x1b0] sm:$0xf] %v369_v44 }
  0x5e   : > { %372 = vst [vmem:[%s5265_s26 + $0x1b4] sm:$0xf] %v371_v45  ;;  %v373_v46 = vld [vmem:[%s5261_s25 + $0x370] sm:$0xf]  ;;  %v375_v47 = vld [vmem:[%s5261_s25 + $0x378] sm:$0xf] }
  0x5f   : > { %v377_v48 = vld [vmem:[%s5261_s25 + $0x380] sm:$0xf]  ;;  %374 = vst [vmem:[%s5265_s26 + $0x1b8] sm:$0xf] %v373_v46  ;;  %376 = vst [vmem:[%s5265_s26 + $0x1bc] sm:$0xf] %v375_v47 }
  0x60   : > { %378 = vst [vmem:[%s5265_s26 + $0x1c0] sm:$0xf] %v377_v48  ;;  %v379_v49 = vld [vmem:[%s5261_s25 + $0x388] sm:$0xf]  ;;  %v381_v50 = vld [vmem:[%s5261_s25 + $0x390] sm:$0xf] }
  0x61   : > { %v383_v51 = vld [vmem:[%s5261_s25 + $0x398] sm:$0xf]  ;;  %380 = vst [vmem:[%s5265_s26 + $0x1c4] sm:$0xf] %v379_v49  ;;  %382 = vst [vmem:[%s5265_s26 + $0x1c8] sm:$0xf] %v381_v50 }
  0x62   : > { %384 = vst [vmem:[%s5265_s26 + $0x1cc] sm:$0xf] %v383_v51  ;;  %v385_v52 = vld [vmem:[%s5261_s25 + $0x3a0] sm:$0xf]  ;;  %v387_v53 = vld [vmem:[%s5261_s25 + $0x3a8] sm:$0xf] }
  0x63   : > { %v389_v54 = vld [vmem:[%s5261_s25 + $0x3b0] sm:$0xf]  ;;  %386 = vst [vmem:[%s5265_s26 + $0x1d0] sm:$0xf] %v385_v52  ;;  %388 = vst [vmem:[%s5265_s26 + $0x1d4] sm:$0xf] %v387_v53 }
  0x64   : > { %390 = vst [vmem:[%s5265_s26 + $0x1d8] sm:$0xf] %v389_v54  ;;  %v391_v55 = vld [vmem:[%s5261_s25 + $0x3b8] sm:$0xf]  ;;  %v393_v56 = vld [vmem:[%s5261_s25 + $0x3c0] sm:$0xf] }
  0x65   : > { %v395_v57 = vld [vmem:[%s5261_s25 + $0x3c8] sm:$0xf]  ;;  %392 = vst [vmem:[%s5265_s26 + $0x1dc] sm:$0xf] %v391_v55  ;;  %394 = vst [vmem:[%s5265_s26 + $0x1e0] sm:$0xf] %v393_v56 }
  0x66   : > { %396 = vst [vmem:[%s5265_s26 + $0x1e4] sm:$0xf] %v395_v57  ;;  %v397_v58 = vld [vmem:[%s5261_s25 + $0x3d0] sm:$0xf]  ;;  %v399_v59 = vld [vmem:[%s5261_s25 + $0x3d8] sm:$0xf] }
  0x67   : > { %v401_v60 = vld [vmem:[%s5261_s25 + $0x3e0] sm:$0xf]  ;;  %398 = vst [vmem:[%s5265_s26 + $0x1e8] sm:$0xf] %v397_v58  ;;  %400 = vst [vmem:[%s5265_s26 + $0x1ec] sm:$0xf] %v399_v59 }
  0x68   : > { %402 = vst [vmem:[%s5265_s26 + $0x1f0] sm:$0xf] %v401_v60  ;;  %v403_v61 = vld [vmem:[%s5261_s25 + $0x3e8] sm:$0xf]  ;;  %v405_v62 = vld [vmem:[%s5261_s25 + $0x3f0] sm:$0xf] }
  0x69   : > { %v407_v63 = vld [vmem:[%s5261_s25 + $0x3f8] sm:$0xf]  ;;  %404 = vst [vmem:[%s5265_s26 + $0x1f4] sm:$0xf] %v403_v61  ;;  %406 = vst [vmem:[%s5265_s26 + $0x1f8] sm:$0xf] %v405_v62 }
  0x6a   : > { %408 = vst [vmem:[%s5265_s26 + $0x1fc] sm:$0xf] %v407_v63  ;;  %v409_v0 = vld [vmem:[%s5261_s25 + $0x400] sm:$0xf]  ;;  %v411_v1 = vld [vmem:[%s5261_s25 + $0x408] sm:$0xf] }
  0x6b   : > { %v413_v2 = vld [vmem:[%s5261_s25 + $0x410] sm:$0xf]  ;;  %410 = vst [vmem:[%s5265_s26 + $0x200] sm:$0xf] %v409_v0  ;;  %412 = vst [vmem:[%s5265_s26 + $0x204] sm:$0xf] %v411_v1 }
  0x6c   : > { %414 = vst [vmem:[%s5265_s26 + $0x208] sm:$0xf] %v413_v2  ;;  %v415_v3 = vld [vmem:[%s5261_s25 + $0x418] sm:$0xf]  ;;  %v417_v4 = vld [vmem:[%s5261_s25 + $0x420] sm:$0xf] }
  0x6d   : > { %v419_v5 = vld [vmem:[%s5261_s25 + $0x428] sm:$0xf]  ;;  %416 = vst [vmem:[%s5265_s26 + $0x20c] sm:$0xf] %v415_v3  ;;  %418 = vst [vmem:[%s5265_s26 + $0x210] sm:$0xf] %v417_v4 }
  0x6e   : > { %420 = vst [vmem:[%s5265_s26 + $0x214] sm:$0xf] %v419_v5  ;;  %v421_v6 = vld [vmem:[%s5261_s25 + $0x430] sm:$0xf]  ;;  %v423_v7 = vld [vmem:[%s5261_s25 + $0x438] sm:$0xf] }
  0x6f   : > { %v425_v8 = vld [vmem:[%s5261_s25 + $0x440] sm:$0xf]  ;;  %422 = vst [vmem:[%s5265_s26 + $0x218] sm:$0xf] %v421_v6  ;;  %424 = vst [vmem:[%s5265_s26 + $0x21c] sm:$0xf] %v423_v7 }
  0x70   : > { %426 = vst [vmem:[%s5265_s26 + $0x220] sm:$0xf] %v425_v8  ;;  %v427_v9 = vld [vmem:[%s5261_s25 + $0x448] sm:$0xf]  ;;  %v429_v10 = vld [vmem:[%s5261_s25 + $0x450] sm:$0xf] }
  0x71   : > { %v431_v11 = vld [vmem:[%s5261_s25 + $0x458] sm:$0xf]  ;;  %428 = vst [vmem:[%s5265_s26 + $0x224] sm:$0xf] %v427_v9  ;;  %430 = vst [vmem:[%s5265_s26 + $0x228] sm:$0xf] %v429_v10 }
  0x72   : > { %432 = vst [vmem:[%s5265_s26 + $0x22c] sm:$0xf] %v431_v11  ;;  %v433_v12 = vld [vmem:[%s5261_s25 + $0x460] sm:$0xf]  ;;  %v435_v13 = vld [vmem:[%s5261_s25 + $0x468] sm:$0xf] }
  0x73   : > { %v437_v14 = vld [vmem:[%s5261_s25 + $0x470] sm:$0xf]  ;;  %434 = vst [vmem:[%s5265_s26 + $0x230] sm:$0xf] %v433_v12  ;;  %436 = vst [vmem:[%s5265_s26 + $0x234] sm:$0xf] %v435_v13 }
  0x74   : > { %438 = vst [vmem:[%s5265_s26 + $0x238] sm:$0xf] %v437_v14  ;;  %v439_v15 = vld [vmem:[%s5261_s25 + $0x478] sm:$0xf]  ;;  %v441_v16 = vld [vmem:[%s5261_s25 + $0x480] sm:$0xf] }
  0x75   : > { %v443_v17 = vld [vmem:[%s5261_s25 + $0x488] sm:$0xf]  ;;  %440 = vst [vmem:[%s5265_s26 + $0x23c] sm:$0xf] %v439_v15  ;;  %442 = vst [vmem:[%s5265_s26 + $0x240] sm:$0xf] %v441_v16 }
  0x76   : > { %444 = vst [vmem:[%s5265_s26 + $0x244] sm:$0xf] %v443_v17  ;;  %v445_v18 = vld [vmem:[%s5261_s25 + $0x490] sm:$0xf]  ;;  %v447_v19 = vld [vmem:[%s5261_s25 + $0x498] sm:$0xf] }
  0x77   : > { %v449_v20 = vld [vmem:[%s5261_s25 + $0x4a0] sm:$0xf]  ;;  %446 = vst [vmem:[%s5265_s26 + $0x248] sm:$0xf] %v445_v18  ;;  %448 = vst [vmem:[%s5265_s26 + $0x24c] sm:$0xf] %v447_v19 }
  0x78   : > { %450 = vst [vmem:[%s5265_s26 + $0x250] sm:$0xf] %v449_v20  ;;  %v451_v21 = vld [vmem:[%s5261_s25 + $0x4a8] sm:$0xf]  ;;  %v453_v22 = vld [vmem:[%s5261_s25 + $0x4b0] sm:$0xf] }
  0x79   : > { %v455_v23 = vld [vmem:[%s5261_s25 + $0x4b8] sm:$0xf]  ;;  %452 = vst [vmem:[%s5265_s26 + $0x254] sm:$0xf] %v451_v21  ;;  %454 = vst [vmem:[%s5265_s26 + $0x258] sm:$0xf] %v453_v22 }
  0x7a   : > { %456 = vst [vmem:[%s5265_s26 + $0x25c] sm:$0xf] %v455_v23  ;;  %v457_v24 = vld [vmem:[%s5261_s25 + $0x4c0] sm:$0xf]  ;;  %v459_v25 = vld [vmem:[%s5261_s25 + $0x4c8] sm:$0xf] }
  0x7b   : > { %v461_v26 = vld [vmem:[%s5261_s25 + $0x4d0] sm:$0xf]  ;;  %458 = vst [vmem:[%s5265_s26 + $0x260] sm:$0xf] %v457_v24  ;;  %460 = vst [vmem:[%s5265_s26 + $0x264] sm:$0xf] %v459_v25 }
  0x7c   : > { %462 = vst [vmem:[%s5265_s26 + $0x268] sm:$0xf] %v461_v26  ;;  %v463_v27 = vld [vmem:[%s5261_s25 + $0x4d8] sm:$0xf]  ;;  %v465_v28 = vld [vmem:[%s5261_s25 + $0x4e0] sm:$0xf] }
  0x7d   : > { %v467_v29 = vld [vmem:[%s5261_s25 + $0x4e8] sm:$0xf]  ;;  %464 = vst [vmem:[%s5265_s26 + $0x26c] sm:$0xf] %v463_v27  ;;  %466 = vst [vmem:[%s5265_s26 + $0x270] sm:$0xf] %v465_v28 }
  0x7e   : > { %468 = vst [vmem:[%s5265_s26 + $0x274] sm:$0xf] %v467_v29  ;;  %v469_v30 = vld [vmem:[%s5261_s25 + $0x4f0] sm:$0xf]  ;;  %v471_v31 = vld [vmem:[%s5261_s25 + $0x4f8] sm:$0xf] }
  0x7f   : > { %v473_v32 = vld [vmem:[%s5261_s25 + $0x500] sm:$0xf]  ;;  %470 = vst [vmem:[%s5265_s26 + $0x278] sm:$0xf] %v469_v30  ;;  %472 = vst [vmem:[%s5265_s26 + $0x27c] sm:$0xf] %v471_v31 }
  0x80   : > { %474 = vst [vmem:[%s5265_s26 + $0x280] sm:$0xf] %v473_v32  ;;  %v475_v33 = vld [vmem:[%s5261_s25 + $0x508] sm:$0xf]  ;;  %v477_v34 = vld [vmem:[%s5261_s25 + $0x510] sm:$0xf] }
  0x81   : > { %v479_v35 = vld [vmem:[%s5261_s25 + $0x518] sm:$0xf]  ;;  %476 = vst [vmem:[%s5265_s26 + $0x284] sm:$0xf] %v475_v33  ;;  %478 = vst [vmem:[%s5265_s26 + $0x288] sm:$0xf] %v477_v34 }
  0x82   : > { %480 = vst [vmem:[%s5265_s26 + $0x28c] sm:$0xf] %v479_v35  ;;  %v481_v36 = vld [vmem:[%s5261_s25 + $0x520] sm:$0xf]  ;;  %v483_v37 = vld [vmem:[%s5261_s25 + $0x528] sm:$0xf] }
  0x83   : > { %v485_v38 = vld [vmem:[%s5261_s25 + $0x530] sm:$0xf]  ;;  %482 = vst [vmem:[%s5265_s26 + $0x290] sm:$0xf] %v481_v36  ;;  %484 = vst [vmem:[%s5265_s26 + $0x294] sm:$0xf] %v483_v37 }
  0x84   : > { %486 = vst [vmem:[%s5265_s26 + $0x298] sm:$0xf] %v485_v38  ;;  %v487_v39 = vld [vmem:[%s5261_s25 + $0x538] sm:$0xf]  ;;  %v489_v40 = vld [vmem:[%s5261_s25 + $0x540] sm:$0xf] }
  0x85   : > { %v491_v41 = vld [vmem:[%s5261_s25 + $0x548] sm:$0xf]  ;;  %488 = vst [vmem:[%s5265_s26 + $0x29c] sm:$0xf] %v487_v39  ;;  %490 = vst [vmem:[%s5265_s26 + $0x2a0] sm:$0xf] %v489_v40 }
  0x86   : > { %492 = vst [vmem:[%s5265_s26 + $0x2a4] sm:$0xf] %v491_v41  ;;  %v493_v42 = vld [vmem:[%s5261_s25 + $0x550] sm:$0xf]  ;;  %v495_v43 = vld [vmem:[%s5261_s25 + $0x558] sm:$0xf] }
  0x87   : > { %v497_v44 = vld [vmem:[%s5261_s25 + $0x560] sm:$0xf]  ;;  %494 = vst [vmem:[%s5265_s26 + $0x2a8] sm:$0xf] %v493_v42  ;;  %496 = vst [vmem:[%s5265_s26 + $0x2ac] sm:$0xf] %v495_v43 }
  0x88   : > { %498 = vst [vmem:[%s5265_s26 + $0x2b0] sm:$0xf] %v497_v44  ;;  %v499_v45 = vld [vmem:[%s5261_s25 + $0x568] sm:$0xf]  ;;  %v501_v46 = vld [vmem:[%s5261_s25 + $0x570] sm:$0xf] }
  0x89   : > { %v503_v47 = vld [vmem:[%s5261_s25 + $0x578] sm:$0xf]  ;;  %500 = vst [vmem:[%s5265_s26 + $0x2b4] sm:$0xf] %v499_v45  ;;  %502 = vst [vmem:[%s5265_s26 + $0x2b8] sm:$0xf] %v501_v46 }
  0x8a   : > { %504 = vst [vmem:[%s5265_s26 + $0x2bc] sm:$0xf] %v503_v47  ;;  %v505_v48 = vld [vmem:[%s5261_s25 + $0x580] sm:$0xf]  ;;  %v507_v49 = vld [vmem:[%s5261_s25 + $0x588] sm:$0xf] }
  0x8b   : > { %v509_v50 = vld [vmem:[%s5261_s25 + $0x590] sm:$0xf]  ;;  %506 = vst [vmem:[%s5265_s26 + $0x2c0] sm:$0xf] %v505_v48  ;;  %508 = vst [vmem:[%s5265_s26 + $0x2c4] sm:$0xf] %v507_v49 }
  0x8c   : > { %510 = vst [vmem:[%s5265_s26 + $0x2c8] sm:$0xf] %v509_v50  ;;  %v511_v51 = vld [vmem:[%s5261_s25 + $0x598] sm:$0xf]  ;;  %v513_v52 = vld [vmem:[%s5261_s25 + $0x5a0] sm:$0xf] }
  0x8d   : > { %v515_v53 = vld [vmem:[%s5261_s25 + $0x5a8] sm:$0xf]  ;;  %512 = vst [vmem:[%s5265_s26 + $0x2cc] sm:$0xf] %v511_v51  ;;  %514 = vst [vmem:[%s5265_s26 + $0x2d0] sm:$0xf] %v513_v52 }
  0x8e   : > { %516 = vst [vmem:[%s5265_s26 + $0x2d4] sm:$0xf] %v515_v53  ;;  %v517_v54 = vld [vmem:[%s5261_s25 + $0x5b0] sm:$0xf]  ;;  %v519_v55 = vld [vmem:[%s5261_s25 + $0x5b8] sm:$0xf] }
  0x8f   : > { %v521_v56 = vld [vmem:[%s5261_s25 + $0x5c0] sm:$0xf]  ;;  %518 = vst [vmem:[%s5265_s26 + $0x2d8] sm:$0xf] %v517_v54  ;;  %520 = vst [vmem:[%s5265_s26 + $0x2dc] sm:$0xf] %v519_v55 }
  0x90   : > { %522 = vst [vmem:[%s5265_s26 + $0x2e0] sm:$0xf] %v521_v56  ;;  %v523_v57 = vld [vmem:[%s5261_s25 + $0x5c8] sm:$0xf]  ;;  %v525_v58 = vld [vmem:[%s5261_s25 + $0x5d0] sm:$0xf] }
  0x91   : > { %v527_v59 = vld [vmem:[%s5261_s25 + $0x5d8] sm:$0xf]  ;;  %524 = vst [vmem:[%s5265_s26 + $0x2e4] sm:$0xf] %v523_v57  ;;  %526 = vst [vmem:[%s5265_s26 + $0x2e8] sm:$0xf] %v525_v58 }
  0x92   : > { %528 = vst [vmem:[%s5265_s26 + $0x2ec] sm:$0xf] %v527_v59  ;;  %v529_v60 = vld [vmem:[%s5261_s25 + $0x5e0] sm:$0xf]  ;;  %v531_v61 = vld [vmem:[%s5261_s25 + $0x5e8] sm:$0xf] }
  0x93   : > { %v533_v62 = vld [vmem:[%s5261_s25 + $0x5f0] sm:$0xf]  ;;  %530 = vst [vmem:[%s5265_s26 + $0x2f0] sm:$0xf] %v529_v60  ;;  %532 = vst [vmem:[%s5265_s26 + $0x2f4] sm:$0xf] %v531_v61 }
  0x94   : > { %534 = vst [vmem:[%s5265_s26 + $0x2f8] sm:$0xf] %v533_v62  ;;  %v535_v63 = vld [vmem:[%s5261_s25 + $0x5f8] sm:$0xf]  ;;  %v537_v0 = vld [vmem:[%s5261_s25 + $0x600] sm:$0xf] }
  0x95   : > { %v539_v1 = vld [vmem:[%s5261_s25 + $0x608] sm:$0xf]  ;;  %536 = vst [vmem:[%s5265_s26 + $0x2fc] sm:$0xf] %v535_v63  ;;  %538 = vst [vmem:[%s5265_s26 + $0x300] sm:$0xf] %v537_v0 }
  0x96   : > { %540 = vst [vmem:[%s5265_s26 + $0x304] sm:$0xf] %v539_v1  ;;  %v541_v2 = vld [vmem:[%s5261_s25 + $0x610] sm:$0xf]  ;;  %v543_v3 = vld [vmem:[%s5261_s25 + $0x618] sm:$0xf] }
  0x97   : > { %v545_v4 = vld [vmem:[%s5261_s25 + $0x620] sm:$0xf]  ;;  %542 = vst [vmem:[%s5265_s26 + $0x308] sm:$0xf] %v541_v2  ;;  %544 = vst [vmem:[%s5265_s26 + $0x30c] sm:$0xf] %v543_v3 }
  0x98   : > { %546 = vst [vmem:[%s5265_s26 + $0x310] sm:$0xf] %v545_v4  ;;  %v547_v5 = vld [vmem:[%s5261_s25 + $0x628] sm:$0xf]  ;;  %v549_v6 = vld [vmem:[%s5261_s25 + $0x630] sm:$0xf] }
  0x99   : > { %v551_v7 = vld [vmem:[%s5261_s25 + $0x638] sm:$0xf]  ;;  %548 = vst [vmem:[%s5265_s26 + $0x314] sm:$0xf] %v547_v5  ;;  %550 = vst [vmem:[%s5265_s26 + $0x318] sm:$0xf] %v549_v6 }
  0x9a   : > { %552 = vst [vmem:[%s5265_s26 + $0x31c] sm:$0xf] %v551_v7  ;;  %v553_v8 = vld [vmem:[%s5261_s25 + $0x640] sm:$0xf]  ;;  %v555_v9 = vld [vmem:[%s5261_s25 + $0x648] sm:$0xf] }
  0x9b   : > { %v557_v10 = vld [vmem:[%s5261_s25 + $0x650] sm:$0xf]  ;;  %554 = vst [vmem:[%s5265_s26 + $0x320] sm:$0xf] %v553_v8  ;;  %556 = vst [vmem:[%s5265_s26 + $0x324] sm:$0xf] %v555_v9 }
  0x9c   : > { %558 = vst [vmem:[%s5265_s26 + $0x328] sm:$0xf] %v557_v10  ;;  %v559_v11 = vld [vmem:[%s5261_s25 + $0x658] sm:$0xf]  ;;  %v561_v12 = vld [vmem:[%s5261_s25 + $0x660] sm:$0xf] }
  0x9d   : > { %v563_v13 = vld [vmem:[%s5261_s25 + $0x668] sm:$0xf]  ;;  %560 = vst [vmem:[%s5265_s26 + $0x32c] sm:$0xf] %v559_v11  ;;  %562 = vst [vmem:[%s5265_s26 + $0x330] sm:$0xf] %v561_v12 }
  0x9e   : > { %564 = vst [vmem:[%s5265_s26 + $0x334] sm:$0xf] %v563_v13  ;;  %v565_v14 = vld [vmem:[%s5261_s25 + $0x670] sm:$0xf]  ;;  %v567_v15 = vld [vmem:[%s5261_s25 + $0x678] sm:$0xf] }
  0x9f   : > { %v569_v16 = vld [vmem:[%s5261_s25 + $0x680] sm:$0xf]  ;;  %566 = vst [vmem:[%s5265_s26 + $0x338] sm:$0xf] %v565_v14  ;;  %568 = vst [vmem:[%s5265_s26 + $0x33c] sm:$0xf] %v567_v15 }
  0xa0   : > { %570 = vst [vmem:[%s5265_s26 + $0x340] sm:$0xf] %v569_v16  ;;  %v571_v17 = vld [vmem:[%s5261_s25 + $0x688] sm:$0xf]  ;;  %v573_v18 = vld [vmem:[%s5261_s25 + $0x690] sm:$0xf] }
  0xa1   : > { %v575_v19 = vld [vmem:[%s5261_s25 + $0x698] sm:$0xf]  ;;  %572 = vst [vmem:[%s5265_s26 + $0x344] sm:$0xf] %v571_v17  ;;  %574 = vst [vmem:[%s5265_s26 + $0x348] sm:$0xf] %v573_v18 }
  0xa2   : > { %576 = vst [vmem:[%s5265_s26 + $0x34c] sm:$0xf] %v575_v19  ;;  %v577_v20 = vld [vmem:[%s5261_s25 + $0x6a0] sm:$0xf]  ;;  %v579_v21 = vld [vmem:[%s5261_s25 + $0x6a8] sm:$0xf] }
  0xa3   : > { %v581_v22 = vld [vmem:[%s5261_s25 + $0x6b0] sm:$0xf]  ;;  %578 = vst [vmem:[%s5265_s26 + $0x350] sm:$0xf] %v577_v20  ;;  %580 = vst [vmem:[%s5265_s26 + $0x354] sm:$0xf] %v579_v21 }
  0xa4   : > { %582 = vst [vmem:[%s5265_s26 + $0x358] sm:$0xf] %v581_v22  ;;  %v583_v23 = vld [vmem:[%s5261_s25 + $0x6b8] sm:$0xf]  ;;  %v585_v24 = vld [vmem:[%s5261_s25 + $0x6c0] sm:$0xf] }
  0xa5   : > { %v587_v25 = vld [vmem:[%s5261_s25 + $0x6c8] sm:$0xf]  ;;  %584 = vst [vmem:[%s5265_s26 + $0x35c] sm:$0xf] %v583_v23  ;;  %586 = vst [vmem:[%s5265_s26 + $0x360] sm:$0xf] %v585_v24 }
  0xa6   : > { %588 = vst [vmem:[%s5265_s26 + $0x364] sm:$0xf] %v587_v25  ;;  %v589_v26 = vld [vmem:[%s5261_s25 + $0x6d0] sm:$0xf]  ;;  %v591_v27 = vld [vmem:[%s5261_s25 + $0x6d8] sm:$0xf] }
  0xa7   : > { %v593_v28 = vld [vmem:[%s5261_s25 + $0x6e0] sm:$0xf]  ;;  %590 = vst [vmem:[%s5265_s26 + $0x368] sm:$0xf] %v589_v26  ;;  %592 = vst [vmem:[%s5265_s26 + $0x36c] sm:$0xf] %v591_v27 }
  0xa8   : > { %594 = vst [vmem:[%s5265_s26 + $0x370] sm:$0xf] %v593_v28  ;;  %v595_v29 = vld [vmem:[%s5261_s25 + $0x6e8] sm:$0xf]  ;;  %v597_v30 = vld [vmem:[%s5261_s25 + $0x6f0] sm:$0xf] }
  0xa9   : > { %v599_v31 = vld [vmem:[%s5261_s25 + $0x6f8] sm:$0xf]  ;;  %596 = vst [vmem:[%s5265_s26 + $0x374] sm:$0xf] %v595_v29  ;;  %598 = vst [vmem:[%s5265_s26 + $0x378] sm:$0xf] %v597_v30 }
  0xaa   : > { %600 = vst [vmem:[%s5265_s26 + $0x37c] sm:$0xf] %v599_v31  ;;  %v601_v32 = vld [vmem:[%s5261_s25 + $0x700] sm:$0xf]  ;;  %v603_v33 = vld [vmem:[%s5261_s25 + $0x708] sm:$0xf] }
  0xab   : > { %v605_v34 = vld [vmem:[%s5261_s25 + $0x710] sm:$0xf]  ;;  %602 = vst [vmem:[%s5265_s26 + $0x380] sm:$0xf] %v601_v32  ;;  %604 = vst [vmem:[%s5265_s26 + $0x384] sm:$0xf] %v603_v33 }
  0xac   : > { %606 = vst [vmem:[%s5265_s26 + $0x388] sm:$0xf] %v605_v34  ;;  %v607_v35 = vld [vmem:[%s5261_s25 + $0x718] sm:$0xf]  ;;  %v609_v36 = vld [vmem:[%s5261_s25 + $0x720] sm:$0xf] }
  0xad   : > { %v611_v37 = vld [vmem:[%s5261_s25 + $0x728] sm:$0xf]  ;;  %608 = vst [vmem:[%s5265_s26 + $0x38c] sm:$0xf] %v607_v35  ;;  %610 = vst [vmem:[%s5265_s26 + $0x390] sm:$0xf] %v609_v36 }
  0xae   : > { %612 = vst [vmem:[%s5265_s26 + $0x394] sm:$0xf] %v611_v37  ;;  %v613_v38 = vld [vmem:[%s5261_s25 + $0x730] sm:$0xf]  ;;  %v615_v39 = vld [vmem:[%s5261_s25 + $0x738] sm:$0xf] }
  0xaf   : > { %v617_v40 = vld [vmem:[%s5261_s25 + $0x740] sm:$0xf]  ;;  %614 = vst [vmem:[%s5265_s26 + $0x398] sm:$0xf] %v613_v38  ;;  %616 = vst [vmem:[%s5265_s26 + $0x39c] sm:$0xf] %v615_v39 }
  0xb0   : > { %618 = vst [vmem:[%s5265_s26 + $0x3a0] sm:$0xf] %v617_v40  ;;  %v619_v41 = vld [vmem:[%s5261_s25 + $0x748] sm:$0xf]  ;;  %v621_v42 = vld [vmem:[%s5261_s25 + $0x750] sm:$0xf] }
  0xb1   : > { %v623_v43 = vld [vmem:[%s5261_s25 + $0x758] sm:$0xf]  ;;  %620 = vst [vmem:[%s5265_s26 + $0x3a4] sm:$0xf] %v619_v41  ;;  %622 = vst [vmem:[%s5265_s26 + $0x3a8] sm:$0xf] %v621_v42 }
  0xb2   : > { %624 = vst [vmem:[%s5265_s26 + $0x3ac] sm:$0xf] %v623_v43  ;;  %v625_v44 = vld [vmem:[%s5261_s25 + $0x760] sm:$0xf]  ;;  %v627_v45 = vld [vmem:[%s5261_s25 + $0x768] sm:$0xf] }
  0xb3   : > { %v629_v46 = vld [vmem:[%s5261_s25 + $0x770] sm:$0xf]  ;;  %626 = vst [vmem:[%s5265_s26 + $0x3b0] sm:$0xf] %v625_v44  ;;  %628 = vst [vmem:[%s5265_s26 + $0x3b4] sm:$0xf] %v627_v45 }
  0xb4   : > { %630 = vst [vmem:[%s5265_s26 + $0x3b8] sm:$0xf] %v629_v46  ;;  %v631_v47 = vld [vmem:[%s5261_s25 + $0x778] sm:$0xf]  ;;  %v633_v48 = vld [vmem:[%s5261_s25 + $0x780] sm:$0xf] }
  0xb5   : > { %v635_v49 = vld [vmem:[%s5261_s25 + $0x788] sm:$0xf]  ;;  %632 = vst [vmem:[%s5265_s26 + $0x3bc] sm:$0xf] %v631_v47  ;;  %634 = vst [vmem:[%s5265_s26 + $0x3c0] sm:$0xf] %v633_v48 }
  0xb6   : > { %636 = vst [vmem:[%s5265_s26 + $0x3c4] sm:$0xf] %v635_v49  ;;  %v637_v50 = vld [vmem:[%s5261_s25 + $0x790] sm:$0xf]  ;;  %v639_v51 = vld [vmem:[%s5261_s25 + $0x798] sm:$0xf] }
  0xb7   : > { %v641_v52 = vld [vmem:[%s5261_s25 + $0x7a0] sm:$0xf]  ;;  %638 = vst [vmem:[%s5265_s26 + $0x3c8] sm:$0xf] %v637_v50  ;;  %640 = vst [vmem:[%s5265_s26 + $0x3cc] sm:$0xf] %v639_v51 }
  0xb8   : > { %642 = vst [vmem:[%s5265_s26 + $0x3d0] sm:$0xf] %v641_v52  ;;  %v643_v53 = vld [vmem:[%s5261_s25 + $0x7a8] sm:$0xf]  ;;  %v645_v54 = vld [vmem:[%s5261_s25 + $0x7b0] sm:$0xf] }
  0xb9   : > { %v647_v55 = vld [vmem:[%s5261_s25 + $0x7b8] sm:$0xf]  ;;  %644 = vst [vmem:[%s5265_s26 + $0x3d4] sm:$0xf] %v643_v53  ;;  %646 = vst [vmem:[%s5265_s26 + $0x3d8] sm:$0xf] %v645_v54 }
  0xba   : > { %648 = vst [vmem:[%s5265_s26 + $0x3dc] sm:$0xf] %v647_v55  ;;  %v649_v56 = vld [vmem:[%s5261_s25 + $0x7c0] sm:$0xf]  ;;  %v651_v57 = vld [vmem:[%s5261_s25 + $0x7c8] sm:$0xf] }
  0xbb   : > { %v653_v58 = vld [vmem:[%s5261_s25 + $0x7d0] sm:$0xf]  ;;  %650 = vst [vmem:[%s5265_s26 + $0x3e0] sm:$0xf] %v649_v56  ;;  %652 = vst [vmem:[%s5265_s26 + $0x3e4] sm:$0xf] %v651_v57 }
  0xbc   : > { %654 = vst [vmem:[%s5265_s26 + $0x3e8] sm:$0xf] %v653_v58  ;;  %v655_v59 = vld [vmem:[%s5261_s25 + $0x7d8] sm:$0xf]  ;;  %v657_v60 = vld [vmem:[%s5261_s25 + $0x7e0] sm:$0xf] }
  0xbd   : > { %v659_v61 = vld [vmem:[%s5261_s25 + $0x7e8] sm:$0xf]  ;;  %656 = vst [vmem:[%s5265_s26 + $0x3ec] sm:$0xf] %v655_v59  ;;  %658 = vst [vmem:[%s5265_s26 + $0x3f0] sm:$0xf] %v657_v60 }
  0xbe   : > { %660 = vst [vmem:[%s5265_s26 + $0x3f4] sm:$0xf] %v659_v61  ;;  %v661_v62 = vld [vmem:[%s5261_s25 + $0x7f0] sm:$0xf]  ;;  %v663_v63 = vld [vmem:[%s5261_s25 + $0x7f8] sm:$0xf] }
  0xbf   : > { %662 = vst [vmem:[%s5265_s26 + $0x3f8] sm:$0xf] %v661_v62  ;;  %664 = vst [vmem:[%s5265_s26 + $0x3fc] sm:$0xf] %v663_v63 }
  0xc0 PF: > { %p4136_p8 = scmp.ge.s32.totalorder %s5196_s13, 1  ;;  %p1198_p9 = scmp.lt.s32.totalorder %s5196_s13, 3 }
  0xc2   : > { %p1199_p10 = pnand %p4136_p8, %p1198_p9 }
  0xc3   : > { %s1205_s27 = sand.u32 (!%p1199_p10), 1, %s5180_s9   ;;  %v5783_v0 = vld [vmem:[%s6505_s0] sm:$0xff] (!%p1199_p10)  ;;  %v5793_v2 = vld [vmem:[%s6505_s0 + $0x8] sm:$0xff] (!%p1199_p10) }
  0xc4   : > { %1202 = sbr.rel (%p1199_p10) target bundleno = 715 (0x2cb), region = 65  ;;  %v5788_v1 = vld [vmem:[%s6505_s0 + $0x40] sm:$0xff] (!%p1199_p10)  ;;  %s4137_s6 = sshll.u32 (!%p1199_p10), %s1205_s27, 10  ;;  %v5802_v4 = vld [vmem:[%s6505_s0 + $0x48] sm:$0xff] (!%p1199_p10) }
  0xc5   : > { %v4140_v3 = vcombine.high (!%p1199_p10), %v5783_v0, %v5788_v1  ;;  %v4142_v5 = vcombine.high (!%p1199_p10), %v5793_v2, %v5802_v4  ;;  %s5806_s15 = scalar_lea.vmem (!%p1199_p10), [#allocation2], %s4137_s6  ;;  %v1256_v35 = vld [vmem:[%s6505_s0 + $0x80] sm:$0xff] (!%p1199_p10)  ;;  %v1257_v38 = vld [vmem:[%s6505_s0 + $0x88] sm:$0xff] (!%p1199_p10)  ;;  %v4139_v42 = vcombine.low (!%p1199_p10), %v5783_v0, %v5788_v1  ;;  %v4141_v43 = vcombine.low (!%p1199_p10), %v5793_v2, %v5802_v4 }
  0xc6   : > { %v5030_v6 = vld [vmem:[%s5806_s15 + $0x40] sm:$0xff] (!%p1199_p10)   ;;  %v5034_v10 = vld [vmem:[%s5806_s15 + $0x48] sm:$0xff] (!%p1199_p10)   ;;  %v5038_v14 = vld [vmem:[%s5806_s15 + $0x50] sm:$0xff] (!%p1199_p10)  }
  0xc7   : > { %3064 = vmatprep.mubr.bf16.mxu0 (!%p1199_p10), %v4140_v3  ;;  %v5031_v7 = vld [vmem:[%s5806_s15 + $0xc0] sm:$0xff] (!%p1199_p10)   ;;  %3161 = vmatprep.mubr.bf16.mxu1 (!%p1199_p10), %v4142_v5  ;;  %v5035_v11 = vld [vmem:[%s5806_s15 + $0xc8] sm:$0xff] (!%p1199_p10)   ;;  %v5039_v15 = vld [vmem:[%s5806_s15 + $0xd0] sm:$0xff] (!%p1199_p10)  }
  0xc8   : > { %4478 = vmatprep.subr.bf16.mxu0 (!%p1199_p10), %v5030_v6  ;;  %v5032_v8 = vld [vmem:[%s5806_s15] sm:$0xff] (!%p1199_p10)   ;;  %4542 = vmatprep.subr.bf16.mxu1 (!%p1199_p10), %v5031_v7  ;;  %v5036_v12 = vld [vmem:[%s5806_s15 + $0x8] sm:$0xff] (!%p1199_p10)   ;;  %v5040_v16 = vld [vmem:[%s5806_s15 + $0x10] sm:$0xff] (!%p1199_p10)  }
  0xc9   : > { %v5033_v9 = vld [vmem:[%s5806_s15 + $0x80] sm:$0xff] (!%p1199_p10)   ;;  %4479 = vmatpush3.bf16.msra.mxu0 (!%p1199_p10), %v5032_v8  ;;  %v5037_v13 = vld [vmem:[%s5806_s15 + $0x88] sm:$0xff] (!%p1199_p10)   ;;  %v5041_v17 = vld [vmem:[%s5806_s15 + $0x90] sm:$0xff] (!%p1199_p10)  }
  0xca   : > { %4543 = vmatpush3.bf16.msra.mxu1 (!%p1199_p10), %v5033_v9  ;;  %4480 = vmatprep.subr.bf16.mxu0 (!%p1199_p10), %v5034_v10  ;;  %v5042_v18 = vld [vmem:[%s5806_s15 + $0x58] sm:$0xff] (!%p1199_p10)   ;;  %v5046_v22 = vld [vmem:[%s5806_s15 + $0x60] sm:$0xff] (!%p1199_p10)   ;;  %v5050_v26 = vld [vmem:[%s5806_s15 + $0x68] sm:$0xff] (!%p1199_p10)  }
  0xcb   : > { %4544 = vmatprep.subr.bf16.mxu1 %v5035_v11  ;;  %v5043_v19 = vld [vmem:[%s5806_s15 + $0xd8] sm:$0xff]   ;;  %v5047_v23 = vld [vmem:[%s5806_s15 + $0xe0] sm:$0xff]   ;;  %v5051_v27 = vld [vmem:[%s5806_s15 + $0xe8] sm:$0xff]  }
  0xcc   : > { %v5044_v20 = vld [vmem:[%s5806_s15 + $0x18] sm:$0xff]   ;;  %v5048_v24 = vld [vmem:[%s5806_s15 + $0x20] sm:$0xff]   ;;  %v5052_v28 = vld [vmem:[%s5806_s15 + $0x28] sm:$0xff]  }
  0xcd   : > { %4481 = vmatpush3.bf16.msra.mxu0 %v5036_v12  ;;  %v5045_v21 = vld [vmem:[%s5806_s15 + $0x98] sm:$0xff]   ;;  %v5049_v25 = vld [vmem:[%s5806_s15 + $0xa0] sm:$0xff]   ;;  %v5053_v29 = vld [vmem:[%s5806_s15 + $0xa8] sm:$0xff]  }
  0xce   : > { %4545 = vmatpush3.bf16.msra.mxu1 %v5037_v13  ;;  %4482 = vmatprep.subr.bf16.mxu0 %v5038_v14  ;;  %v5054_v30 = vld [vmem:[%s5806_s15 + $0x70] sm:$0xff]   ;;  %v5058_v34 = vld [vmem:[%s5806_s15 + $0x78] sm:$0xff]   ;;  %v1264_v36 = vld [vmem:[%s6505_s0 + $0xc0] sm:$0xff] }
  0xcf   : > { %4546 = vmatprep.subr.bf16.mxu1 %v5039_v15  ;;  %v5055_v31 = vld [vmem:[%s5806_s15 + $0xf0] sm:$0xff]   ;;  %v5059_v37 = vld [vmem:[%s5806_s15 + $0xf8] sm:$0xff]   ;;  %v1265_v39 = vld [vmem:[%s6505_s0 + $0xc8] sm:$0xff]  ;;  %v4156_v46 = vcombine.high %v1256_v35, %v1264_v36  ;;  %v4155_v54 = vcombine.low %v1256_v35, %v1264_v36 }
  0xd0   : > { %v5056_v32 = vld [vmem:[%s5806_s15 + $0x30] sm:$0xff]   ;;  %v5060_v40 = vld [vmem:[%s5806_s15 + $0x38] sm:$0xff]   ;;  %v5062_v44 = vld [vmem:[%s5806_s15 + $0x140] sm:$0xff]   ;;  %v4158_v48 = vcombine.high %v1257_v38, %v1265_v39  ;;  %v4157_v56 = vcombine.low %v1257_v38, %v1265_v39 }
  0xd1   : > { %4483 = vmatpush3.bf16.msra.mxu0 %v5040_v16  ;;  %v5057_v33 = vld [vmem:[%s5806_s15 + $0xb0] sm:$0xff]   ;;  %v5061_v41 = vld [vmem:[%s5806_s15 + $0xb8] sm:$0xff]   ;;  %v5063_v45 = vld [vmem:[%s5806_s15 + $0x100] sm:$0xff]  }
  0xd2   : > { %4547 = vmatpush3.bf16.msra.mxu1 %v5041_v17  ;;  %4484 = vmatprep.subr.bf16.mxu0 %v5042_v18  ;;  %v5064_v47 = vld [vmem:[%s5806_s15 + $0x1c0] sm:$0xff]   ;;  %v5066_v50 = vld [vmem:[%s5806_s15 + $0x148] sm:$0xff]   ;;  %v5070_v62 = vld [vmem:[%s5806_s15 + $0x150] sm:$0xff]  }
  0xd3   : > { %4548 = vmatprep.subr.bf16.mxu1 %v5043_v19  ;;  %v5065_v49 = vld [vmem:[%s5806_s15 + $0x180] sm:$0xff]   ;;  %v5067_v52 = vld [vmem:[%s5806_s15 + $0x108] sm:$0xff]   ;;  %v5071_v63 = vld [vmem:[%s5806_s15 + $0x110] sm:$0xff]  }
  0xd4   : > { %v1272_v51 = vld [vmem:[%s6505_s0 + $0x100] sm:$0xff]  ;;  %v5068_v53 = vld [vmem:[%s5806_s15 + $0x1c8] sm:$0xff]   ;;  %v5072_v0 = vld [vmem:[%s5806_s15 + $0x1d0] sm:$0xff]  }
  0xd5   : > { %4485 = vmatpush3.bf16.msra.mxu0 %v5044_v20  ;;  %v5069_v55 = vld [vmem:[%s5806_s15 + $0x188] sm:$0xff]   ;;  %v1280_v57 = vld [vmem:[%s6505_s0 + $0x140] sm:$0xff]  ;;  %v5073_v1 = vld [vmem:[%s5806_s15 + $0x190] sm:$0xff]  }
  0xd6   : > { %4549 = vmatpush3.bf16.msra.mxu1 %v5045_v21  ;;  %4486 = vmatprep.subr.bf16.mxu0 %v5046_v22  ;;  %v1273_v58 = vld [vmem:[%s6505_s0 + $0x108] sm:$0xff]  ;;  %v4172_v60 = vcombine.high %v1272_v51, %v1280_v57  ;;  %v1288_v2 = vld [vmem:[%s6505_s0 + $0x180] sm:$0xff]  ;;  %v4171_v6 = vcombine.low %v1272_v51, %v1280_v57  ;;  %v5074_v7 = vld [vmem:[%s5806_s15 + $0x158] sm:$0xff]  }
  0xd7   : > { %4550 = vmatprep.subr.bf16.mxu1 %v5047_v23  ;;  %v1281_v59 = vld [vmem:[%s6505_s0 + $0x148] sm:$0xff]  ;;  %v1296_v3 = vld [vmem:[%s6505_s0 + $0x1c0] sm:$0xff]  ;;  %v5075_v10 = vld [vmem:[%s5806_s15 + $0x118] sm:$0xff]  }
  0xd8   : > { %v4174_v61 = vcombine.high %v1273_v58, %v1281_v59  ;;  %v1289_v4 = vld [vmem:[%s6505_s0 + $0x188] sm:$0xff]  ;;  %v4173_v8 = vcombine.low %v1273_v58, %v1281_v59  ;;  %v4188_v9 = vcombine.high %v1288_v2, %v1296_v3  ;;  %v5076_v12 = vld [vmem:[%s5806_s15 + $0x1d8] sm:$0xff]   ;;  %v1304_v14 = vld [vmem:[%s6505_s0 + $0x200] sm:$0xff]  ;;  %v4187_v21 = vcombine.low %v1288_v2, %v1296_v3 }
  0xd9   : > { %4487 = vmatpush3.bf16.msra.mxu0 %v5048_v24  ;;  %v1297_v5 = vld [vmem:[%s6505_s0 + $0x1c8] sm:$0xff]  ;;  %v5077_v13 = vld [vmem:[%s5806_s15 + $0x198] sm:$0xff]   ;;  %v1312_v15 = vld [vmem:[%s6505_s0 + $0x240] sm:$0xff] }
  0xda   : > { %4551 = vmatpush3.bf16.msra.mxu1 %v5049_v25  ;;  %4488 = vmatprep.subr.bf16.mxu0 %v5050_v26  ;;  %v4190_v11 = vcombine.high %v1289_v4, %v1297_v5  ;;  %v1305_v16 = vld [vmem:[%s6505_s0 + $0x208] sm:$0xff]  ;;  %v5078_v18 = vld [vmem:[%s5806_s15 + $0x160] sm:$0xff]   ;;  %v4189_v23 = vcombine.low %v1289_v4, %v1297_v5  ;;  %v4204_v24 = vcombine.high %v1304_v14, %v1312_v15  ;;  %v5086_v35 = vld [vmem:[%s5806_s15 + $0x170] sm:$0xff]  }
  0xdb   : > { %4552 = vmatprep.subr.bf16.mxu1 %v5051_v27  ;;  %v1313_v17 = vld [vmem:[%s6505_s0 + $0x248] sm:$0xff]  ;;  %v5079_v19 = vld [vmem:[%s5806_s15 + $0x120] sm:$0xff]   ;;  %v5087_v38 = vld [vmem:[%s5806_s15 + $0x130] sm:$0xff]  }
  0xdc   : > { %v5080_v20 = vld [vmem:[%s5806_s15 + $0x1e0] sm:$0xff]   ;;  %v4206_v25 = vcombine.high %v1305_v16, %v1313_v17  ;;  %v5082_v26 = vld [vmem:[%s5806_s15 + $0x168] sm:$0xff]   ;;  %v4205_v36 = vcombine.low %v1305_v16, %v1313_v17  ;;  %v1243_v2 = vld [vmem:[%s6505_s0 + $0x18] sm:$0xff] }
  0xdd   : > { %4489 = vmatpush3.bf16.msra.mxu0 %v5052_v28  ;;  %v5081_v22 = vld [vmem:[%s5806_s15 + $0x1a0] sm:$0xff]   ;;  %v5083_v27 = vld [vmem:[%s5806_s15 + $0x128] sm:$0xff]   ;;  %v1251_v3 = vld [vmem:[%s6505_s0 + $0x58] sm:$0xff] }
  0xde   : > { %4553 = vmatpush3.bf16.msra.mxu1 %v5053_v29  ;;  %4490 = vmatprep.subr.bf16.mxu0 %v5054_v30  ;;  %v5084_v28 = vld [vmem:[%s5806_s15 + $0x1e8] sm:$0xff]   ;;  %v1320_v30 = vld [vmem:[%s6505_s0 + $0x280] sm:$0xff] }
  0xdf   : > { %4554 = vmatprep.subr.bf16.mxu1 %v5055_v31  ;;  %v5085_v29 = vld [vmem:[%s5806_s15 + $0x1a8] sm:$0xff]   ;;  %v1328_v31 = vld [vmem:[%s6505_s0 + $0x2c0] sm:$0xff] }
  0xe0   : > { %v1360_v57 = vld [vmem:[%s6505_s0 + $0x3c0] sm:$0xff]  ;;  %v1353_v58 = vld [vmem:[%s6505_s0 + $0x388] sm:$0xff] }
  0xe1   : > { %4491 = vmatpush3.bf16.msra.mxu0 %v5056_v32  ;;  %v1321_v32 = vld [vmem:[%s6505_s0 + $0x288] sm:$0xff] }
  0xe2   : > { %4555 = vmatpush3.bf16.msra.mxu1 %v5057_v33  ;;  %4492 = vmatprep.subr.bf16.mxu0 %v5058_v34  ;;  %v1329_v33 = vld [vmem:[%s6505_s0 + $0x2c8] sm:$0xff]  ;;  %v4203_v34 = vcombine.low %v1304_v14, %v1312_v15  ;;  %v5095_v14 = vld [vmem:[%s5806_s15 + $0x200] sm:$0xff]  }
  0xe3   : > { %4556 = vmatprep.subr.bf16.mxu1 %v5059_v37  ;;  %v4220_v37 = vcombine.high %v1320_v30, %v1328_v31  ;;  %v4222_v39 = vcombine.high %v1321_v32, %v1329_v33  ;;  %v4221_v51 = vcombine.low %v1321_v32, %v1329_v33  ;;  %v1361_v59 = vld [vmem:[%s6505_s0 + $0x3c8] sm:$0xff]  ;;  %v5097_v15 = vld [vmem:[%s5806_s15 + $0x280] sm:$0xff]   ;;  %v5105_v33 = vld [vmem:[%s5806_s15 + $0x290] sm:$0xff]  }
  0xe4   : > { %v4253_v5 = vcombine.low %v1353_v58, %v1361_v59 }
  0xe5   : > { %4493 = vmatpush3.bf16.msra.mxu0 %v5060_v40  ;;  %v5088_v40 = vld [vmem:[%s5806_s15 + $0x1f0] sm:$0xff]  }
  0xe6   : > { %4557 = vmatpush3.bf16.msra.mxu1 %v5061_v41  ;;  %4606 = vmatprep.subr.bf16.mxu0 %v5062_v44  ;;  %v5089_v41 = vld [vmem:[%s5806_s15 + $0x1b0] sm:$0xff]   ;;  %v1337_v44 = vld [vmem:[%s6505_s0 + $0x308] sm:$0xff] }
  0xe7   : > { %4670 = vmatprep.subr.bf16.mxu1 %v5064_v47  ;;  %v5091_v47 = vld [vmem:[%s5806_s15 + $0x138] sm:$0xff]  }
  0xe8   : > { %3065 = vmatmul.mubr.bf16.vlgmr.msra.gmra.mrb[0].mxu0 %v4139_v42  ;;  %v1336_v42 = vld [vmem:[%s6505_s0 + $0x300] sm:$0xff] }
  0xe9   : > { %3162 = vmatmul.mubr.bf16.vlgmr.msra.gmra.mrb[0].mxu1 %v4141_v43  ;;  %4607 = vmatpush3.bf16.msra.mxu0 %v5063_v45  ;;  %v1344_v43 = vld [vmem:[%s6505_s0 + $0x340] sm:$0xff]  ;;  %v1345_v45 = vld [vmem:[%s6505_s0 + $0x348] sm:$0xff] }
  0xea   : > { %3072 = vmatprep.mubr.bf16.mxu0 %v4156_v46  ;;  %4671 = vmatpush3.bf16.msra.mxu1 %v5065_v49  ;;  %v5090_v46 = vld [vmem:[%s5806_s15 + $0x178] sm:$0xff]   ;;  %v4219_v49 = vcombine.low %v1320_v30, %v1328_v31  ;;  %v5103_v31 = vld [vmem:[%s5806_s15 + $0x210] sm:$0xff]  }
  0xeb   : > { %3169 = vmatprep.mubr.bf16.mxu1 %v4158_v48  ;;  %4608 = vmatprep.subr.bf16.mxu0 %v5066_v50  ;;  %v5092_v48 = vld [vmem:[%s5806_s15 + $0x1f8] sm:$0xff]  }
  0xec   : > { %4672 = vmatprep.subr.bf16.mxu1 %v5068_v53  ;;  %v5093_v50 = vld [vmem:[%s5806_s15 + $0x1b8] sm:$0xff]   ;;  %v4238_v53 = vcombine.high %v1337_v44, %v1345_v45 }
  0xed   : > { %4609 = vmatpush3.bf16.msra.mxu0 %v5067_v52  ;;  %v4236_v52 = vcombine.high %v1336_v42, %v1344_v43 }
  0xee   : > { %4673 = vmatpush3.bf16.msra.mxu1 %v5069_v55  ;;  %4610 = vmatprep.subr.bf16.mxu0 %v5070_v62  ;;  %v5096_v55 = vld [vmem:[%s5806_s15 + $0x2c0] sm:$0xff]  }
  0xef   : > { %4674 = vmatprep.subr.bf16.mxu1 %v5072_v0  ;;  %v1242_v0 = vld [vmem:[%s6505_s0 + $0x10] sm:$0xff] }
  0xf0   : > { %3073 = vmatmul.mubr.bf16.gmra.mrb[4].mxu0 %v4155_v54  ;;  %v5094_v54 = vld [vmem:[%s5806_s15 + $0x240] sm:$0xff]  }
  0xf1   : > { %3170 = vmatmul.mubr.bf16.gmra.mrb[4].mxu1 %v4157_v56  ;;  %3080 = vmatprep.mubr.bf16.mxu0 %v4172_v60  ;;  %v1352_v56 = vld [vmem:[%s6505_s0 + $0x380] sm:$0xff]  ;;  %v4235_v60 = vcombine.low %v1336_v42, %v1344_v43 }
  0xf2   : > { %3177 = vmatprep.mubr.bf16.mxu1 %v4174_v61  ;;  %4611 = vmatpush3.bf16.msra.mxu0 %v5071_v63  ;;  %v4237_v61 = vcombine.low %v1337_v44, %v1345_v45  ;;  %v4252_v62 = vcombine.high %v1352_v56, %v1360_v57  ;;  %v4254_v63 = vcombine.high %v1353_v58, %v1361_v59  ;;  %v5110_v42 = vld [vmem:[%s5806_s15 + $0x260] sm:$0xff]   ;;  %v5118_v58 = vld [vmem:[%s5806_s15 + $0x270] sm:$0xff]  }
  0xf3   : > { %4675 = vmatpush3.bf16.msra.mxu1 %v5073_v1  ;;  %4612 = vmatprep.subr.bf16.mxu0 %v5074_v7  ;;  %v1250_v1 = vld [vmem:[%s6505_s0 + $0x50] sm:$0xff]  ;;  %v4251_v4 = vcombine.low %v1352_v56, %v1360_v57  ;;  %v4146_v7 = vcombine.high %v1243_v2, %v1251_v3  ;;  %v5112_v44 = vld [vmem:[%s5806_s15 + $0x2e0] sm:$0xff]   ;;  %v5115_v56 = vld [vmem:[%s5806_s15 + $0x228] sm:$0xff]  }
  0xf4   : > { %4676 = vmatprep.subr.bf16.mxu1 %v5076_v12  ;;  %v1267_v12 = vld [vmem:[%s6505_s0 + $0xd8] sm:$0xff]  ;;  %v5117_v57 = vld [vmem:[%s5806_s15 + $0x2a8] sm:$0xff]  }
  0xf6   : > { %4613 = vmatpush3.bf16.msra.mxu0 %v5075_v10  ;;  %v1259_v10 = vld [vmem:[%s6505_s0 + $0x98] sm:$0xff] }
  0xf7   : > { %4677 = vmatpush3.bf16.msra.mxu1 %v5077_v13  ;;  %4614 = vmatprep.subr.bf16.mxu0 %v5078_v18  ;;  %v4145_v13 = vcombine.low %v1243_v2, %v1251_v3  ;;  %v4162_v17 = vcombine.high %v1259_v10, %v1267_v12  ;;  %v5098_v18 = vld [vmem:[%s5806_s15 + $0x248] sm:$0xff]   ;;  %v5122_v2 = vld [vmem:[%s5806_s15 + $0x278] sm:$0xff]   ;;  %v1322_v3 = vld [vmem:[%s6505_s0 + $0x290] sm:$0xff] }
  0xf8   : > { %3081 = vmatmul.mubr.bf16.gmra.mrb[8].mxu0 %v4171_v6  ;;  %4678 = vmatprep.subr.bf16.mxu1 %v5080_v20  ;;  %v4144_v6 = vcombine.high %v1242_v0, %v1250_v1  ;;  %v5100_v20 = vld [vmem:[%s5806_s15 + $0x2c8] sm:$0xff]  }
  0xf9   : > { %3178 = vmatmul.mubr.bf16.gmra.mrb[8].mxu1 %v4173_v8  ;;  %3088 = vmatprep.mubr.bf16.mxu0 %v4188_v9  ;;  %v1258_v8 = vld [vmem:[%s6505_s0 + $0x90] sm:$0xff] }
  0xfa   : > { %3185 = vmatprep.mubr.bf16.mxu1 %v4190_v11  ;;  %4615 = vmatpush3.bf16.msra.mxu0 %v5079_v19  ;;  %v1266_v9 = vld [vmem:[%s6505_s0 + $0xd0] sm:$0xff]  ;;  %v4143_v11 = vcombine.low %v1242_v0, %v1250_v1  ;;  %v5099_v19 = vld [vmem:[%s5806_s15 + $0x208] sm:$0xff]  }
  0xfb   : > { %4679 = vmatpush3.bf16.msra.mxu1 %v5081_v22  ;;  %4616 = vmatprep.subr.bf16.mxu0 %v5082_v26  ;;  %v4160_v16 = vcombine.high %v1258_v8, %v1266_v9  ;;  %v1274_v22 = vld [vmem:[%s6505_s0 + $0x110] sm:$0xff] }
  0xfc   : > { %4680 = vmatprep.subr.bf16.mxu1 %v5084_v28  ;;  %v5102_v26 = vld [vmem:[%s5806_s15 + $0x250] sm:$0xff]   ;;  %v4159_v28 = vcombine.low %v1258_v8, %v1266_v9  ;;  %v5123_v8 = vld [vmem:[%s5806_s15 + $0x238] sm:$0xff]  }
  0xfd   : > { %v5121_v1 = vld [vmem:[%s5806_s15 + $0x2b0] sm:$0xff]   ;;  %v5125_v9 = vld [vmem:[%s5806_s15 + $0x2b8] sm:$0xff]  }
  0xfe   : > { %4617 = vmatpush3.bf16.msra.mxu0 %v5083_v27  ;;  %v5104_v27 = vld [vmem:[%s5806_s15 + $0x2d0] sm:$0xff]  }
  0xff   : > { %4681 = vmatpush3.bf16.msra.mxu1 %v5085_v29  ;;  %4618 = vmatprep.subr.bf16.mxu0 %v5086_v35  ;;  %v4161_v29 = vcombine.low %v1259_v10, %v1267_v12  ;;  %v1290_v35 = vld [vmem:[%s6505_s0 + $0x190] sm:$0xff]  ;;  %v5126_v10 = vld [vmem:[%s5806_s15 + $0x340] sm:$0xff]  }
 0x100   : > { %3089 = vmatmul.mubr.bf16.gmra.mrb[12].mxu0 %v4187_v21  ;;  %4682 = vmatprep.subr.bf16.mxu1 %v5088_v40  ;;  %v5101_v21 = vld [vmem:[%s5806_s15 + $0x288] sm:$0xff]   ;;  %v5107_v40 = vld [vmem:[%s5806_s15 + $0x218] sm:$0xff]   ;;  %v5128_v12 = vld [vmem:[%s5806_s15 + $0x3c0] sm:$0xff]  }
 0x101   : > { %3186 = vmatmul.mubr.bf16.gmra.mrb[12].mxu1 %v4189_v23  ;;  %3096 = vmatprep.mubr.bf16.mxu0 %v4204_v24  ;;  %v1282_v23 = vld [vmem:[%s6505_s0 + $0x150] sm:$0xff]  ;;  %v1275_v24 = vld [vmem:[%s6505_s0 + $0x118] sm:$0xff] }
 0x102   : > { %3193 = vmatprep.mubr.bf16.mxu1 %v4206_v25  ;;  %4619 = vmatpush3.bf16.msra.mxu0 %v5087_v38  ;;  %v1283_v25 = vld [vmem:[%s6505_s0 + $0x158] sm:$0xff]  ;;  %v4176_v30 = vcombine.high %v1274_v22, %v1282_v23  ;;  %v4175_v43 = vcombine.low %v1274_v22, %v1282_v23 }
 0x103   : > { %4683 = vmatpush3.bf16.msra.mxu1 %v5089_v41  ;;  %4620 = vmatprep.subr.bf16.mxu0 %v5090_v46  ;;  %v4178_v32 = vcombine.high %v1275_v24, %v1283_v25  ;;  %v1291_v38 = vld [vmem:[%s6505_s0 + $0x198] sm:$0xff]  ;;  %v4177_v45 = vcombine.low %v1275_v24, %v1283_v25  ;;  %v1354_v24 = vld [vmem:[%s6505_s0 + $0x390] sm:$0xff] }
 0x104   : > { %4684 = vmatprep.subr.bf16.mxu1 %v5092_v48  ;;  %v5109_v41 = vld [vmem:[%s5806_s15 + $0x298] sm:$0xff]   ;;  %v5111_v48 = vld [vmem:[%s5806_s15 + $0x220] sm:$0xff]   ;;  %v1362_v25 = vld [vmem:[%s6505_s0 + $0x3d0] sm:$0xff] }
 0x106   : > { %4621 = vmatpush3.bf16.msra.mxu0 %v5091_v47 }
 0x107   : > { %4685 = vmatpush3.bf16.msra.mxu1 %v5093_v50  ;;  %4734 = vmatprep.subr.bf16.mxu0 %v5094_v54  ;;  %v5114_v50 = vld [vmem:[%s5806_s15 + $0x268] sm:$0xff]   ;;  %v1307_v54 = vld [vmem:[%s6505_s0 + $0x218] sm:$0xff] }
 0x108   : > { %3097 = vmatmul.mubr.bf16.gmra.mrb[16].mxu0 %v4203_v34  ;;  %4798 = vmatprep.subr.bf16.mxu1 %v5096_v55  ;;  %v5106_v34 = vld [vmem:[%s5806_s15 + $0x258] sm:$0xff]  }
 0x109   : > { %3194 = vmatmul.mubr.bf16.gmra.mrb[16].mxu1 %v4205_v36  ;;  %3104 = vmatprep.mubr.bf16.mxu0 %v4220_v37  ;;  %v1298_v36 = vld [vmem:[%s6505_s0 + $0x1d0] sm:$0xff]  ;;  %v5108_v37 = vld [vmem:[%s5806_s15 + $0x2d8] sm:$0xff]  }
 0x10a   : > { %3201 = vmatprep.mubr.bf16.mxu1 %v4222_v39  ;;  %v1299_v39 = vld [vmem:[%s6505_s0 + $0x1d8] sm:$0xff]  ;;  %v4192_v46 = vcombine.high %v1290_v35, %v1298_v36  ;;  %v4191_v59 = vcombine.low %v1290_v35, %v1298_v36  ;;  %v1253_v35 = vld [vmem:[%s6505_s0 + $0x68] sm:$0xff]  ;;  %v4255_v36 = vcombine.low %v1354_v24, %v1362_v25 }
 0x10b   : > { %v4194_v47 = vcombine.high %v1291_v38, %v1299_v39  ;;  %v1315_v55 = vld [vmem:[%s6505_s0 + $0x258] sm:$0xff] }
 0x10c   : > { %v4210_v0 = vcombine.high %v1307_v54, %v1315_v55 }
 0x110   : > { %3105 = vmatmul.mubr.bf16.gmra.mrb[20].mxu0 %v4219_v49  ;;  %v5113_v49 = vld [vmem:[%s5806_s15 + $0x2a0] sm:$0xff]  }
 0x111   : > { %3202 = vmatmul.mubr.bf16.gmra.mrb[20].mxu1 %v4221_v51  ;;  %3112 = vmatprep.mubr.bf16.mxu0 %v4236_v52  ;;  %v1306_v51 = vld [vmem:[%s6505_s0 + $0x210] sm:$0xff] }
 0x112   : > { %3209 = vmatprep.mubr.bf16.mxu1 %v4238_v53  ;;  %v1314_v52 = vld [vmem:[%s6505_s0 + $0x250] sm:$0xff]  ;;  %v5116_v53 = vld [vmem:[%s5806_s15 + $0x2e8] sm:$0xff]  }
 0x118   : > { %3113 = vmatmul.mubr.bf16.gmra.mrb[24].mxu0 %v4235_v60  ;;  %v5120_v60 = vld [vmem:[%s5806_s15 + $0x2f0] sm:$0xff]  }
 0x119   : > { %3210 = vmatmul.mubr.bf16.gmra.mrb[24].mxu1 %v4237_v61  ;;  %3120 = vmatprep.mubr.bf16.mxu0 %v4252_v62  ;;  %v4193_v61 = vcombine.low %v1291_v38, %v1299_v39  ;;  %v4208_v62 = vcombine.high %v1306_v51, %v1314_v52 }
 0x11a   : > { %3217 = vmatprep.mubr.bf16.mxu1 %v4254_v63  ;;  %v5119_v63 = vld [vmem:[%s5806_s15 + $0x230] sm:$0xff]  }
 0x120   : > { %3121 = vmatmul.mubr.bf16.gmra.mrb[28].mxu0 %v4251_v4  ;;  %v1330_v4 = vld [vmem:[%s6505_s0 + $0x2d0] sm:$0xff] }
 0x121   : > { %3218 = vmatmul.mubr.bf16.gmra.mrb[28].mxu1 %v4253_v5  ;;  %3258 = vmatprep.mubr.bf16.mxu0 %v4144_v6  ;;  %v5124_v5 = vld [vmem:[%s5806_s15 + $0x2f8] sm:$0xff]  }
 0x122   : > { %3355 = vmatprep.mubr.bf16.mxu1 %v4146_v7  ;;  %v1323_v6 = vld [vmem:[%s6505_s0 + $0x298] sm:$0xff] }
 0x123   : > { %v1331_v7 = vld [vmem:[%s6505_s0 + $0x2d8] sm:$0xff] }
 0x128   : > { %3259 = vmatmul.mubr.bf16.vlgmr.msra.gmra.mrb[32].mxu0 %v4143_v11  ;;  %v4207_v11 = vcombine.low %v1306_v51, %v1314_v52  ;;  %v5132_v51 = vld [vmem:[%s5806_s15 + $0x3c8] sm:$0xff]  }
 0x129   : > { %3356 = vmatmul.mubr.bf16.vlgmr.msra.gmra.mrb[32].mxu1 %v4145_v13  ;;  %4735 = vmatpush3.bf16.msra.mxu0 %v5095_v14  ;;  %v4209_v13 = vcombine.low %v1307_v54, %v1315_v55  ;;  %v4224_v14 = vcombine.high %v1322_v3, %v1330_v4  ;;  %v5131_v52 = vld [vmem:[%s5806_s15 + $0x308] sm:$0xff]   ;;  %v1276_v54 = vld [vmem:[%s6505_s0 + $0x120] sm:$0xff] }
 0x12a   : > { %4799 = vmatpush3.bf16.msra.mxu1 %v5097_v15  ;;  %3266 = vmatprep.mubr.bf16.mxu0 %v4160_v16  ;;  %v4226_v15 = vcombine.high %v1323_v6, %v1331_v7  ;;  %v1338_v16 = vld [vmem:[%s6505_s0 + $0x310] sm:$0xff]  ;;  %v1284_v55 = vld [vmem:[%s6505_s0 + $0x160] sm:$0xff] }
 0x12b   : > { %3363 = vmatprep.mubr.bf16.mxu1 %v4162_v17  ;;  %4736 = vmatprep.subr.bf16.mxu0 %v5098_v18  ;;  %v1346_v17 = vld [vmem:[%s6505_s0 + $0x350] sm:$0xff]  ;;  %v1339_v18 = vld [vmem:[%s6505_s0 + $0x318] sm:$0xff] }
 0x12c   : > { %4800 = vmatprep.subr.bf16.mxu1 %v5100_v20  ;;  %v4223_v20 = vcombine.low %v1322_v3, %v1330_v4  ;;  %v4240_v22 = vcombine.high %v1338_v16, %v1346_v17  ;;  %v5140_v3 = vld [vmem:[%s5806_s15 + $0x3d8] sm:$0xff]   ;;  %v1292_v4 = vld [vmem:[%s6505_s0 + $0x1a0] sm:$0xff] }
 0x12d   : > { %4737 = vmatpush3.bf16.msra.mxu0 %v5099_v19  ;;  %v1347_v19 = vld [vmem:[%s6505_s0 + $0x358] sm:$0xff] }
 0x12e   : > { %4801 = vmatpush3.bf16.msra.mxu1 %v5101_v21  ;;  %4738 = vmatprep.subr.bf16.mxu0 %v5102_v26  ;;  %v4225_v21 = vcombine.low %v1323_v6, %v1331_v7  ;;  %v4242_v23 = vcombine.high %v1339_v18, %v1347_v19  ;;  %v1355_v26 = vld [vmem:[%s6505_s0 + $0x398] sm:$0xff]  ;;  %v1293_v6 = vld [vmem:[%s6505_s0 + $0x1a8] sm:$0xff] }
 0x12f   : > { %4802 = vmatprep.subr.bf16.mxu1 %v5104_v27  ;;  %v1363_v27 = vld [vmem:[%s6505_s0 + $0x3d8] sm:$0xff] }
 0x130   : > { %3267 = vmatmul.mubr.bf16.gmra.mrb[36].mxu0 %v4159_v28  ;;  %v4239_v28 = vcombine.low %v1338_v16, %v1346_v17  ;;  %v5139_v7 = vld [vmem:[%s5806_s15 + $0x318] sm:$0xff]   ;;  %v5143_v16 = vld [vmem:[%s5806_s15 + $0x320] sm:$0xff]  }
 0x131   : > { %3364 = vmatmul.mubr.bf16.gmra.mrb[36].mxu1 %v4161_v29  ;;  %3274 = vmatprep.mubr.bf16.mxu0 %v4176_v30  ;;  %v4241_v29 = vcombine.low %v1339_v18, %v1347_v19  ;;  %v4256_v30 = vcombine.high %v1354_v24, %v1362_v25  ;;  %v5145_v17 = vld [vmem:[%s5806_s15 + $0x3a0] sm:$0xff]   ;;  %v5146_v18 = vld [vmem:[%s5806_s15 + $0x368] sm:$0xff]  }
 0x132   : > { %3371 = vmatprep.mubr.bf16.mxu1 %v4178_v32  ;;  %4739 = vmatpush3.bf16.msra.mxu0 %v5103_v31  ;;  %v4258_v31 = vcombine.high %v1355_v26, %v1363_v27  ;;  %v1244_v32 = vld [vmem:[%s6505_s0 + $0x20] sm:$0xff]  ;;  %v5148_v19 = vld [vmem:[%s5806_s15 + $0x3e8] sm:$0xff]  }
 0x133   : > { %4803 = vmatpush3.bf16.msra.mxu1 %v5105_v33  ;;  %4740 = vmatprep.subr.bf16.mxu0 %v5106_v34  ;;  %v1252_v33 = vld [vmem:[%s6505_s0 + $0x60] sm:$0xff]  ;;  %v1245_v34 = vld [vmem:[%s6505_s0 + $0x28] sm:$0xff] }
 0x134   : > { %4804 = vmatprep.subr.bf16.mxu1 %v5108_v37  ;;  %v4257_v37 = vcombine.low %v1355_v26, %v1363_v27  ;;  %v4148_v38 = vcombine.high %v1244_v32, %v1252_v33  ;;  %v4150_v39 = vcombine.high %v1245_v34, %v1253_v35  ;;  %v1317_v24 = vld [vmem:[%s6505_s0 + $0x268] sm:$0xff]  ;;  %v5150_v26 = vld [vmem:[%s5806_s15 + $0x370] sm:$0xff]  }
 0x135   : > { %v5149_v25 = vld [vmem:[%s5806_s15 + $0x3a8] sm:$0xff]  }
 0x136   : > { %4741 = vmatpush3.bf16.msra.mxu0 %v5107_v40  ;;  %v1260_v40 = vld [vmem:[%s6505_s0 + $0xa0] sm:$0xff] }
 0x137   : > { %4805 = vmatpush3.bf16.msra.mxu1 %v5109_v41  ;;  %4742 = vmatprep.subr.bf16.mxu0 %v5110_v42  ;;  %v1268_v41 = vld [vmem:[%s6505_s0 + $0xe0] sm:$0xff]  ;;  %v4147_v42 = vcombine.low %v1244_v32, %v1252_v33  ;;  %v5151_v32 = vld [vmem:[%s5806_s15 + $0x330] sm:$0xff]  }
 0x138   : > { %3275 = vmatmul.mubr.bf16.gmra.mrb[40].mxu0 %v4175_v43  ;;  %4806 = vmatprep.subr.bf16.mxu1 %v5112_v44  ;;  %v1261_v43 = vld [vmem:[%s6505_s0 + $0xa8] sm:$0xff]  ;;  %v5153_v33 = vld [vmem:[%s5806_s15 + $0x3b0] sm:$0xff]  }
 0x139   : > { %3372 = vmatmul.mubr.bf16.gmra.mrb[40].mxu1 %v4177_v45  ;;  %3282 = vmatprep.mubr.bf16.mxu0 %v4192_v46  ;;  %v1269_v44 = vld [vmem:[%s6505_s0 + $0xe8] sm:$0xff]  ;;  %v4149_v45 = vcombine.low %v1245_v34, %v1253_v35  ;;  %v5127_v46 = vld [vmem:[%s5806_s15 + $0x300] sm:$0xff]   ;;  %v5154_v34 = vld [vmem:[%s5806_s15 + $0x378] sm:$0xff]  }
 0x13a   : > { %3379 = vmatprep.mubr.bf16.mxu1 %v4194_v47  ;;  %4743 = vmatpush3.bf16.msra.mxu0 %v5111_v48  ;;  %v5129_v47 = vld [vmem:[%s5806_s15 + $0x380] sm:$0xff]   ;;  %v4164_v48 = vcombine.high %v1260_v40, %v1268_v41  ;;  %v5156_v35 = vld [vmem:[%s5806_s15 + $0x3f8] sm:$0xff]  }
 0x13b   : > { %4807 = vmatpush3.bf16.msra.mxu1 %v5113_v49  ;;  %4744 = vmatprep.subr.bf16.mxu0 %v5114_v50  ;;  %v4166_v49 = vcombine.high %v1261_v43, %v1269_v44  ;;  %v5130_v50 = vld [vmem:[%s5806_s15 + $0x348] sm:$0xff]  }
 0x13c   : > { %4808 = vmatprep.subr.bf16.mxu1 %v5116_v53  ;;  %v5133_v53 = vld [vmem:[%s5806_s15 + $0x388] sm:$0xff]  }
 0x13e   : > { %4745 = vmatpush3.bf16.msra.mxu0 %v5115_v56  ;;  %v5134_v56 = vld [vmem:[%s5806_s15 + $0x350] sm:$0xff]  }
 0x13f   : > { %4809 = vmatpush3.bf16.msra.mxu1 %v5117_v57  ;;  %4746 = vmatprep.subr.bf16.mxu0 %v5118_v58  ;;  %v1277_v57 = vld [vmem:[%s6505_s0 + $0x128] sm:$0xff] }
 0x140   : > { %3283 = vmatmul.mubr.bf16.gmra.mrb[44].mxu0 %v4191_v59  ;;  %4810 = vmatprep.subr.bf16.mxu1 %v5120_v60  ;;  %v1285_v58 = vld [vmem:[%s6505_s0 + $0x168] sm:$0xff]  ;;  %v5136_v59 = vld [vmem:[%s5806_s15 + $0x3d0] sm:$0xff]   ;;  %v4163_v60 = vcombine.low %v1260_v40, %v1268_v41  ;;  %v5157_v41 = vld [vmem:[%s5806_s15 + $0x3b8] sm:$0xff]  }
 0x141   : > { %3380 = vmatmul.mubr.bf16.gmra.mrb[44].mxu1 %v4193_v61  ;;  %3290 = vmatprep.mubr.bf16.mxu0 %v4208_v62  ;;  %v4165_v61 = vcombine.low %v1261_v43, %v1269_v44  ;;  %v4180_v62 = vcombine.high %v1276_v54, %v1284_v55  ;;  %v1333_v40 = vld [vmem:[%s6505_s0 + $0x2e8] sm:$0xff] }
 0x142   : > { %3387 = vmatprep.mubr.bf16.mxu1 %v4210_v0  ;;  %4747 = vmatpush3.bf16.msra.mxu0 %v5119_v63  ;;  %v4182_v63 = vcombine.high %v1277_v57, %v1285_v58  ;;  %v5135_v0 = vld [vmem:[%s5806_s15 + $0x310] sm:$0xff]  }
 0x143   : > { %4811 = vmatpush3.bf16.msra.mxu1 %v5121_v1  ;;  %4748 = vmatprep.subr.bf16.mxu0 %v5122_v2  ;;  %v5137_v1 = vld [vmem:[%s5806_s15 + $0x390] sm:$0xff]   ;;  %v5138_v2 = vld [vmem:[%s5806_s15 + $0x358] sm:$0xff]  }
 0x144   : > { %4812 = vmatprep.subr.bf16.mxu1 %v5124_v5  ;;  %v1300_v5 = vld [vmem:[%s6505_s0 + $0x1e0] sm:$0xff] }
 0x145   : > { %v4195_v27 = vcombine.low %v1292_v4, %v1300_v5 }
 0x146   : > { %4749 = vmatpush3.bf16.msra.mxu0 %v5123_v8  ;;  %v1301_v8 = vld [vmem:[%s6505_s0 + $0x1e8] sm:$0xff] }
 0x147   : > { %4813 = vmatpush3.bf16.msra.mxu1 %v5125_v9  ;;  %4862 = vmatprep.subr.bf16.mxu0 %v5126_v10  ;;  %v5141_v9 = vld [vmem:[%s5806_s15 + $0x398] sm:$0xff]   ;;  %v5142_v10 = vld [vmem:[%s5806_s15 + $0x360] sm:$0xff]  }
 0x148   : > { %3291 = vmatmul.mubr.bf16.gmra.mrb[48].mxu0 %v4207_v11  ;;  %4926 = vmatprep.subr.bf16.mxu1 %v5128_v12  ;;  %v4179_v11 = vcombine.low %v1276_v54, %v1284_v55  ;;  %v5144_v12 = vld [vmem:[%s5806_s15 + $0x3e0] sm:$0xff]  }
 0x149   : > { %3388 = vmatmul.mubr.bf16.gmra.mrb[48].mxu1 %v4209_v13  ;;  %3298 = vmatprep.mubr.bf16.mxu0 %v4224_v14  ;;  %v4181_v13 = vcombine.low %v1277_v57, %v1285_v58  ;;  %v4196_v14 = vcombine.high %v1292_v4, %v1300_v5  ;;  %v1356_v54 = vld [vmem:[%s6505_s0 + $0x3a0] sm:$0xff]  ;;  %v1365_v57 = vld [vmem:[%s6505_s0 + $0x3e8] sm:$0xff] }
 0x14a   : > { %3395 = vmatprep.mubr.bf16.mxu1 %v4226_v15  ;;  %v4198_v15 = vcombine.high %v1293_v6, %v1301_v8  ;;  %v1364_v55 = vld [vmem:[%s6505_s0 + $0x3e0] sm:$0xff] }
 0x150   : > { %3299 = vmatmul.mubr.bf16.gmra.mrb[52].mxu0 %v4223_v20  ;;  %v1308_v20 = vld [vmem:[%s6505_s0 + $0x220] sm:$0xff] }
 0x151   : > { %3396 = vmatmul.mubr.bf16.gmra.mrb[52].mxu1 %v4225_v21  ;;  %3306 = vmatprep.mubr.bf16.mxu0 %v4240_v22  ;;  %v1316_v21 = vld [vmem:[%s6505_s0 + $0x260] sm:$0xff]  ;;  %v1309_v22 = vld [vmem:[%s6505_s0 + $0x228] sm:$0xff] }
 0x152   : > { %3403 = vmatprep.mubr.bf16.mxu1 %v4242_v23  ;;  %v5147_v23 = vld [vmem:[%s5806_s15 + $0x328] sm:$0xff]   ;;  %v4213_v43 = vcombine.low %v1309_v22, %v1317_v24 }
 0x158   : > { %3307 = vmatmul.mubr.bf16.gmra.mrb[56].mxu0 %v4239_v28  ;;  %v5152_v28 = vld [vmem:[%s5806_s15 + $0x3f0] sm:$0xff]  }
 0x159   : > { %3404 = vmatmul.mubr.bf16.gmra.mrb[56].mxu1 %v4241_v29  ;;  %3314 = vmatprep.mubr.bf16.mxu0 %v4256_v30  ;;  %v4197_v29 = vcombine.low %v1293_v6, %v1301_v8  ;;  %v4212_v30 = vcombine.high %v1308_v20, %v1316_v21  ;;  %v1262_v6 = vld [vmem:[%s6505_s0 + $0xb0] sm:$0xff]  ;;  %v1263_v8 = vld [vmem:[%s6505_s0 + $0xb8] sm:$0xff] }
 0x15a   : > { %3411 = vmatprep.mubr.bf16.mxu1 %v4258_v31  ;;  %v4214_v31 = vcombine.high %v1309_v22, %v1317_v24  ;;  %v1294_v22 = vld [vmem:[%s6505_s0 + $0x1b0] sm:$0xff]  ;;  %v1295_v24 = vld [vmem:[%s6505_s0 + $0x1b8] sm:$0xff] }
 0x160   : > { %3315 = vmatmul.mubr.bf16.gmra.mrb[60].mxu0 %v4255_v36  ;;  %v1324_v36 = vld [vmem:[%s6505_s0 + $0x2a0] sm:$0xff] }
 0x161   : > { %3412 = vmatmul.mubr.bf16.gmra.mrb[60].mxu1 %v4257_v37  ;;  %3452 = vmatprep.mubr.bf16.mxu0 %v4148_v38  ;;  %v1332_v37 = vld [vmem:[%s6505_s0 + $0x2e0] sm:$0xff]  ;;  %v5155_v38 = vld [vmem:[%s5806_s15 + $0x338] sm:$0xff]   ;;  %s4138_s15 = sshll.u32 %s1205_s27, 6  ;;  %s4412_s27 = sshll.u32 (%p5248_p6), %s5188_s11, 2 }
 0x162   : > { %3549 = vmatprep.mubr.bf16.mxu1 %v4150_v39  ;;  %v1325_v39 = vld [vmem:[%s6505_s0 + $0x2a8] sm:$0xff]  ;;  %v4228_v44 = vcombine.high %v1324_v36, %v1332_v37  ;;  %s6446_s9 = scalar_lea.vmem [#allocation3], %s4138_s15  ;;  %s3947_s3 = scalar_lea.vmem (%p5248_p6), %s6507_s2, %s4412_s27 }
 0x168   : > { %3453 = vmatmul.mubr.bf16.vlgmr.msra.gmra.mrb[64].mxu0 %v4147_v42  ;;  %v4211_v42 = vcombine.low %v1308_v20, %v1316_v21 }
 0x169   : > { %3550 = vmatmul.mubr.bf16.vlgmr.msra.gmra.mrb[64].mxu1 %v4149_v45  ;;  %4863 = vmatpush3.bf16.msra.mxu0 %v5127_v46  ;;  %v4230_v45 = vcombine.high %v1325_v39, %v1333_v40  ;;  %v1340_v46 = vld [vmem:[%s6505_s0 + $0x320] sm:$0xff] }
 0x16a   : > { %4927 = vmatpush3.bf16.msra.mxu1 %v5129_v47  ;;  %3460 = vmatprep.mubr.bf16.mxu0 %v4164_v48  ;;  %v1348_v47 = vld [vmem:[%s6505_s0 + $0x360] sm:$0xff]  ;;  %v1341_v48 = vld [vmem:[%s6505_s0 + $0x328] sm:$0xff] }
 0x16b   : > { %3557 = vmatprep.mubr.bf16.mxu1 %v4166_v49  ;;  %4864 = vmatprep.subr.bf16.mxu0 %v5130_v50  ;;  %v1349_v49 = vld [vmem:[%s6505_s0 + $0x368] sm:$0xff]  ;;  %v4227_v50 = vcombine.low %v1324_v36, %v1332_v37  ;;  %v4243_v58 = vcombine.low %v1340_v46, %v1348_v47 }
 0x16c   : > { %4928 = vmatprep.subr.bf16.mxu1 %v5132_v51  ;;  %v4229_v51 = vcombine.low %v1325_v39, %v1333_v40 }
 0x16d   : > { %4865 = vmatpush3.bf16.msra.mxu0 %v5131_v52  ;;  %v4244_v52 = vcombine.high %v1340_v46, %v1348_v47 }
 0x16e   : > { %4929 = vmatpush3.bf16.msra.mxu1 %v5133_v53  ;;  %4866 = vmatprep.subr.bf16.mxu0 %v5134_v56  ;;  %v4246_v53 = vcombine.high %v1341_v48, %v1349_v49  ;;  %v1357_v56 = vld [vmem:[%s6505_s0 + $0x3a8] sm:$0xff] }
 0x16f   : > { %4930 = vmatprep.subr.bf16.mxu1 %v5136_v59  ;;  %v4245_v59 = vcombine.low %v1341_v48, %v1349_v49 }
 0x170   : > { %3461 = vmatmul.mubr.bf16.gmra.mrb[68].mxu0 %v4163_v60  ;;  %v4260_v60 = vcombine.high %v1356_v54, %v1364_v55 }
 0x171   : > { %3558 = vmatmul.mubr.bf16.gmra.mrb[68].mxu1 %v4165_v61  ;;  %3468 = vmatprep.mubr.bf16.mxu0 %v4180_v62  ;;  %v4262_v61 = vcombine.high %v1357_v56, %v1365_v57  ;;  %v1246_v62 = vld [vmem:[%s6505_s0 + $0x30] sm:$0xff] }
 0x172   : > { %3565 = vmatprep.mubr.bf16.mxu1 %v4182_v63  ;;  %4867 = vmatpush3.bf16.msra.mxu0 %v5135_v0  ;;  %v1254_v63 = vld [vmem:[%s6505_s0 + $0x70] sm:$0xff]  ;;  %v1247_v0 = vld [vmem:[%s6505_s0 + $0x38] sm:$0xff] }
 0x173   : > { %4931 = vmatpush3.bf16.msra.mxu1 %v5137_v1  ;;  %4868 = vmatprep.subr.bf16.mxu0 %v5138_v2  ;;  %v1255_v1 = vld [vmem:[%s6505_s0 + $0x78] sm:$0xff]  ;;  %v4259_v2 = vcombine.low %v1356_v54, %v1364_v55  ;;  %v4152_v4 = vcombine.high %v1246_v62, %v1254_v63 }
 0x174   : > { %4932 = vmatprep.subr.bf16.mxu1 %v5140_v3  ;;  %v4261_v3 = vcombine.low %v1357_v56, %v1365_v57  ;;  %v4154_v5 = vcombine.high %v1247_v0, %v1255_v1  ;;  %v1327_v55 = vld [vmem:[%s6505_s0 + $0x2b8] sm:$0xff] }
 0x175   : > { %v1335_v56 = vld [vmem:[%s6505_s0 + $0x2f8] sm:$0xff] }
 0x176   : > { %4869 = vmatpush3.bf16.msra.mxu0 %v5139_v7  ;;  %v1270_v7 = vld [vmem:[%s6505_s0 + $0xf0] sm:$0xff] }
 0x177   : > { %4933 = vmatpush3.bf16.msra.mxu1 %v5141_v9  ;;  %4870 = vmatprep.subr.bf16.mxu0 %v5142_v10  ;;  %v1271_v9 = vld [vmem:[%s6505_s0 + $0xf8] sm:$0xff]  ;;  %v4151_v10 = vcombine.low %v1246_v62, %v1254_v63 }
 0x178   : > { %3469 = vmatmul.mubr.bf16.gmra.mrb[72].mxu0 %v4179_v11  ;;  %4934 = vmatprep.subr.bf16.mxu1 %v5144_v12  ;;  %v4153_v11 = vcombine.low %v1247_v0, %v1255_v1  ;;  %v4168_v12 = vcombine.high %v1262_v6, %v1270_v7 }
 0x179   : > { %3566 = vmatmul.mubr.bf16.gmra.mrb[72].mxu1 %v4181_v13  ;;  %3476 = vmatprep.mubr.bf16.mxu0 %v4196_v14  ;;  %v4170_v13 = vcombine.high %v1263_v8, %v1271_v9  ;;  %v1278_v14 = vld [vmem:[%s6505_s0 + $0x130] sm:$0xff] }
 0x17a   : > { %3573 = vmatprep.mubr.bf16.mxu1 %v4198_v15  ;;  %4871 = vmatpush3.bf16.msra.mxu0 %v5143_v16  ;;  %v1286_v15 = vld [vmem:[%s6505_s0 + $0x170] sm:$0xff]  ;;  %v1279_v16 = vld [vmem:[%s6505_s0 + $0x138] sm:$0xff] }
 0x17b   : > { %4935 = vmatpush3.bf16.msra.mxu1 %v5145_v17  ;;  %4872 = vmatprep.subr.bf16.mxu0 %v5146_v18  ;;  %v1287_v17 = vld [vmem:[%s6505_s0 + $0x178] sm:$0xff]  ;;  %v4167_v18 = vcombine.low %v1262_v6, %v1270_v7  ;;  %v4184_v20 = vcombine.high %v1278_v14, %v1286_v15 }
 0x17c   : > { %4936 = vmatprep.subr.bf16.mxu1 %v5148_v19  ;;  %v4169_v19 = vcombine.low %v1263_v8, %v1271_v9  ;;  %v4186_v21 = vcombine.high %v1279_v16, %v1287_v17 }
 0x17e   : > { %4873 = vmatpush3.bf16.msra.mxu0 %v5147_v23  ;;  %v1302_v23 = vld [vmem:[%s6505_s0 + $0x1f0] sm:$0xff] }
 0x17f   : > { %4937 = vmatpush3.bf16.msra.mxu1 %v5149_v25  ;;  %4874 = vmatprep.subr.bf16.mxu0 %v5150_v26  ;;  %v1303_v25 = vld [vmem:[%s6505_s0 + $0x1f8] sm:$0xff]  ;;  %v4183_v26 = vcombine.low %v1278_v14, %v1286_v15  ;;  %v4199_v37 = vcombine.low %v1294_v22, %v1302_v23 }
 0x180   : > { %3477 = vmatmul.mubr.bf16.gmra.mrb[76].mxu0 %v4195_v27  ;;  %4938 = vmatprep.subr.bf16.mxu1 %v5152_v28  ;;  %v4185_v27 = vcombine.low %v1279_v16, %v1287_v17  ;;  %v4200_v28 = vcombine.high %v1294_v22, %v1302_v23  ;;  %v1351_v14 = vld [vmem:[%s6505_s0 + $0x378] sm:$0xff] }
 0x181   : > { %3574 = vmatmul.mubr.bf16.gmra.mrb[76].mxu1 %v4197_v29  ;;  %3484 = vmatprep.mubr.bf16.mxu0 %v4212_v30  ;;  %v4202_v29 = vcombine.high %v1295_v24, %v1303_v25  ;;  %v1310_v30 = vld [vmem:[%s6505_s0 + $0x230] sm:$0xff] }
 0x182   : > { %3581 = vmatprep.mubr.bf16.mxu1 %v4214_v31  ;;  %4875 = vmatpush3.bf16.msra.mxu0 %v5151_v32  ;;  %v1318_v31 = vld [vmem:[%s6505_s0 + $0x270] sm:$0xff] }
 0x183   : > { %4939 = vmatpush3.bf16.msra.mxu1 %v5153_v33  ;;  %4876 = vmatprep.subr.bf16.mxu0 %v5154_v34  ;;  %v1311_v33 = vld [vmem:[%s6505_s0 + $0x238] sm:$0xff] }
 0x184   : > { %4940 = vmatprep.subr.bf16.mxu1 %v5156_v35  ;;  %v1319_v34 = vld [vmem:[%s6505_s0 + $0x278] sm:$0xff] }
 0x185   : > { %v4218_v46 = vcombine.high %v1311_v33, %v1319_v34  ;;  %v4217_v63 = vcombine.low %v1311_v33, %v1319_v34  ;;  %v1366_v33 = vld [vmem:[%s6505_s0 + $0x3f0] sm:$0xff] }
 0x186   : > { %4877 = vmatpush3.bf16.msra.mxu0 %v5155_v38 }
 0x187   : > { %4941 = vmatpush3.bf16.msra.mxu1 %v5157_v41  ;;  %v4201_v41 = vcombine.low %v1295_v24, %v1303_v25 }
 0x188   : > { %3485 = vmatmul.mubr.bf16.gmra.mrb[80].mxu0 %v4211_v42  ;;  %v4216_v42 = vcombine.high %v1310_v30, %v1318_v31 }
 0x189   : > { %3582 = vmatmul.mubr.bf16.gmra.mrb[80].mxu1 %v4213_v43  ;;  %3492 = vmatprep.mubr.bf16.mxu0 %v4228_v44 }
 0x18a   : > { %3589 = vmatprep.mubr.bf16.mxu1 %v4230_v45 }
 0x190   : > { %3493 = vmatmul.mubr.bf16.gmra.mrb[84].mxu0 %v4227_v50 }
 0x191   : > { %3590 = vmatmul.mubr.bf16.gmra.mrb[84].mxu1 %v4229_v51  ;;  %3500 = vmatprep.mubr.bf16.mxu0 %v4244_v52  ;;  %v1326_v52 = vld [vmem:[%s6505_s0 + $0x2b0] sm:$0xff] }
 0x192   : > { %3597 = vmatprep.mubr.bf16.mxu1 %v4246_v53  ;;  %v1334_v53 = vld [vmem:[%s6505_s0 + $0x2f0] sm:$0xff] }
 0x193   : > { %v4232_v0 = vcombine.high %v1326_v52, %v1334_v53  ;;  %v4231_v17 = vcombine.low %v1326_v52, %v1334_v53 }
 0x198   : > { %3501 = vmatmul.mubr.bf16.gmra.mrb[88].mxu0 %v4243_v58 }
 0x199   : > { %3598 = vmatmul.mubr.bf16.gmra.mrb[88].mxu1 %v4245_v59  ;;  %3508 = vmatprep.mubr.bf16.mxu0 %v4260_v60  ;;  %v4215_v59 = vcombine.low %v1310_v30, %v1318_v31 }
 0x19a   : > { %3605 = vmatprep.mubr.bf16.mxu1 %v4262_v61 }
 0x1a0   : > { %3509 = vmatmul.mubr.bf16.gmra.mrb[92].mxu0 %v4259_v2 }
 0x1a1   : > { %3606 = vmatmul.mubr.bf16.gmra.mrb[92].mxu1 %v4261_v3  ;;  %3646 = vmatprep.mubr.bf16.mxu0 %v4152_v4  ;;  %v4234_v4 = vcombine.high %v1327_v55, %v1335_v56 }
 0x1a2   : > { %3743 = vmatprep.mubr.bf16.mxu1 %v4154_v5 }
 0x1a8   : > { %3647 = vmatmul.mubr.bf16.vlgmr.msra.gmra.mrb[96].mxu0 %v4151_v10  ;;  %v1342_v10 = vld [vmem:[%s6505_s0 + $0x330] sm:$0xff] }
 0x1a9   : > { %3744 = vmatmul.mubr.bf16.vlgmr.msra.gmra.mrb[96].mxu1 %v4153_v11  ;;  %3654 = vmatprep.mubr.bf16.mxu0 %v4168_v12  ;;  %v1350_v11 = vld [vmem:[%s6505_s0 + $0x370] sm:$0xff] }
 0x1aa   : > { %3751 = vmatprep.mubr.bf16.mxu1 %v4170_v13  ;;  %v1343_v13 = vld [vmem:[%s6505_s0 + $0x338] sm:$0xff]  ;;  %v4248_v22 = vcombine.high %v1342_v10, %v1350_v11 }
 0x1b0   : > { %3655 = vmatmul.mubr.bf16.gmra.mrb[100].mxu0 %v4167_v18 }
 0x1b1   : > { %3752 = vmatmul.mubr.bf16.gmra.mrb[100].mxu1 %v4169_v19  ;;  %3662 = vmatprep.mubr.bf16.mxu0 %v4184_v20 }
 0x1b2   : > { %3759 = vmatprep.mubr.bf16.mxu1 %v4186_v21  ;;  %v4233_v21 = vcombine.low %v1327_v55, %v1335_v56 }
 0x1b8   : > { %3663 = vmatmul.mubr.bf16.gmra.mrb[104].mxu0 %v4183_v26  ;;  %v4250_v26 = vcombine.high %v1343_v13, %v1351_v14 }
 0x1b9   : > { %3760 = vmatmul.mubr.bf16.gmra.mrb[104].mxu1 %v4185_v27  ;;  %3670 = vmatprep.mubr.bf16.mxu0 %v4200_v28 }
 0x1ba   : > { %3767 = vmatprep.mubr.bf16.mxu1 %v4202_v29 }
 0x1bb   : > { %v4494_v32 = vpop.f32.mrb[0].mxu0 }
 0x1bc   : > { %v4558_v35 = vpop.f32.mrb[0].mxu1  ;;  %v4495_v36 = vpop.f32.mrb[1].mxu0 }
 0x1bd   : > { %v4496_v38 = vadd.f32 %v4495_v36, %v4494_v32  ;;  %v4559_v39 = vpop.f32.mrb[1].mxu1  ;;  %v4497_v40 = vpop.f32.mrb[2].mxu0  ;;  %v1358_v32 = vld [vmem:[%s6505_s0 + $0x3b0] sm:$0xff]  ;;  %v1367_v36 = vld [vmem:[%s6505_s0 + $0x3f8] sm:$0xff] }
 0x1be   : > { %v4560_v43 = vadd.f32 %v4559_v39, %v4558_v35  ;;  %v4561_v44 = vpop.f32.mrb[2].mxu1  ;;  %v4498_v45 = vpop.f32.mrb[3].mxu0  ;;  %v1359_v35 = vld [vmem:[%s6505_s0 + $0x3b8] sm:$0xff]  ;;  %v4247_v39 = vcombine.low %v1342_v10, %v1350_v11 }
 0x1bf   : > { %v4499_v47 = vadd.f32 %v4498_v45, %v4497_v40  ;;  %v4562_v48 = vpop.f32.mrb[3].mxu1 }
 0x1c0   : > { %v6276_v49 = vadd.f32 %v4560_v43, %v4496_v38  ;;  %v4563_v50 = vadd.f32 %v4562_v48, %v4561_v44  ;;  %3671 = vmatmul.mubr.bf16.gmra.mrb[108].mxu0 %v4199_v37  ;;  %v4249_v43 = vcombine.low %v1343_v13, %v1351_v14  ;;  %v4264_v44 = vcombine.high %v1358_v32, %v1366_v33 }
 0x1c1   : > { %3768 = vmatmul.mubr.bf16.gmra.mrb[108].mxu1 %v4201_v41  ;;  %3678 = vmatprep.mubr.bf16.mxu0 %v4216_v42  ;;  %v4266_v48 = vcombine.high %v1359_v35, %v1367_v36 }
 0x1c2   : > { %v6278_v51 = vadd.f32 %v4563_v50, %v4499_v47  ;;  %3775 = vmatprep.mubr.bf16.mxu1 %v4218_v46 }
 0x1c3   : > { %v4500_v54 = vpop.f32.mrb[4].mxu0 }
 0x1c4   : > { %v4564_v57 = vpop.f32.mrb[4].mxu1  ;;  %v4501_v58 = vpop.f32.mrb[5].mxu0 }
 0x1c5   : > { %v4502_v60 = vadd.f32 %v4501_v58, %v4500_v54  ;;  %v4565_v61 = vpop.f32.mrb[5].mxu1  ;;  %v4503_v62 = vpop.f32.mrb[6].mxu0 }
 0x1c6   : > { %v4566_v1 = vadd.f32 %v4565_v61, %v4564_v57  ;;  %v4567_v2 = vpop.f32.mrb[6].mxu1  ;;  %v4504_v3 = vpop.f32.mrb[7].mxu0 }
 0x1c7   : > { %v4505_v5 = vadd.f32 %v4504_v3, %v4503_v62  ;;  %v4568_v6 = vpop.f32.mrb[7].mxu1 }
 0x1c8   : > { %v6292_v7 = vadd.f32 %v4566_v1, %v4502_v60  ;;  %v4569_v8 = vadd.f32 %v4568_v6, %v4567_v2  ;;  %3679 = vmatmul.mubr.bf16.gmra.mrb[112].mxu0 %v4215_v59  ;;  %v4263_v59 = vcombine.low %v1358_v32, %v1366_v33 }
 0x1c9   : > { %3776 = vmatmul.mubr.bf16.gmra.mrb[112].mxu1 %v4217_v63  ;;  %3686 = vmatprep.mubr.bf16.mxu0 %v4232_v0  ;;  %v4265_v63 = vcombine.low %v1359_v35, %v1367_v36 }
 0x1ca   : > { %v6294_v9 = vadd.f32 %v4569_v8, %v4505_v5  ;;  %3783 = vmatprep.mubr.bf16.mxu1 %v4234_v4 }
 0x1cb   : > { %v4506_v12 = vpop.f32.mrb[8].mxu0 }
 0x1cc   : > { %v4570_v15 = vpop.f32.mrb[8].mxu1  ;;  %v4507_v16 = vpop.f32.mrb[9].mxu0 }
 0x1cd   : > { %v4508_v18 = vadd.f32 %v4507_v16, %v4506_v12  ;;  %v4571_v19 = vpop.f32.mrb[9].mxu1  ;;  %v4509_v20 = vpop.f32.mrb[10].mxu0 }
 0x1ce   : > { %v4572_v23 = vadd.f32 %v4571_v19, %v4570_v15  ;;  %v4573_v24 = vpop.f32.mrb[10].mxu1  ;;  %v4510_v25 = vpop.f32.mrb[11].mxu0 }
 0x1cf   : > { %v4511_v27 = vadd.f32 %v4510_v25, %v4509_v20  ;;  %v4574_v28 = vpop.f32.mrb[11].mxu1 }
 0x1d0   : > { %v6308_v29 = vadd.f32 %v4572_v23, %v4508_v18  ;;  %v4575_v30 = vadd.f32 %v4574_v28, %v4573_v24  ;;  %3687 = vmatmul.mubr.bf16.gmra.mrb[116].mxu0 %v4231_v17 }
 0x1d1   : > { %3784 = vmatmul.mubr.bf16.gmra.mrb[116].mxu1 %v4233_v21  ;;  %3694 = vmatprep.mubr.bf16.mxu0 %v4248_v22 }
 0x1d2   : > { %v6310_v31 = vadd.f32 %v4575_v30, %v4511_v27  ;;  %3791 = vmatprep.mubr.bf16.mxu1 %v4250_v26 }
 0x1d3   : > { %v4512_v34 = vpop.f32.mrb[12].mxu0 }
 0x1d4   : > { %v4576_v37 = vpop.f32.mrb[12].mxu1  ;;  %v4513_v38 = vpop.f32.mrb[13].mxu0 }
 0x1d5   : > { %v4514_v40 = vadd.f32 %v4513_v38, %v4512_v34  ;;  %v4577_v41 = vpop.f32.mrb[13].mxu1  ;;  %v4515_v42 = vpop.f32.mrb[14].mxu0 }
 0x1d6   : > { %v4578_v45 = vadd.f32 %v4577_v41, %v4576_v37  ;;  %v4579_v46 = vpop.f32.mrb[14].mxu1  ;;  %v4516_v47 = vpop.f32.mrb[15].mxu0 }
 0x1d7   : > { %v4517_v50 = vadd.f32 %v4516_v47, %v4515_v42  ;;  %v4580_v52 = vpop.f32.mrb[15].mxu1 }
 0x1d8   : > { %v6324_v53 = vadd.f32 %v4578_v45, %v4514_v40  ;;  %v4581_v54 = vadd.f32 %v4580_v52, %v4579_v46  ;;  %3695 = vmatmul.mubr.bf16.gmra.mrb[120].mxu0 %v4247_v39 }
 0x1d9   : > { %3792 = vmatmul.mubr.bf16.gmra.mrb[120].mxu1 %v4249_v43  ;;  %3702 = vmatprep.mubr.bf16.mxu0 %v4264_v44 }
 0x1da   : > { %v6326_v55 = vadd.f32 %v4581_v54, %v4517_v50  ;;  %3799 = vmatprep.mubr.bf16.mxu1 %v4266_v48 }
 0x1db   : > { %v4518_v56 = vpop.f32.mrb[16].mxu0 }
 0x1dc   : > { %v4582_v57 = vpop.f32.mrb[16].mxu1  ;;  %v4519_v58 = vpop.f32.mrb[17].mxu0 }
 0x1dd   : > { %v4520_v60 = vadd.f32 %v4519_v58, %v4518_v56  ;;  %v4583_v61 = vpop.f32.mrb[17].mxu1  ;;  %v4521_v62 = vpop.f32.mrb[18].mxu0 }
 0x1de   : > { %v4584_v0 = vadd.f32 %v4583_v61, %v4582_v57  ;;  %v4585_v1 = vpop.f32.mrb[18].mxu1  ;;  %v4522_v2 = vpop.f32.mrb[19].mxu0 }
 0x1df   : > { %v4523_v3 = vadd.f32 %v4522_v2, %v4521_v62  ;;  %v4586_v4 = vpop.f32.mrb[19].mxu1 }
 0x1e0   : > { %v6328_v5 = vadd.f32 %v4584_v0, %v4520_v60  ;;  %v4587_v6 = vadd.f32 %v4586_v4, %v4585_v1  ;;  %3703 = vmatmul.mubr.bf16.gmra.mrb[124].mxu0 %v4263_v59 }
 0x1e1   : > { %3800 = vmatmul.mubr.bf16.gmra.mrb[124].mxu1 %v4265_v63 }
 0x1e2   : > { %v6330_v8 = vadd.f32 %v4587_v6, %v4523_v3 }
 0x1e3   : > { %v4524_v10 = vpop.f32.mrb[20].mxu0 }
 0x1e4   : > { %v4588_v11 = vpop.f32.mrb[20].mxu1  ;;  %v4525_v12 = vpop.f32.mrb[21].mxu0 }
 0x1e5   : > { %v4526_v13 = vadd.f32 %v4525_v12, %v4524_v10  ;;  %v4589_v14 = vpop.f32.mrb[21].mxu1  ;;  %v4527_v15 = vpop.f32.mrb[22].mxu0 }
 0x1e6   : > { %v4590_v16 = vadd.f32 %v4589_v14, %v4588_v11  ;;  %v4591_v17 = vpop.f32.mrb[22].mxu1  ;;  %v4528_v18 = vpop.f32.mrb[23].mxu0 }
 0x1e7   : > { %v4529_v19 = vadd.f32 %v4528_v18, %v4527_v15  ;;  %v4592_v20 = vpop.f32.mrb[23].mxu1 }
 0x1e8   : > { %v6332_v21 = vadd.f32 %v4590_v16, %v4526_v13  ;;  %v4593_v22 = vadd.f32 %v4592_v20, %v4591_v17 }
 0x1ea   : > { %v6334_v23 = vadd.f32 %v4593_v22, %v4529_v19 }
 0x1eb   : > { %v4530_v24 = vpop.f32.mrb[24].mxu0 }
 0x1ec   : > { %v4594_v25 = vpop.f32.mrb[24].mxu1  ;;  %v4531_v26 = vpop.f32.mrb[25].mxu0 }
 0x1ed   : > { %v4532_v27 = vadd.f32 %v4531_v26, %v4530_v24  ;;  %v4595_v28 = vpop.f32.mrb[25].mxu1  ;;  %v4533_v30 = vpop.f32.mrb[26].mxu0 }
 0x1ee   : > { %v4596_v32 = vadd.f32 %v4595_v28, %v4594_v25  ;;  %v4597_v33 = vpop.f32.mrb[26].mxu1  ;;  %v4534_v34 = vpop.f32.mrb[27].mxu0 }
 0x1ef   : > { %v4535_v35 = vadd.f32 %v4534_v34, %v4533_v30  ;;  %v4598_v36 = vpop.f32.mrb[27].mxu1 }
 0x1f0   : > { %v6336_v37 = vadd.f32 %v4596_v32, %v4532_v27  ;;  %v4599_v38 = vadd.f32 %v4598_v36, %v4597_v33 }
 0x1f2   : > { %v6338_v39 = vadd.f32 %v4599_v38, %v4535_v35 }
 0x1f3   : > { %v4536_v40 = vpop.f32.mrb[28].mxu0 }
 0x1f4   : > { %v4600_v41 = vpop.f32.mrb[28].mxu1  ;;  %v4537_v42 = vpop.f32.mrb[29].mxu0 }
 0x1f5   : > { %v4538_v43 = vadd.f32 %v4537_v42, %v4536_v40  ;;  %v4601_v44 = vpop.f32.mrb[29].mxu1  ;;  %v4539_v45 = vpop.f32.mrb[30].mxu0 }
 0x1f6   : > { %v4602_v46 = vadd.f32 %v4601_v44, %v4600_v41  ;;  %v4603_v47 = vpop.f32.mrb[30].mxu1  ;;  %v4540_v48 = vpop.f32.mrb[31].mxu0 }
 0x1f7   : > { %v4541_v50 = vadd.f32 %v4540_v48, %v4539_v45  ;;  %v4604_v52 = vpop.f32.mrb[31].mxu1 }
 0x1f8   : > { %v6340_v54 = vadd.f32 %v4602_v46, %v4538_v43  ;;  %v4605_v56 = vadd.f32 %v4604_v52, %v4603_v47 }
 0x1fa   : > { %v6342_v57 = vadd.f32 %v4605_v56, %v4541_v50 }
 0x1fb   : > { %v4622_v58 = vpop.f32.mrb[32].mxu0 }
 0x1fc   : > { %v4686_v59 = vpop.f32.mrb[32].mxu1  ;;  %v4623_v60 = vpop.f32.mrb[33].mxu0 }
 0x1fd   : > { %v4624_v61 = vadd.f32 %v4623_v60, %v4622_v58  ;;  %v4687_v62 = vpop.f32.mrb[33].mxu1  ;;  %v4625_v63 = vpop.f32.mrb[34].mxu0 }
 0x1fe   : > { %v4688_v0 = vadd.f32 %v4687_v62, %v4686_v59  ;;  %v4689_v1 = vpop.f32.mrb[34].mxu1  ;;  %v4626_v2 = vpop.f32.mrb[35].mxu0 }
 0x1ff   : > { %v3261_v3 = vadd.f32 %v4624_v61, %v6276_v49  ;;  %v4627_v4 = vadd.f32 %v4626_v2, %v4625_v63  ;;  %v4690_v6 = vpop.f32.mrb[35].mxu1 }
 0x200   : > { %v4691_v10 = vadd.f32 %v4690_v6, %v4689_v1 }
 0x201   : > { %v6345_v11 = vadd.f32 %v4688_v0, %v3261_v3  ;;  %v3264_v12 = vadd.f32 %v4627_v4, %v6278_v51 }
 0x203   : > { %v6348_v13 = vadd.f32 %v4691_v10, %v3264_v12  ;;  %v4628_v14 = vpop.f32.mrb[36].mxu0 }
 0x204   : > { %v4692_v15 = vpop.f32.mrb[36].mxu1  ;;  %v4629_v16 = vpop.f32.mrb[37].mxu0 }
 0x205   : > { %v4630_v17 = vadd.f32 %v4629_v16, %v4628_v14  ;;  %v4693_v18 = vpop.f32.mrb[37].mxu1  ;;  %v4631_v19 = vpop.f32.mrb[38].mxu0 }
 0x206   : > { %v4694_v20 = vadd.f32 %v4693_v18, %v4692_v15  ;;  %v4695_v22 = vpop.f32.mrb[38].mxu1  ;;  %v4632_v24 = vpop.f32.mrb[39].mxu0 }
 0x207   : > { %v3269_v49 = vadd.f32 %v4630_v17, %v6292_v7  ;;  %v4633_v25 = vadd.f32 %v4632_v24, %v4631_v19  ;;  %v4696_v26 = vpop.f32.mrb[39].mxu1 }
 0x208   : > { %v4697_v27 = vadd.f32 %v4696_v26, %v4695_v22 }
 0x209   : > { %v6351_v28 = vadd.f32 %v4694_v20, %v3269_v49  ;;  %v3272_v51 = vadd.f32 %v4633_v25, %v6294_v9 }
 0x20b   : > { %v6354_v30 = vadd.f32 %v4697_v27, %v3272_v51  ;;  %v4634_v32 = vpop.f32.mrb[40].mxu0 }
 0x20c   : > { %v4698_v33 = vpop.f32.mrb[40].mxu1  ;;  %v4635_v34 = vpop.f32.mrb[41].mxu0 }
 0x20d   : > { %v4636_v35 = vadd.f32 %v4635_v34, %v4634_v32  ;;  %v4699_v36 = vpop.f32.mrb[41].mxu1  ;;  %v4637_v38 = vpop.f32.mrb[42].mxu0 }
 0x20e   : > { %v4700_v40 = vadd.f32 %v4699_v36, %v4698_v33  ;;  %v4701_v41 = vpop.f32.mrb[42].mxu1  ;;  %v4638_v42 = vpop.f32.mrb[43].mxu0 }
 0x20f   : > { %v3277_v7 = vadd.f32 %v4636_v35, %v6308_v29  ;;  %v4639_v43 = vadd.f32 %v4638_v42, %v4637_v38  ;;  %v4702_v44 = vpop.f32.mrb[43].mxu1 }
 0x210   : > { %v4703_v45 = vadd.f32 %v4702_v44, %v4701_v41 }
 0x211   : > { %v6357_v46 = vadd.f32 %v4700_v40, %v3277_v7  ;;  %v3280_v9 = vadd.f32 %v4639_v43, %v6310_v31 }
 0x213   : > { %v6360_v47 = vadd.f32 %v4703_v45, %v3280_v9  ;;  %v4640_v48 = vpop.f32.mrb[44].mxu0 }
 0x214   : > { %v4704_v50 = vpop.f32.mrb[44].mxu1  ;;  %v4641_v52 = vpop.f32.mrb[45].mxu0 }
 0x215   : > { %v4642_v56 = vadd.f32 %v4641_v52, %v4640_v48  ;;  %v4705_v58 = vpop.f32.mrb[45].mxu1  ;;  %v4643_v59 = vpop.f32.mrb[46].mxu0 }
 0x216   : > { %v4706_v60 = vadd.f32 %v4705_v58, %v4704_v50  ;;  %v4707_v61 = vpop.f32.mrb[46].mxu1  ;;  %v4644_v62 = vpop.f32.mrb[47].mxu0 }
 0x217   : > { %v3285_v29 = vadd.f32 %v4642_v56, %v6324_v53  ;;  %v4645_v63 = vadd.f32 %v4644_v62, %v4643_v59  ;;  %v4708_v0 = vpop.f32.mrb[47].mxu1 }
 0x218   : > { %v4709_v1 = vadd.f32 %v4708_v0, %v4707_v61 }
 0x219   : > { %v6363_v2 = vadd.f32 %v4706_v60, %v3285_v29  ;;  %v3288_v31 = vadd.f32 %v4645_v63, %v6326_v55 }
 0x21b   : > { %v6366_v3 = vadd.f32 %v4709_v1, %v3288_v31  ;;  %v4646_v4 = vpop.f32.mrb[48].mxu0 }
 0x21c   : > { %v4710_v6 = vpop.f32.mrb[48].mxu1  ;;  %v4647_v10 = vpop.f32.mrb[49].mxu0 }
 0x21d   : > { %v4648_v12 = vadd.f32 %v4647_v10, %v4646_v4  ;;  %v4711_v14 = vpop.f32.mrb[49].mxu1  ;;  %v4649_v15 = vpop.f32.mrb[50].mxu0 }
 0x21e   : > { %v4712_v16 = vadd.f32 %v4711_v14, %v4710_v6  ;;  %v4713_v17 = vpop.f32.mrb[50].mxu1  ;;  %v4650_v18 = vpop.f32.mrb[51].mxu0 }
 0x21f   : > { %v3293_v53 = vadd.f32 %v4648_v12, %v6328_v5  ;;  %v4651_v19 = vadd.f32 %v4650_v18, %v4649_v15  ;;  %v4714_v20 = vpop.f32.mrb[51].mxu1 }
 0x220   : > { %v4715_v22 = vadd.f32 %v4714_v20, %v4713_v17 }
 0x221   : > { %v6369_v24 = vadd.f32 %v4712_v16, %v3293_v53  ;;  %v3296_v55 = vadd.f32 %v4651_v19, %v6330_v8 }
 0x223   : > { %v6372_v49 = vadd.f32 %v4715_v22, %v3296_v55  ;;  %v4652_v25 = vpop.f32.mrb[52].mxu0 }
 0x224   : > { %v4716_v26 = vpop.f32.mrb[52].mxu1  ;;  %v4653_v27 = vpop.f32.mrb[53].mxu0 }
 0x225   : > { %v4654_v51 = vadd.f32 %v4653_v27, %v4652_v25  ;;  %v4717_v32 = vpop.f32.mrb[53].mxu1  ;;  %v4655_v33 = vpop.f32.mrb[54].mxu0 }
 0x226   : > { %v4718_v34 = vadd.f32 %v4717_v32, %v4716_v26  ;;  %v4719_v35 = vpop.f32.mrb[54].mxu1  ;;  %v4656_v36 = vpop.f32.mrb[55].mxu0 }
 0x227   : > { %v3301_v5 = vadd.f32 %v4654_v51, %v6332_v21  ;;  %v4657_v38 = vadd.f32 %v4656_v36, %v4655_v33  ;;  %v4720_v40 = vpop.f32.mrb[55].mxu1 }
 0x228   : > { %v4721_v41 = vadd.f32 %v4720_v40, %v4719_v35 }
 0x229   : > { %v6375_v42 = vadd.f32 %v4718_v34, %v3301_v5  ;;  %v3304_v8 = vadd.f32 %v4657_v38, %v6334_v23 }
 0x22b   : > { %v6378_v7 = vadd.f32 %v4721_v41, %v3304_v8  ;;  %v4658_v43 = vpop.f32.mrb[56].mxu0 }
 0x22c   : > { %v4722_v44 = vpop.f32.mrb[56].mxu1  ;;  %v4659_v45 = vpop.f32.mrb[57].mxu0 }
 0x22d   : > { %v4660_v9 = vadd.f32 %v4659_v45, %v4658_v43  ;;  %v4723_v48 = vpop.f32.mrb[57].mxu1  ;;  %v4661_v50 = vpop.f32.mrb[58].mxu0 }
 0x22e   : > { %v4724_v52 = vadd.f32 %v4723_v48, %v4722_v44  ;;  %v4725_v56 = vpop.f32.mrb[58].mxu1  ;;  %v4662_v58 = vpop.f32.mrb[59].mxu0 }
 0x22f   : > { %v3309_v21 = vadd.f32 %v4660_v9, %v6336_v37  ;;  %v4663_v59 = vadd.f32 %v4662_v58, %v4661_v50  ;;  %v4726_v60 = vpop.f32.mrb[59].mxu1 }
 0x230   : > { %v4727_v61 = vadd.f32 %v4726_v60, %v4725_v56 }
 0x231   : > { %v6381_v62 = vadd.f32 %v4724_v52, %v3309_v21  ;;  %v3312_v23 = vadd.f32 %v4663_v59, %v6338_v39 }
 0x233   : > { %v6384_v29 = vadd.f32 %v4727_v61, %v3312_v23  ;;  %v4664_v63 = vpop.f32.mrb[60].mxu0 }
 0x234   : > { %v4728_v0 = vpop.f32.mrb[60].mxu1  ;;  %v4665_v1 = vpop.f32.mrb[61].mxu0 }
 0x235   : > { %v4666_v31 = vadd.f32 %v4665_v1, %v4664_v63  ;;  %v4729_v4 = vpop.f32.mrb[61].mxu1  ;;  %v4667_v6 = vpop.f32.mrb[62].mxu0 }
 0x236   : > { %v4730_v10 = vadd.f32 %v4729_v4, %v4728_v0  ;;  %v4731_v12 = vpop.f32.mrb[62].mxu1  ;;  %v4668_v14 = vpop.f32.mrb[63].mxu0 }
 0x237   : > { %v3317_v37 = vadd.f32 %v4666_v31, %v6340_v54  ;;  %v4669_v15 = vadd.f32 %v4668_v14, %v4667_v6  ;;  %v4732_v16 = vpop.f32.mrb[63].mxu1 }
 0x238   : > { %v4733_v17 = vadd.f32 %v4732_v16, %v4731_v12 }
 0x239   : > { %v6387_v18 = vadd.f32 %v4730_v10, %v3317_v37  ;;  %v3320_v39 = vadd.f32 %v4669_v15, %v6342_v57 }
 0x23b   : > { %v6390_v53 = vadd.f32 %v4733_v17, %v3320_v39  ;;  %v4750_v19 = vpop.f32.mrb[64].mxu0 }
 0x23c   : > { %v4814_v20 = vpop.f32.mrb[64].mxu1  ;;  %v4751_v22 = vpop.f32.mrb[65].mxu0 }
 0x23d   : > { %v4752_v55 = vadd.f32 %v4751_v22, %v4750_v19  ;;  %v4815_v25 = vpop.f32.mrb[65].mxu1  ;;  %v4753_v26 = vpop.f32.mrb[66].mxu0 }
 0x23e   : > { %v4816_v27 = vadd.f32 %v4815_v25, %v4814_v20  ;;  %v4817_v51 = vpop.f32.mrb[66].mxu1  ;;  %v4754_v32 = vpop.f32.mrb[67].mxu0 }
 0x23f   : > { %v3455_v54 = vadd.f32 %v4752_v55, %v6345_v11  ;;  %v4755_v33 = vadd.f32 %v4754_v32, %v4753_v26  ;;  %v4818_v34 = vpop.f32.mrb[67].mxu1 }
 0x240   : > { %v4819_v35 = vadd.f32 %v4818_v34, %v4817_v51 }
 0x241   : > { %v6393_v36 = vadd.f32 %v4816_v27, %v3455_v54  ;;  %v3458_v57 = vadd.f32 %v4755_v33, %v6348_v13 }
 0x243   : > { %v6396_v5 = vadd.f32 %v4819_v35, %v3458_v57  ;;  %v4756_v38 = vpop.f32.mrb[68].mxu0 }
 0x244   : > { %v4820_v40 = vpop.f32.mrb[68].mxu1  ;;  %v4757_v41 = vpop.f32.mrb[69].mxu0 }
 0x245   : > { %v4758_v8 = vadd.f32 %v4757_v41, %v4756_v38  ;;  %v4821_v43 = vpop.f32.mrb[69].mxu1  ;;  %v4759_v44 = vpop.f32.mrb[70].mxu0 }
 0x246   : > { %v4822_v45 = vadd.f32 %v4821_v43, %v4820_v40  ;;  %v4823_v9 = vpop.f32.mrb[70].mxu1  ;;  %v4760_v48 = vpop.f32.mrb[71].mxu0 }
 0x247   : > { %v3463_v11 = vadd.f32 %v4758_v8, %v6351_v28  ;;  %v4761_v50 = vadd.f32 %v4760_v48, %v4759_v44  ;;  %v4824_v52 = vpop.f32.mrb[71].mxu1 }
 0x248   : > { %v4825_v56 = vadd.f32 %v4824_v52, %v4823_v9 }
 0x249   : > { %v6399_v58 = vadd.f32 %v4822_v45, %v3463_v11  ;;  %v3466_v13 = vadd.f32 %v4761_v50, %v6354_v30 }
 0x24b   : > { %v6402_v21 = vadd.f32 %v4825_v56, %v3466_v13  ;;  %v4762_v59 = vpop.f32.mrb[72].mxu0 }
 0x24c   : > { %v4826_v60 = vpop.f32.mrb[72].mxu1  ;;  %v4763_v61 = vpop.f32.mrb[73].mxu0 }
 0x24d   : > { %v4764_v23 = vadd.f32 %v4763_v61, %v4762_v59  ;;  %v4827_v63 = vpop.f32.mrb[73].mxu1  ;;  %v4765_v0 = vpop.f32.mrb[74].mxu0 }
 0x24e   : > { %v4828_v1 = vadd.f32 %v4827_v63, %v4826_v60  ;;  %v4829_v31 = vpop.f32.mrb[74].mxu1  ;;  %v4766_v4 = vpop.f32.mrb[75].mxu0 }
 0x24f   : > { %v3471_v28 = vadd.f32 %v4764_v23, %v6357_v46  ;;  %v4767_v6 = vadd.f32 %v4766_v4, %v4765_v0  ;;  %v4830_v10 = vpop.f32.mrb[75].mxu1 }
 0x250   : > { %v4831_v12 = vadd.f32 %v4830_v10, %v4829_v31 }
 0x251   : > { %v6405_v14 = vadd.f32 %v4828_v1, %v3471_v28  ;;  %v3474_v30 = vadd.f32 %v4767_v6, %v6360_v47 }
 0x253   : > { %v6408_v37 = vadd.f32 %v4831_v12, %v3474_v30  ;;  %v4768_v15 = vpop.f32.mrb[76].mxu0 }
 0x254   : > { %v4832_v16 = vpop.f32.mrb[76].mxu1  ;;  %v4769_v17 = vpop.f32.mrb[77].mxu0 }
 0x255   : > { %v4770_v39 = vadd.f32 %v4769_v17, %v4768_v15  ;;  %v4833_v19 = vpop.f32.mrb[77].mxu1  ;;  %v4771_v20 = vpop.f32.mrb[78].mxu0 }
 0x256   : > { %v4834_v22 = vadd.f32 %v4833_v19, %v4832_v16  ;;  %v4835_v55 = vpop.f32.mrb[78].mxu1  ;;  %v4772_v25 = vpop.f32.mrb[79].mxu0 }
 0x257   : > { %v3479_v46 = vadd.f32 %v4770_v39, %v6363_v2  ;;  %v4773_v26 = vadd.f32 %v4772_v25, %v4771_v20  ;;  %v4836_v27 = vpop.f32.mrb[79].mxu1 }
 0x258   : > { %v4837_v51 = vadd.f32 %v4836_v27, %v4835_v55 }
 0x259   : > { %v6411_v32 = vadd.f32 %v4834_v22, %v3479_v46  ;;  %v3482_v47 = vadd.f32 %v4773_v26, %v6366_v3 }
 0x25b   : > { %v6414_v54 = vadd.f32 %v4837_v51, %v3482_v47  ;;  %v4774_v33 = vpop.f32.mrb[80].mxu0 }
 0x25c   : > { %v4838_v34 = vpop.f32.mrb[80].mxu1  ;;  %v4775_v35 = vpop.f32.mrb[81].mxu0 }
 0x25d   : > { %v4776_v57 = vadd.f32 %v4775_v35, %v4774_v33  ;;  %v4839_v38 = vpop.f32.mrb[81].mxu1  ;;  %v4777_v40 = vpop.f32.mrb[82].mxu0 }
 0x25e   : > { %v4840_v41 = vadd.f32 %v4839_v38, %v4838_v34  ;;  %v4841_v8 = vpop.f32.mrb[82].mxu1  ;;  %v4778_v43 = vpop.f32.mrb[83].mxu0 }
 0x25f   : > { %v3487_v2 = vadd.f32 %v4776_v57, %v6369_v24  ;;  %v4779_v44 = vadd.f32 %v4778_v43, %v4777_v40  ;;  %v4842_v45 = vpop.f32.mrb[83].mxu1 }
 0x260   : > { %v4843_v9 = vadd.f32 %v4842_v45, %v4841_v8 }
 0x261   : > { %v6417_v48 = vadd.f32 %v4840_v41, %v3487_v2  ;;  %v3490_v3 = vadd.f32 %v4779_v44, %v6372_v49 }
 0x263   : > { %v6420_v11 = vadd.f32 %v4843_v9, %v3490_v3  ;;  %v4780_v50 = vpop.f32.mrb[84].mxu0 }
 0x264   : > { %v4844_v52 = vpop.f32.mrb[84].mxu1  ;;  %v4781_v56 = vpop.f32.mrb[85].mxu0 }
 0x265   : > { %v4782_v13 = vadd.f32 %v4781_v56, %v4780_v50  ;;  %v4845_v59 = vpop.f32.mrb[85].mxu1  ;;  %v4783_v60 = vpop.f32.mrb[86].mxu0 }
 0x266   : > { %v4846_v61 = vadd.f32 %v4845_v59, %v4844_v52  ;;  %v4847_v23 = vpop.f32.mrb[86].mxu1  ;;  %v4784_v63 = vpop.f32.mrb[87].mxu0 }
 0x267   : > { %v3495_v24 = vadd.f32 %v4782_v13, %v6375_v42  ;;  %v4785_v0 = vadd.f32 %v4784_v63, %v4783_v60  ;;  %v4848_v1 = vpop.f32.mrb[87].mxu1 }
 0x268   : > { %v4849_v31 = vadd.f32 %v4848_v1, %v4847_v23 }
 0x269   : > { %v6423_v4 = vadd.f32 %v4846_v61, %v3495_v24  ;;  %v3498_v49 = vadd.f32 %v4785_v0, %v6378_v7 }
 0x26b   : > { %v6426_v28 = vadd.f32 %v4849_v31, %v3498_v49  ;;  %v4786_v6 = vpop.f32.mrb[88].mxu0 }
 0x26c   : > { %v4850_v10 = vpop.f32.mrb[88].mxu1  ;;  %v4787_v12 = vpop.f32.mrb[89].mxu0 }
 0x26d   : > { %v4788_v30 = vadd.f32 %v4787_v12, %v4786_v6  ;;  %v4851_v15 = vpop.f32.mrb[89].mxu1  ;;  %v4789_v16 = vpop.f32.mrb[90].mxu0 }
 0x26e   : > { %v4852_v17 = vadd.f32 %v4851_v15, %v4850_v10  ;;  %v4853_v39 = vpop.f32.mrb[90].mxu1  ;;  %v4790_v19 = vpop.f32.mrb[91].mxu0 }
 0x26f   : > { %v3503_v42 = vadd.f32 %v4788_v30, %v6381_v62  ;;  %v4791_v20 = vadd.f32 %v4790_v19, %v4789_v16  ;;  %v4854_v22 = vpop.f32.mrb[91].mxu1 }
 0x270   : > { %v4855_v55 = vadd.f32 %v4854_v22, %v4853_v39 }
 0x271   : > { %v6429_v25 = vadd.f32 %v4852_v17, %v3503_v42  ;;  %v3506_v7 = vadd.f32 %v4791_v20, %v6384_v29 }
 0x273   : > { %v6432_v46 = vadd.f32 %v4855_v55, %v3506_v7  ;;  %v4792_v26 = vpop.f32.mrb[92].mxu0 }
 0x274   : > { %v4856_v27 = vpop.f32.mrb[92].mxu1  ;;  %v4793_v51 = vpop.f32.mrb[93].mxu0 }
 0x275   : > { %v4794_v47 = vadd.f32 %v4793_v51, %v4792_v26  ;;  %v4857_v33 = vpop.f32.mrb[93].mxu1  ;;  %v4795_v34 = vpop.f32.mrb[94].mxu0 }
 0x276   : > { %v4858_v35 = vadd.f32 %v4857_v33, %v4856_v27  ;;  %v4859_v57 = vpop.f32.mrb[94].mxu1  ;;  %v4796_v38 = vpop.f32.mrb[95].mxu0 }
 0x277   : > { %v3511_v62 = vadd.f32 %v4794_v47, %v6387_v18  ;;  %v4797_v40 = vadd.f32 %v4796_v38, %v4795_v34  ;;  %v4860_v41 = vpop.f32.mrb[95].mxu1 }
 0x278   : > { %v4861_v8 = vadd.f32 %v4860_v41, %v4859_v57 }
 0x279   : > { %v6435_v43 = vadd.f32 %v4858_v35, %v3511_v62  ;;  %v3514_v29 = vadd.f32 %v4797_v40, %v6390_v53 }
 0x27b   : > { %v6438_v2 = vadd.f32 %v4861_v8, %v3514_v29  ;;  %v4878_v44 = vpop.f32.mrb[96].mxu0 }
 0x27c   : > { %v4942_v45 = vpop.f32.mrb[96].mxu1  ;;  %v4879_v9 = vpop.f32.mrb[97].mxu0 }
 0x27d   : > { %v4880_v3 = vadd.f32 %v4879_v9, %v4878_v44  ;;  %v4943_v50 = vpop.f32.mrb[97].mxu1  ;;  %v4881_v52 = vpop.f32.mrb[98].mxu0 }
 0x27e   : > { %v4944_v56 = vadd.f32 %v4943_v50, %v4942_v45  ;;  %v4945_v13 = vpop.f32.mrb[98].mxu1  ;;  %v4882_v59 = vpop.f32.mrb[99].mxu0 }
 0x27f   : > { %v3649_v18 = vadd.f32 %v4880_v3, %v6393_v36  ;;  %v4883_v60 = vadd.f32 %v4882_v59, %v4881_v52  ;;  %v4946_v61 = vpop.f32.mrb[99].mxu1 }
 0x280   : > { %v4947_v23 = vadd.f32 %v4946_v61, %v4945_v13 }
 0x281   : > { %v3746_v63 = vadd.f32 %v4944_v56, %v3649_v18  ;;  %v3652_v53 = vadd.f32 %v4883_v60, %v6396_v5 }
 0x283   : > { %v3824_v24 = vmul.f32 0.2, %v3746_v63  ;;  %v3749_v0 = vadd.f32 %v4947_v23, %v3652_v53  ;;  %v4884_v1 = vpop.f32.mrb[100].mxu0  ;;  %vm3808_vm0 = vcmp.ge.f32.partialorder %v3746_v63, 0.0 }
 0x284   : > { %v4948_v31 = vpop.f32.mrb[100].mxu1  ;;  %v4885_v49 = vpop.f32.mrb[101].mxu0 }
 0x285   : > { %vm3809_vm1 = vcmp.ge.f32.partialorder %v3749_v0, 0.0  ;;  %v3825_v6 = vmul.f32 0.2, %v3749_v0  ;;  %v4886_v10 = vadd.f32 %v4885_v49, %v4884_v1  ;;  %v4949_v12 = vpop.f32.mrb[101].mxu1  ;;  %v4887_v30 = vpop.f32.mrb[102].mxu0  ;;  %v3840_v17 = vsel %vm3808_vm0, %v3746_v63, %v3824_v24 }
 0x286   : > { %v4950_v36 = vadd.f32 %v4949_v12, %v4948_v31  ;;  %v4951_v15 = vpop.f32.mrb[102].mxu1  ;;  %v4888_v16 = vpop.f32.mrb[103].mxu0 }
 0x287   : > { %v3841_v39 = vsel %vm3809_vm1, %v3749_v0, %v3825_v6  ;;  %v3657_v5 = vadd.f32 %v4886_v10, %v6399_v58  ;;  %v4889_v19 = vadd.f32 %v4888_v16, %v4887_v30  ;;  %v4952_v42 = vpop.f32.mrb[103].mxu1 }
 0x288   : > { %v4434_v20 = vpack.c.bf16 %v3841_v39, %v3840_v17  ;;  %v4953_v22 = vadd.f32 %v4952_v42, %v4951_v15 }
 0x289   : > { %v3754_v55 = vadd.f32 %v4950_v36, %v3657_v5  ;;  %v3660_v7 = vadd.f32 %v4889_v19, %v6402_v21 }
 0x28a   : > { %4435 = vst [vmem:[%s6446_s9] sm:$0xff] %v4434_v20  }
 0x28b   : > { %v3826_v26 = vmul.f32 0.2, %v3754_v55  ;;  %v3757_v27 = vadd.f32 %v4953_v22, %v3660_v7  ;;  %v4890_v51 = vpop.f32.mrb[104].mxu0  ;;  %vm3810_vm2 = vcmp.ge.f32.partialorder %v3754_v55, 0.0 }
 0x28c   : > { %v4954_v47 = vpop.f32.mrb[104].mxu1  ;;  %v4891_v33 = vpop.f32.mrb[105].mxu0 }
 0x28d   : > { %vm3811_vm3 = vcmp.ge.f32.partialorder %v3757_v27, 0.0  ;;  %v3827_v34 = vmul.f32 0.2, %v3757_v27  ;;  %v4892_v58 = vadd.f32 %v4891_v33, %v4890_v51  ;;  %v4955_v35 = vpop.f32.mrb[105].mxu1  ;;  %v4893_v57 = vpop.f32.mrb[106].mxu0  ;;  %v3842_v21 = vsel %vm3810_vm2, %v3754_v55, %v3826_v26 }
 0x28e   : > { %v4956_v38 = vadd.f32 %v4955_v35, %v4954_v47  ;;  %v4957_v62 = vpop.f32.mrb[106].mxu1  ;;  %v4894_v40 = vpop.f32.mrb[107].mxu0 }
 0x28f   : > { %v3843_v41 = vsel %vm3811_vm3, %v3757_v27, %v3827_v34  ;;  %v3665_v8 = vadd.f32 %v4892_v58, %v6405_v14  ;;  %v4895_v29 = vadd.f32 %v4894_v40, %v4893_v57  ;;  %v4958_v44 = vpop.f32.mrb[107].mxu1 }
 0x290   : > { %v4439_v45 = vpack.c.bf16 %v3843_v41, %v3842_v21  ;;  %v4959_v9 = vadd.f32 %v4958_v44, %v4957_v62 }
 0x291   : > { %v3762_v3 = vadd.f32 %v4956_v38, %v3665_v8  ;;  %v3668_v50 = vadd.f32 %v4895_v29, %v6408_v37 }
 0x292   : > { %4471 = vst [vmem:[%s6446_s9 + $0x8] sm:$0xff] %v4439_v45  }
 0x293   : > { %v3828_v52 = vmul.f32 0.2, %v3762_v3  ;;  %v3765_v56 = vadd.f32 %v4959_v9, %v3668_v50  ;;  %v4896_v13 = vpop.f32.mrb[108].mxu0  ;;  %vm3812_vm4 = vcmp.ge.f32.partialorder %v3762_v3, 0.0 }
 0x294   : > { %v4960_v59 = vpop.f32.mrb[108].mxu1  ;;  %v4897_v18 = vpop.f32.mrb[109].mxu0 }
 0x295   : > { %vm3813_vm5 = vcmp.ge.f32.partialorder %v3765_v56, 0.0  ;;  %v3829_v60 = vmul.f32 0.2, %v3765_v56  ;;  %v4898_v61 = vadd.f32 %v4897_v18, %v4896_v13  ;;  %v4961_v23 = vpop.f32.mrb[109].mxu1  ;;  %v4899_v14 = vpop.f32.mrb[110].mxu0  ;;  %v3844_v0 = vsel %vm3812_vm4, %v3762_v3, %v3828_v52 }
 0x296   : > { %v4962_v63 = vadd.f32 %v4961_v23, %v4960_v59  ;;  %v4963_v53 = vpop.f32.mrb[110].mxu1  ;;  %v4900_v24 = vpop.f32.mrb[111].mxu0 }
 0x297   : > { %v3845_v1 = vsel %vm3813_vm5, %v3765_v56, %v3829_v60  ;;  %v3673_v37 = vadd.f32 %v4898_v61, %v6411_v32  ;;  %v4901_v31 = vadd.f32 %v4900_v24, %v4899_v14  ;;  %v4964_v49 = vpop.f32.mrb[111].mxu1 }
 0x298   : > { %v4444_v6 = vpack.c.bf16 %v3845_v1, %v3844_v0  ;;  %v4965_v10 = vadd.f32 %v4964_v49, %v4963_v53 }
 0x299   : > { %v3770_v12 = vadd.f32 %v4962_v63, %v3673_v37  ;;  %v3676_v30 = vadd.f32 %v4901_v31, %v6414_v54 }
 0x29a   : > { %4472 = vst [vmem:[%s6446_s9 + $0x10] sm:$0xff] %v4444_v6  }
 0x29b   : > { %v3830_v36 = vmul.f32 0.2, %v3770_v12  ;;  %v3773_v15 = vadd.f32 %v4965_v10, %v3676_v30  ;;  %v4902_v16 = vpop.f32.mrb[112].mxu0  ;;  %vm3814_vm6 = vcmp.ge.f32.partialorder %v3770_v12, 0.0 }
 0x29c   : > { %v4966_v17 = vpop.f32.mrb[112].mxu1  ;;  %v4903_v39 = vpop.f32.mrb[113].mxu0 }
 0x29d   : > { %vm3815_vm7 = vcmp.ge.f32.partialorder %v3773_v15, 0.0  ;;  %v3831_v5 = vmul.f32 0.2, %v3773_v15  ;;  %v4904_v19 = vadd.f32 %v4903_v39, %v4902_v16  ;;  %v4967_v42 = vpop.f32.mrb[113].mxu1  ;;  %v4905_v32 = vpop.f32.mrb[114].mxu0  ;;  %v3846_v7 = vsel %vm3814_vm6, %v3770_v12, %v3830_v36 }
 0x29e   : > { %v4968_v20 = vadd.f32 %v4967_v42, %v4966_v17  ;;  %v4969_v22 = vpop.f32.mrb[114].mxu1  ;;  %v4906_v55 = vpop.f32.mrb[115].mxu0 }
 0x29f   : > { %v3847_v26 = vsel %vm3815_vm7, %v3773_v15, %v3831_v5  ;;  %v3681_v54 = vadd.f32 %v4904_v19, %v6417_v48  ;;  %v4907_v27 = vadd.f32 %v4906_v55, %v4905_v32  ;;  %v4970_v51 = vpop.f32.mrb[115].mxu1 }
 0x2a0   : > { %v4449_v47 = vpack.c.bf16 %v3847_v26, %v3846_v7  ;;  %v4971_v33 = vadd.f32 %v4970_v51, %v4969_v22 }
 0x2a1   : > { %v3778_v34 = vadd.f32 %v4968_v20, %v3681_v54  ;;  %v3684_v58 = vadd.f32 %v4907_v27, %v6420_v11 }
 0x2a2   : > { %4473 = vst [vmem:[%s6446_s9 + $0x18] sm:$0xff] %v4449_v47  }
 0x2a3   : > { %v3832_v35 = vmul.f32 0.2, %v3778_v34  ;;  %v3781_v57 = vadd.f32 %v4971_v33, %v3684_v58  ;;  %v4908_v38 = vpop.f32.mrb[116].mxu0  ;;  %vm3816_vm8 = vcmp.ge.f32.partialorder %v3778_v34, 0.0 }
 0x2a4   : > { %v4972_v62 = vpop.f32.mrb[116].mxu1  ;;  %v4909_v40 = vpop.f32.mrb[117].mxu0 }
 0x2a5   : > { %vm3817_vm9 = vcmp.ge.f32.partialorder %v3781_v57, 0.0  ;;  %v3833_v21 = vmul.f32 0.2, %v3781_v57  ;;  %v4910_v41 = vadd.f32 %v4909_v40, %v4908_v38  ;;  %v4973_v8 = vpop.f32.mrb[117].mxu1  ;;  %v4911_v48 = vpop.f32.mrb[118].mxu0  ;;  %v3848_v9 = vsel %vm3816_vm8, %v3778_v34, %v3832_v35 }
 0x2a6   : > { %v4974_v29 = vadd.f32 %v4973_v8, %v4972_v62  ;;  %v4975_v44 = vpop.f32.mrb[118].mxu1  ;;  %v4912_v45 = vpop.f32.mrb[119].mxu0  ;;  %v3967_v8 = vld [vmem:[%s6446_s9 + $0x8] sm:$0xf] (%p5248_p6) }
 0x2a7   : > { %v3849_v3 = vsel %vm3817_vm9, %v3781_v57, %v3833_v21  ;;  %v3689_v11 = vadd.f32 %v4910_v41, %v6423_v4  ;;  %v4913_v50 = vadd.f32 %v4912_v45, %v4911_v48  ;;  %v4976_v52 = vpop.f32.mrb[119].mxu1  ;;  %v3969_v48 = vld [vmem:[%s6446_s9 + $0xc] sm:$0xf] (%p5248_p6)  ;;  %3968 = vst [vmem:[%s3947_s3 + $0x10] sm:$0xf] (%p5248_p6), %v3967_v8 }
 0x2a8   : > { %v4454_v56 = vpack.c.bf16 %v3849_v3, %v3848_v9  ;;  %v4977_v13 = vadd.f32 %v4976_v52, %v4975_v44  ;;  %3970 = vst [vmem:[%s3947_s3 + $0x18] sm:$0xf] (%p5248_p6), %v3969_v48  ;;  %v3973_v44 = vld [vmem:[%s6446_s9 + $0x14] sm:$0xf] (%p5248_p6) }
 0x2a9   : > { %v3786_v59 = vadd.f32 %v4974_v29, %v3689_v11  ;;  %v3692_v18 = vadd.f32 %v4913_v50, %v6426_v28  ;;  %v3971_v29 = vld [vmem:[%s6446_s9 + $0x10] sm:$0xf] (%p5248_p6)  ;;  %v3975_v45 = vld [vmem:[%s6446_s9 + $0x18] sm:$0xf] (%p5248_p6)  ;;  %v3977_v9 = vld [vmem:[%s6446_s9 + $0x1c] sm:$0xf] (%p5248_p6) }
 0x2aa   : > { %4474 = vst [vmem:[%s6446_s9 + $0x20] sm:$0xff] %v4454_v56   ;;  %3972 = vst [vmem:[%s3947_s3 + $0x20] sm:$0xf] (%p5248_p6), %v3971_v29 }
 0x2ab   : > { %v3834_v60 = vmul.f32 0.2, %v3786_v59  ;;  %v3789_v61 = vadd.f32 %v4977_v13, %v3692_v18  ;;  %v4914_v23 = vpop.f32.mrb[120].mxu0  ;;  %vm3818_vm10 = vcmp.ge.f32.partialorder %v3786_v59, 0.0  ;;  %3974 = vst [vmem:[%s3947_s3 + $0x28] sm:$0xf] (%p5248_p6), %v3973_v44 }
 0x2ac   : > { %v4978_v14 = vpop.f32.mrb[120].mxu1  ;;  %v4915_v63 = vpop.f32.mrb[121].mxu0  ;;  %3976 = vst [vmem:[%s3947_s3 + $0x30] sm:$0xf] (%p5248_p6), %v3975_v45  ;;  %3978 = vst [vmem:[%s3947_s3 + $0x38] sm:$0xf] (%p5248_p6), %v3977_v9 }
 0x2ad   : > { %vm3819_vm11 = vcmp.ge.f32.partialorder %v3789_v61, 0.0  ;;  %v3835_v53 = vmul.f32 0.2, %v3789_v61  ;;  %v4916_v24 = vadd.f32 %v4915_v63, %v4914_v23  ;;  %v4979_v0 = vpop.f32.mrb[121].mxu1  ;;  %v4917_v4 = vpop.f32.mrb[122].mxu0  ;;  %v3850_v49 = vsel %vm3818_vm10, %v3786_v59, %v3834_v60 }
 0x2ae   : > { %v4980_v1 = vadd.f32 %v4979_v0, %v4978_v14  ;;  %v4981_v37 = vpop.f32.mrb[122].mxu1  ;;  %v4918_v31 = vpop.f32.mrb[123].mxu0 }
 0x2af   : > { %v3851_v6 = vsel %vm3819_vm11, %v3789_v61, %v3835_v53  ;;  %v3697_v28 = vadd.f32 %v4916_v24, %v6429_v25  ;;  %v4919_v10 = vadd.f32 %v4918_v31, %v4917_v4  ;;  %v4982_v12 = vpop.f32.mrb[123].mxu1 }
 0x2b0   : > { %v4459_v30 = vpack.c.bf16 %v3851_v6, %v3850_v49  ;;  %v4983_v36 = vadd.f32 %v4982_v12, %v4981_v37 }
 0x2b1   : > { %v3794_v15 = vadd.f32 %v4980_v1, %v3697_v28  ;;  %v3700_v16 = vadd.f32 %v4919_v10, %v6432_v46  ;;  %v3979_v3 = vld [vmem:[%s6446_s9 + $0x20] sm:$0xf] (%p5248_p6)  ;;  %v3981_v11 = vld [vmem:[%s6446_s9 + $0x24] sm:$0xf] (%p5248_p6) }
 0x2b2   : > { %4475 = vst [vmem:[%s6446_s9 + $0x28] sm:$0xff] %v4459_v30   ;;  %3980 = vst [vmem:[%s3947_s3 + $0x40] sm:$0xf] (%p5248_p6), %v3979_v3 }
 0x2b3   : > { %v3836_v17 = vmul.f32 0.2, %v3794_v15  ;;  %v3797_v39 = vadd.f32 %v4983_v36, %v3700_v16  ;;  %v4920_v5 = vpop.f32.mrb[124].mxu0  ;;  %vm3820_vm12 = vcmp.ge.f32.partialorder %v3794_v15, 0.0  ;;  %3982 = vst [vmem:[%s3947_s3 + $0x48] sm:$0xf] (%p5248_p6), %v3981_v11 }
 0x2b4   : > { %v4984_v19 = vpop.f32.mrb[124].mxu1  ;;  %v4921_v42 = vpop.f32.mrb[125].mxu0 }
 0x2b5   : > { %vm3821_vm13 = vcmp.ge.f32.partialorder %v3797_v39, 0.0  ;;  %v3837_v32 = vmul.f32 0.2, %v3797_v39  ;;  %v4922_v20 = vadd.f32 %v4921_v42, %v4920_v5  ;;  %v4985_v22 = vpop.f32.mrb[125].mxu1  ;;  %v4923_v25 = vpop.f32.mrb[126].mxu0  ;;  %v3852_v54 = vsel %vm3820_vm12, %v3794_v15, %v3836_v17 }
 0x2b6   : > { %v4986_v55 = vadd.f32 %v4985_v22, %v4984_v19  ;;  %v4987_v7 = vpop.f32.mrb[126].mxu1  ;;  %v4924_v26 = vpop.f32.mrb[127].mxu0 }
 0x2b7   : > { %v3853_v27 = vsel %vm3821_vm13, %v3797_v39, %v3837_v32  ;;  %v3705_v46 = vadd.f32 %v4922_v20, %v6435_v43  ;;  %v4925_v51 = vadd.f32 %v4924_v26, %v4923_v25  ;;  %v4988_v47 = vpop.f32.mrb[127].mxu1  ;;  %v3963_v43 = vld [vmem:[%s6446_s9] sm:$0xf] (%p5248_p6) }
 0x2b8   : > { %v4464_v33 = vpack.c.bf16 %v3853_v27, %v3852_v54  ;;  %v4989_v34 = vadd.f32 %v4988_v47, %v4987_v7  ;;  %3964 = vst [vmem:[%s3947_s3] sm:$0xf] (%p5248_p6), %v3963_v43 }
 0x2b9   : > { %v3802_v58 = vadd.f32 %v4986_v55, %v3705_v46  ;;  %v3708_v35 = vadd.f32 %v4925_v51, %v6438_v2  ;;  %v3965_v2 = vld [vmem:[%s6446_s9 + $0x4] sm:$0xf] (%p5248_p6)  ;;  %v3983_v50 = vld [vmem:[%s6446_s9 + $0x28] sm:$0xf] (%p5248_p6)  ;;  %v3985_v52 = vld [vmem:[%s6446_s9 + $0x2c] sm:$0xf] (%p5248_p6) }
 0x2ba   : > { %4476 = vst [vmem:[%s6446_s9 + $0x30] sm:$0xff] %v4464_v33   ;;  %3966 = vst [vmem:[%s3947_s3 + $0x8] sm:$0xf] (%p5248_p6), %v3965_v2 }
 0x2bb   : > { %v3838_v57 = vmul.f32 0.2, %v3802_v58  ;;  %v3805_v38 = vadd.f32 %v4989_v34, %v3708_v35  ;;  %vm3822_vm14 = vcmp.ge.f32.partialorder %v3802_v58, 0.0  ;;  %3984 = vst [vmem:[%s3947_s3 + $0x50] sm:$0xf] (%p5248_p6), %v3983_v50 }
 0x2bc   : > { %3942 = sbr.rel (!%p5248_p6) target bundleno = 715 (0x2cb), region = 73  ;;  %3986 = vst [vmem:[%s3947_s3 + $0x58] sm:$0xf] (%p5248_p6), %v3985_v52 }
 0x2bd   : > { %vm3823_vm15 = vcmp.ge.f32.partialorder %v3805_v38, 0.0  ;;  %v3839_v62 = vmul.f32 0.2, %v3805_v38  ;;  %v3854_v40 = vsel %vm3822_vm14, %v3802_v58, %v3838_v57 }
 0x2bf   : > { %v3855_v21 = vsel %vm3823_vm15, %v3805_v38, %v3839_v62 }
 0x2c0   : > { %v4469_v41 = vpack.c.bf16 %v3855_v21, %v3854_v40 }
 0x2c1   : > { %v3987_v56 = vld [vmem:[%s6446_s9 + $0x30] sm:$0xf] (%p5248_p6)  ;;  %v3989_v13 = vld [vmem:[%s6446_s9 + $0x34] sm:$0xf] (%p5248_p6) }
 0x2c2   : > { %4477 = vst [vmem:[%s6446_s9 + $0x38] sm:$0xff] %v4469_v41   ;;  %3988 = vst [vmem:[%s3947_s3 + $0x60] sm:$0xf] (%p5248_p6), %v3987_v56 }
 0x2c3   : > { %3990 = vst [vmem:[%s3947_s3 + $0x68] sm:$0xf] %v3989_v13 }
 0x2c9   : > { %v3991_v59 = vld [vmem:[%s6446_s9 + $0x38] sm:$0xf]  ;;  %v3993_v18 = vld [vmem:[%s6446_s9 + $0x3c] sm:$0xf] }
 0x2ca   : > { %3992 = vst [vmem:[%s3947_s3 + $0x70] sm:$0xf] %v3991_v59  ;;  %3994 = vst [vmem:[%s3947_s3 + $0x78] sm:$0xf] %v3993_v18 }
 0x2cb PF: > { %s12_s13 = sadd.s32 1, %s5196_s13   ;;  %s6509_s9 = smov %s5184_s10 }
 0x2cc   : > { %p9_p11 = scmp.ge.s32.totalorder %s12_s13, 4   ;;  %s6510_s10 = smov %s5253_s19 }
 0x2cd   : > { %s6511_s11 = smov %s5192_s12  ;;  %s6512_s12 = smov %s6514_s14 }
 0x2ce   :  { %11 = sbr.rel (!%p9_p11) target bundleno = 3 (0x3), region = 148 }

// kernel: forward.9
= control target key start
LH: loop header
LB: loop body
LE: loop exit
PB: predicated region body
PF: predicated region fallthrough
CT: control target
= control target key end

     0   :  { %v75_v0 = vlaneseq  ;;  %v1519_v10 = vmov 1983009808   ;;  %vm1371_vm0 = vcmask 1041408   ;;  %vm1507_vm1 = vcmask 1024   ;;  %s2500_s1 = inlined_call_operand.vmem [shape: bf16[1,8192], index: 1, kind: input, shape index: {}]   ;;  %s2501_s0 = inlined_call_operand.vmem [shape: bf16[2,8192], index: 0, kind: input, shape index: {}]   ;;  %s2502_s2 = inlined_call_operand.vmem [shape: f32[2,1], index: 2, kind: output, shape index: {}]  }
   0x1   :  { %v39_v1 = vld [vmem:[%s2500_s1 + $0x20] sm:$0xff]  ;;  %v40_v2 = vld [vmem:[%s2500_s1 + $0x28] sm:$0xff]  ;;  %v41_v4 = vld [vmem:[%s2500_s1 + $0x30] sm:$0xff]  ;;  %v1557_v11 = vunpack.c.l.s4 %v1519_v10 }
   0x2   :  { %v1541_v3 = vshrl.u32 %v75_v0, 7  ;;  %v42_v5 = vld [vmem:[%s2500_s1 + $0x38] sm:$0xff]  ;;  %v1549_v6 = vunpack.c.l.bf16 %v39_v1  ;;  %v1551_v7 = vunpack.c.h.bf16 %v39_v1  ;;  %v1553_v8 = vunpack.c.l.bf16 %v40_v2  ;;  %v1638_v48 = vld [vmem:[%s2501_s0] sm:$0xff]  ;;  %v1643_v49 = vld [vmem:[%s2501_s0 + $0x8] sm:$0xff] }
   0x3   :  { %v1555_v9 = vunpack.c.h.bf16 %v40_v2  ;;  %v1571_v16 = vunpack.c.l.bf16 %v41_v4  ;;  %v1573_v17 = vunpack.c.h.bf16 %v41_v4  ;;  %v1575_v18 = vunpack.c.l.bf16 %v42_v5  ;;  %2523 = vst [vmem:[#allocation4_spill] sm:$0xff] %v1638_v48  ;;  %2524 = vst [vmem:[#allocation5_spill] sm:$0xff] %v1643_v49  ;;  %v1656_v54 = vld [vmem:[%s2501_s0 + $0x20] sm:$0xff]  ;;  %v1664_v56 = vld [vmem:[%s2501_s0 + $0x28] sm:$0xff] }
   0x4   :  { %v1560_v12 = vsub.s32 0, %v1541_v3  ;;  %v1563_v13 = vsub.s32 2, %v1541_v3  ;;  %v1566_v14 = vsub.s32 4, %v1541_v3  ;;  %v1569_v15 = vsub.s32 6, %v1541_v3  ;;  %v35_v55 = vld [vmem:[%s2500_s1] sm:$0xff]  ;;  %v1669_v57 = vld [vmem:[%s2501_s0 + $0x30] sm:$0xff] }
   0x5   :  { %v1577_v19 = vunpack.c.h.bf16 %v42_v5  ;;  %2525 = vst [vmem:[#allocation6_spill] sm:$0xff] %v1669_v57  ;;  %v1674_v58 = vld [vmem:[%s2501_s0 + $0x38] sm:$0xff]  ;;  %v36_v0 = vld [vmem:[%s2500_s1 + $0x8] sm:$0xff]  ;;  %v37_v1 = vld [vmem:[%s2500_s1 + $0x10] sm:$0xff]  ;;  %v1687_v2 = vunpack.c.l.bf16 %v35_v55  ;;  %v719_v4 = vunpack.c.0.s8 %v1557_v11  ;;  %v1702_v11 = vunpack.c.h.bf16 %v35_v55 }
   0x6   :  { %2521 = vst [vmem:[#allocation2_spill] sm:$0xff] %v1563_v13  ;;  %2522 = vst [vmem:[#allocation3_spill] sm:$0xff] %v1566_v14  ;;  %v206_v20 = vrot.slane %v1549_v6, %v1560_v12  ;;  %v210_v21 = vrot.slane %v1549_v6, %v1563_v13  ;;  %v214_v22 = vrot.slane %v1549_v6, %v1566_v14  ;;  %v1697_v60 = vld [vmem:[%s2500_s1 + $0x18] sm:$0xff]  ;;  %v1704_v5 = vunpack.c.l.bf16 %v36_v0 }
   0x7   :  { %v218_v23 = vrot.slane %v1549_v6, %v1569_v15  ;;  %v222_v24 = vrot.slane %v1551_v7, %v1560_v12  ;;  %v226_v25 = vrot.slane %v1551_v7, %v1563_v13  ;;  %v230_v26 = vrot.slane %v1551_v7, %v1566_v14  ;;  %2526 = vst [vmem:[#allocation7_spill] sm:$0xff] %v1674_v58 }
   0x8   :  { %v234_v27 = vrot.slane %v1551_v7, %v1569_v15  ;;  %v238_v28 = vrot.slane %v1553_v8, %v1560_v12  ;;  %v242_v29 = vrot.slane %v1553_v8, %v1563_v13  ;;  %v246_v30 = vrot.slane %v1553_v8, %v1566_v14  ;;  %2527 = vst [vmem:[#allocation8_spill] sm:$0xff] %v1697_v60 }
   0x9   :  { %v250_v31 = vrot.slane %v1553_v8, %v1569_v15  ;;  %v254_v32 = vrot.slane %v1555_v9, %v1560_v12  ;;  %v258_v33 = vrot.slane %v1555_v9, %v1563_v13  ;;  %v262_v34 = vrot.slane %v1555_v9, %v1566_v14 }
   0xa   :  { %v266_v35 = vrot.slane %v1555_v9, %v1569_v15  ;;  %v270_v36 = vrot.slane %v1571_v16, %v1560_v12  ;;  %v274_v37 = vrot.slane %v1571_v16, %v1563_v13  ;;  %v278_v38 = vrot.slane %v1571_v16, %v1566_v14 }
   0xb   :  { %v282_v39 = vrot.slane %v1571_v16, %v1569_v15  ;;  %v286_v40 = vrot.slane %v1573_v17, %v1560_v12  ;;  %v290_v41 = vrot.slane %v1573_v17, %v1563_v13  ;;  %v294_v42 = vrot.slane %v1573_v17, %v1566_v14 }
   0xc   :  { %v298_v43 = vrot.slane %v1573_v17, %v1569_v15  ;;  %v302_v44 = vrot.slane %v1575_v18, %v1560_v12  ;;  %v306_v45 = vrot.slane %v1575_v18, %v1563_v13  ;;  %v310_v46 = vrot.slane %v1575_v18, %v1566_v14 }
   0xd   :  { %v314_v47 = vrot.slane %v1575_v18, %v1569_v15  ;;  %v318_v50 = vrot.slane %v1577_v19, %v1560_v12  ;;  %v322_v51 = vrot.slane %v1577_v19, %v1563_v13  ;;  %v1706_v10 = vunpack.c.h.bf16 %v36_v0 }
   0xe   :  { %v1708_v62 = vunpack.c.l.bf16 %v37_v1  ;;  %v1710_v61 = vunpack.c.h.bf16 %v37_v1  ;;  %v1713_v52 = vunpack.c.l.bf16 %v1697_v60  ;;  %v78_v59 = vrot.slane %v1687_v2, %v1560_v12 }
   0xf   :  { %v82_v63 = vrot.slane %v1687_v2, %v1563_v13  ;;  %v1720_v55 = vsub.s32 %v719_v4, %v1541_v3  ;;  %v1726_v0 = vrot.slane %v206_v20, %v1560_v12  ;;  %v1732_v1 = vrot.slane %v210_v21, %v1560_v12 }
  0x10   :  { %2528 = vst [vmem:[#allocation9_spill] sm:$0xff] %v1710_v61  ;;  %2529 = vst [vmem:[#allocation10_spill] sm:$0xff] %v1713_v52  ;;  %v1738_v53 = vrot.slane %v214_v22, %v1560_v12  ;;  %v1744_v3 = vrot.slane %v218_v23, %v1560_v12  ;;  %v1750_v20 = vrot.slane %v222_v24, %v1560_v12 }
  0x11   :  { %2530 = vst [vmem:[#allocation11_spill] sm:$0xff] %v1720_v55  ;;  %v1756_v21 = vrot.slane %v226_v25, %v1560_v12  ;;  %v1762_v22 = vrot.slane %v230_v26, %v1560_v12  ;;  %v1768_v6 = vrot.slane %v234_v27, %v1560_v12  ;;  %v1774_v23 = vrot.slane %v238_v28, %v1560_v12 }
  0x12   :  { %v1780_v24 = vrot.slane %v242_v29, %v1560_v12  ;;  %v1786_v25 = vrot.slane %v246_v30, %v1560_v12  ;;  %v1792_v7 = vrot.slane %v250_v31, %v1560_v12  ;;  %v1798_v26 = vrot.slane %v254_v32, %v1560_v12 }
  0x13   :  { %v1804_v27 = vrot.slane %v258_v33, %v1560_v12  ;;  %v1810_v28 = vrot.slane %v262_v34, %v1560_v12  ;;  %v1816_v8 = vrot.slane %v266_v35, %v1560_v12  ;;  %v1822_v29 = vrot.slane %v270_v36, %v1560_v12 }
  0x14   :  { %v1828_v30 = vrot.slane %v274_v37, %v1560_v12  ;;  %v1834_v31 = vrot.slane %v278_v38, %v1560_v12  ;;  %v1840_v9 = vrot.slane %v282_v39, %v1560_v12  ;;  %v1846_v32 = vrot.slane %v286_v40, %v1560_v12 }
  0x15   :  { %v1852_v33 = vrot.slane %v290_v41, %v1560_v12  ;;  %v1858_v34 = vrot.slane %v294_v42, %v1560_v12  ;;  %v1864_v16 = vrot.slane %v298_v43, %v1560_v12  ;;  %v1870_v35 = vrot.slane %v302_v44, %v1560_v12 }
  0x16   :  { %v1876_v36 = vrot.slane %v306_v45, %v1560_v12  ;;  %v1882_v37 = vrot.slane %v310_v46, %v1560_v12  ;;  %v1888_v17 = vrot.slane %v314_v47, %v1560_v12  ;;  %v1894_v38 = vrot.slane %v318_v50, %v1560_v12 }
  0x17   :  { %v1900_v39 = vrot.slane %v322_v51, %v1560_v12  ;;  %v2531_v40 = vrot.slane %v1577_v19, %v1566_v14  ;;  %v2532_v18 = vrot.slane %v1577_v19, %v1569_v15  ;;  %v86_v43 = vrot.slane %v1687_v2, %v1566_v14 }
  0x18   :  { %v90_v44 = vrot.slane %v1687_v2, %v1569_v15  ;;  %v94_v45 = vrot.slane %v1702_v11, %v1560_v12  ;;  %v98_v46 = vrot.slane %v1702_v11, %v1563_v13  ;;  %v102_v47 = vrot.slane %v1702_v11, %v1566_v14 }
  0x19   :  { %v1906_v41 = vrot.slane %v2531_v40, %v1560_v12  ;;  %v1912_v42 = vrot.slane %v2532_v18, %v1560_v12  ;;  %v106_v19 = vrot.slane %v1702_v11, %v1569_v15  ;;  %v110_v50 = vrot.slane %v1704_v5, %v1560_v12 }
  0x1a   :  { %v114_v51 = vrot.slane %v1704_v5, %v1563_v13  ;;  %v118_v2 = vrot.slane %v1704_v5, %v1566_v14  ;;  %v122_v4 = vrot.slane %v1704_v5, %v1569_v15  ;;  %v126_v40 = vrot.slane %v1706_v10, %v1560_v12 }
  0x1b   :  { %v130_v18 = vrot.slane %v1706_v10, %v1563_v13  ;;  %v134_v11 = vrot.slane %v1706_v10, %v1566_v14  ;;  %v138_v49 = vrot.slane %v1706_v10, %v1569_v15  ;;  %v142_v48 = vrot.slane %v1708_v62, %v1560_v12 }
  0x1c   :  { %v146_v60 = vrot.slane %v1708_v62, %v1563_v13  ;;  %v150_v5 = vrot.slane %v1708_v62, %v1566_v14  ;;  %v154_v52 = vrot.slane %v1708_v62, %v1569_v15  ;;  %v1951_v61 = vrot.slane %v78_v59, %v1560_v12 }
  0x1d   :  { %v1954_v58 = vrot.slane %v82_v63, %v1560_v12  ;;  %v1957_v10 = vrot.slane %v86_v43, %v1560_v12  ;;  %v1960_v57 = vrot.slane %v90_v44, %v1560_v12  ;;  %v1963_v13 = vrot.slane %v94_v45, %v1560_v12 }
  0x1e   :  { %v1966_v14 = vrot.slane %v98_v46, %v1560_v12  ;;  %v1969_v62 = vrot.slane %v102_v47, %v1560_v12  ;;  %v1972_v59 = vrot.slane %v106_v19, %v1560_v12  ;;  %v1975_v63 = vrot.slane %v110_v50, %v1560_v12 }
  0x1f   :  { %v1978_v43 = vrot.slane %v114_v51, %v1560_v12  ;;  %v1981_v44 = vrot.slane %v118_v2, %v1560_v12  ;;  %v1984_v45 = vrot.slane %v122_v4, %v1560_v12  ;;  %v1987_v46 = vrot.slane %v126_v40, %v1560_v12 }
  0x20   :  { %v1990_v47 = vrot.slane %v130_v18, %v1560_v12  ;;  %v1993_v19 = vrot.slane %v134_v11, %v1560_v12  ;;  %v1996_v50 = vrot.slane %v138_v49, %v1560_v12  ;;  %v1999_v51 = vrot.slane %v142_v48, %v1560_v12 }
  0x21   :  { %v851_v2 = vcombine.low %v1726_v0, %v1732_v1  ;;  %v2004_v4 = vrot.slane %v146_v60, %v1560_v12  ;;  %v2007_v40 = vrot.slane %v150_v5, %v1560_v12  ;;  %v2010_v18 = vrot.slane %v154_v52, %v1560_v12 }
  0x22   :  { %v852_v11 = vcombine.low %v1738_v53, %v1744_v3  ;;  %v715_v49 = vcombine.low %v1951_v61, %v1954_v58  ;;  %v868_v0 = vcombine.low %v1750_v20, %v1756_v21  ;;  %v869_v60 = vcombine.low %v1762_v22, %v1768_v6 }
  0x23   :  { %v859_v48 = vrot.slane %v851_v2, %v1720_v55  ;;  %v716_v1 = vcombine.low %v1957_v10, %v1960_v57  ;;  %v885_v5 = vcombine.low %v1774_v23, %v1780_v24  ;;  %v886_v53 = vcombine.low %v1786_v25, %v1792_v7 }
  0x24   :  { %v866_v52 = vrot.slane %v852_v11, %v1720_v55  ;;  %v876_v58 = vrot.slane %v868_v0, %v1720_v55  ;;  %v883_v61 = vrot.slane %v869_v60, %v1720_v55  ;;  %v902_v3 = vcombine.low %v1798_v26, %v1804_v27 }
  0x25   :  { %v903_v20 = vcombine.low %v1810_v28, %v1816_v8  ;;  %v893_v57 = vrot.slane %v885_v5, %v1720_v55  ;;  %v900_v22 = vrot.slane %v886_v53, %v1720_v55  ;;  %v919_v6 = vcombine.low %v1822_v29, %v1828_v30  ;;  %v2540_v5 = vld [vmem:[#allocation7_spill] sm:$0xff] }
  0x26   :  { %v867_v21 = vcombine.low %v859_v48, %v866_v52  ;;  %v884_v23 = vcombine.low %v876_v58, %v883_v61  ;;  %v910_v24 = vrot.slane %v902_v3, %v1720_v55  ;;  %v920_v7 = vcombine.low %v1834_v31, %v1840_v9 }
  0x27   :  { %v917_v25 = vrot.slane %v903_v20, %v1720_v55  ;;  %v901_v26 = vcombine.low %v893_v57, %v900_v22  ;;  %v927_v27 = vrot.slane %v919_v6, %v1720_v55  ;;  %v936_v28 = vcombine.low %v1846_v32, %v1852_v33  ;;  %v2544_v20 = vld [vmem:[#allocation2_spill] sm:$0xff]  ;;  %v2545_v6 = vld [vmem:[#allocation3_spill] sm:$0xff] }
  0x28   :  { %v937_v8 = vcombine.low %v1858_v34, %v1864_v16  ;;  %v934_v29 = vrot.slane %v920_v7, %v1720_v55  ;;  %v953_v30 = vcombine.low %v1870_v35, %v1876_v36  ;;  %v954_v2 = vcombine.low %v1882_v37, %v1888_v17 }
  0x29   :  { %v918_v10 = vcombine.low %v910_v24, %v917_v25  ;;  %v944_v31 = vrot.slane %v936_v28, %v1720_v55  ;;  %v970_v11 = vcombine.low %v1894_v38, %v1900_v39  ;;  %v971_v32 = vcombine.low %v1906_v41, %v1912_v42 }
  0x2a   :  { %v951_v9 = vrot.slane %v937_v8, %v1720_v55  ;;  %v732_v33 = vcombine.low %v1963_v13, %v1966_v14  ;;  %v935_v34 = vcombine.low %v927_v27, %v934_v29  ;;  %v961_v16 = vrot.slane %v953_v30, %v1720_v55  ;;  %v2125_v29 = vld [vmem:[%s2501_s0 + $0x10] sm:$0xff] }
  0x2b   :  { %v968_v35 = vrot.slane %v954_v2, %v1720_v55  ;;  %v733_v36 = vcombine.low %v1969_v62, %v1972_v59  ;;  %v978_v17 = vrot.slane %v970_v11, %v1720_v55  ;;  %v985_v48 = vrot.slane %v971_v32, %v1720_v55 }
  0x2c   :  { %v952_v37 = vcombine.low %v944_v31, %v951_v9  ;;  %v749_v38 = vcombine.low %v1975_v63, %v1978_v43  ;;  %v750_v39 = vcombine.low %v1981_v44, %v1984_v45  ;;  %v766_v13 = vcombine.low %v1987_v46, %v1990_v47 }
  0x2d   :  { %v969_v14 = vcombine.low %v961_v16, %v968_v35  ;;  %v723_v41 = vrot.slane %v715_v49, %v1720_v55  ;;  %v730_v42 = vrot.slane %v716_v1, %v1720_v55  ;;  %v767_v62 = vcombine.low %v1993_v19, %v1996_v50  ;;  %v2537_v49 = vld [vmem:[#allocation6_spill] sm:$0xff]  ;;  %v2547_v35 = vld [vmem:[#allocation8_spill] sm:$0xff] }
  0x2e   :  { %v986_v59 = vcombine.low %v978_v17, %v985_v48  ;;  %v2533_v0 = vunpack.c.l.bf16 %v1656_v54  ;;  %v2534_v63 = vunpack.c.h.bf16 %v1656_v54  ;;  %v2535_v44 = vunpack.c.l.bf16 %v1664_v56 }
  0x2f   :  { %v2536_v46 = vunpack.c.h.bf16 %v1664_v56  ;;  %v2538_v52 = vunpack.c.l.bf16 %v2537_v49  ;;  %v2539_v19 = vunpack.c.h.bf16 %v2537_v49  ;;  %v2541_v53 = vunpack.c.l.bf16 %v2540_v5  ;;  %v2543_v56 = vld [vmem:[#allocation9_spill] sm:$0xff] }
  0x30   :  { %v1011_v60 = vmul.f32 %v867_v21, %v2533_v0  ;;  %v1012_v43 = vmul.f32 %v884_v23, %v2534_v63  ;;  %v1013_v45 = vmul.f32 %v901_v26, %v2535_v44  ;;  %v2542_v54 = vunpack.c.h.bf16 %v2540_v5  ;;  %v2546_v26 = vld [vmem:[#allocation10_spill] sm:$0xff] }
  0x31   :  { %v2084_v47 = vmul.f32 %v918_v10, %v2536_v46  ;;  %v2088_v1 = vmul.f32 %v935_v34, %v2538_v52  ;;  %v2092_v50 = vmul.f32 %v952_v37, %v2539_v19  ;;  %v2096_v58 = vmul.f32 %v969_v14, %v2541_v53  ;;  %v2552_v19 = vld [vmem:[#allocation5_spill] sm:$0xff] }
  0x32   :  { %v2100_v61 = vmul.f32 %v986_v59, %v2542_v54  ;;  %v158_v3 = vrot.slane %v2543_v56, %v1560_v12  ;;  %v162_v21 = vrot.slane %v2543_v56, %v2544_v20  ;;  %v740_v57 = vrot.slane %v732_v33, %v1720_v55 }
  0x33   :  { %v747_v22 = vrot.slane %v733_v36, %v1720_v55  ;;  %v166_v23 = vrot.slane %v2543_v56, %v2545_v6  ;;  %v170_v24 = vrot.slane %v2543_v56, %v1569_v15  ;;  %v783_v25 = vcombine.low %v1999_v51, %v2004_v4 }
  0x34   :  { %v784_v7 = vcombine.low %v2007_v40, %v2010_v18  ;;  %v174_v27 = vrot.slane %v2546_v26, %v1560_v12  ;;  %v178_v28 = vrot.slane %v2546_v26, %v2544_v20  ;;  %v757_v8 = vrot.slane %v749_v38, %v1720_v55 }
  0x35   :  { %v764_v10 = vrot.slane %v750_v39, %v1720_v55  ;;  %v182_v51 = vrot.slane %v2546_v26, %v2545_v6  ;;  %v731_v4 = vcombine.low %v723_v41, %v730_v42  ;;  %v774_v40 = vrot.slane %v766_v13, %v1720_v55  ;;  %v2548_v13 = vld [vmem:[#allocation4_spill] sm:$0xff] }
  0x36   :  { %v781_v18 = vrot.slane %v767_v62, %v1720_v55  ;;  %v186_v30 = vrot.slane %v2546_v26, %v1569_v15  ;;  %v478_v2 = vrot.slane %v158_v3, %v1560_v12  ;;  %v482_v31 = vrot.slane %v162_v21, %v1560_v12 }
  0x37   :  { %v748_v9 = vcombine.low %v740_v57, %v747_v22  ;;  %v486_v11 = vrot.slane %v166_v23, %v1560_v12  ;;  %v490_v32 = vrot.slane %v170_v24, %v1560_v12  ;;  %v791_v33 = vrot.slane %v783_v25, %v1720_v55 }
  0x38   :  { %v798_v34 = vrot.slane %v784_v7, %v1720_v55  ;;  %v23_v16 = vunpack.c.l.bf16 %v2125_v29  ;;  %v2141_v36 = vunpack.c.h.bf16 %v2547_v35  ;;  %v2144_v37 = vrot.slane %v174_v27, %v1560_v12 }
  0x39   :  { %v765_v17 = vcombine.low %v757_v8, %v764_v10  ;;  %v2147_v48 = vrot.slane %v178_v28, %v1560_v12  ;;  %v2150_v38 = vrot.slane %v182_v51, %v1560_v12  ;;  %v782_v39 = vcombine.low %v774_v40, %v781_v18 }
  0x3a   :  { %v2549_v14 = vunpack.c.l.bf16 %v2548_v13  ;;  %v2155_v42 = vrot.slane %v186_v30, %v1560_v12  ;;  %v800_v62 = vcombine.low %v478_v2, %v482_v31  ;;  %v2550_v59 = vunpack.c.h.bf16 %v2548_v13 }
  0x3b   :  { %v1171_v63 = vcombine.high %v1011_v60, %v1011_v60  ;;  %v799_v44 = vcombine.low %v791_v33, %v798_v34  ;;  %v801_v46 = vcombine.low %v486_v11, %v490_v32  ;;  %v2160_v52 = vrot.slane %v1011_v60, %v1720_v55 }
  0x3c   :  { %v1003_v41 = vmul.f32 %v731_v4, %v2549_v14  ;;  %v1004_v0 = vmul.f32 %v748_v9, %v2550_v59  ;;  %v2553_v5 = vunpack.c.l.bf16 %v2552_v19  ;;  %v1188_v56 = vcombine.high %v1012_v43, %v1012_v43 }
  0x3d   :  { %2551 = vst [vmem:[#allocation6_spill] sm:$0xff] %v2160_v52  ;;  %v2165_v54 = vrot.slane %v1171_v63, %v1720_v55  ;;  %v2168_v3 = vrot.slane %v1012_v43, %v1720_v55  ;;  %v2554_v21 = vunpack.c.h.bf16 %v2552_v19  ;;  %v1205_v23 = vcombine.high %v1013_v45, %v1013_v45 }
  0x3e   :  { %v1035_v49 = vcombine.high %v1003_v41, %v1003_v41  ;;  %v1005_v53 = vmul.f32 %v765_v17, %v2553_v5  ;;  %v1042_v22 = vrot.slane %v1003_v41, %v1720_v55  ;;  %v2174_v24 = vrot.slane %v1013_v45, %v1720_v55 }
  0x3f   :  { %v1006_v57 = vmul.f32 %v782_v39, %v2554_v21  ;;  %v1052_v60 = vcombine.high %v1004_v0, %v1004_v0  ;;  %v1059_v25 = vrot.slane %v1004_v0, %v1720_v55  ;;  %v2178_v7 = vrot.slane %v1188_v56, %v1720_v55 }
  0x40   :  { %v1222_v26 = vcombine.high %v2084_v47, %v2084_v47  ;;  %v1049_v43 = vrot.slane %v1035_v49, %v1720_v55  ;;  %v2184_v27 = vrot.slane %v1205_v23, %v1720_v55  ;;  %v2188_v28 = vrot.slane %v2084_v47, %v1720_v55 }
  0x41   :  { %v1239_v45 = vcombine.high %v2088_v1, %v2088_v1  ;;  %v1069_v8 = vcombine.high %v1005_v53, %v1005_v53  ;;  %v2197_v51 = vrot.slane %v2088_v1, %v1720_v55  ;;  %v1256_v4 = vcombine.high %v2092_v50, %v2092_v50 }
  0x42   :  { %v2193_v10 = vrot.slane %v1222_v26, %v1720_v55  ;;  %v1050_v40 = vcombine.high %v1042_v22, %v1042_v22  ;;  %v1076_v18 = vrot.slane %v1005_v53, %v1720_v55  ;;  %v2207_v30 = vrot.slane %v2092_v50, %v1720_v55 }
  0x43   :  { %v2203_v47 = vrot.slane %v1239_v45, %v1720_v55  ;;  %v1086_v2 = vcombine.high %v1006_v57, %v1006_v57  ;;  %v2210_v31 = vrot.slane %v1006_v57, %v1720_v55  ;;  %v2213_v1 = vrot.slane %v1256_v4, %v1720_v55 }
  0x44   :  { %v1273_v9 = vcombine.high %v2096_v58, %v2096_v58  ;;  %v1051_v11 = vcombine.high %v1049_v43, %v1049_v43  ;;  %v1066_v32 = vrot.slane %v1052_v60, %v1720_v55  ;;  %v2220_v33 = vrot.slane %v2096_v58, %v1720_v55 }
  0x45   :  { %v1290_v50 = vcombine.high %v2100_v61, %v2100_v61  ;;  %v1083_v34 = vrot.slane %v1069_v8, %v1720_v55  ;;  %v2230_v17 = vrot.slane %v2100_v61, %v1720_v55  ;;  %v1372_v39 = vsel %vm1371_vm0, %v1042_v22, 0.0 }
  0x46   :  { %v2226_v35 = vrot.slane %v1273_v9, %v1720_v55  ;;  %v2234_v13 = vrot.slane %v800_v62, %v1720_v55  ;;  %v1373_v14 = vsel %vm1371_vm0, %v1050_v40, 0.0  ;;  %v1375_v41 = vsel %vm1371_vm0, %v1049_v43, 0.0 }
  0x47   :  { %v2237_v58 = vrot.slane %v1290_v50, %v1720_v55  ;;  %v2242_v59 = vrot.slane %v801_v46, %v1720_v55  ;;  %v2244_v0 = vmul.f32 %v799_v44, %v23_v16  ;;  %v1067_v63 = vcombine.high %v1059_v25, %v1059_v25 }
  0x48   :  { %v1374_v61 = vadd.f32 %v1373_v14, %v1372_v39  ;;  %v1084_v49 = vcombine.high %v1076_v18, %v1076_v18  ;;  %v2247_v19 = vrot.slane %v1086_v2, %v1720_v55  ;;  %v1377_v5 = vsel %vm1371_vm0, %v1051_v11, 0.0 }
  0x49   :  { %v1068_v53 = vcombine.high %v1066_v32, %v1066_v32  ;;  %v1085_v56 = vcombine.high %v1083_v34, %v1083_v34  ;;  %v1186_v21 = vcombine.high %v2160_v52, %v2160_v52  ;;  %v1187_v16 = vcombine.high %v2165_v54, %v2165_v54 }
  0x4a   :  { %v1376_v46 = vadd.f32 %v1375_v41, %v1374_v61  ;;  %v1203_v44 = vcombine.high %v2168_v3, %v2168_v3  ;;  %v1220_v57 = vcombine.high %v2174_v24, %v2174_v24  ;;  %v1379_v22 = vsel %vm1371_vm0, %v1059_v25, 0.0 }
  0x4b   :  { %v1204_v23 = vcombine.high %v2178_v7, %v2178_v7  ;;  %v1221_v60 = vcombine.high %v2184_v27, %v2184_v27  ;;  %v1237_v26 = vcombine.high %v2188_v28, %v2188_v28  ;;  %v1238_v45 = vcombine.high %v2193_v10, %v2193_v10 }
  0x4c   :  { %v1378_v43 = vadd.f32 %v1377_v5, %v1376_v46  ;;  %v1254_v8 = vcombine.high %v2197_v51, %v2197_v51  ;;  %v1255_v4 = vcombine.high %v2203_v47, %v2203_v47  ;;  %v1381_v25 = vsel %vm1371_vm0, %v1067_v63, 0.0 }
  0x4d   :  { %v1271_v40 = vcombine.high %v2207_v30, %v2207_v30  ;;  %v1272_v2 = vcombine.high %v2213_v1, %v2213_v1  ;;  %v1288_v9 = vcombine.high %v2220_v33, %v2220_v33  ;;  %v1289_v50 = vcombine.high %v2226_v35, %v2226_v35 }
  0x4e   :  { %v1380_v11 = vadd.f32 %v1379_v22, %v1378_v43  ;;  %v1305_v39 = vcombine.high %v2230_v17, %v2230_v17  ;;  %v1306_v14 = vcombine.high %v2237_v58, %v2237_v58  ;;  %v1383_v41 = vsel %vm1371_vm0, %v1066_v32, 0.0 }
  0x4f   :  { %v1385_v61 = vsel %vm1371_vm0, %v1068_v53, 0.0  ;;  %v1387_v5 = vsel %vm1371_vm0, %v1076_v18, 0.0  ;;  %v1389_v46 = vsel %vm1371_vm0, %v1084_v49, 0.0  ;;  %v1391_v22 = vsel %vm1371_vm0, %v1083_v34, 0.0 }
  0x50   :  { %v1382_v63 = vadd.f32 %v1381_v25, %v1380_v11  ;;  %v1393_v43 = vsel %vm1371_vm0, %v1085_v56, 0.0  ;;  %v2293_v62 = vsel %vm1371_vm0, %v1186_v21, 0.0  ;;  %v2297_v52 = vsel %vm1371_vm0, %v2165_v54, 0.0 }
  0x51   :  { %v2300_v32 = vsel %vm1371_vm0, %v1187_v16, 0.0  ;;  %v2304_v18 = vsel %vm1371_vm0, %v2168_v3, 0.0  ;;  %v2307_v49 = vsel %vm1371_vm0, %v1203_v44, 0.0  ;;  %v2311_v34 = vsel %vm1371_vm0, %v2178_v7, 0.0 }
  0x52   :  { %v1384_v55 = vadd.f32 %v1383_v41, %v1382_v63  ;;  %v2314_v53 = vsel %vm1371_vm0, %v1204_v23, 0.0  ;;  %v2318_v54 = vsel %vm1371_vm0, %v2174_v24, 0.0  ;;  %v2321_v56 = vsel %vm1371_vm0, %v1220_v57, 0.0 }
  0x53   :  { %v2325_v3 = vsel %vm1371_vm0, %v2184_v27, 0.0  ;;  %v2328_v16 = vsel %vm1371_vm0, %v1221_v60, 0.0  ;;  %v2332_v7 = vsel %vm1371_vm0, %v2188_v28, 0.0  ;;  %v2335_v44 = vsel %vm1371_vm0, %v1237_v26, 0.0 }
  0x54   :  { %v1386_v21 = vadd.f32 %v1385_v61, %v1384_v55  ;;  %v2339_v24 = vsel %vm1371_vm0, %v2193_v10, 0.0  ;;  %v2342_v55 = vsel %vm1371_vm0, %v1238_v45, 0.0  ;;  %v2346_v27 = vsel %vm1371_vm0, %v2197_v51, 0.0 }
  0x55   :  { %v2349_v23 = vsel %vm1371_vm0, %v1254_v8, 0.0  ;;  %v2353_v28 = vsel %vm1371_vm0, %v2203_v47, 0.0  ;;  %v2356_v60 = vsel %vm1371_vm0, %v1255_v4, 0.0  ;;  %v2360_v10 = vsel %vm1371_vm0, %v2207_v30, 0.0 }
  0x56   :  { %v1388_v57 = vadd.f32 %v1387_v5, %v1386_v21  ;;  %v2363_v26 = vsel %vm1371_vm0, %v1271_v40, 0.0  ;;  %v2367_v51 = vsel %vm1371_vm0, %v2213_v1, 0.0  ;;  %v2370_v45 = vsel %vm1371_vm0, %v1272_v2, 0.0  ;;  %v14_v5 = vld [vmem:[%s2501_s0 + $0x18] sm:$0xff] }
  0x57   :  { %v2374_v47 = vsel %vm1371_vm0, %v2220_v33, 0.0  ;;  %v2377_v4 = vsel %vm1371_vm0, %v1288_v9, 0.0  ;;  %v2381_v30 = vsel %vm1371_vm0, %v2226_v35, 0.0  ;;  %v2384_v25 = vsel %vm1371_vm0, %v1289_v50, 0.0 }
  0x58   :  { %v1390_v8 = vadd.f32 %v1389_v46, %v1388_v57  ;;  %v2388_v1 = vsel %vm1371_vm0, %v2230_v17, 0.0  ;;  %v2391_v40 = vsel %vm1371_vm0, %v1305_v39, 0.0  ;;  %v2395_v33 = vsel %vm1371_vm0, %v2237_v58, 0.0 }
  0x59   :  { %v24_v2 = vunpack.c.h.bf16 %v2125_v29  ;;  %v190_v35 = vrot.slane %v2141_v36, %v1560_v12  ;;  %v2401_v11 = vsel %vm1371_vm0, %v1306_v14, 0.0  ;;  %v194_v17 = vrot.slane %v2141_v36, %v2544_v20 }
  0x5a   :  { %v1392_v9 = vadd.f32 %v1391_v22, %v1390_v8  ;;  %v198_v50 = vrot.slane %v2141_v36, %v2545_v6  ;;  %v202_v39 = vrot.slane %v2141_v36, %v1569_v15  ;;  %v1395_v58 = vsel %vm1371_vm0, %v2210_v31, 0.0  ;;  %v2555_v15 = vld [vmem:[#allocation11_spill] sm:$0xff] }
  0x5b   :  { %v816_v29 = vcombine.low %v2234_v13, %v2242_v59  ;;  %v817_v41 = vcombine.low %v2144_v37, %v2147_v48  ;;  %v818_v14 = vcombine.low %v2150_v38, %v2155_v42  ;;  %v1102_v20 = vcombine.high %v2247_v19, %v2247_v19 }
  0x5c   :  { %v1394_v63 = vadd.f32 %v1393_v43, %v1392_v9  ;;  %v1103_v6 = vcombine.high %v2244_v0, %v2244_v0  ;;  %v1110_v36 = vrot.slane %v2244_v0, %v2555_v15  ;;  %v2556_v61 = vcombine.high %v2210_v31, %v2210_v31 }
  0x5d   :  { %v510_v37 = vrot.slane %v190_v35, %v1560_v12  ;;  %v514_v48 = vrot.slane %v194_v17, %v1560_v12  ;;  %v518_v38 = vrot.slane %v198_v50, %v1560_v12  ;;  %v1399_v42 = vsel %vm1371_vm0, %v2247_v19, 0.0 }
  0x5e   :  { %v1397_v13 = vsel %vm1371_vm0, %v2556_v61, 0.0  ;;  %v1396_v59 = vadd.f32 %v1395_v58, %v1394_v63  ;;  %v522_v0 = vrot.slane %v202_v39, %v1560_v12  ;;  %v825_v31 = vrot.slane %v817_v41, %v2555_v15 }
  0x5f   :  { %v832_v46 = vrot.slane %v818_v14, %v2555_v15  ;;  %v1008_v43 = vmul.f32 %v816_v29, %v24_v2  ;;  %v1117_v21 = vrot.slane %v1103_v6, %v2555_v15  ;;  %v1118_v57 = vcombine.high %v1110_v36, %v1110_v36 }
  0x60   :  { %v1398_v22 = vadd.f32 %v1397_v13, %v1396_v59  ;;  %v1401_v8 = vsel %vm1371_vm0, %v1102_v20, 0.0  ;;  %v25_v9 = vunpack.c.l.bf16 %v14_v5  ;;  %v1403_v19 = vsel %vm1371_vm0, %v1110_v36, 0.0 }
  0x61   :  { %v833_v17 = vcombine.low %v825_v31, %v832_v46  ;;  %v834_v50 = vcombine.low %v510_v37, %v514_v48  ;;  %v835_v58 = vcombine.low %v518_v38, %v522_v0  ;;  %v1119_v12 = vcombine.high %v1117_v21, %v1117_v21 }
  0x62   :  { %v1400_v35 = vadd.f32 %v1399_v42, %v1398_v22  ;;  %v1120_v39 = vcombine.high %v1008_v43, %v1008_v43  ;;  %v1127_v41 = vrot.slane %v1008_v43, %v2555_v15  ;;  %v1405_v14 = vsel %vm1371_vm0, %v1118_v57, 0.0 }
  0x63   :  { %v1407_v29 = vsel %vm1371_vm0, %v1117_v21, 0.0  ;;  %v842_v6 = vrot.slane %v834_v50, %v2555_v15  ;;  %v849_v20 = vrot.slane %v835_v58, %v2555_v15  ;;  %v1009_v13 = vmul.f32 %v833_v17, %v25_v9 }
  0x64   :  { %v1402_v63 = vadd.f32 %v1401_v8, %v1400_v35  ;;  %v1134_v36 = vrot.slane %v1120_v39, %v2555_v15  ;;  %v1135_v59 = vcombine.high %v1127_v41, %v1127_v41  ;;  %v1409_v37 = vsel %vm1371_vm0, %v1119_v12, 0.0 }
  0x65   :  { %v1411_v38 = vsel %vm1371_vm0, %v1127_v41, 0.0  ;;  %v26_v42 = vunpack.c.h.bf16 %v14_v5  ;;  %v850_v0 = vcombine.low %v842_v6, %v849_v20  ;;  %v1137_v22 = vcombine.high %v1009_v13, %v1009_v13 }
  0x66   :  { %v1404_v2 = vadd.f32 %v1403_v19, %v1402_v63  ;;  %v1136_v46 = vcombine.high %v1134_v36, %v1134_v36  ;;  %v1144_v43 = vrot.slane %v1009_v13, %v2555_v15  ;;  %v1413_v21 = vsel %vm1371_vm0, %v1135_v59, 0.0 }
  0x67   :  { %v1415_v8 = vsel %vm1371_vm0, %v1134_v36, 0.0  ;;  %v1010_v9 = vmul.f32 %v850_v0, %v26_v42  ;;  %v1151_v19 = vrot.slane %v1137_v22, %v2555_v15 }
  0x68   :  { %v1406_v61 = vadd.f32 %v1405_v14, %v1404_v2  ;;  %v1152_v17 = vcombine.high %v1144_v43, %v1144_v43  ;;  %v1417_v50 = vsel %vm1371_vm0, %v1136_v46, 0.0  ;;  %v1419_v5 = vsel %vm1371_vm0, %v1144_v43, 0.0  ;;  %v2557_v43 = vld [vmem:[#allocation6_spill] sm:$0xff] }
  0x69   :  { %v1153_v12 = vcombine.high %v1151_v19, %v1151_v19  ;;  %v1154_v39 = vcombine.high %v1010_v9, %v1010_v9  ;;  %v1161_v41 = vrot.slane %v1010_v9, %v2555_v15 }
  0x6a   :  { %v1408_v48 = vadd.f32 %v1407_v29, %v1406_v61  ;;  %v1421_v14 = vsel %vm1371_vm0, %v1152_v17, 0.0  ;;  %v1423_v29 = vsel %vm1371_vm0, %v1151_v19, 0.0 }
  0x6b   :  { %v1168_v20 = vrot.slane %v1154_v39, %v2555_v15  ;;  %v1169_v61 = vcombine.high %v1161_v41, %v1161_v41  ;;  %v1425_v13 = vsel %vm1371_vm0, %v1153_v12, 0.0  ;;  %v1427_v59 = vsel %vm1371_vm0, %v1161_v41, 0.0 }
  0x6c   :  { %v1410_v31 = vadd.f32 %v1409_v37, %v1408_v48  ;;  %v1435_v15 = vsel %vm1371_vm0, %v2557_v43, 0.0 }
  0x6d   :  { %v1170_v48 = vcombine.high %v1168_v20, %v1168_v20  ;;  %v1431_v0 = vsel %vm1371_vm0, %v1168_v20, 0.0 }
  0x6e   :  { %v1412_v57 = vadd.f32 %v1411_v38, %v1410_v31  ;;  %v1429_v38 = vsel %vm1371_vm0, %v1169_v61, 0.0 }
  0x6f   :  { %v1433_v46 = vsel %vm1371_vm0, %v1170_v48, 0.0 }
  0x70   :  { %v1414_v35 = vadd.f32 %v1413_v21, %v1412_v57 }
  0x72   :  { %v1416_v58 = vadd.f32 %v1415_v8, %v1414_v35 }
  0x74   :  { %v1418_v63 = vadd.f32 %v1417_v50, %v1416_v58 }
  0x76   :  { %v1420_v2 = vadd.f32 %v1419_v5, %v1418_v63 }
  0x78   :  { %v1422_v6 = vadd.f32 %v1421_v14, %v1420_v2 }
  0x7a   :  { %v1424_v36 = vadd.f32 %v1423_v29, %v1422_v6 }
  0x7c   :  { %v1426_v37 = vadd.f32 %v1425_v13, %v1424_v36 }
  0x7e   :  { %v1428_v42 = vadd.f32 %v1427_v59, %v1426_v37 }
  0x80   :  { %v1430_v31 = vadd.f32 %v1429_v38, %v1428_v42 }
  0x82   :  { %v1432_v22 = vadd.f32 %v1431_v0, %v1430_v31 }
  0x84   :  { %v1434_v21 = vadd.f32 %v1433_v46, %v1432_v22 }
  0x86   :  { %v1436_v57 = vadd.f32 %v1435_v15, %v1434_v21 }
  0x88   :  { %v1438_v8 = vadd.f32 %v2293_v62, %v1436_v57 }
  0x8a   :  { %v1440_v35 = vadd.f32 %v2297_v52, %v1438_v8 }
  0x8c   :  { %v1442_v9 = vadd.f32 %v2300_v32, %v1440_v35 }
  0x8e   :  { %v1444_v19 = vadd.f32 %v2304_v18, %v1442_v9 }
  0x90   :  { %v1446_v17 = vadd.f32 %v2307_v49, %v1444_v19 }
  0x92   :  { %v1448_v50 = vadd.f32 %v2311_v34, %v1446_v17 }
  0x94   :  { %v1450_v58 = vadd.f32 %v2314_v53, %v1448_v50 }
  0x96   :  { %v1452_v5 = vadd.f32 %v2318_v54, %v1450_v58 }
  0x98   :  { %v1454_v63 = vadd.f32 %v2321_v56, %v1452_v5 }
  0x9a   :  { %v1456_v12 = vadd.f32 %v2325_v3, %v1454_v63 }
  0x9c   :  { %v1458_v62 = vadd.f32 %v2328_v16, %v1456_v12 }
  0x9e   :  { %v1460_v52 = vadd.f32 %v2332_v7, %v1458_v62 }
  0xa0   :  { %v1462_v32 = vadd.f32 %v2335_v44, %v1460_v52 }
  0xa2   :  { %v1464_v18 = vadd.f32 %v2339_v24, %v1462_v32 }
  0xa4   :  { %v1466_v49 = vadd.f32 %v2342_v55, %v1464_v18 }
  0xa6   :  { %v1468_v34 = vadd.f32 %v2346_v27, %v1466_v49 }
  0xa8   :  { %v1470_v53 = vadd.f32 %v2349_v23, %v1468_v34 }
  0xaa   :  { %v1472_v54 = vadd.f32 %v2353_v28, %v1470_v53 }
  0xac   :  { %v1474_v56 = vadd.f32 %v2356_v60, %v1472_v54 }
  0xae   :  { %v1476_v3 = vadd.f32 %v2360_v10, %v1474_v56 }
  0xb0   :  { %v1478_v16 = vadd.f32 %v2363_v26, %v1476_v3 }
  0xb2   :  { %v1480_v7 = vadd.f32 %v2367_v51, %v1478_v16 }
  0xb4   :  { %v1482_v44 = vadd.f32 %v2370_v45, %v1480_v7 }
  0xb6   :  { %v1484_v24 = vadd.f32 %v2374_v47, %v1482_v44 }
  0xb8   :  { %v1486_v55 = vadd.f32 %v2377_v4, %v1484_v24 }
  0xba   :  { %v1488_v27 = vadd.f32 %v2381_v30, %v1486_v55 }
  0xbc   :  { %v1490_v23 = vadd.f32 %v2384_v25, %v1488_v27 }
  0xbe   :  { %v1492_v28 = vadd.f32 %v2388_v1, %v1490_v23 }
  0xc0   :  { %v1494_v60 = vadd.f32 %v2391_v40, %v1492_v28 }
  0xc2   :  { %v1496_v10 = vadd.f32 %v2395_v33, %v1494_v60 }
  0xc4   :  { %v1498_v26 = vadd.f32 %v2401_v11, %v1496_v10 }
  0xc6   :  { %1499 = vadd.xlane.f32.xlu0 %v1498_v26 }
 0x153   :  { %v1500_v51 = vpop.xlane.xlu0 %1499 }
 0x154   :  { %v1513_v39 = vmul.f32 -1.442695, %v1500_v51 }
 0x156   :  { %1515 = vpow2.f32 %v1513_v39 }
 0x160   :  { %v1516_v45 = vpop.eup %1515 }
 0x161   :  { %v1504_v47 = vadd.f32 1.0, %v1516_v45 }
 0x163   :  { %1517 = vrcp.f32 %v1504_v47 }
 0x16d   :  { %v1518_v4 = vpop.eup %1517 }
 0x16e   :  { %1508 = vst.msk [vmem:[%s2502_s2] sm:$0x3] %vm1507_vm1, %v1518_v4 }

// kernel: forward.8
= control target key start
LH: loop header
LB: loop body
LE: loop exit
PB: predicated region body
PF: predicated region fallthrough
CT: control target
= control target key end

     0   :  { %s10436_s9 = smov 0   ;;  %s10438_s10 = smov 0   ;;  %s12390_s0 = inlined_call_operand.vmem [shape: bf16[32,4096], index: 0, kind: input, shape index: {}]   ;;  %s12391_s1 = inlined_call_operand.vmem [shape: bf16[4096,512], index: 1, kind: input, shape index: {}]   ;;  %s12392_s2 = inlined_call_operand.vmem [shape: bf16[32,512], index: 2, kind: output, shape index: {}]  }
   0x1   :  { %s10440_s11 = smov 0   ;;  %s10442_s12 = smov 0  }
   0x2   :  { %s10444_s13 = smov 0  }
   0x3 LB: > { %s24_s14 = sadd.s32 1, %s10415_s12  ;;  %s8851_s15 = sadd.s32 4294967295, %s10419_s13   ;;  %s10419_s13 = sphi %s10444_s13, %s12_s13   ;;  %s10415_s12 = sphi %s10442_s12, %s12397_s12   ;;  %s10411_s11 = sphi %s10440_s11, %s12396_s11   ;;  %s10407_s10 = sphi %s10438_s10, %s12395_s10   ;;  %s10403_s9 = sphi %s10436_s9, %s12394_s9  }
   0x4   : > { %p26_p0 = scmp.ge.s32.totalorder %s24_s14, 2  ;;  %p64_p1 = scmp.ne.s32.totalorder %s10407_s10, %s10403_s9 }
   0x5   : > { %p65_p2 = scmp.eq.s32.totalorder %s10419_s13, 0  ;;  %p96_p4 = scmp.eq.s32.totalorder %s8851_s15, 1 }
   0x6   : > { %s12399_s14 = smov (%p26_p0, %s24_s14), 0  ;;  %s57_s17 = sadd.s32 1, %s10407_s10 }
   0x7   : > { %p66_p3 = por %p65_p2, %p64_p1  ;;  %s54_s16 = ssub.s32 %s10415_s12, %s12399_s14 }
   0x8   : > { %p55_p5 = scmp.eq.s32.totalorder %s54_s16, 0  ;;  %p10471_p6 = por %p96_p4, %p64_p1 }
   0x9   : > { %p8855_p7 = scmp.ge.s32.totalorder %s10419_s13, 2 }
   0xa   : > { %s10476_s19 = scalar_select %p55_p5, %s10407_s10, %s57_s17  }
   0xb   : > { %128 = sbr.rel (%p8855_p7) target bundleno = 278 (0x116), region = 20 }
  0x12   : > { %131 = sbr.rel (!%p66_p3) target bundleno = 278 (0x116), region = 24  ;;  %s133_s20 = sand.u32 (%p66_p3), 1, %s10407_s10  }
  0x13   : > { %s9447_s21 = sshll.u32 (%p66_p3), %s10415_s12, 3  ;;  %s8856_s22 = sshll.u32 (%p66_p3), %s133_s20, 12 }
  0x14   : > { %s10484_s25 = scalar_lea.vmem (%p66_p3), %s12391_s1, %s9447_s21  ;;  %s10489_s26 = scalar_lea.vmem (%p66_p3), [#allocation2], %s8856_s22 }
  0x15   : > { %v1191_v0 = vld [vmem:[%s10484_s25] sm:$0xff] (%p66_p3)  ;;  %v1193_v1 = vld [vmem:[%s10484_s25 + $0x10] sm:$0xff] (%p66_p3) }
  0x16   : > { %v1195_v2 = vld [vmem:[%s10484_s25 + $0x20] sm:$0xff] (%p66_p3)  ;;  %1192 = vst [vmem:[%s10489_s26] sm:$0xff] (%p66_p3), %v1191_v0  ;;  %1194 = vst [vmem:[%s10489_s26 + $0x8] sm:$0xff] (%p66_p3), %v1193_v1  ;;  %v1197_v3 = vld [vmem:[%s10484_s25 + $0x30] sm:$0xff] (%p66_p3) }
  0x17   : > { %1196 = vst [vmem:[%s10489_s26 + $0x10] sm:$0xff] (%p66_p3), %v1195_v2  ;;  %v1199_v4 = vld [vmem:[%s10484_s25 + $0x40] sm:$0xff] (%p66_p3)  ;;  %v1201_v5 = vld [vmem:[%s10484_s25 + $0x50] sm:$0xff] (%p66_p3)  ;;  %1198 = vst [vmem:[%s10489_s26 + $0x18] sm:$0xff] (%p66_p3), %v1197_v3 }
  0x18   : > { %1200 = vst [vmem:[%s10489_s26 + $0x20] sm:$0xff] (%p66_p3), %v1199_v4  ;;  %1202 = vst [vmem:[%s10489_s26 + $0x28] sm:$0xff] (%p66_p3), %v1201_v5  ;;  %v1203_v6 = vld [vmem:[%s10484_s25 + $0x60] sm:$0xff] (%p66_p3)  ;;  %v1205_v7 = vld [vmem:[%s10484_s25 + $0x70] sm:$0xff] (%p66_p3) }
  0x19   : > { %v1207_v8 = vld [vmem:[%s10484_s25 + $0x80] sm:$0xff]  ;;  %1204 = vst [vmem:[%s10489_s26 + $0x30] sm:$0xff] %v1203_v6  ;;  %1206 = vst [vmem:[%s10489_s26 + $0x38] sm:$0xff] %v1205_v7  ;;  %v1209_v9 = vld [vmem:[%s10484_s25 + $0x90] sm:$0xff] }
  0x1a   : > { %1208 = vst [vmem:[%s10489_s26 + $0x40] sm:$0xff] %v1207_v8  ;;  %v1211_v10 = vld [vmem:[%s10484_s25 + $0xa0] sm:$0xff]  ;;  %v1213_v11 = vld [vmem:[%s10484_s25 + $0xb0] sm:$0xff]  ;;  %1210 = vst [vmem:[%s10489_s26 + $0x48] sm:$0xff] %v1209_v9 }
  0x1b   : > { %1212 = vst [vmem:[%s10489_s26 + $0x50] sm:$0xff] %v1211_v10  ;;  %1214 = vst [vmem:[%s10489_s26 + $0x58] sm:$0xff] %v1213_v11  ;;  %v1215_v12 = vld [vmem:[%s10484_s25 + $0xc0] sm:$0xff]  ;;  %v1217_v13 = vld [vmem:[%s10484_s25 + $0xd0] sm:$0xff] }
  0x1c   : > { %v1219_v14 = vld [vmem:[%s10484_s25 + $0xe0] sm:$0xff]  ;;  %1216 = vst [vmem:[%s10489_s26 + $0x60] sm:$0xff] %v1215_v12  ;;  %1218 = vst [vmem:[%s10489_s26 + $0x68] sm:$0xff] %v1217_v13  ;;  %v1221_v15 = vld [vmem:[%s10484_s25 + $0xf0] sm:$0xff] }
  0x1d   : > { %1220 = vst [vmem:[%s10489_s26 + $0x70] sm:$0xff] %v1219_v14  ;;  %v1223_v16 = vld [vmem:[%s10484_s25 + $0x100] sm:$0xff]  ;;  %v1225_v17 = vld [vmem:[%s10484_s25 + $0x110] sm:$0xff]  ;;  %1222 = vst [vmem:[%s10489_s26 + $0x78] sm:$0xff] %v1221_v15 }
  0x1e   : > { %1224 = vst [vmem:[%s10489_s26 + $0x80] sm:$0xff] %v1223_v16  ;;  %1226 = vst [vmem:[%s10489_s26 + $0x88] sm:$0xff] %v1225_v17  ;;  %v1227_v18 = vld [vmem:[%s10484_s25 + $0x120] sm:$0xff]  ;;  %v1229_v19 = vld [vmem:[%s10484_s25 + $0x130] sm:$0xff] }
  0x1f   : > { %v1231_v20 = vld [vmem:[%s10484_s25 + $0x140] sm:$0xff]  ;;  %1228 = vst [vmem:[%s10489_s26 + $0x90] sm:$0xff] %v1227_v18  ;;  %1230 = vst [vmem:[%s10489_s26 + $0x98] sm:$0xff] %v1229_v19  ;;  %v1233_v21 = vld [vmem:[%s10484_s25 + $0x150] sm:$0xff] }
  0x20   : > { %1232 = vst [vmem:[%s10489_s26 + $0xa0] sm:$0xff] %v1231_v20  ;;  %v1235_v22 = vld [vmem:[%s10484_s25 + $0x160] sm:$0xff]  ;;  %v1237_v23 = vld [vmem:[%s10484_s25 + $0x170] sm:$0xff]  ;;  %1234 = vst [vmem:[%s10489_s26 + $0xa8] sm:$0xff] %v1233_v21 }
  0x21   : > { %1236 = vst [vmem:[%s10489_s26 + $0xb0] sm:$0xff] %v1235_v22  ;;  %1238 = vst [vmem:[%s10489_s26 + $0xb8] sm:$0xff] %v1237_v23  ;;  %v1239_v24 = vld [vmem:[%s10484_s25 + $0x180] sm:$0xff]  ;;  %v1241_v25 = vld [vmem:[%s10484_s25 + $0x190] sm:$0xff] }
  0x22   : > { %v1243_v26 = vld [vmem:[%s10484_s25 + $0x1a0] sm:$0xff]  ;;  %1240 = vst [vmem:[%s10489_s26 + $0xc0] sm:$0xff] %v1239_v24  ;;  %1242 = vst [vmem:[%s10489_s26 + $0xc8] sm:$0xff] %v1241_v25  ;;  %v1245_v27 = vld [vmem:[%s10484_s25 + $0x1b0] sm:$0xff] }
  0x23   : > { %1244 = vst [vmem:[%s10489_s26 + $0xd0] sm:$0xff] %v1243_v26  ;;  %v1247_v28 = vld [vmem:[%s10484_s25 + $0x1c0] sm:$0xff]  ;;  %v1249_v29 = vld [vmem:[%s10484_s25 + $0x1d0] sm:$0xff]  ;;  %1246 = vst [vmem:[%s10489_s26 + $0xd8] sm:$0xff] %v1245_v27 }
  0x24   : > { %1248 = vst [vmem:[%s10489_s26 + $0xe0] sm:$0xff] %v1247_v28  ;;  %1250 = vst [vmem:[%s10489_s26 + $0xe8] sm:$0xff] %v1249_v29  ;;  %v1251_v30 = vld [vmem:[%s10484_s25 + $0x1e0] sm:$0xff]  ;;  %v1253_v31 = vld [vmem:[%s10484_s25 + $0x1f0] sm:$0xff] }
  0x25   : > { %v1255_v32 = vld [vmem:[%s10484_s25 + $0x200] sm:$0xff]  ;;  %1252 = vst [vmem:[%s10489_s26 + $0xf0] sm:$0xff] %v1251_v30  ;;  %1254 = vst [vmem:[%s10489_s26 + $0xf8] sm:$0xff] %v1253_v31  ;;  %v1257_v33 = vld [vmem:[%s10484_s25 + $0x210] sm:$0xff] }
  0x26   : > { %1256 = vst [vmem:[%s10489_s26 + $0x100] sm:$0xff] %v1255_v32  ;;  %v1259_v34 = vld [vmem:[%s10484_s25 + $0x220] sm:$0xff]  ;;  %v1261_v35 = vld [vmem:[%s10484_s25 + $0x230] sm:$0xff]  ;;  %1258 = vst [vmem:[%s10489_s26 + $0x108] sm:$0xff] %v1257_v33 }
  0x27   : > { %1260 = vst [vmem:[%s10489_s26 + $0x110] sm:$0xff] %v1259_v34  ;;  %1262 = vst [vmem:[%s10489_s26 + $0x118] sm:$0xff] %v1261_v35  ;;  %v1263_v36 = vld [vmem:[%s10484_s25 + $0x240] sm:$0xff]  ;;  %v1265_v37 = vld [vmem:[%s10484_s25 + $0x250] sm:$0xff] }
  0x28   : > { %v1267_v38 = vld [vmem:[%s10484_s25 + $0x260] sm:$0xff]  ;;  %1264 = vst [vmem:[%s10489_s26 + $0x120] sm:$0xff] %v1263_v36  ;;  %1266 = vst [vmem:[%s10489_s26 + $0x128] sm:$0xff] %v1265_v37  ;;  %v1269_v39 = vld [vmem:[%s10484_s25 + $0x270] sm:$0xff] }
  0x29   : > { %1268 = vst [vmem:[%s10489_s26 + $0x130] sm:$0xff] %v1267_v38  ;;  %v1271_v40 = vld [vmem:[%s10484_s25 + $0x280] sm:$0xff]  ;;  %v1273_v41 = vld [vmem:[%s10484_s25 + $0x290] sm:$0xff]  ;;  %1270 = vst [vmem:[%s10489_s26 + $0x138] sm:$0xff] %v1269_v39 }
  0x2a   : > { %1272 = vst [vmem:[%s10489_s26 + $0x140] sm:$0xff] %v1271_v40  ;;  %1274 = vst [vmem:[%s10489_s26 + $0x148] sm:$0xff] %v1273_v41  ;;  %v1275_v42 = vld [vmem:[%s10484_s25 + $0x2a0] sm:$0xff]  ;;  %v1277_v43 = vld [vmem:[%s10484_s25 + $0x2b0] sm:$0xff] }
  0x2b   : > { %v1279_v44 = vld [vmem:[%s10484_s25 + $0x2c0] sm:$0xff]  ;;  %1276 = vst [vmem:[%s10489_s26 + $0x150] sm:$0xff] %v1275_v42  ;;  %1278 = vst [vmem:[%s10489_s26 + $0x158] sm:$0xff] %v1277_v43  ;;  %v1281_v45 = vld [vmem:[%s10484_s25 + $0x2d0] sm:$0xff] }
  0x2c   : > { %1280 = vst [vmem:[%s10489_s26 + $0x160] sm:$0xff] %v1279_v44  ;;  %v1283_v46 = vld [vmem:[%s10484_s25 + $0x2e0] sm:$0xff]  ;;  %v1285_v47 = vld [vmem:[%s10484_s25 + $0x2f0] sm:$0xff]  ;;  %1282 = vst [vmem:[%s10489_s26 + $0x168] sm:$0xff] %v1281_v45 }
  0x2d   : > { %1284 = vst [vmem:[%s10489_s26 + $0x170] sm:$0xff] %v1283_v46  ;;  %1286 = vst [vmem:[%s10489_s26 + $0x178] sm:$0xff] %v1285_v47  ;;  %v1287_v48 = vld [vmem:[%s10484_s25 + $0x300] sm:$0xff]  ;;  %v1289_v49 = vld [vmem:[%s10484_s25 + $0x310] sm:$0xff] }
  0x2e   : > { %v1291_v50 = vld [vmem:[%s10484_s25 + $0x320] sm:$0xff]  ;;  %1288 = vst [vmem:[%s10489_s26 + $0x180] sm:$0xff] %v1287_v48  ;;  %1290 = vst [vmem:[%s10489_s26 + $0x188] sm:$0xff] %v1289_v49  ;;  %v1293_v51 = vld [vmem:[%s10484_s25 + $0x330] sm:$0xff] }
  0x2f   : > { %1292 = vst [vmem:[%s10489_s26 + $0x190] sm:$0xff] %v1291_v50  ;;  %v1295_v52 = vld [vmem:[%s10484_s25 + $0x340] sm:$0xff]  ;;  %v1297_v53 = vld [vmem:[%s10484_s25 + $0x350] sm:$0xff]  ;;  %1294 = vst [vmem:[%s10489_s26 + $0x198] sm:$0xff] %v1293_v51 }
  0x30   : > { %1296 = vst [vmem:[%s10489_s26 + $0x1a0] sm:$0xff] %v1295_v52  ;;  %1298 = vst [vmem:[%s10489_s26 + $0x1a8] sm:$0xff] %v1297_v53  ;;  %v1299_v54 = vld [vmem:[%s10484_s25 + $0x360] sm:$0xff]  ;;  %v1301_v55 = vld [vmem:[%s10484_s25 + $0x370] sm:$0xff] }
  0x31   : > { %v1303_v56 = vld [vmem:[%s10484_s25 + $0x380] sm:$0xff]  ;;  %1300 = vst [vmem:[%s10489_s26 + $0x1b0] sm:$0xff] %v1299_v54  ;;  %1302 = vst [vmem:[%s10489_s26 + $0x1b8] sm:$0xff] %v1301_v55  ;;  %v1305_v57 = vld [vmem:[%s10484_s25 + $0x390] sm:$0xff] }
  0x32   : > { %1304 = vst [vmem:[%s10489_s26 + $0x1c0] sm:$0xff] %v1303_v56  ;;  %v1307_v58 = vld [vmem:[%s10484_s25 + $0x3a0] sm:$0xff]  ;;  %v1309_v59 = vld [vmem:[%s10484_s25 + $0x3b0] sm:$0xff]  ;;  %1306 = vst [vmem:[%s10489_s26 + $0x1c8] sm:$0xff] %v1305_v57 }
  0x33   : > { %1308 = vst [vmem:[%s10489_s26 + $0x1d0] sm:$0xff] %v1307_v58  ;;  %1310 = vst [vmem:[%s10489_s26 + $0x1d8] sm:$0xff] %v1309_v59  ;;  %v1311_v60 = vld [vmem:[%s10484_s25 + $0x3c0] sm:$0xff]  ;;  %v1313_v61 = vld [vmem:[%s10484_s25 + $0x3d0] sm:$0xff] }
  0x34   : > { %v1315_v62 = vld [vmem:[%s10484_s25 + $0x3e0] sm:$0xff]  ;;  %1312 = vst [vmem:[%s10489_s26 + $0x1e0] sm:$0xff] %v1311_v60  ;;  %1314 = vst [vmem:[%s10489_s26 + $0x1e8] sm:$0xff] %v1313_v61  ;;  %v1317_v63 = vld [vmem:[%s10484_s25 + $0x3f0] sm:$0xff] }
  0x35   : > { %1316 = vst [vmem:[%s10489_s26 + $0x1f0] sm:$0xff] %v1315_v62  ;;  %v1319_v0 = vld [vmem:[%s10484_s25 + $0x400] sm:$0xff]  ;;  %v1321_v1 = vld [vmem:[%s10484_s25 + $0x410] sm:$0xff]  ;;  %1318 = vst [vmem:[%s10489_s26 + $0x1f8] sm:$0xff] %v1317_v63 }
  0x36   : > { %1320 = vst [vmem:[%s10489_s26 + $0x200] sm:$0xff] %v1319_v0  ;;  %1322 = vst [vmem:[%s10489_s26 + $0x208] sm:$0xff] %v1321_v1  ;;  %v1323_v2 = vld [vmem:[%s10484_s25 + $0x420] sm:$0xff]  ;;  %v1325_v3 = vld [vmem:[%s10484_s25 + $0x430] sm:$0xff] }
  0x37   : > { %v1327_v4 = vld [vmem:[%s10484_s25 + $0x440] sm:$0xff]  ;;  %1324 = vst [vmem:[%s10489_s26 + $0x210] sm:$0xff] %v1323_v2  ;;  %1326 = vst [vmem:[%s10489_s26 + $0x218] sm:$0xff] %v1325_v3  ;;  %v1329_v5 = vld [vmem:[%s10484_s25 + $0x450] sm:$0xff] }
  0x38   : > { %1328 = vst [vmem:[%s10489_s26 + $0x220] sm:$0xff] %v1327_v4  ;;  %v1331_v6 = vld [vmem:[%s10484_s25 + $0x460] sm:$0xff]  ;;  %v1333_v7 = vld [vmem:[%s10484_s25 + $0x470] sm:$0xff]  ;;  %1330 = vst [vmem:[%s10489_s26 + $0x228] sm:$0xff] %v1329_v5 }
  0x39   : > { %1332 = vst [vmem:[%s10489_s26 + $0x230] sm:$0xff] %v1331_v6  ;;  %1334 = vst [vmem:[%s10489_s26 + $0x238] sm:$0xff] %v1333_v7  ;;  %v1335_v8 = vld [vmem:[%s10484_s25 + $0x480] sm:$0xff]  ;;  %v1337_v9 = vld [vmem:[%s10484_s25 + $0x490] sm:$0xff] }
  0x3a   : > { %v1339_v10 = vld [vmem:[%s10484_s25 + $0x4a0] sm:$0xff]  ;;  %1336 = vst [vmem:[%s10489_s26 + $0x240] sm:$0xff] %v1335_v8  ;;  %1338 = vst [vmem:[%s10489_s26 + $0x248] sm:$0xff] %v1337_v9  ;;  %v1341_v11 = vld [vmem:[%s10484_s25 + $0x4b0] sm:$0xff] }
  0x3b   : > { %1340 = vst [vmem:[%s10489_s26 + $0x250] sm:$0xff] %v1339_v10  ;;  %v1343_v12 = vld [vmem:[%s10484_s25 + $0x4c0] sm:$0xff]  ;;  %v1345_v13 = vld [vmem:[%s10484_s25 + $0x4d0] sm:$0xff]  ;;  %1342 = vst [vmem:[%s10489_s26 + $0x258] sm:$0xff] %v1341_v11 }
  0x3c   : > { %1344 = vst [vmem:[%s10489_s26 + $0x260] sm:$0xff] %v1343_v12  ;;  %1346 = vst [vmem:[%s10489_s26 + $0x268] sm:$0xff] %v1345_v13  ;;  %v1347_v14 = vld [vmem:[%s10484_s25 + $0x4e0] sm:$0xff]  ;;  %v1349_v15 = vld [vmem:[%s10484_s25 + $0x4f0] sm:$0xff] }
  0x3d   : > { %v1351_v16 = vld [vmem:[%s10484_s25 + $0x500] sm:$0xff]  ;;  %1348 = vst [vmem:[%s10489_s26 + $0x270] sm:$0xff] %v1347_v14  ;;  %1350 = vst [vmem:[%s10489_s26 + $0x278] sm:$0xff] %v1349_v15  ;;  %v1353_v17 = vld [vmem:[%s10484_s25 + $0x510] sm:$0xff] }
  0x3e   : > { %1352 = vst [vmem:[%s10489_s26 + $0x280] sm:$0xff] %v1351_v16  ;;  %v1355_v18 = vld [vmem:[%s10484_s25 + $0x520] sm:$0xff]  ;;  %v1357_v19 = vld [vmem:[%s10484_s25 + $0x530] sm:$0xff]  ;;  %1354 = vst [vmem:[%s10489_s26 + $0x288] sm:$0xff] %v1353_v17 }
  0x3f   : > { %1356 = vst [vmem:[%s10489_s26 + $0x290] sm:$0xff] %v1355_v18  ;;  %1358 = vst [vmem:[%s10489_s26 + $0x298] sm:$0xff] %v1357_v19  ;;  %v1359_v20 = vld [vmem:[%s10484_s25 + $0x540] sm:$0xff]  ;;  %v1361_v21 = vld [vmem:[%s10484_s25 + $0x550] sm:$0xff] }
  0x40   : > { %v1363_v22 = vld [vmem:[%s10484_s25 + $0x560] sm:$0xff]  ;;  %1360 = vst [vmem:[%s10489_s26 + $0x2a0] sm:$0xff] %v1359_v20  ;;  %1362 = vst [vmem:[%s10489_s26 + $0x2a8] sm:$0xff] %v1361_v21  ;;  %v1365_v23 = vld [vmem:[%s10484_s25 + $0x570] sm:$0xff] }
  0x41   : > { %1364 = vst [vmem:[%s10489_s26 + $0x2b0] sm:$0xff] %v1363_v22  ;;  %v1367_v24 = vld [vmem:[%s10484_s25 + $0x580] sm:$0xff]  ;;  %v1369_v25 = vld [vmem:[%s10484_s25 + $0x590] sm:$0xff]  ;;  %1366 = vst [vmem:[%s10489_s26 + $0x2b8] sm:$0xff] %v1365_v23 }
  0x42   : > { %1368 = vst [vmem:[%s10489_s26 + $0x2c0] sm:$0xff] %v1367_v24  ;;  %1370 = vst [vmem:[%s10489_s26 + $0x2c8] sm:$0xff] %v1369_v25  ;;  %v1371_v26 = vld [vmem:[%s10484_s25 + $0x5a0] sm:$0xff]  ;;  %v1373_v27 = vld [vmem:[%s10484_s25 + $0x5b0] sm:$0xff] }
  0x43   : > { %v1375_v28 = vld [vmem:[%s10484_s25 + $0x5c0] sm:$0xff]  ;;  %1372 = vst [vmem:[%s10489_s26 + $0x2d0] sm:$0xff] %v1371_v26  ;;  %1374 = vst [vmem:[%s10489_s26 + $0x2d8] sm:$0xff] %v1373_v27  ;;  %v1377_v29 = vld [vmem:[%s10484_s25 + $0x5d0] sm:$0xff] }
  0x44   : > { %1376 = vst [vmem:[%s10489_s26 + $0x2e0] sm:$0xff] %v1375_v28  ;;  %v1379_v30 = vld [vmem:[%s10484_s25 + $0x5e0] sm:$0xff]  ;;  %v1381_v31 = vld [vmem:[%s10484_s25 + $0x5f0] sm:$0xff]  ;;  %1378 = vst [vmem:[%s10489_s26 + $0x2e8] sm:$0xff] %v1377_v29 }
  0x45   : > { %1380 = vst [vmem:[%s10489_s26 + $0x2f0] sm:$0xff] %v1379_v30  ;;  %1382 = vst [vmem:[%s10489_s26 + $0x2f8] sm:$0xff] %v1381_v31  ;;  %v1383_v32 = vld [vmem:[%s10484_s25 + $0x600] sm:$0xff]  ;;  %v1385_v33 = vld [vmem:[%s10484_s25 + $0x610] sm:$0xff] }
  0x46   : > { %v1387_v34 = vld [vmem:[%s10484_s25 + $0x620] sm:$0xff]  ;;  %1384 = vst [vmem:[%s10489_s26 + $0x300] sm:$0xff] %v1383_v32  ;;  %1386 = vst [vmem:[%s10489_s26 + $0x308] sm:$0xff] %v1385_v33  ;;  %v1389_v35 = vld [vmem:[%s10484_s25 + $0x630] sm:$0xff] }
  0x47   : > { %1388 = vst [vmem:[%s10489_s26 + $0x310] sm:$0xff] %v1387_v34  ;;  %v1391_v36 = vld [vmem:[%s10484_s25 + $0x640] sm:$0xff]  ;;  %v1393_v37 = vld [vmem:[%s10484_s25 + $0x650] sm:$0xff]  ;;  %1390 = vst [vmem:[%s10489_s26 + $0x318] sm:$0xff] %v1389_v35 }
  0x48   : > { %1392 = vst [vmem:[%s10489_s26 + $0x320] sm:$0xff] %v1391_v36  ;;  %1394 = vst [vmem:[%s10489_s26 + $0x328] sm:$0xff] %v1393_v37  ;;  %v1395_v38 = vld [vmem:[%s10484_s25 + $0x660] sm:$0xff]  ;;  %v1397_v39 = vld [vmem:[%s10484_s25 + $0x670] sm:$0xff] }
  0x49   : > { %v1399_v40 = vld [vmem:[%s10484_s25 + $0x680] sm:$0xff]  ;;  %1396 = vst [vmem:[%s10489_s26 + $0x330] sm:$0xff] %v1395_v38  ;;  %1398 = vst [vmem:[%s10489_s26 + $0x338] sm:$0xff] %v1397_v39  ;;  %v1401_v41 = vld [vmem:[%s10484_s25 + $0x690] sm:$0xff] }
  0x4a   : > { %1400 = vst [vmem:[%s10489_s26 + $0x340] sm:$0xff] %v1399_v40  ;;  %v1403_v42 = vld [vmem:[%s10484_s25 + $0x6a0] sm:$0xff]  ;;  %v1405_v43 = vld [vmem:[%s10484_s25 + $0x6b0] sm:$0xff]  ;;  %1402 = vst [vmem:[%s10489_s26 + $0x348] sm:$0xff] %v1401_v41 }
  0x4b   : > { %1404 = vst [vmem:[%s10489_s26 + $0x350] sm:$0xff] %v1403_v42  ;;  %1406 = vst [vmem:[%s10489_s26 + $0x358] sm:$0xff] %v1405_v43  ;;  %v1407_v44 = vld [vmem:[%s10484_s25 + $0x6c0] sm:$0xff]  ;;  %v1409_v45 = vld [vmem:[%s10484_s25 + $0x6d0] sm:$0xff] }
  0x4c   : > { %v1411_v46 = vld [vmem:[%s10484_s25 + $0x6e0] sm:$0xff]  ;;  %1408 = vst [vmem:[%s10489_s26 + $0x360] sm:$0xff] %v1407_v44  ;;  %1410 = vst [vmem:[%s10489_s26 + $0x368] sm:$0xff] %v1409_v45  ;;  %v1413_v47 = vld [vmem:[%s10484_s25 + $0x6f0] sm:$0xff] }
  0x4d   : > { %1412 = vst [vmem:[%s10489_s26 + $0x370] sm:$0xff] %v1411_v46  ;;  %v1415_v48 = vld [vmem:[%s10484_s25 + $0x700] sm:$0xff]  ;;  %v1417_v49 = vld [vmem:[%s10484_s25 + $0x710] sm:$0xff]  ;;  %1414 = vst [vmem:[%s10489_s26 + $0x378] sm:$0xff] %v1413_v47 }
  0x4e   : > { %1416 = vst [vmem:[%s10489_s26 + $0x380] sm:$0xff] %v1415_v48  ;;  %1418 = vst [vmem:[%s10489_s26 + $0x388] sm:$0xff] %v1417_v49  ;;  %v1419_v50 = vld [vmem:[%s10484_s25 + $0x720] sm:$0xff]  ;;  %v1421_v51 = vld [vmem:[%s10484_s25 + $0x730] sm:$0xff] }
  0x4f   : > { %v1423_v52 = vld [vmem:[%s10484_s25 + $0x740] sm:$0xff]  ;;  %1420 = vst [vmem:[%s10489_s26 + $0x390] sm:$0xff] %v1419_v50  ;;  %1422 = vst [vmem:[%s10489_s26 + $0x398] sm:$0xff] %v1421_v51  ;;  %v1425_v53 = vld [vmem:[%s10484_s25 + $0x750] sm:$0xff] }
  0x50   : > { %1424 = vst [vmem:[%s10489_s26 + $0x3a0] sm:$0xff] %v1423_v52  ;;  %v1427_v54 = vld [vmem:[%s10484_s25 + $0x760] sm:$0xff]  ;;  %v1429_v55 = vld [vmem:[%s10484_s25 + $0x770] sm:$0xff]  ;;  %1426 = vst [vmem:[%s10489_s26 + $0x3a8] sm:$0xff] %v1425_v53 }
  0x51   : > { %1428 = vst [vmem:[%s10489_s26 + $0x3b0] sm:$0xff] %v1427_v54  ;;  %1430 = vst [vmem:[%s10489_s26 + $0x3b8] sm:$0xff] %v1429_v55  ;;  %v1431_v56 = vld [vmem:[%s10484_s25 + $0x780] sm:$0xff]  ;;  %v1433_v57 = vld [vmem:[%s10484_s25 + $0x790] sm:$0xff] }
  0x52   : > { %v1435_v58 = vld [vmem:[%s10484_s25 + $0x7a0] sm:$0xff]  ;;  %1432 = vst [vmem:[%s10489_s26 + $0x3c0] sm:$0xff] %v1431_v56  ;;  %1434 = vst [vmem:[%s10489_s26 + $0x3c8] sm:$0xff] %v1433_v57  ;;  %v1437_v59 = vld [vmem:[%s10484_s25 + $0x7b0] sm:$0xff] }
  0x53   : > { %1436 = vst [vmem:[%s10489_s26 + $0x3d0] sm:$0xff] %v1435_v58  ;;  %v1439_v60 = vld [vmem:[%s10484_s25 + $0x7c0] sm:$0xff]  ;;  %v1441_v61 = vld [vmem:[%s10484_s25 + $0x7d0] sm:$0xff]  ;;  %1438 = vst [vmem:[%s10489_s26 + $0x3d8] sm:$0xff] %v1437_v59 }
  0x54   : > { %1440 = vst [vmem:[%s10489_s26 + $0x3e0] sm:$0xff] %v1439_v60  ;;  %1442 = vst [vmem:[%s10489_s26 + $0x3e8] sm:$0xff] %v1441_v61  ;;  %v1443_v62 = vld [vmem:[%s10484_s25 + $0x7e0] sm:$0xff]  ;;  %v1445_v63 = vld [vmem:[%s10484_s25 + $0x7f0] sm:$0xff] }
  0x55   : > { %v1447_v0 = vld [vmem:[%s10484_s25 + $0x800] sm:$0xff]  ;;  %1444 = vst [vmem:[%s10489_s26 + $0x3f0] sm:$0xff] %v1443_v62  ;;  %1446 = vst [vmem:[%s10489_s26 + $0x3f8] sm:$0xff] %v1445_v63  ;;  %v1449_v1 = vld [vmem:[%s10484_s25 + $0x810] sm:$0xff] }
  0x56   : > { %1448 = vst [vmem:[%s10489_s26 + $0x400] sm:$0xff] %v1447_v0  ;;  %v1451_v2 = vld [vmem:[%s10484_s25 + $0x820] sm:$0xff]  ;;  %v1453_v3 = vld [vmem:[%s10484_s25 + $0x830] sm:$0xff]  ;;  %1450 = vst [vmem:[%s10489_s26 + $0x408] sm:$0xff] %v1449_v1 }
  0x57   : > { %1452 = vst [vmem:[%s10489_s26 + $0x410] sm:$0xff] %v1451_v2  ;;  %1454 = vst [vmem:[%s10489_s26 + $0x418] sm:$0xff] %v1453_v3  ;;  %v1455_v4 = vld [vmem:[%s10484_s25 + $0x840] sm:$0xff]  ;;  %v1457_v5 = vld [vmem:[%s10484_s25 + $0x850] sm:$0xff] }
  0x58   : > { %v1459_v6 = vld [vmem:[%s10484_s25 + $0x860] sm:$0xff]  ;;  %1456 = vst [vmem:[%s10489_s26 + $0x420] sm:$0xff] %v1455_v4  ;;  %1458 = vst [vmem:[%s10489_s26 + $0x428] sm:$0xff] %v1457_v5  ;;  %v1461_v7 = vld [vmem:[%s10484_s25 + $0x870] sm:$0xff] }
  0x59   : > { %1460 = vst [vmem:[%s10489_s26 + $0x430] sm:$0xff] %v1459_v6  ;;  %v1463_v8 = vld [vmem:[%s10484_s25 + $0x880] sm:$0xff]  ;;  %v1465_v9 = vld [vmem:[%s10484_s25 + $0x890] sm:$0xff]  ;;  %1462 = vst [vmem:[%s10489_s26 + $0x438] sm:$0xff] %v1461_v7 }
  0x5a   : > { %1464 = vst [vmem:[%s10489_s26 + $0x440] sm:$0xff] %v1463_v8  ;;  %1466 = vst [vmem:[%s10489_s26 + $0x448] sm:$0xff] %v1465_v9  ;;  %v1467_v10 = vld [vmem:[%s10484_s25 + $0x8a0] sm:$0xff]  ;;  %v1469_v11 = vld [vmem:[%s10484_s25 + $0x8b0] sm:$0xff] }
  0x5b   : > { %v1471_v12 = vld [vmem:[%s10484_s25 + $0x8c0] sm:$0xff]  ;;  %1468 = vst [vmem:[%s10489_s26 + $0x450] sm:$0xff] %v1467_v10  ;;  %1470 = vst [vmem:[%s10489_s26 + $0x458] sm:$0xff] %v1469_v11  ;;  %v1473_v13 = vld [vmem:[%s10484_s25 + $0x8d0] sm:$0xff] }
  0x5c   : > { %1472 = vst [vmem:[%s10489_s26 + $0x460] sm:$0xff] %v1471_v12  ;;  %v1475_v14 = vld [vmem:[%s10484_s25 + $0x8e0] sm:$0xff]  ;;  %v1477_v15 = vld [vmem:[%s10484_s25 + $0x8f0] sm:$0xff]  ;;  %1474 = vst [vmem:[%s10489_s26 + $0x468] sm:$0xff] %v1473_v13 }
  0x5d   : > { %1476 = vst [vmem:[%s10489_s26 + $0x470] sm:$0xff] %v1475_v14  ;;  %1478 = vst [vmem:[%s10489_s26 + $0x478] sm:$0xff] %v1477_v15  ;;  %v1479_v16 = vld [vmem:[%s10484_s25 + $0x900] sm:$0xff]  ;;  %v1481_v17 = vld [vmem:[%s10484_s25 + $0x910] sm:$0xff] }
  0x5e   : > { %v1483_v18 = vld [vmem:[%s10484_s25 + $0x920] sm:$0xff]  ;;  %1480 = vst [vmem:[%s10489_s26 + $0x480] sm:$0xff] %v1479_v16  ;;  %1482 = vst [vmem:[%s10489_s26 + $0x488] sm:$0xff] %v1481_v17  ;;  %v1485_v19 = vld [vmem:[%s10484_s25 + $0x930] sm:$0xff] }
  0x5f   : > { %1484 = vst [vmem:[%s10489_s26 + $0x490] sm:$0xff] %v1483_v18  ;;  %v1487_v20 = vld [vmem:[%s10484_s25 + $0x940] sm:$0xff]  ;;  %v1489_v21 = vld [vmem:[%s10484_s25 + $0x950] sm:$0xff]  ;;  %1486 = vst [vmem:[%s10489_s26 + $0x498] sm:$0xff] %v1485_v19 }
  0x60   : > { %1488 = vst [vmem:[%s10489_s26 + $0x4a0] sm:$0xff] %v1487_v20  ;;  %1490 = vst [vmem:[%s10489_s26 + $0x4a8] sm:$0xff] %v1489_v21  ;;  %v1491_v22 = vld [vmem:[%s10484_s25 + $0x960] sm:$0xff]  ;;  %v1493_v23 = vld [vmem:[%s10484_s25 + $0x970] sm:$0xff] }
  0x61   : > { %v1495_v24 = vld [vmem:[%s10484_s25 + $0x980] sm:$0xff]  ;;  %1492 = vst [vmem:[%s10489_s26 + $0x4b0] sm:$0xff] %v1491_v22  ;;  %1494 = vst [vmem:[%s10489_s26 + $0x4b8] sm:$0xff] %v1493_v23  ;;  %v1497_v25 = vld [vmem:[%s10484_s25 + $0x990] sm:$0xff] }
  0x62   : > { %1496 = vst [vmem:[%s10489_s26 + $0x4c0] sm:$0xff] %v1495_v24  ;;  %v1499_v26 = vld [vmem:[%s10484_s25 + $0x9a0] sm:$0xff]  ;;  %v1501_v27 = vld [vmem:[%s10484_s25 + $0x9b0] sm:$0xff]  ;;  %1498 = vst [vmem:[%s10489_s26 + $0x4c8] sm:$0xff] %v1497_v25 }
  0x63   : > { %1500 = vst [vmem:[%s10489_s26 + $0x4d0] sm:$0xff] %v1499_v26  ;;  %1502 = vst [vmem:[%s10489_s26 + $0x4d8] sm:$0xff] %v1501_v27  ;;  %v1503_v28 = vld [vmem:[%s10484_s25 + $0x9c0] sm:$0xff]  ;;  %v1505_v29 = vld [vmem:[%s10484_s25 + $0x9d0] sm:$0xff] }
  0x64   : > { %v1507_v30 = vld [vmem:[%s10484_s25 + $0x9e0] sm:$0xff]  ;;  %1504 = vst [vmem:[%s10489_s26 + $0x4e0] sm:$0xff] %v1503_v28  ;;  %1506 = vst [vmem:[%s10489_s26 + $0x4e8] sm:$0xff] %v1505_v29  ;;  %v1509_v31 = vld [vmem:[%s10484_s25 + $0x9f0] sm:$0xff] }
  0x65   : > { %1508 = vst [vmem:[%s10489_s26 + $0x4f0] sm:$0xff] %v1507_v30  ;;  %v1511_v32 = vld [vmem:[%s10484_s25 + $0xa00] sm:$0xff]  ;;  %v1513_v33 = vld [vmem:[%s10484_s25 + $0xa10] sm:$0xff]  ;;  %1510 = vst [vmem:[%s10489_s26 + $0x4f8] sm:$0xff] %v1509_v31 }
  0x66   : > { %1512 = vst [vmem:[%s10489_s26 + $0x500] sm:$0xff] %v1511_v32  ;;  %1514 = vst [vmem:[%s10489_s26 + $0x508] sm:$0xff] %v1513_v33  ;;  %v1515_v34 = vld [vmem:[%s10484_s25 + $0xa20] sm:$0xff]  ;;  %v1517_v35 = vld [vmem:[%s10484_s25 + $0xa30] sm:$0xff] }
  0x67   : > { %v1519_v36 = vld [vmem:[%s10484_s25 + $0xa40] sm:$0xff]  ;;  %1516 = vst [vmem:[%s10489_s26 + $0x510] sm:$0xff] %v1515_v34  ;;  %1518 = vst [vmem:[%s10489_s26 + $0x518] sm:$0xff] %v1517_v35  ;;  %v1521_v37 = vld [vmem:[%s10484_s25 + $0xa50] sm:$0xff] }
  0x68   : > { %1520 = vst [vmem:[%s10489_s26 + $0x520] sm:$0xff] %v1519_v36  ;;  %v1523_v38 = vld [vmem:[%s10484_s25 + $0xa60] sm:$0xff]  ;;  %v1525_v39 = vld [vmem:[%s10484_s25 + $0xa70] sm:$0xff]  ;;  %1522 = vst [vmem:[%s10489_s26 + $0x528] sm:$0xff] %v1521_v37 }
  0x69   : > { %1524 = vst [vmem:[%s10489_s26 + $0x530] sm:$0xff] %v1523_v38  ;;  %1526 = vst [vmem:[%s10489_s26 + $0x538] sm:$0xff] %v1525_v39  ;;  %v1527_v40 = vld [vmem:[%s10484_s25 + $0xa80] sm:$0xff]  ;;  %v1529_v41 = vld [vmem:[%s10484_s25 + $0xa90] sm:$0xff] }
  0x6a   : > { %v1531_v42 = vld [vmem:[%s10484_s25 + $0xaa0] sm:$0xff]  ;;  %1528 = vst [vmem:[%s10489_s26 + $0x540] sm:$0xff] %v1527_v40  ;;  %1530 = vst [vmem:[%s10489_s26 + $0x548] sm:$0xff] %v1529_v41  ;;  %v1533_v43 = vld [vmem:[%s10484_s25 + $0xab0] sm:$0xff] }
  0x6b   : > { %1532 = vst [vmem:[%s10489_s26 + $0x550] sm:$0xff] %v1531_v42  ;;  %v1535_v44 = vld [vmem:[%s10484_s25 + $0xac0] sm:$0xff]  ;;  %v1537_v45 = vld [vmem:[%s10484_s25 + $0xad0] sm:$0xff]  ;;  %1534 = vst [vmem:[%s10489_s26 + $0x558] sm:$0xff] %v1533_v43 }
  0x6c   : > { %1536 = vst [vmem:[%s10489_s26 + $0x560] sm:$0xff] %v1535_v44  ;;  %1538 = vst [vmem:[%s10489_s26 + $0x568] sm:$0xff] %v1537_v45  ;;  %v1539_v46 = vld [vmem:[%s10484_s25 + $0xae0] sm:$0xff]  ;;  %v1541_v47 = vld [vmem:[%s10484_s25 + $0xaf0] sm:$0xff] }
  0x6d   : > { %v1543_v48 = vld [vmem:[%s10484_s25 + $0xb00] sm:$0xff]  ;;  %1540 = vst [vmem:[%s10489_s26 + $0x570] sm:$0xff] %v1539_v46  ;;  %1542 = vst [vmem:[%s10489_s26 + $0x578] sm:$0xff] %v1541_v47  ;;  %v1545_v49 = vld [vmem:[%s10484_s25 + $0xb10] sm:$0xff] }
  0x6e   : > { %1544 = vst [vmem:[%s10489_s26 + $0x580] sm:$0xff] %v1543_v48  ;;  %v1547_v50 = vld [vmem:[%s10484_s25 + $0xb20] sm:$0xff]  ;;  %v1549_v51 = vld [vmem:[%s10484_s25 + $0xb30] sm:$0xff]  ;;  %1546 = vst [vmem:[%s10489_s26 + $0x588] sm:$0xff] %v1545_v49 }
  0x6f   : > { %1548 = vst [vmem:[%s10489_s26 + $0x590] sm:$0xff] %v1547_v50  ;;  %1550 = vst [vmem:[%s10489_s26 + $0x598] sm:$0xff] %v1549_v51  ;;  %v1551_v52 = vld [vmem:[%s10484_s25 + $0xb40] sm:$0xff]  ;;  %v1553_v53 = vld [vmem:[%s10484_s25 + $0xb50] sm:$0xff] }
  0x70   : > { %v1555_v54 = vld [vmem:[%s10484_s25 + $0xb60] sm:$0xff]  ;;  %1552 = vst [vmem:[%s10489_s26 + $0x5a0] sm:$0xff] %v1551_v52  ;;  %1554 = vst [vmem:[%s10489_s26 + $0x5a8] sm:$0xff] %v1553_v53  ;;  %v1557_v55 = vld [vmem:[%s10484_s25 + $0xb70] sm:$0xff] }
  0x71   : > { %1556 = vst [vmem:[%s10489_s26 + $0x5b0] sm:$0xff] %v1555_v54  ;;  %v1559_v56 = vld [vmem:[%s10484_s25 + $0xb80] sm:$0xff]  ;;  %v1561_v57 = vld [vmem:[%s10484_s25 + $0xb90] sm:$0xff]  ;;  %1558 = vst [vmem:[%s10489_s26 + $0x5b8] sm:$0xff] %v1557_v55 }
  0x72   : > { %1560 = vst [vmem:[%s10489_s26 + $0x5c0] sm:$0xff] %v1559_v56  ;;  %1562 = vst [vmem:[%s10489_s26 + $0x5c8] sm:$0xff] %v1561_v57  ;;  %v1563_v58 = vld [vmem:[%s10484_s25 + $0xba0] sm:$0xff]  ;;  %v1565_v59 = vld [vmem:[%s10484_s25 + $0xbb0] sm:$0xff] }
  0x73   : > { %v1567_v60 = vld [vmem:[%s10484_s25 + $0xbc0] sm:$0xff]  ;;  %1564 = vst [vmem:[%s10489_s26 + $0x5d0] sm:$0xff] %v1563_v58  ;;  %1566 = vst [vmem:[%s10489_s26 + $0x5d8] sm:$0xff] %v1565_v59  ;;  %v1569_v61 = vld [vmem:[%s10484_s25 + $0xbd0] sm:$0xff] }
  0x74   : > { %1568 = vst [vmem:[%s10489_s26 + $0x5e0] sm:$0xff] %v1567_v60  ;;  %v1571_v62 = vld [vmem:[%s10484_s25 + $0xbe0] sm:$0xff]  ;;  %v1573_v63 = vld [vmem:[%s10484_s25 + $0xbf0] sm:$0xff]  ;;  %1570 = vst [vmem:[%s10489_s26 + $0x5e8] sm:$0xff] %v1569_v61 }
  0x75   : > { %1572 = vst [vmem:[%s10489_s26 + $0x5f0] sm:$0xff] %v1571_v62  ;;  %1574 = vst [vmem:[%s10489_s26 + $0x5f8] sm:$0xff] %v1573_v63  ;;  %v1575_v0 = vld [vmem:[%s10484_s25 + $0xc00] sm:$0xff]  ;;  %v1577_v1 = vld [vmem:[%s10484_s25 + $0xc10] sm:$0xff] }
  0x76   : > { %v1579_v2 = vld [vmem:[%s10484_s25 + $0xc20] sm:$0xff]  ;;  %1576 = vst [vmem:[%s10489_s26 + $0x600] sm:$0xff] %v1575_v0  ;;  %1578 = vst [vmem:[%s10489_s26 + $0x608] sm:$0xff] %v1577_v1  ;;  %v1581_v3 = vld [vmem:[%s10484_s25 + $0xc30] sm:$0xff] }
  0x77   : > { %1580 = vst [vmem:[%s10489_s26 + $0x610] sm:$0xff] %v1579_v2  ;;  %v1583_v4 = vld [vmem:[%s10484_s25 + $0xc40] sm:$0xff]  ;;  %v1585_v5 = vld [vmem:[%s10484_s25 + $0xc50] sm:$0xff]  ;;  %1582 = vst [vmem:[%s10489_s26 + $0x618] sm:$0xff] %v1581_v3 }
  0x78   : > { %1584 = vst [vmem:[%s10489_s26 + $0x620] sm:$0xff] %v1583_v4  ;;  %1586 = vst [vmem:[%s10489_s26 + $0x628] sm:$0xff] %v1585_v5  ;;  %v1587_v6 = vld [vmem:[%s10484_s25 + $0xc60] sm:$0xff]  ;;  %v1589_v7 = vld [vmem:[%s10484_s25 + $0xc70] sm:$0xff] }
  0x79   : > { %v1591_v8 = vld [vmem:[%s10484_s25 + $0xc80] sm:$0xff]  ;;  %1588 = vst [vmem:[%s10489_s26 + $0x630] sm:$0xff] %v1587_v6  ;;  %1590 = vst [vmem:[%s10489_s26 + $0x638] sm:$0xff] %v1589_v7  ;;  %v1593_v9 = vld [vmem:[%s10484_s25 + $0xc90] sm:$0xff] }
  0x7a   : > { %1592 = vst [vmem:[%s10489_s26 + $0x640] sm:$0xff] %v1591_v8  ;;  %v1595_v10 = vld [vmem:[%s10484_s25 + $0xca0] sm:$0xff]  ;;  %v1597_v11 = vld [vmem:[%s10484_s25 + $0xcb0] sm:$0xff]  ;;  %1594 = vst [vmem:[%s10489_s26 + $0x648] sm:$0xff] %v1593_v9 }
  0x7b   : > { %1596 = vst [vmem:[%s10489_s26 + $0x650] sm:$0xff] %v1595_v10  ;;  %1598 = vst [vmem:[%s10489_s26 + $0x658] sm:$0xff] %v1597_v11  ;;  %v1599_v12 = vld [vmem:[%s10484_s25 + $0xcc0] sm:$0xff]  ;;  %v1601_v13 = vld [vmem:[%s10484_s25 + $0xcd0] sm:$0xff] }
  0x7c   : > { %v1603_v14 = vld [vmem:[%s10484_s25 + $0xce0] sm:$0xff]  ;;  %1600 = vst [vmem:[%s10489_s26 + $0x660] sm:$0xff] %v1599_v12  ;;  %1602 = vst [vmem:[%s10489_s26 + $0x668] sm:$0xff] %v1601_v13  ;;  %v1605_v15 = vld [vmem:[%s10484_s25 + $0xcf0] sm:$0xff] }
  0x7d   : > { %1604 = vst [vmem:[%s10489_s26 + $0x670] sm:$0xff] %v1603_v14  ;;  %v1607_v16 = vld [vmem:[%s10484_s25 + $0xd00] sm:$0xff]  ;;  %v1609_v17 = vld [vmem:[%s10484_s25 + $0xd10] sm:$0xff]  ;;  %1606 = vst [vmem:[%s10489_s26 + $0x678] sm:$0xff] %v1605_v15 }
  0x7e   : > { %1608 = vst [vmem:[%s10489_s26 + $0x680] sm:$0xff] %v1607_v16  ;;  %1610 = vst [vmem:[%s10489_s26 + $0x688] sm:$0xff] %v1609_v17  ;;  %v1611_v18 = vld [vmem:[%s10484_s25 + $0xd20] sm:$0xff]  ;;  %v1613_v19 = vld [vmem:[%s10484_s25 + $0xd30] sm:$0xff] }
  0x7f   : > { %v1615_v20 = vld [vmem:[%s10484_s25 + $0xd40] sm:$0xff]  ;;  %1612 = vst [vmem:[%s10489_s26 + $0x690] sm:$0xff] %v1611_v18  ;;  %1614 = vst [vmem:[%s10489_s26 + $0x698] sm:$0xff] %v1613_v19  ;;  %v1617_v21 = vld [vmem:[%s10484_s25 + $0xd50] sm:$0xff] }
  0x80   : > { %1616 = vst [vmem:[%s10489_s26 + $0x6a0] sm:$0xff] %v1615_v20  ;;  %v1619_v22 = vld [vmem:[%s10484_s25 + $0xd60] sm:$0xff]  ;;  %v1621_v23 = vld [vmem:[%s10484_s25 + $0xd70] sm:$0xff]  ;;  %1618 = vst [vmem:[%s10489_s26 + $0x6a8] sm:$0xff] %v1617_v21 }
  0x81   : > { %1620 = vst [vmem:[%s10489_s26 + $0x6b0] sm:$0xff] %v1619_v22  ;;  %1622 = vst [vmem:[%s10489_s26 + $0x6b8] sm:$0xff] %v1621_v23  ;;  %v1623_v24 = vld [vmem:[%s10484_s25 + $0xd80] sm:$0xff]  ;;  %v1625_v25 = vld [vmem:[%s10484_s25 + $0xd90] sm:$0xff] }
  0x82   : > { %v1627_v26 = vld [vmem:[%s10484_s25 + $0xda0] sm:$0xff]  ;;  %1624 = vst [vmem:[%s10489_s26 + $0x6c0] sm:$0xff] %v1623_v24  ;;  %1626 = vst [vmem:[%s10489_s26 + $0x6c8] sm:$0xff] %v1625_v25  ;;  %v1629_v27 = vld [vmem:[%s10484_s25 + $0xdb0] sm:$0xff] }
  0x83   : > { %1628 = vst [vmem:[%s10489_s26 + $0x6d0] sm:$0xff] %v1627_v26  ;;  %v1631_v28 = vld [vmem:[%s10484_s25 + $0xdc0] sm:$0xff]  ;;  %v1633_v29 = vld [vmem:[%s10484_s25 + $0xdd0] sm:$0xff]  ;;  %1630 = vst [vmem:[%s10489_s26 + $0x6d8] sm:$0xff] %v1629_v27 }
  0x84   : > { %1632 = vst [vmem:[%s10489_s26 + $0x6e0] sm:$0xff] %v1631_v28  ;;  %1634 = vst [vmem:[%s10489_s26 + $0x6e8] sm:$0xff] %v1633_v29  ;;  %v1635_v30 = vld [vmem:[%s10484_s25 + $0xde0] sm:$0xff]  ;;  %v1637_v31 = vld [vmem:[%s10484_s25 + $0xdf0] sm:$0xff] }
  0x85   : > { %v1639_v32 = vld [vmem:[%s10484_s25 + $0xe00] sm:$0xff]  ;;  %1636 = vst [vmem:[%s10489_s26 + $0x6f0] sm:$0xff] %v1635_v30  ;;  %1638 = vst [vmem:[%s10489_s26 + $0x6f8] sm:$0xff] %v1637_v31  ;;  %v1641_v33 = vld [vmem:[%s10484_s25 + $0xe10] sm:$0xff] }
  0x86   : > { %1640 = vst [vmem:[%s10489_s26 + $0x700] sm:$0xff] %v1639_v32  ;;  %v1643_v34 = vld [vmem:[%s10484_s25 + $0xe20] sm:$0xff]  ;;  %v1645_v35 = vld [vmem:[%s10484_s25 + $0xe30] sm:$0xff]  ;;  %1642 = vst [vmem:[%s10489_s26 + $0x708] sm:$0xff] %v1641_v33 }
  0x87   : > { %1644 = vst [vmem:[%s10489_s26 + $0x710] sm:$0xff] %v1643_v34  ;;  %1646 = vst [vmem:[%s10489_s26 + $0x718] sm:$0xff] %v1645_v35  ;;  %v1647_v36 = vld [vmem:[%s10484_s25 + $0xe40] sm:$0xff]  ;;  %v1649_v37 = vld [vmem:[%s10484_s25 + $0xe50] sm:$0xff] }
  0x88   : > { %v1651_v38 = vld [vmem:[%s10484_s25 + $0xe60] sm:$0xff]  ;;  %1648 = vst [vmem:[%s10489_s26 + $0x720] sm:$0xff] %v1647_v36  ;;  %1650 = vst [vmem:[%s10489_s26 + $0x728] sm:$0xff] %v1649_v37  ;;  %v1653_v39 = vld [vmem:[%s10484_s25 + $0xe70] sm:$0xff] }
  0x89   : > { %1652 = vst [vmem:[%s10489_s26 + $0x730] sm:$0xff] %v1651_v38  ;;  %v1655_v40 = vld [vmem:[%s10484_s25 + $0xe80] sm:$0xff]  ;;  %v1657_v41 = vld [vmem:[%s10484_s25 + $0xe90] sm:$0xff]  ;;  %1654 = vst [vmem:[%s10489_s26 + $0x738] sm:$0xff] %v1653_v39 }
  0x8a   : > { %1656 = vst [vmem:[%s10489_s26 + $0x740] sm:$0xff] %v1655_v40  ;;  %1658 = vst [vmem:[%s10489_s26 + $0x748] sm:$0xff] %v1657_v41  ;;  %v1659_v42 = vld [vmem:[%s10484_s25 + $0xea0] sm:$0xff]  ;;  %v1661_v43 = vld [vmem:[%s10484_s25 + $0xeb0] sm:$0xff] }
  0x8b   : > { %v1663_v44 = vld [vmem:[%s10484_s25 + $0xec0] sm:$0xff]  ;;  %1660 = vst [vmem:[%s10489_s26 + $0x750] sm:$0xff] %v1659_v42  ;;  %1662 = vst [vmem:[%s10489_s26 + $0x758] sm:$0xff] %v1661_v43  ;;  %v1665_v45 = vld [vmem:[%s10484_s25 + $0xed0] sm:$0xff] }
  0x8c   : > { %1664 = vst [vmem:[%s10489_s26 + $0x760] sm:$0xff] %v1663_v44  ;;  %v1667_v46 = vld [vmem:[%s10484_s25 + $0xee0] sm:$0xff]  ;;  %v1669_v47 = vld [vmem:[%s10484_s25 + $0xef0] sm:$0xff]  ;;  %1666 = vst [vmem:[%s10489_s26 + $0x768] sm:$0xff] %v1665_v45 }
  0x8d   : > { %1668 = vst [vmem:[%s10489_s26 + $0x770] sm:$0xff] %v1667_v46  ;;  %1670 = vst [vmem:[%s10489_s26 + $0x778] sm:$0xff] %v1669_v47  ;;  %v1671_v48 = vld [vmem:[%s10484_s25 + $0xf00] sm:$0xff]  ;;  %v1673_v49 = vld [vmem:[%s10484_s25 + $0xf10] sm:$0xff] }
  0x8e   : > { %v1675_v50 = vld [vmem:[%s10484_s25 + $0xf20] sm:$0xff]  ;;  %1672 = vst [vmem:[%s10489_s26 + $0x780] sm:$0xff] %v1671_v48  ;;  %1674 = vst [vmem:[%s10489_s26 + $0x788] sm:$0xff] %v1673_v49  ;;  %v1677_v51 = vld [vmem:[%s10484_s25 + $0xf30] sm:$0xff] }
  0x8f   : > { %1676 = vst [vmem:[%s10489_s26 + $0x790] sm:$0xff] %v1675_v50  ;;  %v1679_v52 = vld [vmem:[%s10484_s25 + $0xf40] sm:$0xff]  ;;  %v1681_v53 = vld [vmem:[%s10484_s25 + $0xf50] sm:$0xff]  ;;  %1678 = vst [vmem:[%s10489_s26 + $0x798] sm:$0xff] %v1677_v51 }
  0x90   : > { %1680 = vst [vmem:[%s10489_s26 + $0x7a0] sm:$0xff] %v1679_v52  ;;  %1682 = vst [vmem:[%s10489_s26 + $0x7a8] sm:$0xff] %v1681_v53  ;;  %v1683_v54 = vld [vmem:[%s10484_s25 + $0xf60] sm:$0xff]  ;;  %v1685_v55 = vld [vmem:[%s10484_s25 + $0xf70] sm:$0xff] }
  0x91   : > { %v1687_v56 = vld [vmem:[%s10484_s25 + $0xf80] sm:$0xff]  ;;  %1684 = vst [vmem:[%s10489_s26 + $0x7b0] sm:$0xff] %v1683_v54  ;;  %1686 = vst [vmem:[%s10489_s26 + $0x7b8] sm:$0xff] %v1685_v55  ;;  %v1689_v57 = vld [vmem:[%s10484_s25 + $0xf90] sm:$0xff] }
  0x92   : > { %1688 = vst [vmem:[%s10489_s26 + $0x7c0] sm:$0xff] %v1687_v56  ;;  %v1691_v58 = vld [vmem:[%s10484_s25 + $0xfa0] sm:$0xff]  ;;  %v1693_v59 = vld [vmem:[%s10484_s25 + $0xfb0] sm:$0xff]  ;;  %1690 = vst [vmem:[%s10489_s26 + $0x7c8] sm:$0xff] %v1689_v57 }
  0x93   : > { %1692 = vst [vmem:[%s10489_s26 + $0x7d0] sm:$0xff] %v1691_v58  ;;  %1694 = vst [vmem:[%s10489_s26 + $0x7d8] sm:$0xff] %v1693_v59  ;;  %v1695_v60 = vld [vmem:[%s10484_s25 + $0xfc0] sm:$0xff]  ;;  %v1697_v61 = vld [vmem:[%s10484_s25 + $0xfd0] sm:$0xff] }
  0x94   : > { %v1699_v62 = vld [vmem:[%s10484_s25 + $0xfe0] sm:$0xff]  ;;  %1696 = vst [vmem:[%s10489_s26 + $0x7e0] sm:$0xff] %v1695_v60  ;;  %1698 = vst [vmem:[%s10489_s26 + $0x7e8] sm:$0xff] %v1697_v61  ;;  %v1701_v63 = vld [vmem:[%s10484_s25 + $0xff0] sm:$0xff] }
  0x95   : > { %1700 = vst [vmem:[%s10489_s26 + $0x7f0] sm:$0xff] %v1699_v62  ;;  %v1703_v0 = vld [vmem:[%s10484_s25 + $0x1000] sm:$0xff]  ;;  %v1705_v1 = vld [vmem:[%s10484_s25 + $0x1010] sm:$0xff]  ;;  %1702 = vst [vmem:[%s10489_s26 + $0x7f8] sm:$0xff] %v1701_v63 }
  0x96   : > { %1704 = vst [vmem:[%s10489_s26 + $0x800] sm:$0xff] %v1703_v0  ;;  %1706 = vst [vmem:[%s10489_s26 + $0x808] sm:$0xff] %v1705_v1  ;;  %v1707_v2 = vld [vmem:[%s10484_s25 + $0x1020] sm:$0xff]  ;;  %v1709_v3 = vld [vmem:[%s10484_s25 + $0x1030] sm:$0xff] }
  0x97   : > { %v1711_v4 = vld [vmem:[%s10484_s25 + $0x1040] sm:$0xff]  ;;  %1708 = vst [vmem:[%s10489_s26 + $0x810] sm:$0xff] %v1707_v2  ;;  %1710 = vst [vmem:[%s10489_s26 + $0x818] sm:$0xff] %v1709_v3  ;;  %v1713_v5 = vld [vmem:[%s10484_s25 + $0x1050] sm:$0xff] }
  0x98   : > { %1712 = vst [vmem:[%s10489_s26 + $0x820] sm:$0xff] %v1711_v4  ;;  %v1715_v6 = vld [vmem:[%s10484_s25 + $0x1060] sm:$0xff]  ;;  %v1717_v7 = vld [vmem:[%s10484_s25 + $0x1070] sm:$0xff]  ;;  %1714 = vst [vmem:[%s10489_s26 + $0x828] sm:$0xff] %v1713_v5 }
  0x99   : > { %1716 = vst [vmem:[%s10489_s26 + $0x830] sm:$0xff] %v1715_v6  ;;  %1718 = vst [vmem:[%s10489_s26 + $0x838] sm:$0xff] %v1717_v7  ;;  %v1719_v8 = vld [vmem:[%s10484_s25 + $0x1080] sm:$0xff]  ;;  %v1721_v9 = vld [vmem:[%s10484_s25 + $0x1090] sm:$0xff] }
  0x9a   : > { %v1723_v10 = vld [vmem:[%s10484_s25 + $0x10a0] sm:$0xff]  ;;  %1720 = vst [vmem:[%s10489_s26 + $0x840] sm:$0xff] %v1719_v8  ;;  %1722 = vst [vmem:[%s10489_s26 + $0x848] sm:$0xff] %v1721_v9  ;;  %v1725_v11 = vld [vmem:[%s10484_s25 + $0x10b0] sm:$0xff] }
  0x9b   : > { %1724 = vst [vmem:[%s10489_s26 + $0x850] sm:$0xff] %v1723_v10  ;;  %v1727_v12 = vld [vmem:[%s10484_s25 + $0x10c0] sm:$0xff]  ;;  %v1729_v13 = vld [vmem:[%s10484_s25 + $0x10d0] sm:$0xff]  ;;  %1726 = vst [vmem:[%s10489_s26 + $0x858] sm:$0xff] %v1725_v11 }
  0x9c   : > { %1728 = vst [vmem:[%s10489_s26 + $0x860] sm:$0xff] %v1727_v12  ;;  %1730 = vst [vmem:[%s10489_s26 + $0x868] sm:$0xff] %v1729_v13  ;;  %v1731_v14 = vld [vmem:[%s10484_s25 + $0x10e0] sm:$0xff]  ;;  %v1733_v15 = vld [vmem:[%s10484_s25 + $0x10f0] sm:$0xff] }
  0x9d   : > { %v1735_v16 = vld [vmem:[%s10484_s25 + $0x1100] sm:$0xff]  ;;  %1732 = vst [vmem:[%s10489_s26 + $0x870] sm:$0xff] %v1731_v14  ;;  %1734 = vst [vmem:[%s10489_s26 + $0x878] sm:$0xff] %v1733_v15  ;;  %v1737_v17 = vld [vmem:[%s10484_s25 + $0x1110] sm:$0xff] }
  0x9e   : > { %1736 = vst [vmem:[%s10489_s26 + $0x880] sm:$0xff] %v1735_v16  ;;  %v1739_v18 = vld [vmem:[%s10484_s25 + $0x1120] sm:$0xff]  ;;  %v1741_v19 = vld [vmem:[%s10484_s25 + $0x1130] sm:$0xff]  ;;  %1738 = vst [vmem:[%s10489_s26 + $0x888] sm:$0xff] %v1737_v17 }
  0x9f   : > { %1740 = vst [vmem:[%s10489_s26 + $0x890] sm:$0xff] %v1739_v18  ;;  %1742 = vst [vmem:[%s10489_s26 + $0x898] sm:$0xff] %v1741_v19  ;;  %v1743_v20 = vld [vmem:[%s10484_s25 + $0x1140] sm:$0xff]  ;;  %v1745_v21 = vld [vmem:[%s10484_s25 + $0x1150] sm:$0xff] }
  0xa0   : > { %v1747_v22 = vld [vmem:[%s10484_s25 + $0x1160] sm:$0xff]  ;;  %1744 = vst [vmem:[%s10489_s26 + $0x8a0] sm:$0xff] %v1743_v20  ;;  %1746 = vst [vmem:[%s10489_s26 + $0x8a8] sm:$0xff] %v1745_v21  ;;  %v1749_v23 = vld [vmem:[%s10484_s25 + $0x1170] sm:$0xff] }
  0xa1   : > { %1748 = vst [vmem:[%s10489_s26 + $0x8b0] sm:$0xff] %v1747_v22  ;;  %v1751_v24 = vld [vmem:[%s10484_s25 + $0x1180] sm:$0xff]  ;;  %v1753_v25 = vld [vmem:[%s10484_s25 + $0x1190] sm:$0xff]  ;;  %1750 = vst [vmem:[%s10489_s26 + $0x8b8] sm:$0xff] %v1749_v23 }
  0xa2   : > { %1752 = vst [vmem:[%s10489_s26 + $0x8c0] sm:$0xff] %v1751_v24  ;;  %1754 = vst [vmem:[%s10489_s26 + $0x8c8] sm:$0xff] %v1753_v25  ;;  %v1755_v26 = vld [vmem:[%s10484_s25 + $0x11a0] sm:$0xff]  ;;  %v1757_v27 = vld [vmem:[%s10484_s25 + $0x11b0] sm:$0xff] }
  0xa3   : > { %v1759_v28 = vld [vmem:[%s10484_s25 + $0x11c0] sm:$0xff]  ;;  %1756 = vst [vmem:[%s10489_s26 + $0x8d0] sm:$0xff] %v1755_v26  ;;  %1758 = vst [vmem:[%s10489_s26 + $0x8d8] sm:$0xff] %v1757_v27  ;;  %v1761_v29 = vld [vmem:[%s10484_s25 + $0x11d0] sm:$0xff] }
  0xa4   : > { %1760 = vst [vmem:[%s10489_s26 + $0x8e0] sm:$0xff] %v1759_v28  ;;  %v1763_v30 = vld [vmem:[%s10484_s25 + $0x11e0] sm:$0xff]  ;;  %v1765_v31 = vld [vmem:[%s10484_s25 + $0x11f0] sm:$0xff]  ;;  %1762 = vst [vmem:[%s10489_s26 + $0x8e8] sm:$0xff] %v1761_v29 }
  0xa5   : > { %1764 = vst [vmem:[%s10489_s26 + $0x8f0] sm:$0xff] %v1763_v30  ;;  %1766 = vst [vmem:[%s10489_s26 + $0x8f8] sm:$0xff] %v1765_v31  ;;  %v1767_v32 = vld [vmem:[%s10484_s25 + $0x1200] sm:$0xff]  ;;  %v1769_v33 = vld [vmem:[%s10484_s25 + $0x1210] sm:$0xff] }
  0xa6   : > { %v1771_v34 = vld [vmem:[%s10484_s25 + $0x1220] sm:$0xff]  ;;  %1768 = vst [vmem:[%s10489_s26 + $0x900] sm:$0xff] %v1767_v32  ;;  %1770 = vst [vmem:[%s10489_s26 + $0x908] sm:$0xff] %v1769_v33  ;;  %v1773_v35 = vld [vmem:[%s10484_s25 + $0x1230] sm:$0xff] }
  0xa7   : > { %1772 = vst [vmem:[%s10489_s26 + $0x910] sm:$0xff] %v1771_v34  ;;  %v1775_v36 = vld [vmem:[%s10484_s25 + $0x1240] sm:$0xff]  ;;  %v1777_v37 = vld [vmem:[%s10484_s25 + $0x1250] sm:$0xff]  ;;  %1774 = vst [vmem:[%s10489_s26 + $0x918] sm:$0xff] %v1773_v35 }
  0xa8   : > { %1776 = vst [vmem:[%s10489_s26 + $0x920] sm:$0xff] %v1775_v36  ;;  %1778 = vst [vmem:[%s10489_s26 + $0x928] sm:$0xff] %v1777_v37  ;;  %v1779_v38 = vld [vmem:[%s10484_s25 + $0x1260] sm:$0xff]  ;;  %v1781_v39 = vld [vmem:[%s10484_s25 + $0x1270] sm:$0xff] }
  0xa9   : > { %v1783_v40 = vld [vmem:[%s10484_s25 + $0x1280] sm:$0xff]  ;;  %1780 = vst [vmem:[%s10489_s26 + $0x930] sm:$0xff] %v1779_v38  ;;  %1782 = vst [vmem:[%s10489_s26 + $0x938] sm:$0xff] %v1781_v39  ;;  %v1785_v41 = vld [vmem:[%s10484_s25 + $0x1290] sm:$0xff] }
  0xaa   : > { %1784 = vst [vmem:[%s10489_s26 + $0x940] sm:$0xff] %v1783_v40  ;;  %v1787_v42 = vld [vmem:[%s10484_s25 + $0x12a0] sm:$0xff]  ;;  %v1789_v43 = vld [vmem:[%s10484_s25 + $0x12b0] sm:$0xff]  ;;  %1786 = vst [vmem:[%s10489_s26 + $0x948] sm:$0xff] %v1785_v41 }
  0xab   : > { %1788 = vst [vmem:[%s10489_s26 + $0x950] sm:$0xff] %v1787_v42  ;;  %1790 = vst [vmem:[%s10489_s26 + $0x958] sm:$0xff] %v1789_v43  ;;  %v1791_v44 = vld [vmem:[%s10484_s25 + $0x12c0] sm:$0xff]  ;;  %v1793_v45 = vld [vmem:[%s10484_s25 + $0x12d0] sm:$0xff] }
  0xac   : > { %v1795_v46 = vld [vmem:[%s10484_s25 + $0x12e0] sm:$0xff]  ;;  %1792 = vst [vmem:[%s10489_s26 + $0x960] sm:$0xff] %v1791_v44  ;;  %1794 = vst [vmem:[%s10489_s26 + $0x968] sm:$0xff] %v1793_v45  ;;  %v1797_v47 = vld [vmem:[%s10484_s25 + $0x12f0] sm:$0xff] }
  0xad   : > { %1796 = vst [vmem:[%s10489_s26 + $0x970] sm:$0xff] %v1795_v46  ;;  %v1799_v48 = vld [vmem:[%s10484_s25 + $0x1300] sm:$0xff]  ;;  %v1801_v49 = vld [vmem:[%s10484_s25 + $0x1310] sm:$0xff]  ;;  %1798 = vst [vmem:[%s10489_s26 + $0x978] sm:$0xff] %v1797_v47 }
  0xae   : > { %1800 = vst [vmem:[%s10489_s26 + $0x980] sm:$0xff] %v1799_v48  ;;  %1802 = vst [vmem:[%s10489_s26 + $0x988] sm:$0xff] %v1801_v49  ;;  %v1803_v50 = vld [vmem:[%s10484_s25 + $0x1320] sm:$0xff]  ;;  %v1805_v51 = vld [vmem:[%s10484_s25 + $0x1330] sm:$0xff] }
  0xaf   : > { %v1807_v52 = vld [vmem:[%s10484_s25 + $0x1340] sm:$0xff]  ;;  %1804 = vst [vmem:[%s10489_s26 + $0x990] sm:$0xff] %v1803_v50  ;;  %1806 = vst [vmem:[%s10489_s26 + $0x998] sm:$0xff] %v1805_v51  ;;  %v1809_v53 = vld [vmem:[%s10484_s25 + $0x1350] sm:$0xff] }
  0xb0   : > { %1808 = vst [vmem:[%s10489_s26 + $0x9a0] sm:$0xff] %v1807_v52  ;;  %v1811_v54 = vld [vmem:[%s10484_s25 + $0x1360] sm:$0xff]  ;;  %v1813_v55 = vld [vmem:[%s10484_s25 + $0x1370] sm:$0xff]  ;;  %1810 = vst [vmem:[%s10489_s26 + $0x9a8] sm:$0xff] %v1809_v53 }
  0xb1   : > { %1812 = vst [vmem:[%s10489_s26 + $0x9b0] sm:$0xff] %v1811_v54  ;;  %1814 = vst [vmem:[%s10489_s26 + $0x9b8] sm:$0xff] %v1813_v55  ;;  %v1815_v56 = vld [vmem:[%s10484_s25 + $0x1380] sm:$0xff]  ;;  %v1817_v57 = vld [vmem:[%s10484_s25 + $0x1390] sm:$0xff] }
  0xb2   : > { %v1819_v58 = vld [vmem:[%s10484_s25 + $0x13a0] sm:$0xff]  ;;  %1816 = vst [vmem:[%s10489_s26 + $0x9c0] sm:$0xff] %v1815_v56  ;;  %1818 = vst [vmem:[%s10489_s26 + $0x9c8] sm:$0xff] %v1817_v57  ;;  %v1821_v59 = vld [vmem:[%s10484_s25 + $0x13b0] sm:$0xff] }
  0xb3   : > { %1820 = vst [vmem:[%s10489_s26 + $0x9d0] sm:$0xff] %v1819_v58  ;;  %v1823_v60 = vld [vmem:[%s10484_s25 + $0x13c0] sm:$0xff]  ;;  %v1825_v61 = vld [vmem:[%s10484_s25 + $0x13d0] sm:$0xff]  ;;  %1822 = vst [vmem:[%s10489_s26 + $0x9d8] sm:$0xff] %v1821_v59 }
  0xb4   : > { %1824 = vst [vmem:[%s10489_s26 + $0x9e0] sm:$0xff] %v1823_v60  ;;  %1826 = vst [vmem:[%s10489_s26 + $0x9e8] sm:$0xff] %v1825_v61  ;;  %v1827_v62 = vld [vmem:[%s10484_s25 + $0x13e0] sm:$0xff]  ;;  %v1829_v63 = vld [vmem:[%s10484_s25 + $0x13f0] sm:$0xff] }
  0xb5   : > { %v1831_v0 = vld [vmem:[%s10484_s25 + $0x1400] sm:$0xff]  ;;  %1828 = vst [vmem:[%s10489_s26 + $0x9f0] sm:$0xff] %v1827_v62  ;;  %1830 = vst [vmem:[%s10489_s26 + $0x9f8] sm:$0xff] %v1829_v63  ;;  %v1833_v1 = vld [vmem:[%s10484_s25 + $0x1410] sm:$0xff] }
  0xb6   : > { %1832 = vst [vmem:[%s10489_s26 + $0xa00] sm:$0xff] %v1831_v0  ;;  %v1835_v2 = vld [vmem:[%s10484_s25 + $0x1420] sm:$0xff]  ;;  %v1837_v3 = vld [vmem:[%s10484_s25 + $0x1430] sm:$0xff]  ;;  %1834 = vst [vmem:[%s10489_s26 + $0xa08] sm:$0xff] %v1833_v1 }
  0xb7   : > { %1836 = vst [vmem:[%s10489_s26 + $0xa10] sm:$0xff] %v1835_v2  ;;  %1838 = vst [vmem:[%s10489_s26 + $0xa18] sm:$0xff] %v1837_v3  ;;  %v1839_v4 = vld [vmem:[%s10484_s25 + $0x1440] sm:$0xff]  ;;  %v1841_v5 = vld [vmem:[%s10484_s25 + $0x1450] sm:$0xff] }
  0xb8   : > { %v1843_v6 = vld [vmem:[%s10484_s25 + $0x1460] sm:$0xff]  ;;  %1840 = vst [vmem:[%s10489_s26 + $0xa20] sm:$0xff] %v1839_v4  ;;  %1842 = vst [vmem:[%s10489_s26 + $0xa28] sm:$0xff] %v1841_v5  ;;  %v1845_v7 = vld [vmem:[%s10484_s25 + $0x1470] sm:$0xff] }
  0xb9   : > { %1844 = vst [vmem:[%s10489_s26 + $0xa30] sm:$0xff] %v1843_v6  ;;  %v1847_v8 = vld [vmem:[%s10484_s25 + $0x1480] sm:$0xff]  ;;  %v1849_v9 = vld [vmem:[%s10484_s25 + $0x1490] sm:$0xff]  ;;  %1846 = vst [vmem:[%s10489_s26 + $0xa38] sm:$0xff] %v1845_v7 }
  0xba   : > { %1848 = vst [vmem:[%s10489_s26 + $0xa40] sm:$0xff] %v1847_v8  ;;  %1850 = vst [vmem:[%s10489_s26 + $0xa48] sm:$0xff] %v1849_v9  ;;  %v1851_v10 = vld [vmem:[%s10484_s25 + $0x14a0] sm:$0xff]  ;;  %v1853_v11 = vld [vmem:[%s10484_s25 + $0x14b0] sm:$0xff] }
  0xbb   : > { %v1855_v12 = vld [vmem:[%s10484_s25 + $0x14c0] sm:$0xff]  ;;  %1852 = vst [vmem:[%s10489_s26 + $0xa50] sm:$0xff] %v1851_v10  ;;  %1854 = vst [vmem:[%s10489_s26 + $0xa58] sm:$0xff] %v1853_v11  ;;  %v1857_v13 = vld [vmem:[%s10484_s25 + $0x14d0] sm:$0xff] }
  0xbc   : > { %1856 = vst [vmem:[%s10489_s26 + $0xa60] sm:$0xff] %v1855_v12  ;;  %v1859_v14 = vld [vmem:[%s10484_s25 + $0x14e0] sm:$0xff]  ;;  %v1861_v15 = vld [vmem:[%s10484_s25 + $0x14f0] sm:$0xff]  ;;  %1858 = vst [vmem:[%s10489_s26 + $0xa68] sm:$0xff] %v1857_v13 }
  0xbd   : > { %1860 = vst [vmem:[%s10489_s26 + $0xa70] sm:$0xff] %v1859_v14  ;;  %1862 = vst [vmem:[%s10489_s26 + $0xa78] sm:$0xff] %v1861_v15  ;;  %v1863_v16 = vld [vmem:[%s10484_s25 + $0x1500] sm:$0xff]  ;;  %v1865_v17 = vld [vmem:[%s10484_s25 + $0x1510] sm:$0xff] }
  0xbe   : > { %v1867_v18 = vld [vmem:[%s10484_s25 + $0x1520] sm:$0xff]  ;;  %1864 = vst [vmem:[%s10489_s26 + $0xa80] sm:$0xff] %v1863_v16  ;;  %1866 = vst [vmem:[%s10489_s26 + $0xa88] sm:$0xff] %v1865_v17  ;;  %v1869_v19 = vld [vmem:[%s10484_s25 + $0x1530] sm:$0xff] }
  0xbf   : > { %1868 = vst [vmem:[%s10489_s26 + $0xa90] sm:$0xff] %v1867_v18  ;;  %v1871_v20 = vld [vmem:[%s10484_s25 + $0x1540] sm:$0xff]  ;;  %v1873_v21 = vld [vmem:[%s10484_s25 + $0x1550] sm:$0xff]  ;;  %1870 = vst [vmem:[%s10489_s26 + $0xa98] sm:$0xff] %v1869_v19 }
  0xc0   : > { %1872 = vst [vmem:[%s10489_s26 + $0xaa0] sm:$0xff] %v1871_v20  ;;  %1874 = vst [vmem:[%s10489_s26 + $0xaa8] sm:$0xff] %v1873_v21  ;;  %v1875_v22 = vld [vmem:[%s10484_s25 + $0x1560] sm:$0xff]  ;;  %v1877_v23 = vld [vmem:[%s10484_s25 + $0x1570] sm:$0xff] }
  0xc1   : > { %v1879_v24 = vld [vmem:[%s10484_s25 + $0x1580] sm:$0xff]  ;;  %1876 = vst [vmem:[%s10489_s26 + $0xab0] sm:$0xff] %v1875_v22  ;;  %1878 = vst [vmem:[%s10489_s26 + $0xab8] sm:$0xff] %v1877_v23  ;;  %v1881_v25 = vld [vmem:[%s10484_s25 + $0x1590] sm:$0xff] }
  0xc2   : > { %1880 = vst [vmem:[%s10489_s26 + $0xac0] sm:$0xff] %v1879_v24  ;;  %v1883_v26 = vld [vmem:[%s10484_s25 + $0x15a0] sm:$0xff]  ;;  %v1885_v27 = vld [vmem:[%s10484_s25 + $0x15b0] sm:$0xff]  ;;  %1882 = vst [vmem:[%s10489_s26 + $0xac8] sm:$0xff] %v1881_v25 }
  0xc3   : > { %1884 = vst [vmem:[%s10489_s26 + $0xad0] sm:$0xff] %v1883_v26  ;;  %1886 = vst [vmem:[%s10489_s26 + $0xad8] sm:$0xff] %v1885_v27  ;;  %v1887_v28 = vld [vmem:[%s10484_s25 + $0x15c0] sm:$0xff]  ;;  %v1889_v29 = vld [vmem:[%s10484_s25 + $0x15d0] sm:$0xff] }
  0xc4   : > { %v1891_v30 = vld [vmem:[%s10484_s25 + $0x15e0] sm:$0xff]  ;;  %1888 = vst [vmem:[%s10489_s26 + $0xae0] sm:$0xff] %v1887_v28  ;;  %1890 = vst [vmem:[%s10489_s26 + $0xae8] sm:$0xff] %v1889_v29  ;;  %v1893_v31 = vld [vmem:[%s10484_s25 + $0x15f0] sm:$0xff] }
  0xc5   : > { %1892 = vst [vmem:[%s10489_s26 + $0xaf0] sm:$0xff] %v1891_v30  ;;  %v1895_v32 = vld [vmem:[%s10484_s25 + $0x1600] sm:$0xff]  ;;  %v1897_v33 = vld [vmem:[%s10484_s25 + $0x1610] sm:$0xff]  ;;  %1894 = vst [vmem:[%s10489_s26 + $0xaf8] sm:$0xff] %v1893_v31 }
  0xc6   : > { %1896 = vst [vmem:[%s10489_s26 + $0xb00] sm:$0xff] %v1895_v32  ;;  %1898 = vst [vmem:[%s10489_s26 + $0xb08] sm:$0xff] %v1897_v33  ;;  %v1899_v34 = vld [vmem:[%s10484_s25 + $0x1620] sm:$0xff]  ;;  %v1901_v35 = vld [vmem:[%s10484_s25 + $0x1630] sm:$0xff] }
  0xc7   : > { %v1903_v36 = vld [vmem:[%s10484_s25 + $0x1640] sm:$0xff]  ;;  %1900 = vst [vmem:[%s10489_s26 + $0xb10] sm:$0xff] %v1899_v34  ;;  %1902 = vst [vmem:[%s10489_s26 + $0xb18] sm:$0xff] %v1901_v35  ;;  %v1905_v37 = vld [vmem:[%s10484_s25 + $0x1650] sm:$0xff] }
  0xc8   : > { %1904 = vst [vmem:[%s10489_s26 + $0xb20] sm:$0xff] %v1903_v36  ;;  %v1907_v38 = vld [vmem:[%s10484_s25 + $0x1660] sm:$0xff]  ;;  %v1909_v39 = vld [vmem:[%s10484_s25 + $0x1670] sm:$0xff]  ;;  %1906 = vst [vmem:[%s10489_s26 + $0xb28] sm:$0xff] %v1905_v37 }
  0xc9   : > { %1908 = vst [vmem:[%s10489_s26 + $0xb30] sm:$0xff] %v1907_v38  ;;  %1910 = vst [vmem:[%s10489_s26 + $0xb38] sm:$0xff] %v1909_v39  ;;  %v1911_v40 = vld [vmem:[%s10484_s25 + $0x1680] sm:$0xff]  ;;  %v1913_v41 = vld [vmem:[%s10484_s25 + $0x1690] sm:$0xff] }
  0xca   : > { %v1915_v42 = vld [vmem:[%s10484_s25 + $0x16a0] sm:$0xff]  ;;  %1912 = vst [vmem:[%s10489_s26 + $0xb40] sm:$0xff] %v1911_v40  ;;  %1914 = vst [vmem:[%s10489_s26 + $0xb48] sm:$0xff] %v1913_v41  ;;  %v1917_v43 = vld [vmem:[%s10484_s25 + $0x16b0] sm:$0xff] }
  0xcb   : > { %1916 = vst [vmem:[%s10489_s26 + $0xb50] sm:$0xff] %v1915_v42  ;;  %v1919_v44 = vld [vmem:[%s10484_s25 + $0x16c0] sm:$0xff]  ;;  %v1921_v45 = vld [vmem:[%s10484_s25 + $0x16d0] sm:$0xff]  ;;  %1918 = vst [vmem:[%s10489_s26 + $0xb58] sm:$0xff] %v1917_v43 }
  0xcc   : > { %1920 = vst [vmem:[%s10489_s26 + $0xb60] sm:$0xff] %v1919_v44  ;;  %1922 = vst [vmem:[%s10489_s26 + $0xb68] sm:$0xff] %v1921_v45  ;;  %v1923_v46 = vld [vmem:[%s10484_s25 + $0x16e0] sm:$0xff]  ;;  %v1925_v47 = vld [vmem:[%s10484_s25 + $0x16f0] sm:$0xff] }
  0xcd   : > { %v1927_v48 = vld [vmem:[%s10484_s25 + $0x1700] sm:$0xff]  ;;  %1924 = vst [vmem:[%s10489_s26 + $0xb70] sm:$0xff] %v1923_v46  ;;  %1926 = vst [vmem:[%s10489_s26 + $0xb78] sm:$0xff] %v1925_v47  ;;  %v1929_v49 = vld [vmem:[%s10484_s25 + $0x1710] sm:$0xff] }
  0xce   : > { %1928 = vst [vmem:[%s10489_s26 + $0xb80] sm:$0xff] %v1927_v48  ;;  %v1931_v50 = vld [vmem:[%s10484_s25 + $0x1720] sm:$0xff]  ;;  %v1933_v51 = vld [vmem:[%s10484_s25 + $0x1730] sm:$0xff]  ;;  %1930 = vst [vmem:[%s10489_s26 + $0xb88] sm:$0xff] %v1929_v49 }
  0xcf   : > { %1932 = vst [vmem:[%s10489_s26 + $0xb90] sm:$0xff] %v1931_v50  ;;  %1934 = vst [vmem:[%s10489_s26 + $0xb98] sm:$0xff] %v1933_v51  ;;  %v1935_v52 = vld [vmem:[%s10484_s25 + $0x1740] sm:$0xff]  ;;  %v1937_v53 = vld [vmem:[%s10484_s25 + $0x1750] sm:$0xff] }
  0xd0   : > { %v1939_v54 = vld [vmem:[%s10484_s25 + $0x1760] sm:$0xff]  ;;  %1936 = vst [vmem:[%s10489_s26 + $0xba0] sm:$0xff] %v1935_v52  ;;  %1938 = vst [vmem:[%s10489_s26 + $0xba8] sm:$0xff] %v1937_v53  ;;  %v1941_v55 = vld [vmem:[%s10484_s25 + $0x1770] sm:$0xff] }
  0xd1   : > { %1940 = vst [vmem:[%s10489_s26 + $0xbb0] sm:$0xff] %v1939_v54  ;;  %v1943_v56 = vld [vmem:[%s10484_s25 + $0x1780] sm:$0xff]  ;;  %v1945_v57 = vld [vmem:[%s10484_s25 + $0x1790] sm:$0xff]  ;;  %1942 = vst [vmem:[%s10489_s26 + $0xbb8] sm:$0xff] %v1941_v55 }
  0xd2   : > { %1944 = vst [vmem:[%s10489_s26 + $0xbc0] sm:$0xff] %v1943_v56  ;;  %1946 = vst [vmem:[%s10489_s26 + $0xbc8] sm:$0xff] %v1945_v57  ;;  %v1947_v58 = vld [vmem:[%s10484_s25 + $0x17a0] sm:$0xff]  ;;  %v1949_v59 = vld [vmem:[%s10484_s25 + $0x17b0] sm:$0xff] }
  0xd3   : > { %v1951_v60 = vld [vmem:[%s10484_s25 + $0x17c0] sm:$0xff]  ;;  %1948 = vst [vmem:[%s10489_s26 + $0xbd0] sm:$0xff] %v1947_v58  ;;  %1950 = vst [vmem:[%s10489_s26 + $0xbd8] sm:$0xff] %v1949_v59  ;;  %v1953_v61 = vld [vmem:[%s10484_s25 + $0x17d0] sm:$0xff] }
  0xd4   : > { %1952 = vst [vmem:[%s10489_s26 + $0xbe0] sm:$0xff] %v1951_v60  ;;  %v1955_v62 = vld [vmem:[%s10484_s25 + $0x17e0] sm:$0xff]  ;;  %v1957_v63 = vld [vmem:[%s10484_s25 + $0x17f0] sm:$0xff]  ;;  %1954 = vst [vmem:[%s10489_s26 + $0xbe8] sm:$0xff] %v1953_v61 }
  0xd5   : > { %1956 = vst [vmem:[%s10489_s26 + $0xbf0] sm:$0xff] %v1955_v62  ;;  %1958 = vst [vmem:[%s10489_s26 + $0xbf8] sm:$0xff] %v1957_v63  ;;  %v1959_v0 = vld [vmem:[%s10484_s25 + $0x1800] sm:$0xff]  ;;  %v1961_v1 = vld [vmem:[%s10484_s25 + $0x1810] sm:$0xff] }
  0xd6   : > { %v1963_v2 = vld [vmem:[%s10484_s25 + $0x1820] sm:$0xff]  ;;  %1960 = vst [vmem:[%s10489_s26 + $0xc00] sm:$0xff] %v1959_v0  ;;  %1962 = vst [vmem:[%s10489_s26 + $0xc08] sm:$0xff] %v1961_v1  ;;  %v1965_v3 = vld [vmem:[%s10484_s25 + $0x1830] sm:$0xff] }
  0xd7   : > { %1964 = vst [vmem:[%s10489_s26 + $0xc10] sm:$0xff] %v1963_v2  ;;  %v1967_v4 = vld [vmem:[%s10484_s25 + $0x1840] sm:$0xff]  ;;  %v1969_v5 = vld [vmem:[%s10484_s25 + $0x1850] sm:$0xff]  ;;  %1966 = vst [vmem:[%s10489_s26 + $0xc18] sm:$0xff] %v1965_v3 }
  0xd8   : > { %1968 = vst [vmem:[%s10489_s26 + $0xc20] sm:$0xff] %v1967_v4  ;;  %1970 = vst [vmem:[%s10489_s26 + $0xc28] sm:$0xff] %v1969_v5  ;;  %v1971_v6 = vld [vmem:[%s10484_s25 + $0x1860] sm:$0xff]  ;;  %v1973_v7 = vld [vmem:[%s10484_s25 + $0x1870] sm:$0xff] }
  0xd9   : > { %v1975_v8 = vld [vmem:[%s10484_s25 + $0x1880] sm:$0xff]  ;;  %1972 = vst [vmem:[%s10489_s26 + $0xc30] sm:$0xff] %v1971_v6  ;;  %1974 = vst [vmem:[%s10489_s26 + $0xc38] sm:$0xff] %v1973_v7  ;;  %v1977_v9 = vld [vmem:[%s10484_s25 + $0x1890] sm:$0xff] }
  0xda   : > { %1976 = vst [vmem:[%s10489_s26 + $0xc40] sm:$0xff] %v1975_v8  ;;  %v1979_v10 = vld [vmem:[%s10484_s25 + $0x18a0] sm:$0xff]  ;;  %v1981_v11 = vld [vmem:[%s10484_s25 + $0x18b0] sm:$0xff]  ;;  %1978 = vst [vmem:[%s10489_s26 + $0xc48] sm:$0xff] %v1977_v9 }
  0xdb   : > { %1980 = vst [vmem:[%s10489_s26 + $0xc50] sm:$0xff] %v1979_v10  ;;  %1982 = vst [vmem:[%s10489_s26 + $0xc58] sm:$0xff] %v1981_v11  ;;  %v1983_v12 = vld [vmem:[%s10484_s25 + $0x18c0] sm:$0xff]  ;;  %v1985_v13 = vld [vmem:[%s10484_s25 + $0x18d0] sm:$0xff] }
  0xdc   : > { %v1987_v14 = vld [vmem:[%s10484_s25 + $0x18e0] sm:$0xff]  ;;  %1984 = vst [vmem:[%s10489_s26 + $0xc60] sm:$0xff] %v1983_v12  ;;  %1986 = vst [vmem:[%s10489_s26 + $0xc68] sm:$0xff] %v1985_v13  ;;  %v1989_v15 = vld [vmem:[%s10484_s25 + $0x18f0] sm:$0xff] }
  0xdd   : > { %1988 = vst [vmem:[%s10489_s26 + $0xc70] sm:$0xff] %v1987_v14  ;;  %v1991_v16 = vld [vmem:[%s10484_s25 + $0x1900] sm:$0xff]  ;;  %v1993_v17 = vld [vmem:[%s10484_s25 + $0x1910] sm:$0xff]  ;;  %1990 = vst [vmem:[%s10489_s26 + $0xc78] sm:$0xff] %v1989_v15 }
  0xde   : > { %1992 = vst [vmem:[%s10489_s26 + $0xc80] sm:$0xff] %v1991_v16  ;;  %1994 = vst [vmem:[%s10489_s26 + $0xc88] sm:$0xff] %v1993_v17  ;;  %v1995_v18 = vld [vmem:[%s10484_s25 + $0x1920] sm:$0xff]  ;;  %v1997_v19 = vld [vmem:[%s10484_s25 + $0x1930] sm:$0xff] }
  0xdf   : > { %v1999_v20 = vld [vmem:[%s10484_s25 + $0x1940] sm:$0xff]  ;;  %1996 = vst [vmem:[%s10489_s26 + $0xc90] sm:$0xff] %v1995_v18  ;;  %1998 = vst [vmem:[%s10489_s26 + $0xc98] sm:$0xff] %v1997_v19  ;;  %v2001_v21 = vld [vmem:[%s10484_s25 + $0x1950] sm:$0xff] }
  0xe0   : > { %2000 = vst [vmem:[%s10489_s26 + $0xca0] sm:$0xff] %v1999_v20  ;;  %v2003_v22 = vld [vmem:[%s10484_s25 + $0x1960] sm:$0xff]  ;;  %v2005_v23 = vld [vmem:[%s10484_s25 + $0x1970] sm:$0xff]  ;;  %2002 = vst [vmem:[%s10489_s26 + $0xca8] sm:$0xff] %v2001_v21 }
  0xe1   : > { %2004 = vst [vmem:[%s10489_s26 + $0xcb0] sm:$0xff] %v2003_v22  ;;  %2006 = vst [vmem:[%s10489_s26 + $0xcb8] sm:$0xff] %v2005_v23  ;;  %v2007_v24 = vld [vmem:[%s10484_s25 + $0x1980] sm:$0xff]  ;;  %v2009_v25 = vld [vmem:[%s10484_s25 + $0x1990] sm:$0xff] }
  0xe2   : > { %v2011_v26 = vld [vmem:[%s10484_s25 + $0x19a0] sm:$0xff]  ;;  %2008 = vst [vmem:[%s10489_s26 + $0xcc0] sm:$0xff] %v2007_v24  ;;  %2010 = vst [vmem:[%s10489_s26 + $0xcc8] sm:$0xff] %v2009_v25  ;;  %v2013_v27 = vld [vmem:[%s10484_s25 + $0x19b0] sm:$0xff] }
  0xe3   : > { %2012 = vst [vmem:[%s10489_s26 + $0xcd0] sm:$0xff] %v2011_v26  ;;  %v2015_v28 = vld [vmem:[%s10484_s25 + $0x19c0] sm:$0xff]  ;;  %v2017_v29 = vld [vmem:[%s10484_s25 + $0x19d0] sm:$0xff]  ;;  %2014 = vst [vmem:[%s10489_s26 + $0xcd8] sm:$0xff] %v2013_v27 }
  0xe4   : > { %2016 = vst [vmem:[%s10489_s26 + $0xce0] sm:$0xff] %v2015_v28  ;;  %2018 = vst [vmem:[%s10489_s26 + $0xce8] sm:$0xff] %v2017_v29  ;;  %v2019_v30 = vld [vmem:[%s10484_s25 + $0x19e0] sm:$0xff]  ;;  %v2021_v31 = vld [vmem:[%s10484_s25 + $0x19f0] sm:$0xff] }
  0xe5   : > { %v2023_v32 = vld [vmem:[%s10484_s25 + $0x1a00] sm:$0xff]  ;;  %2020 = vst [vmem:[%s10489_s26 + $0xcf0] sm:$0xff] %v2019_v30  ;;  %2022 = vst [vmem:[%s10489_s26 + $0xcf8] sm:$0xff] %v2021_v31  ;;  %v2025_v33 = vld [vmem:[%s10484_s25 + $0x1a10] sm:$0xff] }
  0xe6   : > { %2024 = vst [vmem:[%s10489_s26 + $0xd00] sm:$0xff] %v2023_v32  ;;  %v2027_v34 = vld [vmem:[%s10484_s25 + $0x1a20] sm:$0xff]  ;;  %v2029_v35 = vld [vmem:[%s10484_s25 + $0x1a30] sm:$0xff]  ;;  %2026 = vst [vmem:[%s10489_s26 + $0xd08] sm:$0xff] %v2025_v33 }
  0xe7   : > { %2028 = vst [vmem:[%s10489_s26 + $0xd10] sm:$0xff] %v2027_v34  ;;  %2030 = vst [vmem:[%s10489_s26 + $0xd18] sm:$0xff] %v2029_v35  ;;  %v2031_v36 = vld [vmem:[%s10484_s25 + $0x1a40] sm:$0xff]  ;;  %v2033_v37 = vld [vmem:[%s10484_s25 + $0x1a50] sm:$0xff] }
  0xe8   : > { %v2035_v38 = vld [vmem:[%s10484_s25 + $0x1a60] sm:$0xff]  ;;  %2032 = vst [vmem:[%s10489_s26 + $0xd20] sm:$0xff] %v2031_v36  ;;  %2034 = vst [vmem:[%s10489_s26 + $0xd28] sm:$0xff] %v2033_v37  ;;  %v2037_v39 = vld [vmem:[%s10484_s25 + $0x1a70] sm:$0xff] }
  0xe9   : > { %2036 = vst [vmem:[%s10489_s26 + $0xd30] sm:$0xff] %v2035_v38  ;;  %v2039_v40 = vld [vmem:[%s10484_s25 + $0x1a80] sm:$0xff]  ;;  %v2041_v41 = vld [vmem:[%s10484_s25 + $0x1a90] sm:$0xff]  ;;  %2038 = vst [vmem:[%s10489_s26 + $0xd38] sm:$0xff] %v2037_v39 }
  0xea   : > { %2040 = vst [vmem:[%s10489_s26 + $0xd40] sm:$0xff] %v2039_v40  ;;  %2042 = vst [vmem:[%s10489_s26 + $0xd48] sm:$0xff] %v2041_v41  ;;  %v2043_v42 = vld [vmem:[%s10484_s25 + $0x1aa0] sm:$0xff]  ;;  %v2045_v43 = vld [vmem:[%s10484_s25 + $0x1ab0] sm:$0xff] }
  0xeb   : > { %v2047_v44 = vld [vmem:[%s10484_s25 + $0x1ac0] sm:$0xff]  ;;  %2044 = vst [vmem:[%s10489_s26 + $0xd50] sm:$0xff] %v2043_v42  ;;  %2046 = vst [vmem:[%s10489_s26 + $0xd58] sm:$0xff] %v2045_v43  ;;  %v2049_v45 = vld [vmem:[%s10484_s25 + $0x1ad0] sm:$0xff] }
  0xec   : > { %2048 = vst [vmem:[%s10489_s26 + $0xd60] sm:$0xff] %v2047_v44  ;;  %v2051_v46 = vld [vmem:[%s10484_s25 + $0x1ae0] sm:$0xff]  ;;  %v2053_v47 = vld [vmem:[%s10484_s25 + $0x1af0] sm:$0xff]  ;;  %2050 = vst [vmem:[%s10489_s26 + $0xd68] sm:$0xff] %v2049_v45 }
  0xed   : > { %2052 = vst [vmem:[%s10489_s26 + $0xd70] sm:$0xff] %v2051_v46  ;;  %2054 = vst [vmem:[%s10489_s26 + $0xd78] sm:$0xff] %v2053_v47  ;;  %v2055_v48 = vld [vmem:[%s10484_s25 + $0x1b00] sm:$0xff]  ;;  %v2057_v49 = vld [vmem:[%s10484_s25 + $0x1b10] sm:$0xff] }
  0xee   : > { %v2059_v50 = vld [vmem:[%s10484_s25 + $0x1b20] sm:$0xff]  ;;  %2056 = vst [vmem:[%s10489_s26 + $0xd80] sm:$0xff] %v2055_v48  ;;  %2058 = vst [vmem:[%s10489_s26 + $0xd88] sm:$0xff] %v2057_v49  ;;  %v2061_v51 = vld [vmem:[%s10484_s25 + $0x1b30] sm:$0xff] }
  0xef   : > { %2060 = vst [vmem:[%s10489_s26 + $0xd90] sm:$0xff] %v2059_v50  ;;  %v2063_v52 = vld [vmem:[%s10484_s25 + $0x1b40] sm:$0xff]  ;;  %v2065_v53 = vld [vmem:[%s10484_s25 + $0x1b50] sm:$0xff]  ;;  %2062 = vst [vmem:[%s10489_s26 + $0xd98] sm:$0xff] %v2061_v51 }
  0xf0   : > { %2064 = vst [vmem:[%s10489_s26 + $0xda0] sm:$0xff] %v2063_v52  ;;  %2066 = vst [vmem:[%s10489_s26 + $0xda8] sm:$0xff] %v2065_v53  ;;  %v2067_v54 = vld [vmem:[%s10484_s25 + $0x1b60] sm:$0xff]  ;;  %v2069_v55 = vld [vmem:[%s10484_s25 + $0x1b70] sm:$0xff] }
  0xf1   : > { %v2071_v56 = vld [vmem:[%s10484_s25 + $0x1b80] sm:$0xff]  ;;  %2068 = vst [vmem:[%s10489_s26 + $0xdb0] sm:$0xff] %v2067_v54  ;;  %2070 = vst [vmem:[%s10489_s26 + $0xdb8] sm:$0xff] %v2069_v55  ;;  %v2073_v57 = vld [vmem:[%s10484_s25 + $0x1b90] sm:$0xff] }
  0xf2   : > { %2072 = vst [vmem:[%s10489_s26 + $0xdc0] sm:$0xff] %v2071_v56  ;;  %v2075_v58 = vld [vmem:[%s10484_s25 + $0x1ba0] sm:$0xff]  ;;  %v2077_v59 = vld [vmem:[%s10484_s25 + $0x1bb0] sm:$0xff]  ;;  %2074 = vst [vmem:[%s10489_s26 + $0xdc8] sm:$0xff] %v2073_v57 }
  0xf3   : > { %2076 = vst [vmem:[%s10489_s26 + $0xdd0] sm:$0xff] %v2075_v58  ;;  %2078 = vst [vmem:[%s10489_s26 + $0xdd8] sm:$0xff] %v2077_v59  ;;  %v2079_v60 = vld [vmem:[%s10484_s25 + $0x1bc0] sm:$0xff]  ;;  %v2081_v61 = vld [vmem:[%s10484_s25 + $0x1bd0] sm:$0xff] }
  0xf4   : > { %v2083_v62 = vld [vmem:[%s10484_s25 + $0x1be0] sm:$0xff]  ;;  %2080 = vst [vmem:[%s10489_s26 + $0xde0] sm:$0xff] %v2079_v60  ;;  %2082 = vst [vmem:[%s10489_s26 + $0xde8] sm:$0xff] %v2081_v61  ;;  %v2085_v63 = vld [vmem:[%s10484_s25 + $0x1bf0] sm:$0xff] }
  0xf5   : > { %2084 = vst [vmem:[%s10489_s26 + $0xdf0] sm:$0xff] %v2083_v62  ;;  %v2087_v0 = vld [vmem:[%s10484_s25 + $0x1c00] sm:$0xff]  ;;  %v2089_v1 = vld [vmem:[%s10484_s25 + $0x1c10] sm:$0xff]  ;;  %2086 = vst [vmem:[%s10489_s26 + $0xdf8] sm:$0xff] %v2085_v63 }
  0xf6   : > { %2088 = vst [vmem:[%s10489_s26 + $0xe00] sm:$0xff] %v2087_v0  ;;  %2090 = vst [vmem:[%s10489_s26 + $0xe08] sm:$0xff] %v2089_v1  ;;  %v2091_v2 = vld [vmem:[%s10484_s25 + $0x1c20] sm:$0xff]  ;;  %v2093_v3 = vld [vmem:[%s10484_s25 + $0x1c30] sm:$0xff] }
  0xf7   : > { %v2095_v4 = vld [vmem:[%s10484_s25 + $0x1c40] sm:$0xff]  ;;  %2092 = vst [vmem:[%s10489_s26 + $0xe10] sm:$0xff] %v2091_v2  ;;  %2094 = vst [vmem:[%s10489_s26 + $0xe18] sm:$0xff] %v2093_v3  ;;  %v2097_v5 = vld [vmem:[%s10484_s25 + $0x1c50] sm:$0xff] }
  0xf8   : > { %2096 = vst [vmem:[%s10489_s26 + $0xe20] sm:$0xff] %v2095_v4  ;;  %v2099_v6 = vld [vmem:[%s10484_s25 + $0x1c60] sm:$0xff]  ;;  %v2101_v7 = vld [vmem:[%s10484_s25 + $0x1c70] sm:$0xff]  ;;  %2098 = vst [vmem:[%s10489_s26 + $0xe28] sm:$0xff] %v2097_v5 }
  0xf9   : > { %2100 = vst [vmem:[%s10489_s26 + $0xe30] sm:$0xff] %v2099_v6  ;;  %2102 = vst [vmem:[%s10489_s26 + $0xe38] sm:$0xff] %v2101_v7  ;;  %v2103_v8 = vld [vmem:[%s10484_s25 + $0x1c80] sm:$0xff]  ;;  %v2105_v9 = vld [vmem:[%s10484_s25 + $0x1c90] sm:$0xff] }
  0xfa   : > { %v2107_v10 = vld [vmem:[%s10484_s25 + $0x1ca0] sm:$0xff]  ;;  %2104 = vst [vmem:[%s10489_s26 + $0xe40] sm:$0xff] %v2103_v8  ;;  %2106 = vst [vmem:[%s10489_s26 + $0xe48] sm:$0xff] %v2105_v9  ;;  %v2109_v11 = vld [vmem:[%s10484_s25 + $0x1cb0] sm:$0xff] }
  0xfb   : > { %2108 = vst [vmem:[%s10489_s26 + $0xe50] sm:$0xff] %v2107_v10  ;;  %v2111_v12 = vld [vmem:[%s10484_s25 + $0x1cc0] sm:$0xff]  ;;  %v2113_v13 = vld [vmem:[%s10484_s25 + $0x1cd0] sm:$0xff]  ;;  %2110 = vst [vmem:[%s10489_s26 + $0xe58] sm:$0xff] %v2109_v11 }
  0xfc   : > { %2112 = vst [vmem:[%s10489_s26 + $0xe60] sm:$0xff] %v2111_v12  ;;  %2114 = vst [vmem:[%s10489_s26 + $0xe68] sm:$0xff] %v2113_v13  ;;  %v2115_v14 = vld [vmem:[%s10484_s25 + $0x1ce0] sm:$0xff]  ;;  %v2117_v15 = vld [vmem:[%s10484_s25 + $0x1cf0] sm:$0xff] }
  0xfd   : > { %v2119_v16 = vld [vmem:[%s10484_s25 + $0x1d00] sm:$0xff]  ;;  %2116 = vst [vmem:[%s10489_s26 + $0xe70] sm:$0xff] %v2115_v14  ;;  %2118 = vst [vmem:[%s10489_s26 + $0xe78] sm:$0xff] %v2117_v15  ;;  %v2121_v17 = vld [vmem:[%s10484_s25 + $0x1d10] sm:$0xff] }
  0xfe   : > { %2120 = vst [vmem:[%s10489_s26 + $0xe80] sm:$0xff] %v2119_v16  ;;  %v2123_v18 = vld [vmem:[%s10484_s25 + $0x1d20] sm:$0xff]  ;;  %v2125_v19 = vld [vmem:[%s10484_s25 + $0x1d30] sm:$0xff]  ;;  %2122 = vst [vmem:[%s10489_s26 + $0xe88] sm:$0xff] %v2121_v17 }
  0xff   : > { %2124 = vst [vmem:[%s10489_s26 + $0xe90] sm:$0xff] %v2123_v18  ;;  %2126 = vst [vmem:[%s10489_s26 + $0xe98] sm:$0xff] %v2125_v19  ;;  %v2127_v20 = vld [vmem:[%s10484_s25 + $0x1d40] sm:$0xff]  ;;  %v2129_v21 = vld [vmem:[%s10484_s25 + $0x1d50] sm:$0xff] }
 0x100   : > { %v2131_v22 = vld [vmem:[%s10484_s25 + $0x1d60] sm:$0xff]  ;;  %2128 = vst [vmem:[%s10489_s26 + $0xea0] sm:$0xff] %v2127_v20  ;;  %2130 = vst [vmem:[%s10489_s26 + $0xea8] sm:$0xff] %v2129_v21  ;;  %v2133_v23 = vld [vmem:[%s10484_s25 + $0x1d70] sm:$0xff] }
 0x101   : > { %2132 = vst [vmem:[%s10489_s26 + $0xeb0] sm:$0xff] %v2131_v22  ;;  %v2135_v24 = vld [vmem:[%s10484_s25 + $0x1d80] sm:$0xff]  ;;  %v2137_v25 = vld [vmem:[%s10484_s25 + $0x1d90] sm:$0xff]  ;;  %2134 = vst [vmem:[%s10489_s26 + $0xeb8] sm:$0xff] %v2133_v23 }
 0x102   : > { %2136 = vst [vmem:[%s10489_s26 + $0xec0] sm:$0xff] %v2135_v24  ;;  %2138 = vst [vmem:[%s10489_s26 + $0xec8] sm:$0xff] %v2137_v25  ;;  %v2139_v26 = vld [vmem:[%s10484_s25 + $0x1da0] sm:$0xff]  ;;  %v2141_v27 = vld [vmem:[%s10484_s25 + $0x1db0] sm:$0xff] }
 0x103   : > { %v2143_v28 = vld [vmem:[%s10484_s25 + $0x1dc0] sm:$0xff]  ;;  %2140 = vst [vmem:[%s10489_s26 + $0xed0] sm:$0xff] %v2139_v26  ;;  %2142 = vst [vmem:[%s10489_s26 + $0xed8] sm:$0xff] %v2141_v27  ;;  %v2145_v29 = vld [vmem:[%s10484_s25 + $0x1dd0] sm:$0xff] }
 0x104   : > { %2144 = vst [vmem:[%s10489_s26 + $0xee0] sm:$0xff] %v2143_v28  ;;  %v2147_v30 = vld [vmem:[%s10484_s25 + $0x1de0] sm:$0xff]  ;;  %v2149_v31 = vld [vmem:[%s10484_s25 + $0x1df0] sm:$0xff]  ;;  %2146 = vst [vmem:[%s10489_s26 + $0xee8] sm:$0xff] %v2145_v29 }
 0x105   : > { %2148 = vst [vmem:[%s10489_s26 + $0xef0] sm:$0xff] %v2147_v30  ;;  %2150 = vst [vmem:[%s10489_s26 + $0xef8] sm:$0xff] %v2149_v31  ;;  %v2151_v32 = vld [vmem:[%s10484_s25 + $0x1e00] sm:$0xff]  ;;  %v2153_v33 = vld [vmem:[%s10484_s25 + $0x1e10] sm:$0xff] }
 0x106   : > { %v2155_v34 = vld [vmem:[%s10484_s25 + $0x1e20] sm:$0xff]  ;;  %2152 = vst [vmem:[%s10489_s26 + $0xf00] sm:$0xff] %v2151_v32  ;;  %2154 = vst [vmem:[%s10489_s26 + $0xf08] sm:$0xff] %v2153_v33  ;;  %v2157_v35 = vld [vmem:[%s10484_s25 + $0x1e30] sm:$0xff] }
 0x107   : > { %2156 = vst [vmem:[%s10489_s26 + $0xf10] sm:$0xff] %v2155_v34  ;;  %v2159_v36 = vld [vmem:[%s10484_s25 + $0x1e40] sm:$0xff]  ;;  %v2161_v37 = vld [vmem:[%s10484_s25 + $0x1e50] sm:$0xff]  ;;  %2158 = vst [vmem:[%s10489_s26 + $0xf18] sm:$0xff] %v2157_v35 }
 0x108   : > { %2160 = vst [vmem:[%s10489_s26 + $0xf20] sm:$0xff] %v2159_v36  ;;  %2162 = vst [vmem:[%s10489_s26 + $0xf28] sm:$0xff] %v2161_v37  ;;  %v2163_v38 = vld [vmem:[%s10484_s25 + $0x1e60] sm:$0xff]  ;;  %v2165_v39 = vld [vmem:[%s10484_s25 + $0x1e70] sm:$0xff] }
 0x109   : > { %v2167_v40 = vld [vmem:[%s10484_s25 + $0x1e80] sm:$0xff]  ;;  %2164 = vst [vmem:[%s10489_s26 + $0xf30] sm:$0xff] %v2163_v38  ;;  %2166 = vst [vmem:[%s10489_s26 + $0xf38] sm:$0xff] %v2165_v39  ;;  %v2169_v41 = vld [vmem:[%s10484_s25 + $0x1e90] sm:$0xff] }
 0x10a   : > { %2168 = vst [vmem:[%s10489_s26 + $0xf40] sm:$0xff] %v2167_v40  ;;  %v2171_v42 = vld [vmem:[%s10484_s25 + $0x1ea0] sm:$0xff]  ;;  %v2173_v43 = vld [vmem:[%s10484_s25 + $0x1eb0] sm:$0xff]  ;;  %2170 = vst [vmem:[%s10489_s26 + $0xf48] sm:$0xff] %v2169_v41 }
 0x10b   : > { %2172 = vst [vmem:[%s10489_s26 + $0xf50] sm:$0xff] %v2171_v42  ;;  %2174 = vst [vmem:[%s10489_s26 + $0xf58] sm:$0xff] %v2173_v43  ;;  %v2175_v44 = vld [vmem:[%s10484_s25 + $0x1ec0] sm:$0xff]  ;;  %v2177_v45 = vld [vmem:[%s10484_s25 + $0x1ed0] sm:$0xff] }
 0x10c   : > { %v2179_v46 = vld [vmem:[%s10484_s25 + $0x1ee0] sm:$0xff]  ;;  %2176 = vst [vmem:[%s10489_s26 + $0xf60] sm:$0xff] %v2175_v44  ;;  %2178 = vst [vmem:[%s10489_s26 + $0xf68] sm:$0xff] %v2177_v45  ;;  %v2181_v47 = vld [vmem:[%s10484_s25 + $0x1ef0] sm:$0xff] }
 0x10d   : > { %2180 = vst [vmem:[%s10489_s26 + $0xf70] sm:$0xff] %v2179_v46  ;;  %v2183_v48 = vld [vmem:[%s10484_s25 + $0x1f00] sm:$0xff]  ;;  %v2185_v49 = vld [vmem:[%s10484_s25 + $0x1f10] sm:$0xff]  ;;  %2182 = vst [vmem:[%s10489_s26 + $0xf78] sm:$0xff] %v2181_v47 }
 0x10e   : > { %2184 = vst [vmem:[%s10489_s26 + $0xf80] sm:$0xff] %v2183_v48  ;;  %2186 = vst [vmem:[%s10489_s26 + $0xf88] sm:$0xff] %v2185_v49  ;;  %v2187_v50 = vld [vmem:[%s10484_s25 + $0x1f20] sm:$0xff]  ;;  %v2189_v51 = vld [vmem:[%s10484_s25 + $0x1f30] sm:$0xff] }
 0x10f   : > { %v2191_v52 = vld [vmem:[%s10484_s25 + $0x1f40] sm:$0xff]  ;;  %2188 = vst [vmem:[%s10489_s26 + $0xf90] sm:$0xff] %v2187_v50  ;;  %2190 = vst [vmem:[%s10489_s26 + $0xf98] sm:$0xff] %v2189_v51  ;;  %v2193_v53 = vld [vmem:[%s10484_s25 + $0x1f50] sm:$0xff] }
 0x110   : > { %2192 = vst [vmem:[%s10489_s26 + $0xfa0] sm:$0xff] %v2191_v52  ;;  %v2195_v54 = vld [vmem:[%s10484_s25 + $0x1f60] sm:$0xff]  ;;  %v2197_v55 = vld [vmem:[%s10484_s25 + $0x1f70] sm:$0xff]  ;;  %2194 = vst [vmem:[%s10489_s26 + $0xfa8] sm:$0xff] %v2193_v53 }
 0x111   : > { %2196 = vst [vmem:[%s10489_s26 + $0xfb0] sm:$0xff] %v2195_v54  ;;  %2198 = vst [vmem:[%s10489_s26 + $0xfb8] sm:$0xff] %v2197_v55  ;;  %v2199_v56 = vld [vmem:[%s10484_s25 + $0x1f80] sm:$0xff]  ;;  %v2201_v57 = vld [vmem:[%s10484_s25 + $0x1f90] sm:$0xff] }
 0x112   : > { %v2203_v58 = vld [vmem:[%s10484_s25 + $0x1fa0] sm:$0xff]  ;;  %2200 = vst [vmem:[%s10489_s26 + $0xfc0] sm:$0xff] %v2199_v56  ;;  %2202 = vst [vmem:[%s10489_s26 + $0xfc8] sm:$0xff] %v2201_v57  ;;  %v2205_v59 = vld [vmem:[%s10484_s25 + $0x1fb0] sm:$0xff] }
 0x113   : > { %2204 = vst [vmem:[%s10489_s26 + $0xfd0] sm:$0xff] %v2203_v58  ;;  %v2207_v60 = vld [vmem:[%s10484_s25 + $0x1fc0] sm:$0xff]  ;;  %v2209_v61 = vld [vmem:[%s10484_s25 + $0x1fd0] sm:$0xff]  ;;  %2206 = vst [vmem:[%s10489_s26 + $0xfd8] sm:$0xff] %v2205_v59 }
 0x114   : > { %2208 = vst [vmem:[%s10489_s26 + $0xfe0] sm:$0xff] %v2207_v60  ;;  %2210 = vst [vmem:[%s10489_s26 + $0xfe8] sm:$0xff] %v2209_v61  ;;  %v2211_v62 = vld [vmem:[%s10484_s25 + $0x1fe0] sm:$0xff]  ;;  %v2213_v63 = vld [vmem:[%s10484_s25 + $0x1ff0] sm:$0xff] }
 0x115   : > { %2212 = vst [vmem:[%s10489_s26 + $0xff0] sm:$0xff] %v2211_v62  ;;  %2214 = vst [vmem:[%s10489_s26 + $0xff8] sm:$0xff] %v2213_v63 }
 0x116 PF: > { %p8859_p8 = scmp.ge.s32.totalorder %s10419_s13, 1  ;;  %p4303_p9 = scmp.lt.s32.totalorder %s10419_s13, 3 }
 0x118   : > { %p4304_p10 = pnand %p8859_p8, %p4303_p9 }
 0x119   : > { %s4310_s27 = sand.u32 (!%p4304_p10), 1, %s10403_s9   ;;  %v11518_v0 = vld [vmem:[%s12390_s0] sm:$0xff] (!%p4304_p10) }
 0x11a   : > { %4307 = sbr.rel (%p4304_p10) target bundleno = 1038 (0x40e), region = 76  ;;  %v11523_v1 = vld [vmem:[%s12390_s0 + $0x80] sm:$0xff] (!%p4304_p10)  ;;  %s8860_s6 = sshll.u32 (!%p4304_p10), %s4310_s27, 12 }
 0x11b   : > { %v11528_v2 = vld [vmem:[%s12390_s0 + $0x40] sm:$0xff] (!%p4304_p10)  ;;  %v8862_v3 = vcombine.low (!%p4304_p10), %v11518_v0, %v11523_v1  ;;  %v8863_v4 = vcombine.high (!%p4304_p10), %v11518_v0, %v11523_v1  ;;  %s11545_s15 = scalar_lea.vmem (!%p4304_p10), [#allocation2], %s8860_s6 }
 0x11c   : > { %v11539_v5 = vld [vmem:[%s12390_s0 + $0xc0] sm:$0xff] (!%p4304_p10)  ;;  %v9619_v12 = vld [vmem:[%s11545_s15 + $0x14] ss:$8 sps:$4 sm:$0xff] (!%p4304_p10)   ;;  %v9623_v14 = vld [vmem:[%s11545_s15 + $0x10] ss:$8 sps:$4 sm:$0xff] (!%p4304_p10)  }
 0x11d   : > { %v8878_v6 = vcombine.low (!%p4304_p10), %v11528_v2, %v11539_v5  ;;  %v8879_v7 = vcombine.high (!%p4304_p10), %v11528_v2, %v11539_v5  ;;  %v9613_v8 = vld [vmem:[%s11545_s15 + $0x4] ss:$8 sps:$4 sm:$0xff] (!%p4304_p10)   ;;  %7834 = vmatprep.mubr.bf16.mxu1 (!%p4304_p10), %v8863_v4  ;;  %v9617_v10 = vld [vmem:[%s11545_s15] ss:$8 sps:$4 sm:$0xff] (!%p4304_p10)   ;;  %v9621_v13 = vld [vmem:[%s11545_s15 + $0x814] ss:$8 sps:$4 sm:$0xff] (!%p4304_p10)  }
 0x11e   : > { %v9615_v9 = vld [vmem:[%s11545_s15 + $0x804] ss:$8 sps:$4 sm:$0xff] (!%p4304_p10)   ;;  %7802 = vmatprep.subr.bf16.mxu1 (!%p4304_p10), %v9613_v8  ;;  %v9618_v11 = vld [vmem:[%s11545_s15 + $0x800] ss:$8 sps:$4 sm:$0xff] (!%p4304_p10)   ;;  %v9624_v15 = vld [vmem:[%s11545_s15 + $0x810] ss:$8 sps:$4 sm:$0xff] (!%p4304_p10)  }
 0x11f   : > { %8258 = vmatprep.mubr.bf16.mxu0 (!%p4304_p10), %v8879_v7  ;;  %8226 = vmatprep.subr.bf16.mxu0 (!%p4304_p10), %v9615_v9  ;;  %v9625_v16 = vld [vmem:[%s11545_s15 + $0x24] ss:$8 sps:$4 sm:$0xff] (!%p4304_p10)   ;;  %v9629_v18 = vld [vmem:[%s11545_s15 + $0x20] ss:$8 sps:$4 sm:$0xff] (!%p4304_p10)   ;;  %v9631_v20 = vld [vmem:[%s11545_s15 + $0x34] ss:$8 sps:$4 sm:$0xff] (!%p4304_p10)  }
 0x120   : > { %7803 = vmatpush1.bf16.msra.mxu1 (!%p4304_p10), %v9617_v10  ;;  %8227 = vmatpush1.bf16.msra.mxu0 (!%p4304_p10), %v9618_v11  ;;  %v9627_v17 = vld [vmem:[%s11545_s15 + $0x824] ss:$8 sps:$4 sm:$0xff] (!%p4304_p10)   ;;  %v9630_v19 = vld [vmem:[%s11545_s15 + $0x820] ss:$8 sps:$4 sm:$0xff] (!%p4304_p10)   ;;  %v9633_v21 = vld [vmem:[%s11545_s15 + $0x834] ss:$8 sps:$4 sm:$0xff] (!%p4304_p10)  }
 0x121   : > { %7804 = vmatprep.subr.bf16.mxu1 %v9619_v12  ;;  %8228 = vmatprep.subr.bf16.mxu0 %v9621_v13  ;;  %v9635_v22 = vld [vmem:[%s11545_s15 + $0x30] ss:$8 sps:$4 sm:$0xff]   ;;  %v9637_v24 = vld [vmem:[%s11545_s15 + $0x44] ss:$8 sps:$4 sm:$0xff]   ;;  %v9641_v26 = vld [vmem:[%s11545_s15 + $0x40] ss:$8 sps:$4 sm:$0xff]  }
 0x122   : > { %v9636_v23 = vld [vmem:[%s11545_s15 + $0x830] ss:$8 sps:$4 sm:$0xff]   ;;  %v9639_v25 = vld [vmem:[%s11545_s15 + $0x844] ss:$8 sps:$4 sm:$0xff]   ;;  %v9642_v27 = vld [vmem:[%s11545_s15 + $0x840] ss:$8 sps:$4 sm:$0xff]  }
 0x123   : > { %v9643_v28 = vld [vmem:[%s11545_s15 + $0x54] ss:$8 sps:$4 sm:$0xff]   ;;  %v9647_v30 = vld [vmem:[%s11545_s15 + $0x50] ss:$8 sps:$4 sm:$0xff]   ;;  %v9649_v32 = vld [vmem:[%s11545_s15 + $0x64] ss:$8 sps:$4 sm:$0xff]  }
 0x124   : > { %7805 = vmatpush1.bf16.msra.mxu1 %v9623_v14  ;;  %8229 = vmatpush1.bf16.msra.mxu0 %v9624_v15  ;;  %v9645_v29 = vld [vmem:[%s11545_s15 + $0x854] ss:$8 sps:$4 sm:$0xff]   ;;  %v9648_v31 = vld [vmem:[%s11545_s15 + $0x850] ss:$8 sps:$4 sm:$0xff]   ;;  %v9651_v33 = vld [vmem:[%s11545_s15 + $0x864] ss:$8 sps:$4 sm:$0xff]  }
 0x125   : > { %7806 = vmatprep.subr.bf16.mxu1 %v9625_v16  ;;  %8230 = vmatprep.subr.bf16.mxu0 %v9627_v17  ;;  %v9653_v34 = vld [vmem:[%s11545_s15 + $0x60] ss:$8 sps:$4 sm:$0xff]   ;;  %v9655_v36 = vld [vmem:[%s11545_s15 + $0x74] ss:$8 sps:$4 sm:$0xff]   ;;  %v9659_v38 = vld [vmem:[%s11545_s15 + $0x70] ss:$8 sps:$4 sm:$0xff]  }
 0x126   : > { %v9654_v35 = vld [vmem:[%s11545_s15 + $0x860] ss:$8 sps:$4 sm:$0xff]   ;;  %v9657_v37 = vld [vmem:[%s11545_s15 + $0x874] ss:$8 sps:$4 sm:$0xff]   ;;  %v9660_v39 = vld [vmem:[%s11545_s15 + $0x870] ss:$8 sps:$4 sm:$0xff]  }
 0x127   : > { %v9661_v40 = vld [vmem:[%s11545_s15 + $0x84] ss:$8 sps:$4 sm:$0xff]   ;;  %v9665_v42 = vld [vmem:[%s11545_s15 + $0x80] ss:$8 sps:$4 sm:$0xff]   ;;  %v9667_v44 = vld [vmem:[%s11545_s15 + $0x94] ss:$8 sps:$4 sm:$0xff]  }
 0x128   : > { %7807 = vmatpush1.bf16.msra.mxu1 %v9629_v18  ;;  %8231 = vmatpush1.bf16.msra.mxu0 %v9630_v19  ;;  %v9663_v41 = vld [vmem:[%s11545_s15 + $0x884] ss:$8 sps:$4 sm:$0xff]   ;;  %v9666_v43 = vld [vmem:[%s11545_s15 + $0x880] ss:$8 sps:$4 sm:$0xff]   ;;  %v9669_v45 = vld [vmem:[%s11545_s15 + $0x894] ss:$8 sps:$4 sm:$0xff]  }
 0x129   : > { %7808 = vmatprep.subr.bf16.mxu1 %v9631_v20  ;;  %8232 = vmatprep.subr.bf16.mxu0 %v9633_v21  ;;  %v9671_v46 = vld [vmem:[%s11545_s15 + $0x90] ss:$8 sps:$4 sm:$0xff]   ;;  %v9673_v48 = vld [vmem:[%s11545_s15 + $0xa4] ss:$8 sps:$4 sm:$0xff]   ;;  %v9677_v50 = vld [vmem:[%s11545_s15 + $0xa0] ss:$8 sps:$4 sm:$0xff]  }
 0x12a   : > { %v9672_v47 = vld [vmem:[%s11545_s15 + $0x890] ss:$8 sps:$4 sm:$0xff]   ;;  %v9675_v49 = vld [vmem:[%s11545_s15 + $0x8a4] ss:$8 sps:$4 sm:$0xff]   ;;  %v9678_v51 = vld [vmem:[%s11545_s15 + $0x8a0] ss:$8 sps:$4 sm:$0xff]  }
 0x12b   : > { %v9679_v52 = vld [vmem:[%s11545_s15 + $0xb4] ss:$8 sps:$4 sm:$0xff]   ;;  %v9683_v54 = vld [vmem:[%s11545_s15 + $0xb0] ss:$8 sps:$4 sm:$0xff]   ;;  %v9685_v56 = vld [vmem:[%s11545_s15 + $0xc4] ss:$8 sps:$4 sm:$0xff]  }
 0x12c   : > { %7809 = vmatpush1.bf16.msra.mxu1 %v9635_v22  ;;  %8233 = vmatpush1.bf16.msra.mxu0 %v9636_v23  ;;  %v9681_v53 = vld [vmem:[%s11545_s15 + $0x8b4] ss:$8 sps:$4 sm:$0xff]   ;;  %v9684_v55 = vld [vmem:[%s11545_s15 + $0x8b0] ss:$8 sps:$4 sm:$0xff]   ;;  %v9687_v57 = vld [vmem:[%s11545_s15 + $0x8c4] ss:$8 sps:$4 sm:$0xff]  }
 0x12d   : > { %7810 = vmatprep.subr.bf16.mxu1 %v9637_v24  ;;  %8234 = vmatprep.subr.bf16.mxu0 %v9639_v25  ;;  %v9689_v58 = vld [vmem:[%s11545_s15 + $0xc0] ss:$8 sps:$4 sm:$0xff]   ;;  %v9691_v60 = vld [vmem:[%s11545_s15 + $0xd4] ss:$8 sps:$4 sm:$0xff]   ;;  %v9695_v62 = vld [vmem:[%s11545_s15 + $0xd0] ss:$8 sps:$4 sm:$0xff]  }
 0x12e   : > { %v9690_v59 = vld [vmem:[%s11545_s15 + $0x8c0] ss:$8 sps:$4 sm:$0xff]   ;;  %v9693_v61 = vld [vmem:[%s11545_s15 + $0x8d4] ss:$8 sps:$4 sm:$0xff]   ;;  %v9696_v63 = vld [vmem:[%s11545_s15 + $0x8d0] ss:$8 sps:$4 sm:$0xff]  }
 0x12f   : > { %v9697_v4 = vld [vmem:[%s11545_s15 + $0xe4] ss:$8 sps:$4 sm:$0xff]   ;;  %v9701_v8 = vld [vmem:[%s11545_s15 + $0xe0] ss:$8 sps:$4 sm:$0xff]   ;;  %v9703_v10 = vld [vmem:[%s11545_s15 + $0xf4] ss:$8 sps:$4 sm:$0xff]  }
 0x130   : > { %7811 = vmatpush1.bf16.msra.mxu1 %v9641_v26  ;;  %8235 = vmatpush1.bf16.msra.mxu0 %v9642_v27  ;;  %v9699_v7 = vld [vmem:[%s11545_s15 + $0x8e4] ss:$8 sps:$4 sm:$0xff]   ;;  %v9702_v9 = vld [vmem:[%s11545_s15 + $0x8e0] ss:$8 sps:$4 sm:$0xff]   ;;  %v9705_v11 = vld [vmem:[%s11545_s15 + $0x8f4] ss:$8 sps:$4 sm:$0xff]  }
 0x131   : > { %7812 = vmatprep.subr.bf16.mxu1 %v9643_v28  ;;  %8236 = vmatprep.subr.bf16.mxu0 %v9645_v29  ;;  %v9707_v12 = vld [vmem:[%s11545_s15 + $0xf0] ss:$8 sps:$4 sm:$0xff]   ;;  %v9711_v14 = vld [vmem:[%s11545_s15 + $0x104] ss:$8 sps:$4 sm:$0xff]   ;;  %v9709_v20 = vld [vmem:[%s11545_s15 + $0x100] ss:$8 sps:$4 sm:$0xff]  }
 0x132   : > { %v9708_v13 = vld [vmem:[%s11545_s15 + $0x8f0] ss:$8 sps:$4 sm:$0xff]   ;;  %v9714_v15 = vld [vmem:[%s11545_s15 + $0x904] ss:$8 sps:$4 sm:$0xff]   ;;  %v9712_v21 = vld [vmem:[%s11545_s15 + $0x900] ss:$8 sps:$4 sm:$0xff]  }
 0x133   : > { %v4378_v16 = vld [vmem:[%s12390_s0 + $0x100] sm:$0xff]  ;;  %v9717_v22 = vld [vmem:[%s11545_s15 + $0x114] ss:$8 sps:$4 sm:$0xff]   ;;  %v9715_v26 = vld [vmem:[%s11545_s15 + $0x110] ss:$8 sps:$4 sm:$0xff]   ;;  %s9452_s9 = sshll.u32 (%p10471_p6), %s10411_s11, 3 }
 0x134   : > { %7813 = vmatpush1.bf16.msra.mxu1 %v9647_v30  ;;  %8237 = vmatpush1.bf16.msra.mxu0 %v9648_v31  ;;  %v4394_v17 = vld [vmem:[%s12390_s0 + $0x180] sm:$0xff]  ;;  %v9720_v23 = vld [vmem:[%s11545_s15 + $0x914] ss:$8 sps:$4 sm:$0xff]   ;;  %v9718_v27 = vld [vmem:[%s11545_s15 + $0x910] ss:$8 sps:$4 sm:$0xff]   ;;  %s8714_s5 = scalar_lea.vmem (%p10471_p6), %s12392_s2, %s9452_s9 }
 0x135   : > { %7814 = vmatprep.subr.bf16.mxu1 %v9649_v32  ;;  %8238 = vmatprep.subr.bf16.mxu0 %v9651_v33  ;;  %v4386_v18 = vld [vmem:[%s12390_s0 + $0x140] sm:$0xff]  ;;  %v8895_v24 = vcombine.high %v4378_v16, %v4394_v17  ;;  %v9729_v5 = vld [vmem:[%s11545_s15 + $0x134] ss:$8 sps:$4 sm:$0xff]   ;;  %v9727_v30 = vld [vmem:[%s11545_s15 + $0x130] ss:$8 sps:$4 sm:$0xff]  }
 0x136   : > { %v4402_v19 = vld [vmem:[%s12390_s0 + $0x1c0] sm:$0xff]  ;;  %v9730_v31 = vld [vmem:[%s11545_s15 + $0x930] ss:$8 sps:$4 sm:$0xff]  }
 0x137   : > { %v8911_v25 = vcombine.high %v4386_v18, %v4402_v19  ;;  %v9723_v28 = vld [vmem:[%s11545_s15 + $0x124] ss:$8 sps:$4 sm:$0xff]   ;;  %v9721_v0 = vld [vmem:[%s11545_s15 + $0x120] ss:$8 sps:$4 sm:$0xff]   ;;  %v8910_v2 = vcombine.low %v4386_v18, %v4402_v19  ;;  %v9787_v18 = vld [vmem:[%s11545_s15 + $0x1d0] ss:$8 sps:$4 sm:$0xff]  }
 0x138   : > { %7815 = vmatpush1.bf16.msra.mxu1 %v9653_v34  ;;  %8239 = vmatpush1.bf16.msra.mxu0 %v9654_v35  ;;  %v9726_v29 = vld [vmem:[%s11545_s15 + $0x924] ss:$8 sps:$4 sm:$0xff]   ;;  %v9724_v1 = vld [vmem:[%s11545_s15 + $0x920] ss:$8 sps:$4 sm:$0xff]   ;;  %v9790_v19 = vld [vmem:[%s11545_s15 + $0x9d0] ss:$8 sps:$4 sm:$0xff]  }
 0x139   : > { %7816 = vmatprep.subr.bf16.mxu1 %v9655_v36  ;;  %8240 = vmatprep.subr.bf16.mxu0 %v9657_v37  ;;  %v9735_v32 = vld [vmem:[%s11545_s15 + $0x144] ss:$8 sps:$4 sm:$0xff]   ;;  %v9733_v34 = vld [vmem:[%s11545_s15 + $0x140] ss:$8 sps:$4 sm:$0xff]   ;;  %v9741_v36 = vld [vmem:[%s11545_s15 + $0x154] ss:$8 sps:$4 sm:$0xff]  }
 0x13a   : > { %v9738_v33 = vld [vmem:[%s11545_s15 + $0x944] ss:$8 sps:$4 sm:$0xff]   ;;  %v9736_v35 = vld [vmem:[%s11545_s15 + $0x940] ss:$8 sps:$4 sm:$0xff]   ;;  %v9744_v37 = vld [vmem:[%s11545_s15 + $0x954] ss:$8 sps:$4 sm:$0xff]  }
 0x13c   : > { %7817 = vmatpush1.bf16.msra.mxu1 %v9659_v38  ;;  %8241 = vmatpush1.bf16.msra.mxu0 %v9660_v39  ;;  %v9739_v38 = vld [vmem:[%s11545_s15 + $0x150] ss:$8 sps:$4 sm:$0xff]  }
 0x13d   : > { %7818 = vmatprep.subr.bf16.mxu1 %v9661_v40  ;;  %8242 = vmatprep.subr.bf16.mxu0 %v9663_v41  ;;  %v9742_v39 = vld [vmem:[%s11545_s15 + $0x950] ss:$8 sps:$4 sm:$0xff]   ;;  %v9747_v40 = vld [vmem:[%s11545_s15 + $0x164] ss:$8 sps:$4 sm:$0xff]  }
 0x13e   : > { %v9750_v41 = vld [vmem:[%s11545_s15 + $0x964] ss:$8 sps:$4 sm:$0xff]  }
 0x140   : > { %7819 = vmatpush1.bf16.msra.mxu1 %v9665_v42  ;;  %8243 = vmatpush1.bf16.msra.mxu0 %v9666_v43  ;;  %v11658_v42 = vld [vmem:[%s12390_s0 + $0x8] sm:$0xff] }
 0x141   : > { %7820 = vmatprep.subr.bf16.mxu1 %v9667_v44  ;;  %8244 = vmatprep.subr.bf16.mxu0 %v9669_v45  ;;  %v11663_v43 = vld [vmem:[%s12390_s0 + $0x88] sm:$0xff] }
 0x142   : > { %v9745_v44 = vld [vmem:[%s11545_s15 + $0x160] ss:$8 sps:$4 sm:$0xff]   ;;  %v8865_v45 = vcombine.high %v11658_v42, %v11663_v43 }
 0x144   : > { %7821 = vmatpush1.bf16.msra.mxu1 %v9671_v46  ;;  %8245 = vmatpush1.bf16.msra.mxu0 %v9672_v47  ;;  %v9748_v46 = vld [vmem:[%s11545_s15 + $0x960] ss:$8 sps:$4 sm:$0xff]  }
 0x145   : > { %7822 = vmatprep.subr.bf16.mxu1 %v9673_v48  ;;  %8246 = vmatprep.subr.bf16.mxu0 %v9675_v49  ;;  %v11672_v47 = vld [vmem:[%s12390_s0 + $0x48] sm:$0xff]  ;;  %v9753_v49 = vld [vmem:[%s11545_s15 + $0x174] ss:$8 sps:$4 sm:$0xff]  }
 0x146   : > { %v11677_v48 = vld [vmem:[%s12390_s0 + $0xc8] sm:$0xff] }
 0x148   : > { %7823 = vmatpush1.bf16.msra.mxu1 %v9677_v50  ;;  %8247 = vmatpush1.bf16.msra.mxu0 %v9678_v51  ;;  %v8881_v50 = vcombine.high %v11672_v47, %v11677_v48  ;;  %v9756_v51 = vld [vmem:[%s11545_s15 + $0x974] ss:$8 sps:$4 sm:$0xff]  }
 0x149   : > { %7824 = vmatprep.subr.bf16.mxu1 %v9679_v52  ;;  %8248 = vmatprep.subr.bf16.mxu0 %v9681_v53  ;;  %v9751_v52 = vld [vmem:[%s11545_s15 + $0x170] ss:$8 sps:$4 sm:$0xff]  }
 0x14a   : > { %v9754_v53 = vld [vmem:[%s11545_s15 + $0x970] ss:$8 sps:$4 sm:$0xff]  }
 0x14c   : > { %7825 = vmatpush1.bf16.msra.mxu1 %v9683_v54  ;;  %8249 = vmatpush1.bf16.msra.mxu0 %v9684_v55  ;;  %v9759_v54 = vld [vmem:[%s11545_s15 + $0x184] ss:$8 sps:$4 sm:$0xff]  }
 0x14d   : > { %7826 = vmatprep.subr.bf16.mxu1 %v9685_v56  ;;  %8250 = vmatprep.subr.bf16.mxu0 %v9687_v57  ;;  %v9762_v55 = vld [vmem:[%s11545_s15 + $0x984] ss:$8 sps:$4 sm:$0xff]   ;;  %v9757_v56 = vld [vmem:[%s11545_s15 + $0x180] ss:$8 sps:$4 sm:$0xff]  }
 0x14e   : > { %v9760_v57 = vld [vmem:[%s11545_s15 + $0x980] ss:$8 sps:$4 sm:$0xff]  }
 0x150   : > { %7827 = vmatpush1.bf16.msra.mxu1 %v9689_v58  ;;  %8251 = vmatpush1.bf16.msra.mxu0 %v9690_v59  ;;  %v9765_v58 = vld [vmem:[%s11545_s15 + $0x194] ss:$8 sps:$4 sm:$0xff]  }
 0x151   : > { %7828 = vmatprep.subr.bf16.mxu1 %v9691_v60  ;;  %8252 = vmatprep.subr.bf16.mxu0 %v9693_v61  ;;  %v9768_v59 = vld [vmem:[%s11545_s15 + $0x994] ss:$8 sps:$4 sm:$0xff]   ;;  %v9763_v60 = vld [vmem:[%s11545_s15 + $0x190] ss:$8 sps:$4 sm:$0xff]  }
 0x152   : > { %v9766_v61 = vld [vmem:[%s11545_s15 + $0x990] ss:$8 sps:$4 sm:$0xff]  }
 0x154   : > { %7829 = vmatpush1.bf16.msra.mxu1 %v9695_v62  ;;  %8253 = vmatpush1.bf16.msra.mxu0 %v9696_v63  ;;  %v9771_v62 = vld [vmem:[%s11545_s15 + $0x1a4] ss:$8 sps:$4 sm:$0xff]  }
 0x155   : > { %7830 = vmatprep.subr.bf16.mxu1 %v9697_v4  ;;  %8254 = vmatprep.subr.bf16.mxu0 %v9699_v7  ;;  %v9774_v63 = vld [vmem:[%s11545_s15 + $0x9a4] ss:$8 sps:$4 sm:$0xff]   ;;  %v9769_v4 = vld [vmem:[%s11545_s15 + $0x1a0] ss:$8 sps:$4 sm:$0xff]  }
 0x156   : > { %v9772_v7 = vld [vmem:[%s11545_s15 + $0x9a0] ss:$8 sps:$4 sm:$0xff]  }
 0x158   : > { %7831 = vmatpush1.bf16.msra.mxu1 %v9701_v8  ;;  %8255 = vmatpush1.bf16.msra.mxu0 %v9702_v9  ;;  %v9777_v8 = vld [vmem:[%s11545_s15 + $0x1b4] ss:$8 sps:$4 sm:$0xff]  }
 0x159   : > { %7832 = vmatprep.subr.bf16.mxu1 %v9703_v10  ;;  %8256 = vmatprep.subr.bf16.mxu0 %v9705_v11  ;;  %v9780_v9 = vld [vmem:[%s11545_s15 + $0x9b4] ss:$8 sps:$4 sm:$0xff]   ;;  %v9775_v10 = vld [vmem:[%s11545_s15 + $0x1b0] ss:$8 sps:$4 sm:$0xff]  }
 0x15a   : > { %v9778_v11 = vld [vmem:[%s11545_s15 + $0x9b0] ss:$8 sps:$4 sm:$0xff]  }
 0x15c   : > { %7833 = vmatpush1.bf16.msra.mxu1 %v9707_v12  ;;  %8257 = vmatpush1.bf16.msra.mxu0 %v9708_v13  ;;  %v9783_v12 = vld [vmem:[%s11545_s15 + $0x1c4] ss:$8 sps:$4 sm:$0xff]  }
 0x15d   : > { %7855 = vmatprep.subr.bf16.mxu1 %v9711_v14  ;;  %8279 = vmatprep.subr.bf16.mxu0 %v9714_v15  ;;  %v9786_v13 = vld [vmem:[%s11545_s15 + $0x9c4] ss:$8 sps:$4 sm:$0xff]   ;;  %v9781_v14 = vld [vmem:[%s11545_s15 + $0x1c0] ss:$8 sps:$4 sm:$0xff]  }
 0x15e   : > { %v9784_v15 = vld [vmem:[%s11545_s15 + $0x9c0] ss:$8 sps:$4 sm:$0xff]  }
 0x15f   : > { %7835 = vmatmul.mubr.bf16.vlgmr.msra.gmra.mrb[0].mxu1 %v8862_v3  ;;  %8259 = vmatmul.mubr.bf16.vlgmr.msra.gmra.mrb[0].mxu0 %v8878_v6  ;;  %v8894_v3 = vcombine.low %v4378_v16, %v4394_v17  ;;  %v9732_v6 = vld [vmem:[%s11545_s15 + $0x934] ss:$8 sps:$4 sm:$0xff]  }
 0x160   : > { %7856 = vmatpush1.bf16.msra.mxu1 %v9709_v20  ;;  %8280 = vmatpush1.bf16.msra.mxu0 %v9712_v21  ;;  %v9789_v16 = vld [vmem:[%s11545_s15 + $0x1d4] ss:$8 sps:$4 sm:$0xff]   ;;  %v9795_v20 = vld [vmem:[%s11545_s15 + $0x1e4] ss:$8 sps:$4 sm:$0xff]  }
 0x161   : > { %7857 = vmatprep.subr.bf16.mxu1 %v9717_v22  ;;  %8281 = vmatprep.subr.bf16.mxu0 %v9720_v23  ;;  %v9792_v17 = vld [vmem:[%s11545_s15 + $0x9d4] ss:$8 sps:$4 sm:$0xff]   ;;  %v9798_v21 = vld [vmem:[%s11545_s15 + $0x9e4] ss:$8 sps:$4 sm:$0xff]   ;;  %v9793_v22 = vld [vmem:[%s11545_s15 + $0x1e0] ss:$8 sps:$4 sm:$0xff]  }
 0x162   : > { %7844 = vmatprep.mubr.bf16.mxu1 %v8895_v24  ;;  %8268 = vmatprep.mubr.bf16.mxu0 %v8911_v25  ;;  %v9796_v23 = vld [vmem:[%s11545_s15 + $0x9e0] ss:$8 sps:$4 sm:$0xff]   ;;  %v9801_v24 = vld [vmem:[%s11545_s15 + $0x1f4] ss:$8 sps:$4 sm:$0xff]  }
 0x163   : > { %v9804_v25 = vld [vmem:[%s11545_s15 + $0x9f4] ss:$8 sps:$4 sm:$0xff]  }
 0x164   : > { %7858 = vmatpush1.bf16.msra.mxu1 %v9715_v26  ;;  %8282 = vmatpush1.bf16.msra.mxu0 %v9718_v27  ;;  %v9799_v26 = vld [vmem:[%s11545_s15 + $0x1f0] ss:$8 sps:$4 sm:$0xff]  }
 0x165   : > { %7859 = vmatprep.subr.bf16.mxu1 %v9723_v28  ;;  %8283 = vmatprep.subr.bf16.mxu0 %v9726_v29  ;;  %v9802_v27 = vld [vmem:[%s11545_s15 + $0x9f0] ss:$8 sps:$4 sm:$0xff]   ;;  %v9807_v28 = vld [vmem:[%s11545_s15 + $0x204] ss:$8 sps:$4 sm:$0xff]  }
 0x166   : > { %v9810_v29 = vld [vmem:[%s11545_s15 + $0xa04] ss:$8 sps:$4 sm:$0xff]  }
 0x167   : > { %7845 = vmatmul.mubr.bf16.gmra.mrb[4].mxu1 %v8894_v3  ;;  %8269 = vmatmul.mubr.bf16.gmra.mrb[4].mxu0 %v8910_v2  ;;  %v4379_v3 = vld [vmem:[%s12390_s0 + $0x108] sm:$0xff] }
 0x168   : > { %7860 = vmatpush1.bf16.msra.mxu1 %v9721_v0  ;;  %8284 = vmatpush1.bf16.msra.mxu0 %v9724_v1  ;;  %v9805_v0 = vld [vmem:[%s11545_s15 + $0x200] ss:$8 sps:$4 sm:$0xff]  }
 0x169   : > { %7861 = vmatprep.subr.bf16.mxu1 %v9729_v5  ;;  %8285 = vmatprep.subr.bf16.mxu0 %v9732_v6  ;;  %v9808_v1 = vld [vmem:[%s11545_s15 + $0xa00] ss:$8 sps:$4 sm:$0xff]   ;;  %v8864_v5 = vcombine.low %v11658_v42, %v11663_v43  ;;  %v8880_v6 = vcombine.low %v11672_v47, %v11677_v48  ;;  %v11748_v42 = vld [vmem:[%s12390_s0 + $0x10] sm:$0xff] }
 0x16a   : > { %7887 = vmatprep.mubr.bf16.mxu1 %v8865_v45  ;;  %8311 = vmatprep.mubr.bf16.mxu0 %v8881_v50  ;;  %v4395_v2 = vld [vmem:[%s12390_s0 + $0x188] sm:$0xff]  ;;  %v11753_v43 = vld [vmem:[%s12390_s0 + $0x90] sm:$0xff] }
 0x16b   : > { %v11763_v47 = vld [vmem:[%s12390_s0 + $0xd0] sm:$0xff]  ;;  %v8867_v50 = vcombine.high %v11748_v42, %v11753_v43 }
 0x16c   : > { %7862 = vmatpush1.bf16.msra.mxu1 %v9727_v30  ;;  %8286 = vmatpush1.bf16.msra.mxu0 %v9730_v31  ;;  %v4387_v30 = vld [vmem:[%s12390_s0 + $0x148] sm:$0xff]  ;;  %v9825_v48 = vld [vmem:[%s11545_s15 + $0x234] ss:$8 sps:$4 sm:$0xff]  }
 0x16d   : > { %7863 = vmatprep.subr.bf16.mxu1 %v9735_v32  ;;  %8287 = vmatprep.subr.bf16.mxu0 %v9738_v33  ;;  %v4403_v31 = vld [vmem:[%s12390_s0 + $0x1c8] sm:$0xff]  ;;  %v9813_v32 = vld [vmem:[%s11545_s15 + $0x214] ss:$8 sps:$4 sm:$0xff]  }
 0x16e   : > { %v9816_v33 = vld [vmem:[%s11545_s15 + $0xa14] ss:$8 sps:$4 sm:$0xff]   ;;  %v8912_v45 = vcombine.low %v4387_v30, %v4403_v31 }
 0x170   : > { %7864 = vmatpush1.bf16.msra.mxu1 %v9733_v34  ;;  %8288 = vmatpush1.bf16.msra.mxu0 %v9736_v35  ;;  %v8897_v34 = vcombine.high %v4379_v3, %v4395_v2  ;;  %v8913_v35 = vcombine.high %v4387_v30, %v4403_v31  ;;  %v9891_v30 = vld [vmem:[%s11545_s15 + $0x2e4] ss:$8 sps:$4 sm:$0xff]  }
 0x171   : > { %7865 = vmatprep.subr.bf16.mxu1 %v9741_v36  ;;  %8289 = vmatprep.subr.bf16.mxu0 %v9744_v37  ;;  %v9811_v36 = vld [vmem:[%s11545_s15 + $0x210] ss:$8 sps:$4 sm:$0xff]   ;;  %v9894_v31 = vld [vmem:[%s11545_s15 + $0xae4] ss:$8 sps:$4 sm:$0xff]  }
 0x172   : > { %v9814_v37 = vld [vmem:[%s11545_s15 + $0xa10] ss:$8 sps:$4 sm:$0xff]  }
 0x174   : > { %7866 = vmatpush1.bf16.msra.mxu1 %v9739_v38  ;;  %8290 = vmatpush1.bf16.msra.mxu0 %v9742_v39  ;;  %v9819_v38 = vld [vmem:[%s11545_s15 + $0x224] ss:$8 sps:$4 sm:$0xff]  }
 0x175   : > { %7867 = vmatprep.subr.bf16.mxu1 %v9747_v40  ;;  %8291 = vmatprep.subr.bf16.mxu0 %v9750_v41  ;;  %v9822_v39 = vld [vmem:[%s11545_s15 + $0xa24] ss:$8 sps:$4 sm:$0xff]   ;;  %v9817_v40 = vld [vmem:[%s11545_s15 + $0x220] ss:$8 sps:$4 sm:$0xff]  }
 0x176   : > { %v9820_v41 = vld [vmem:[%s11545_s15 + $0xa20] ss:$8 sps:$4 sm:$0xff]  }
 0x178   : > { %7868 = vmatpush1.bf16.msra.mxu1 %v9745_v44  ;;  %8292 = vmatpush1.bf16.msra.mxu0 %v9748_v46  ;;  %v8896_v44 = vcombine.low %v4379_v3, %v4395_v2  ;;  %v11758_v46 = vld [vmem:[%s12390_s0 + $0x50] sm:$0xff] }
 0x179   : > { %7869 = vmatprep.subr.bf16.mxu1 %v9753_v49  ;;  %8293 = vmatprep.subr.bf16.mxu0 %v9756_v51  ;;  %v9828_v49 = vld [vmem:[%s11545_s15 + $0xa34] ss:$8 sps:$4 sm:$0xff]   ;;  %v8883_v51 = vcombine.high %v11758_v46, %v11763_v47 }
 0x17a   : > { %v9885_v3 = vld [vmem:[%s11545_s15 + $0x2d4] ss:$8 sps:$4 sm:$0xff]  }
 0x17b   : > { %v9888_v2 = vld [vmem:[%s11545_s15 + $0xad4] ss:$8 sps:$4 sm:$0xff]  }
 0x17c   : > { %7870 = vmatpush1.bf16.msra.mxu1 %v9751_v52  ;;  %8294 = vmatpush1.bf16.msra.mxu0 %v9754_v53  ;;  %v9823_v52 = vld [vmem:[%s11545_s15 + $0x230] ss:$8 sps:$4 sm:$0xff]  }
 0x17d   : > { %7871 = vmatprep.subr.bf16.mxu1 %v9759_v54  ;;  %8295 = vmatprep.subr.bf16.mxu0 %v9762_v55  ;;  %v9826_v53 = vld [vmem:[%s11545_s15 + $0xa30] ss:$8 sps:$4 sm:$0xff]   ;;  %v9831_v54 = vld [vmem:[%s11545_s15 + $0x244] ss:$8 sps:$4 sm:$0xff]  }
 0x17e   : > { %v9834_v55 = vld [vmem:[%s11545_s15 + $0xa44] ss:$8 sps:$4 sm:$0xff]  }
 0x180   : > { %7872 = vmatpush1.bf16.msra.mxu1 %v9757_v56  ;;  %8296 = vmatpush1.bf16.msra.mxu0 %v9760_v57  ;;  %v9829_v56 = vld [vmem:[%s11545_s15 + $0x240] ss:$8 sps:$4 sm:$0xff]  }
 0x181   : > { %7873 = vmatprep.subr.bf16.mxu1 %v9765_v58  ;;  %8297 = vmatprep.subr.bf16.mxu0 %v9768_v59  ;;  %v9832_v57 = vld [vmem:[%s11545_s15 + $0xa40] ss:$8 sps:$4 sm:$0xff]   ;;  %v9837_v58 = vld [vmem:[%s11545_s15 + $0x254] ss:$8 sps:$4 sm:$0xff]  }
 0x182   : > { %v9840_v59 = vld [vmem:[%s11545_s15 + $0xa54] ss:$8 sps:$4 sm:$0xff]  }
 0x184   : > { %7874 = vmatpush1.bf16.msra.mxu1 %v9763_v60  ;;  %8298 = vmatpush1.bf16.msra.mxu0 %v9766_v61  ;;  %v9835_v60 = vld [vmem:[%s11545_s15 + $0x250] ss:$8 sps:$4 sm:$0xff]  }
 0x185   : > { %7875 = vmatprep.subr.bf16.mxu1 %v9771_v62  ;;  %8299 = vmatprep.subr.bf16.mxu0 %v9774_v63  ;;  %v9838_v61 = vld [vmem:[%s11545_s15 + $0xa50] ss:$8 sps:$4 sm:$0xff]   ;;  %v9843_v62 = vld [vmem:[%s11545_s15 + $0x264] ss:$8 sps:$4 sm:$0xff]  }
 0x186   : > { %v9846_v63 = vld [vmem:[%s11545_s15 + $0xa64] ss:$8 sps:$4 sm:$0xff]  }
 0x188   : > { %7876 = vmatpush1.bf16.msra.mxu1 %v9769_v4  ;;  %8300 = vmatpush1.bf16.msra.mxu0 %v9772_v7  ;;  %v9841_v4 = vld [vmem:[%s11545_s15 + $0x260] ss:$8 sps:$4 sm:$0xff]  }
 0x189   : > { %7877 = vmatprep.subr.bf16.mxu1 %v9777_v8  ;;  %8301 = vmatprep.subr.bf16.mxu0 %v9780_v9  ;;  %v9844_v7 = vld [vmem:[%s11545_s15 + $0xa60] ss:$8 sps:$4 sm:$0xff]   ;;  %v9849_v8 = vld [vmem:[%s11545_s15 + $0x274] ss:$8 sps:$4 sm:$0xff]  }
 0x18a   : > { %v9852_v9 = vld [vmem:[%s11545_s15 + $0xa74] ss:$8 sps:$4 sm:$0xff]  }
 0x18c   : > { %7878 = vmatpush1.bf16.msra.mxu1 %v9775_v10  ;;  %8302 = vmatpush1.bf16.msra.mxu0 %v9778_v11  ;;  %v9847_v10 = vld [vmem:[%s11545_s15 + $0x270] ss:$8 sps:$4 sm:$0xff]  }
 0x18d   : > { %7879 = vmatprep.subr.bf16.mxu1 %v9783_v12  ;;  %8303 = vmatprep.subr.bf16.mxu0 %v9786_v13  ;;  %v9850_v11 = vld [vmem:[%s11545_s15 + $0xa70] ss:$8 sps:$4 sm:$0xff]   ;;  %v9855_v12 = vld [vmem:[%s11545_s15 + $0x284] ss:$8 sps:$4 sm:$0xff]  }
 0x18e   : > { %v9858_v13 = vld [vmem:[%s11545_s15 + $0xa84] ss:$8 sps:$4 sm:$0xff]  }
 0x190   : > { %7880 = vmatpush1.bf16.msra.mxu1 %v9781_v14  ;;  %8304 = vmatpush1.bf16.msra.mxu0 %v9784_v15  ;;  %v9853_v14 = vld [vmem:[%s11545_s15 + $0x280] ss:$8 sps:$4 sm:$0xff]  }
 0x191   : > { %7881 = vmatprep.subr.bf16.mxu1 %v9789_v16  ;;  %8305 = vmatprep.subr.bf16.mxu0 %v9792_v17  ;;  %v9856_v15 = vld [vmem:[%s11545_s15 + $0xa80] ss:$8 sps:$4 sm:$0xff]   ;;  %v9861_v16 = vld [vmem:[%s11545_s15 + $0x294] ss:$8 sps:$4 sm:$0xff]  }
 0x192   : > { %v9864_v17 = vld [vmem:[%s11545_s15 + $0xa94] ss:$8 sps:$4 sm:$0xff]  }
 0x194   : > { %7882 = vmatpush1.bf16.msra.mxu1 %v9787_v18  ;;  %8306 = vmatpush1.bf16.msra.mxu0 %v9790_v19  ;;  %v9859_v18 = vld [vmem:[%s11545_s15 + $0x290] ss:$8 sps:$4 sm:$0xff]  }
 0x195   : > { %7883 = vmatprep.subr.bf16.mxu1 %v9795_v20  ;;  %8307 = vmatprep.subr.bf16.mxu0 %v9798_v21  ;;  %v9862_v19 = vld [vmem:[%s11545_s15 + $0xa90] ss:$8 sps:$4 sm:$0xff]   ;;  %v9867_v20 = vld [vmem:[%s11545_s15 + $0x2a4] ss:$8 sps:$4 sm:$0xff]  }
 0x196   : > { %v9870_v21 = vld [vmem:[%s11545_s15 + $0xaa4] ss:$8 sps:$4 sm:$0xff]  }
 0x198   : > { %7884 = vmatpush1.bf16.msra.mxu1 %v9793_v22  ;;  %8308 = vmatpush1.bf16.msra.mxu0 %v9796_v23  ;;  %v9865_v22 = vld [vmem:[%s11545_s15 + $0x2a0] ss:$8 sps:$4 sm:$0xff]  }
 0x199   : > { %7885 = vmatprep.subr.bf16.mxu1 %v9801_v24  ;;  %8309 = vmatprep.subr.bf16.mxu0 %v9804_v25  ;;  %v9868_v23 = vld [vmem:[%s11545_s15 + $0xaa0] ss:$8 sps:$4 sm:$0xff]   ;;  %v9873_v24 = vld [vmem:[%s11545_s15 + $0x2b4] ss:$8 sps:$4 sm:$0xff]  }
 0x19a   : > { %v9876_v25 = vld [vmem:[%s11545_s15 + $0xab4] ss:$8 sps:$4 sm:$0xff]  }
 0x19c   : > { %7886 = vmatpush1.bf16.msra.mxu1 %v9799_v26  ;;  %8310 = vmatpush1.bf16.msra.mxu0 %v9802_v27  ;;  %v9871_v26 = vld [vmem:[%s11545_s15 + $0x2b0] ss:$8 sps:$4 sm:$0xff]  }
 0x19d   : > { %7908 = vmatprep.subr.bf16.mxu1 %v9807_v28  ;;  %8332 = vmatprep.subr.bf16.mxu0 %v9810_v29  ;;  %v9874_v27 = vld [vmem:[%s11545_s15 + $0xab0] ss:$8 sps:$4 sm:$0xff]   ;;  %v9879_v28 = vld [vmem:[%s11545_s15 + $0x2c4] ss:$8 sps:$4 sm:$0xff]  }
 0x19e   : > { %v9882_v29 = vld [vmem:[%s11545_s15 + $0xac4] ss:$8 sps:$4 sm:$0xff]  }
 0x19f   : > { %7888 = vmatmul.mubr.bf16.vlgmr.msra.gmra.mrb[0].mxu1 %v8864_v5  ;;  %8312 = vmatmul.mubr.bf16.vlgmr.msra.gmra.mrb[0].mxu0 %v8880_v6  ;;  %v9883_v5 = vld [vmem:[%s11545_s15 + $0x2d0] ss:$8 sps:$4 sm:$0xff]  }
 0x1a0   : > { %7909 = vmatpush1.bf16.msra.mxu1 %v9805_v0  ;;  %8333 = vmatpush1.bf16.msra.mxu0 %v9808_v1  ;;  %v9877_v0 = vld [vmem:[%s11545_s15 + $0x2c0] ss:$8 sps:$4 sm:$0xff]   ;;  %v9886_v6 = vld [vmem:[%s11545_s15 + $0xad0] ss:$8 sps:$4 sm:$0xff]  }
 0x1a1   : > { %7910 = vmatprep.subr.bf16.mxu1 %v9813_v32  ;;  %8334 = vmatprep.subr.bf16.mxu0 %v9816_v33  ;;  %v9880_v1 = vld [vmem:[%s11545_s15 + $0xac0] ss:$8 sps:$4 sm:$0xff]  }
 0x1a2   : > { %7897 = vmatprep.mubr.bf16.mxu1 %v8897_v34  ;;  %8321 = vmatprep.mubr.bf16.mxu0 %v8913_v35  ;;  %v9889_v32 = vld [vmem:[%s11545_s15 + $0x2e0] ss:$8 sps:$4 sm:$0xff]   ;;  %v9897_v34 = vld [vmem:[%s11545_s15 + $0x2f4] ss:$8 sps:$4 sm:$0xff]  }
 0x1a3   : > { %v9892_v33 = vld [vmem:[%s11545_s15 + $0xae0] ss:$8 sps:$4 sm:$0xff]   ;;  %v9900_v35 = vld [vmem:[%s11545_s15 + $0xaf4] ss:$8 sps:$4 sm:$0xff]  }
 0x1a4   : > { %7911 = vmatpush1.bf16.msra.mxu1 %v9811_v36  ;;  %8335 = vmatpush1.bf16.msra.mxu0 %v9814_v37  ;;  %v9895_v36 = vld [vmem:[%s11545_s15 + $0x2f0] ss:$8 sps:$4 sm:$0xff]  }
 0x1a5   : > { %7912 = vmatprep.subr.bf16.mxu1 %v9819_v38  ;;  %8336 = vmatprep.subr.bf16.mxu0 %v9822_v39  ;;  %v9898_v37 = vld [vmem:[%s11545_s15 + $0xaf0] ss:$8 sps:$4 sm:$0xff]   ;;  %v9903_v38 = vld [vmem:[%s11545_s15 + $0x304] ss:$8 sps:$4 sm:$0xff]  }
 0x1a6   : > { %v9906_v39 = vld [vmem:[%s11545_s15 + $0xb04] ss:$8 sps:$4 sm:$0xff]  }
 0x1a7   : > { %7898 = vmatmul.mubr.bf16.gmra.mrb[4].mxu1 %v8896_v44  ;;  %8322 = vmatmul.mubr.bf16.gmra.mrb[4].mxu0 %v8912_v45  ;;  %v4380_v44 = vld [vmem:[%s12390_s0 + $0x110] sm:$0xff] }
 0x1a8   : > { %7913 = vmatpush1.bf16.msra.mxu1 %v9817_v40  ;;  %8337 = vmatpush1.bf16.msra.mxu0 %v9820_v41  ;;  %v9901_v40 = vld [vmem:[%s11545_s15 + $0x300] ss:$8 sps:$4 sm:$0xff]   ;;  %v4396_v45 = vld [vmem:[%s12390_s0 + $0x190] sm:$0xff] }
 0x1a9   : > { %7914 = vmatprep.subr.bf16.mxu1 %v9825_v48  ;;  %8338 = vmatprep.subr.bf16.mxu0 %v9828_v49  ;;  %v9904_v41 = vld [vmem:[%s11545_s15 + $0xb00] ss:$8 sps:$4 sm:$0xff]   ;;  %v8866_v48 = vcombine.low %v11748_v42, %v11753_v43  ;;  %v8882_v49 = vcombine.low %v11758_v46, %v11763_v47  ;;  %v9912_v42 = vld [vmem:[%s11545_s15 + $0xb14] ss:$8 sps:$4 sm:$0xff]   ;;  %v8899_v43 = vcombine.high %v4380_v44, %v4396_v45  ;;  %v9907_v47 = vld [vmem:[%s11545_s15 + $0x310] ss:$8 sps:$4 sm:$0xff]  }
 0x1aa   : > { %7940 = vmatprep.mubr.bf16.mxu1 %v8867_v50  ;;  %8364 = vmatprep.mubr.bf16.mxu0 %v8883_v51  ;;  %v4388_v50 = vld [vmem:[%s12390_s0 + $0x150] sm:$0xff] }
 0x1ab   : > { %v4404_v51 = vld [vmem:[%s12390_s0 + $0x1d0] sm:$0xff] }
 0x1ac   : > { %7915 = vmatpush1.bf16.msra.mxu1 %v9823_v52  ;;  %8339 = vmatpush1.bf16.msra.mxu0 %v9826_v53  ;;  %v9909_v52 = vld [vmem:[%s11545_s15 + $0x314] ss:$8 sps:$4 sm:$0xff]   ;;  %v8915_v46 = vcombine.high %v4388_v50, %v4404_v51  ;;  %v9910_v53 = vld [vmem:[%s11545_s15 + $0xb10] ss:$8 sps:$4 sm:$0xff]  }
 0x1ad   : > { %7916 = vmatprep.subr.bf16.mxu1 %v9831_v54  ;;  %8340 = vmatprep.subr.bf16.mxu0 %v9834_v55  ;;  %v9915_v54 = vld [vmem:[%s11545_s15 + $0x324] ss:$8 sps:$4 sm:$0xff]  }
 0x1ae   : > { %v9918_v55 = vld [vmem:[%s11545_s15 + $0xb24] ss:$8 sps:$4 sm:$0xff]  }
 0x1b0   : > { %7917 = vmatpush1.bf16.msra.mxu1 %v9829_v56  ;;  %8341 = vmatpush1.bf16.msra.mxu0 %v9832_v57  ;;  %v9913_v56 = vld [vmem:[%s11545_s15 + $0x320] ss:$8 sps:$4 sm:$0xff]  }
 0x1b1   : > { %7918 = vmatprep.subr.bf16.mxu1 %v9837_v58  ;;  %8342 = vmatprep.subr.bf16.mxu0 %v9840_v59  ;;  %v9916_v57 = vld [vmem:[%s11545_s15 + $0xb20] ss:$8 sps:$4 sm:$0xff]   ;;  %v11852_v58 = vld [vmem:[%s12390_s0 + $0x18] sm:$0xff] }
 0x1b2   : > { %v11857_v59 = vld [vmem:[%s12390_s0 + $0x98] sm:$0xff] }
 0x1b4   : > { %7919 = vmatpush1.bf16.msra.mxu1 %v9835_v60  ;;  %8343 = vmatpush1.bf16.msra.mxu0 %v9838_v61  ;;  %v8898_v60 = vcombine.low %v4380_v44, %v4396_v45  ;;  %v8914_v61 = vcombine.low %v4388_v50, %v4404_v51  ;;  %v9981_v44 = vld [vmem:[%s11545_s15 + $0x3d4] ss:$8 sps:$4 sm:$0xff]   ;;  %v9987_v50 = vld [vmem:[%s11545_s15 + $0x3e4] ss:$8 sps:$4 sm:$0xff]  }
 0x1b5   : > { %7920 = vmatprep.subr.bf16.mxu1 %v9843_v62  ;;  %8344 = vmatprep.subr.bf16.mxu0 %v9846_v63  ;;  %v11862_v62 = vld [vmem:[%s12390_s0 + $0x58] sm:$0xff]  ;;  %v9990_v51 = vld [vmem:[%s11545_s15 + $0xbe4] ss:$8 sps:$4 sm:$0xff]  }
 0x1b6   : > { %v11867_v63 = vld [vmem:[%s12390_s0 + $0xd8] sm:$0xff] }
 0x1b7   : > { %v9984_v45 = vld [vmem:[%s11545_s15 + $0xbd4] ss:$8 sps:$4 sm:$0xff]  }
 0x1b8   : > { %7921 = vmatpush1.bf16.msra.mxu1 %v9841_v4  ;;  %8345 = vmatpush1.bf16.msra.mxu0 %v9844_v7  ;;  %v9921_v4 = vld [vmem:[%s11545_s15 + $0x334] ss:$8 sps:$4 sm:$0xff]  }
 0x1b9   : > { %7922 = vmatprep.subr.bf16.mxu1 %v9849_v8  ;;  %8346 = vmatprep.subr.bf16.mxu0 %v9852_v9  ;;  %v9924_v7 = vld [vmem:[%s11545_s15 + $0xb34] ss:$8 sps:$4 sm:$0xff]   ;;  %v8869_v8 = vcombine.high %v11852_v58, %v11857_v59  ;;  %v8885_v9 = vcombine.high %v11862_v62, %v11867_v63 }
 0x1bc   : > { %7923 = vmatpush1.bf16.msra.mxu1 %v9847_v10  ;;  %8347 = vmatpush1.bf16.msra.mxu0 %v9850_v11  ;;  %v9919_v10 = vld [vmem:[%s11545_s15 + $0x330] ss:$8 sps:$4 sm:$0xff]  }
 0x1bd   : > { %7924 = vmatprep.subr.bf16.mxu1 %v9855_v12  ;;  %8348 = vmatprep.subr.bf16.mxu0 %v9858_v13  ;;  %v9922_v11 = vld [vmem:[%s11545_s15 + $0xb30] ss:$8 sps:$4 sm:$0xff]   ;;  %v9927_v12 = vld [vmem:[%s11545_s15 + $0x344] ss:$8 sps:$4 sm:$0xff]  }
 0x1be   : > { %v9930_v13 = vld [vmem:[%s11545_s15 + $0xb44] ss:$8 sps:$4 sm:$0xff]  }
 0x1c0   : > { %7925 = vmatpush1.bf16.msra.mxu1 %v9853_v14  ;;  %8349 = vmatpush1.bf16.msra.mxu0 %v9856_v15  ;;  %v9925_v14 = vld [vmem:[%s11545_s15 + $0x340] ss:$8 sps:$4 sm:$0xff]  }
 0x1c1   : > { %7926 = vmatprep.subr.bf16.mxu1 %v9861_v16  ;;  %8350 = vmatprep.subr.bf16.mxu0 %v9864_v17  ;;  %v9928_v15 = vld [vmem:[%s11545_s15 + $0xb40] ss:$8 sps:$4 sm:$0xff]   ;;  %v9933_v16 = vld [vmem:[%s11545_s15 + $0x354] ss:$8 sps:$4 sm:$0xff]  }
 0x1c2   : > { %v9936_v17 = vld [vmem:[%s11545_s15 + $0xb54] ss:$8 sps:$4 sm:$0xff]  }
 0x1c4   : > { %7927 = vmatpush1.bf16.msra.mxu1 %v9859_v18  ;;  %8351 = vmatpush1.bf16.msra.mxu0 %v9862_v19  ;;  %v9931_v18 = vld [vmem:[%s11545_s15 + $0x350] ss:$8 sps:$4 sm:$0xff]  }
 0x1c5   : > { %7928 = vmatprep.subr.bf16.mxu1 %v9867_v20  ;;  %8352 = vmatprep.subr.bf16.mxu0 %v9870_v21  ;;  %v9934_v19 = vld [vmem:[%s11545_s15 + $0xb50] ss:$8 sps:$4 sm:$0xff]   ;;  %v9939_v20 = vld [vmem:[%s11545_s15 + $0x364] ss:$8 sps:$4 sm:$0xff]  }
 0x1c6   : > { %v9942_v21 = vld [vmem:[%s11545_s15 + $0xb64] ss:$8 sps:$4 sm:$0xff]  }
 0x1c8   : > { %7929 = vmatpush1.bf16.msra.mxu1 %v9865_v22  ;;  %8353 = vmatpush1.bf16.msra.mxu0 %v9868_v23  ;;  %v9937_v22 = vld [vmem:[%s11545_s15 + $0x360] ss:$8 sps:$4 sm:$0xff]  }
 0x1c9   : > { %7930 = vmatprep.subr.bf16.mxu1 %v9873_v24  ;;  %8354 = vmatprep.subr.bf16.mxu0 %v9876_v25  ;;  %v9940_v23 = vld [vmem:[%s11545_s15 + $0xb60] ss:$8 sps:$4 sm:$0xff]   ;;  %v9945_v24 = vld [vmem:[%s11545_s15 + $0x374] ss:$8 sps:$4 sm:$0xff]  }
 0x1ca   : > { %v9948_v25 = vld [vmem:[%s11545_s15 + $0xb74] ss:$8 sps:$4 sm:$0xff]  }
 0x1cc   : > { %7931 = vmatpush1.bf16.msra.mxu1 %v9871_v26  ;;  %8355 = vmatpush1.bf16.msra.mxu0 %v9874_v27  ;;  %v9943_v26 = vld [vmem:[%s11545_s15 + $0x370] ss:$8 sps:$4 sm:$0xff]  }
 0x1cd   : > { %7932 = vmatprep.subr.bf16.mxu1 %v9879_v28  ;;  %8356 = vmatprep.subr.bf16.mxu0 %v9882_v29  ;;  %v9946_v27 = vld [vmem:[%s11545_s15 + $0xb70] ss:$8 sps:$4 sm:$0xff]   ;;  %v9951_v28 = vld [vmem:[%s11545_s15 + $0x384] ss:$8 sps:$4 sm:$0xff]  }
 0x1ce   : > { %v9954_v29 = vld [vmem:[%s11545_s15 + $0xb84] ss:$8 sps:$4 sm:$0xff]  }
 0x1d0   : > { %7933 = vmatpush1.bf16.msra.mxu1 %v9877_v0  ;;  %8357 = vmatpush1.bf16.msra.mxu0 %v9880_v1  ;;  %v9949_v0 = vld [vmem:[%s11545_s15 + $0x380] ss:$8 sps:$4 sm:$0xff]  }
 0x1d1   : > { %7934 = vmatprep.subr.bf16.mxu1 %v9885_v3  ;;  %8358 = vmatprep.subr.bf16.mxu0 %v9888_v2  ;;  %v9952_v1 = vld [vmem:[%s11545_s15 + $0xb80] ss:$8 sps:$4 sm:$0xff]   ;;  %v9957_v3 = vld [vmem:[%s11545_s15 + $0x394] ss:$8 sps:$4 sm:$0xff]  }
 0x1d2   : > { %v9960_v2 = vld [vmem:[%s11545_s15 + $0xb94] ss:$8 sps:$4 sm:$0xff]  }
 0x1d4   : > { %7935 = vmatpush1.bf16.msra.mxu1 %v9883_v5  ;;  %8359 = vmatpush1.bf16.msra.mxu0 %v9886_v6  ;;  %v9955_v5 = vld [vmem:[%s11545_s15 + $0x390] ss:$8 sps:$4 sm:$0xff]  }
 0x1d5   : > { %7936 = vmatprep.subr.bf16.mxu1 %v9891_v30  ;;  %8360 = vmatprep.subr.bf16.mxu0 %v9894_v31  ;;  %v9958_v6 = vld [vmem:[%s11545_s15 + $0xb90] ss:$8 sps:$4 sm:$0xff]   ;;  %v9963_v30 = vld [vmem:[%s11545_s15 + $0x3a4] ss:$8 sps:$4 sm:$0xff]  }
 0x1d6   : > { %v9966_v31 = vld [vmem:[%s11545_s15 + $0xba4] ss:$8 sps:$4 sm:$0xff]  }
 0x1d8   : > { %7937 = vmatpush1.bf16.msra.mxu1 %v9889_v32  ;;  %8361 = vmatpush1.bf16.msra.mxu0 %v9892_v33  ;;  %v9961_v32 = vld [vmem:[%s11545_s15 + $0x3a0] ss:$8 sps:$4 sm:$0xff]  }
 0x1d9   : > { %7938 = vmatprep.subr.bf16.mxu1 %v9897_v34  ;;  %8362 = vmatprep.subr.bf16.mxu0 %v9900_v35  ;;  %v9964_v33 = vld [vmem:[%s11545_s15 + $0xba0] ss:$8 sps:$4 sm:$0xff]   ;;  %v9969_v34 = vld [vmem:[%s11545_s15 + $0x3b4] ss:$8 sps:$4 sm:$0xff]  }
 0x1da   : > { %v9972_v35 = vld [vmem:[%s11545_s15 + $0xbb4] ss:$8 sps:$4 sm:$0xff]  }
 0x1dc   : > { %7939 = vmatpush1.bf16.msra.mxu1 %v9895_v36  ;;  %8363 = vmatpush1.bf16.msra.mxu0 %v9898_v37  ;;  %v9967_v36 = vld [vmem:[%s11545_s15 + $0x3b0] ss:$8 sps:$4 sm:$0xff]  }
 0x1dd   : > { %7961 = vmatprep.subr.bf16.mxu1 %v9903_v38  ;;  %8385 = vmatprep.subr.bf16.mxu0 %v9906_v39  ;;  %v9970_v37 = vld [vmem:[%s11545_s15 + $0xbb0] ss:$8 sps:$4 sm:$0xff]   ;;  %v9975_v38 = vld [vmem:[%s11545_s15 + $0x3c4] ss:$8 sps:$4 sm:$0xff]  }
 0x1de   : > { %v9978_v39 = vld [vmem:[%s11545_s15 + $0xbc4] ss:$8 sps:$4 sm:$0xff]  }
 0x1df   : > { %7941 = vmatmul.mubr.bf16.vlgmr.msra.gmra.mrb[0].mxu1 %v8866_v48  ;;  %8365 = vmatmul.mubr.bf16.vlgmr.msra.gmra.mrb[0].mxu0 %v8882_v49  ;;  %v9979_v48 = vld [vmem:[%s11545_s15 + $0x3d0] ss:$8 sps:$4 sm:$0xff]  }
 0x1e0   : > { %7962 = vmatpush1.bf16.msra.mxu1 %v9901_v40  ;;  %8386 = vmatpush1.bf16.msra.mxu0 %v9904_v41  ;;  %v9973_v40 = vld [vmem:[%s11545_s15 + $0x3c0] ss:$8 sps:$4 sm:$0xff]   ;;  %v9982_v49 = vld [vmem:[%s11545_s15 + $0xbd0] ss:$8 sps:$4 sm:$0xff]  }
 0x1e1   : > { %7963 = vmatprep.subr.bf16.mxu1 %v9909_v52  ;;  %8387 = vmatprep.subr.bf16.mxu0 %v9912_v42  ;;  %v9976_v41 = vld [vmem:[%s11545_s15 + $0xbc0] ss:$8 sps:$4 sm:$0xff]  }
 0x1e2   : > { %7950 = vmatprep.mubr.bf16.mxu1 %v8899_v43  ;;  %8374 = vmatprep.mubr.bf16.mxu0 %v8915_v46  ;;  %v9985_v52 = vld [vmem:[%s11545_s15 + $0x3e0] ss:$8 sps:$4 sm:$0xff]   ;;  %v9993_v43 = vld [vmem:[%s11545_s15 + $0x3f4] ss:$8 sps:$4 sm:$0xff]  }
 0x1e3   : > { %v9988_v42 = vld [vmem:[%s11545_s15 + $0xbe0] ss:$8 sps:$4 sm:$0xff]   ;;  %v9996_v46 = vld [vmem:[%s11545_s15 + $0xbf4] ss:$8 sps:$4 sm:$0xff]  }
 0x1e4   : > { %7964 = vmatpush1.bf16.msra.mxu1 %v9907_v47  ;;  %8388 = vmatpush1.bf16.msra.mxu0 %v9910_v53  ;;  %v9991_v47 = vld [vmem:[%s11545_s15 + $0x3f0] ss:$8 sps:$4 sm:$0xff]  }
 0x1e5   : > { %7965 = vmatprep.subr.bf16.mxu1 %v9915_v54  ;;  %8389 = vmatprep.subr.bf16.mxu0 %v9918_v55  ;;  %v9994_v53 = vld [vmem:[%s11545_s15 + $0xbf0] ss:$8 sps:$4 sm:$0xff]   ;;  %v9999_v54 = vld [vmem:[%s11545_s15 + $0x404] ss:$8 sps:$4 sm:$0xff]  }
 0x1e6   : > { %v10002_v55 = vld [vmem:[%s11545_s15 + $0xc04] ss:$8 sps:$4 sm:$0xff]  }
 0x1e7   : > { %7951 = vmatmul.mubr.bf16.gmra.mrb[4].mxu1 %v8898_v60  ;;  %8375 = vmatmul.mubr.bf16.gmra.mrb[4].mxu0 %v8914_v61  ;;  %v4381_v60 = vld [vmem:[%s12390_s0 + $0x118] sm:$0xff] }
 0x1e8   : > { %7966 = vmatpush1.bf16.msra.mxu1 %v9913_v56  ;;  %8390 = vmatpush1.bf16.msra.mxu0 %v9916_v57  ;;  %v9997_v56 = vld [vmem:[%s11545_s15 + $0x400] ss:$8 sps:$4 sm:$0xff]   ;;  %v4397_v61 = vld [vmem:[%s12390_s0 + $0x198] sm:$0xff] }
 0x1e9   : > { %7967 = vmatprep.subr.bf16.mxu1 %v9921_v4  ;;  %8391 = vmatprep.subr.bf16.mxu0 %v9924_v7  ;;  %v10000_v57 = vld [vmem:[%s11545_s15 + $0xc00] ss:$8 sps:$4 sm:$0xff]   ;;  %v8868_v4 = vcombine.low %v11852_v58, %v11857_v59  ;;  %v8884_v7 = vcombine.low %v11862_v62, %v11867_v63  ;;  %v10008_v58 = vld [vmem:[%s11545_s15 + $0xc14] ss:$8 sps:$4 sm:$0xff]   ;;  %v8901_v59 = vcombine.high %v4381_v60, %v4397_v61  ;;  %v10003_v63 = vld [vmem:[%s11545_s15 + $0x410] ss:$8 sps:$4 sm:$0xff]  }
 0x1ea   : > { %7993 = vmatprep.mubr.bf16.mxu1 %v8869_v8  ;;  %8417 = vmatprep.mubr.bf16.mxu0 %v8885_v9  ;;  %v4389_v8 = vld [vmem:[%s12390_s0 + $0x158] sm:$0xff] }
 0x1eb   : > { %v4405_v9 = vld [vmem:[%s12390_s0 + $0x1d8] sm:$0xff] }
 0x1ec   : > { %7968 = vmatpush1.bf16.msra.mxu1 %v9919_v10  ;;  %8392 = vmatpush1.bf16.msra.mxu0 %v9922_v11  ;;  %v10005_v10 = vld [vmem:[%s11545_s15 + $0x414] ss:$8 sps:$4 sm:$0xff]   ;;  %v8917_v62 = vcombine.high %v4389_v8, %v4405_v9  ;;  %v10006_v11 = vld [vmem:[%s11545_s15 + $0xc10] ss:$8 sps:$4 sm:$0xff]  }
 0x1ed   : > { %7969 = vmatprep.subr.bf16.mxu1 %v9927_v12  ;;  %8393 = vmatprep.subr.bf16.mxu0 %v9930_v13  ;;  %v10011_v12 = vld [vmem:[%s11545_s15 + $0x424] ss:$8 sps:$4 sm:$0xff]  }
 0x1ee   : > { %v10014_v13 = vld [vmem:[%s11545_s15 + $0xc24] ss:$8 sps:$4 sm:$0xff]  }
 0x1f0   : > { %7970 = vmatpush1.bf16.msra.mxu1 %v9925_v14  ;;  %8394 = vmatpush1.bf16.msra.mxu0 %v9928_v15  ;;  %v10009_v14 = vld [vmem:[%s11545_s15 + $0x420] ss:$8 sps:$4 sm:$0xff]  }
 0x1f1   : > { %7971 = vmatprep.subr.bf16.mxu1 %v9933_v16  ;;  %8395 = vmatprep.subr.bf16.mxu0 %v9936_v17  ;;  %v10012_v15 = vld [vmem:[%s11545_s15 + $0xc20] ss:$8 sps:$4 sm:$0xff]  }
 0x1f2   : > { %v11956_v16 = vld [vmem:[%s12390_s0 + $0x20] sm:$0xff] }
 0x1f3   : > { %v11961_v17 = vld [vmem:[%s12390_s0 + $0xa0] sm:$0xff] }
 0x1f4   : > { %7972 = vmatpush1.bf16.msra.mxu1 %v9931_v18  ;;  %8396 = vmatpush1.bf16.msra.mxu0 %v9934_v19  ;;  %v8900_v18 = vcombine.low %v4381_v60, %v4397_v61  ;;  %v8916_v19 = vcombine.low %v4389_v8, %v4405_v9  ;;  %v10077_v60 = vld [vmem:[%s11545_s15 + $0x4d4] ss:$8 sps:$4 sm:$0xff]   ;;  %v10083_v8 = vld [vmem:[%s11545_s15 + $0x4e4] ss:$8 sps:$4 sm:$0xff]  }
 0x1f5   : > { %7973 = vmatprep.subr.bf16.mxu1 %v9939_v20  ;;  %8397 = vmatprep.subr.bf16.mxu0 %v9942_v21  ;;  %v11966_v20 = vld [vmem:[%s12390_s0 + $0x60] sm:$0xff]  ;;  %v10080_v61 = vld [vmem:[%s11545_s15 + $0xcd4] ss:$8 sps:$4 sm:$0xff]  }
 0x1f6   : > { %v11971_v21 = vld [vmem:[%s12390_s0 + $0xe0] sm:$0xff] }
 0x1f7   : > { %v10086_v9 = vld [vmem:[%s11545_s15 + $0xce4] ss:$8 sps:$4 sm:$0xff]  }
 0x1f8   : > { %7974 = vmatpush1.bf16.msra.mxu1 %v9937_v22  ;;  %8398 = vmatpush1.bf16.msra.mxu0 %v9940_v23  ;;  %v10017_v22 = vld [vmem:[%s11545_s15 + $0x434] ss:$8 sps:$4 sm:$0xff]  }
 0x1f9   : > { %7975 = vmatprep.subr.bf16.mxu1 %v9945_v24  ;;  %8399 = vmatprep.subr.bf16.mxu0 %v9948_v25  ;;  %v10020_v23 = vld [vmem:[%s11545_s15 + $0xc34] ss:$8 sps:$4 sm:$0xff]   ;;  %v8871_v24 = vcombine.high %v11956_v16, %v11961_v17  ;;  %v8887_v25 = vcombine.high %v11966_v20, %v11971_v21 }
 0x1fc   : > { %7976 = vmatpush1.bf16.msra.mxu1 %v9943_v26  ;;  %8400 = vmatpush1.bf16.msra.mxu0 %v9946_v27  ;;  %v10015_v26 = vld [vmem:[%s11545_s15 + $0x430] ss:$8 sps:$4 sm:$0xff]  }
 0x1fd   : > { %7977 = vmatprep.subr.bf16.mxu1 %v9951_v28  ;;  %8401 = vmatprep.subr.bf16.mxu0 %v9954_v29  ;;  %v10018_v27 = vld [vmem:[%s11545_s15 + $0xc30] ss:$8 sps:$4 sm:$0xff]   ;;  %v10023_v28 = vld [vmem:[%s11545_s15 + $0x444] ss:$8 sps:$4 sm:$0xff]  }
 0x1fe   : > { %v10026_v29 = vld [vmem:[%s11545_s15 + $0xc44] ss:$8 sps:$4 sm:$0xff]  }
 0x200   : > { %7978 = vmatpush1.bf16.msra.mxu1 %v9949_v0  ;;  %8402 = vmatpush1.bf16.msra.mxu0 %v9952_v1  ;;  %v10021_v0 = vld [vmem:[%s11545_s15 + $0x440] ss:$8 sps:$4 sm:$0xff]  }
 0x201   : > { %7979 = vmatprep.subr.bf16.mxu1 %v9957_v3  ;;  %8403 = vmatprep.subr.bf16.mxu0 %v9960_v2  ;;  %v10024_v1 = vld [vmem:[%s11545_s15 + $0xc40] ss:$8 sps:$4 sm:$0xff]   ;;  %v10029_v3 = vld [vmem:[%s11545_s15 + $0x454] ss:$8 sps:$4 sm:$0xff]  }
 0x202   : > { %v10032_v2 = vld [vmem:[%s11545_s15 + $0xc54] ss:$8 sps:$4 sm:$0xff]  }
 0x204   : > { %7980 = vmatpush1.bf16.msra.mxu1 %v9955_v5  ;;  %8404 = vmatpush1.bf16.msra.mxu0 %v9958_v6  ;;  %v10027_v5 = vld [vmem:[%s11545_s15 + $0x450] ss:$8 sps:$4 sm:$0xff]  }
 0x205   : > { %7981 = vmatprep.subr.bf16.mxu1 %v9963_v30  ;;  %8405 = vmatprep.subr.bf16.mxu0 %v9966_v31  ;;  %v10030_v6 = vld [vmem:[%s11545_s15 + $0xc50] ss:$8 sps:$4 sm:$0xff]   ;;  %v10035_v30 = vld [vmem:[%s11545_s15 + $0x464] ss:$8 sps:$4 sm:$0xff]  }
 0x206   : > { %v10038_v31 = vld [vmem:[%s11545_s15 + $0xc64] ss:$8 sps:$4 sm:$0xff]  }
 0x208   : > { %7982 = vmatpush1.bf16.msra.mxu1 %v9961_v32  ;;  %8406 = vmatpush1.bf16.msra.mxu0 %v9964_v33  ;;  %v10033_v32 = vld [vmem:[%s11545_s15 + $0x460] ss:$8 sps:$4 sm:$0xff]  }
 0x209   : > { %7983 = vmatprep.subr.bf16.mxu1 %v9969_v34  ;;  %8407 = vmatprep.subr.bf16.mxu0 %v9972_v35  ;;  %v10036_v33 = vld [vmem:[%s11545_s15 + $0xc60] ss:$8 sps:$4 sm:$0xff]   ;;  %v10041_v34 = vld [vmem:[%s11545_s15 + $0x474] ss:$8 sps:$4 sm:$0xff]  }
 0x20a   : > { %v10044_v35 = vld [vmem:[%s11545_s15 + $0xc74] ss:$8 sps:$4 sm:$0xff]  }
 0x20c   : > { %7984 = vmatpush1.bf16.msra.mxu1 %v9967_v36  ;;  %8408 = vmatpush1.bf16.msra.mxu0 %v9970_v37  ;;  %v10039_v36 = vld [vmem:[%s11545_s15 + $0x470] ss:$8 sps:$4 sm:$0xff]  }
 0x20d   : > { %7985 = vmatprep.subr.bf16.mxu1 %v9975_v38  ;;  %8409 = vmatprep.subr.bf16.mxu0 %v9978_v39  ;;  %v10042_v37 = vld [vmem:[%s11545_s15 + $0xc70] ss:$8 sps:$4 sm:$0xff]   ;;  %v10047_v38 = vld [vmem:[%s11545_s15 + $0x484] ss:$8 sps:$4 sm:$0xff]  }
 0x20e   : > { %v10050_v39 = vld [vmem:[%s11545_s15 + $0xc84] ss:$8 sps:$4 sm:$0xff]  }
 0x210   : > { %7986 = vmatpush1.bf16.msra.mxu1 %v9973_v40  ;;  %8410 = vmatpush1.bf16.msra.mxu0 %v9976_v41  ;;  %v10045_v40 = vld [vmem:[%s11545_s15 + $0x480] ss:$8 sps:$4 sm:$0xff]  }
 0x211   : > { %7987 = vmatprep.subr.bf16.mxu1 %v9981_v44  ;;  %8411 = vmatprep.subr.bf16.mxu0 %v9984_v45  ;;  %v10048_v41 = vld [vmem:[%s11545_s15 + $0xc80] ss:$8 sps:$4 sm:$0xff]   ;;  %v10053_v44 = vld [vmem:[%s11545_s15 + $0x494] ss:$8 sps:$4 sm:$0xff]  }
 0x212   : > { %v10056_v45 = vld [vmem:[%s11545_s15 + $0xc94] ss:$8 sps:$4 sm:$0xff]  }
 0x214   : > { %7988 = vmatpush1.bf16.msra.mxu1 %v9979_v48  ;;  %8412 = vmatpush1.bf16.msra.mxu0 %v9982_v49  ;;  %v10051_v48 = vld [vmem:[%s11545_s15 + $0x490] ss:$8 sps:$4 sm:$0xff]  }
 0x215   : > { %7989 = vmatprep.subr.bf16.mxu1 %v9987_v50  ;;  %8413 = vmatprep.subr.bf16.mxu0 %v9990_v51  ;;  %v10054_v49 = vld [vmem:[%s11545_s15 + $0xc90] ss:$8 sps:$4 sm:$0xff]   ;;  %v10059_v50 = vld [vmem:[%s11545_s15 + $0x4a4] ss:$8 sps:$4 sm:$0xff]  }
 0x216   : > { %v10062_v51 = vld [vmem:[%s11545_s15 + $0xca4] ss:$8 sps:$4 sm:$0xff]  }
 0x218   : > { %7990 = vmatpush1.bf16.msra.mxu1 %v9985_v52  ;;  %8414 = vmatpush1.bf16.msra.mxu0 %v9988_v42  ;;  %v10057_v52 = vld [vmem:[%s11545_s15 + $0x4a0] ss:$8 sps:$4 sm:$0xff]  }
 0x219   : > { %7991 = vmatprep.subr.bf16.mxu1 %v9993_v43  ;;  %8415 = vmatprep.subr.bf16.mxu0 %v9996_v46  ;;  %v10060_v42 = vld [vmem:[%s11545_s15 + $0xca0] ss:$8 sps:$4 sm:$0xff]   ;;  %v10065_v43 = vld [vmem:[%s11545_s15 + $0x4b4] ss:$8 sps:$4 sm:$0xff]  }
 0x21a   : > { %v10068_v46 = vld [vmem:[%s11545_s15 + $0xcb4] ss:$8 sps:$4 sm:$0xff]  }
 0x21c   : > { %7992 = vmatpush1.bf16.msra.mxu1 %v9991_v47  ;;  %8416 = vmatpush1.bf16.msra.mxu0 %v9994_v53  ;;  %v10063_v47 = vld [vmem:[%s11545_s15 + $0x4b0] ss:$8 sps:$4 sm:$0xff]  }
 0x21d   : > { %8014 = vmatprep.subr.bf16.mxu1 %v9999_v54  ;;  %8438 = vmatprep.subr.bf16.mxu0 %v10002_v55  ;;  %v10066_v53 = vld [vmem:[%s11545_s15 + $0xcb0] ss:$8 sps:$4 sm:$0xff]   ;;  %v10071_v54 = vld [vmem:[%s11545_s15 + $0x4c4] ss:$8 sps:$4 sm:$0xff]  }
 0x21e   : > { %v10074_v55 = vld [vmem:[%s11545_s15 + $0xcc4] ss:$8 sps:$4 sm:$0xff]  }
 0x21f   : > { %7994 = vmatmul.mubr.bf16.vlgmr.msra.gmra.mrb[0].mxu1 %v8868_v4  ;;  %8418 = vmatmul.mubr.bf16.vlgmr.msra.gmra.mrb[0].mxu0 %v8884_v7  ;;  %v10075_v4 = vld [vmem:[%s11545_s15 + $0x4d0] ss:$8 sps:$4 sm:$0xff]  }
 0x220   : > { %8015 = vmatpush1.bf16.msra.mxu1 %v9997_v56  ;;  %8439 = vmatpush1.bf16.msra.mxu0 %v10000_v57  ;;  %v10069_v56 = vld [vmem:[%s11545_s15 + $0x4c0] ss:$8 sps:$4 sm:$0xff]   ;;  %v10078_v7 = vld [vmem:[%s11545_s15 + $0xcd0] ss:$8 sps:$4 sm:$0xff]  }
 0x221   : > { %8016 = vmatprep.subr.bf16.mxu1 %v10005_v10  ;;  %8440 = vmatprep.subr.bf16.mxu0 %v10008_v58  ;;  %v10072_v57 = vld [vmem:[%s11545_s15 + $0xcc0] ss:$8 sps:$4 sm:$0xff]  }
 0x222   : > { %8003 = vmatprep.mubr.bf16.mxu1 %v8901_v59  ;;  %8427 = vmatprep.mubr.bf16.mxu0 %v8917_v62  ;;  %v10081_v10 = vld [vmem:[%s11545_s15 + $0x4e0] ss:$8 sps:$4 sm:$0xff]   ;;  %v10089_v59 = vld [vmem:[%s11545_s15 + $0x4f4] ss:$8 sps:$4 sm:$0xff]  }
 0x223   : > { %v10084_v58 = vld [vmem:[%s11545_s15 + $0xce0] ss:$8 sps:$4 sm:$0xff]   ;;  %v10092_v62 = vld [vmem:[%s11545_s15 + $0xcf4] ss:$8 sps:$4 sm:$0xff]  }
 0x224   : > { %8017 = vmatpush1.bf16.msra.mxu1 %v10003_v63  ;;  %8441 = vmatpush1.bf16.msra.mxu0 %v10006_v11  ;;  %v10087_v63 = vld [vmem:[%s11545_s15 + $0x4f0] ss:$8 sps:$4 sm:$0xff]  }
 0x225   : > { %8018 = vmatprep.subr.bf16.mxu1 %v10011_v12  ;;  %8442 = vmatprep.subr.bf16.mxu0 %v10014_v13  ;;  %v10090_v11 = vld [vmem:[%s11545_s15 + $0xcf0] ss:$8 sps:$4 sm:$0xff]   ;;  %v10095_v12 = vld [vmem:[%s11545_s15 + $0x504] ss:$8 sps:$4 sm:$0xff]  }
 0x226   : > { %v10098_v13 = vld [vmem:[%s11545_s15 + $0xd04] ss:$8 sps:$4 sm:$0xff]  }
 0x227   : > { %8004 = vmatmul.mubr.bf16.gmra.mrb[4].mxu1 %v8900_v18  ;;  %8428 = vmatmul.mubr.bf16.gmra.mrb[4].mxu0 %v8916_v19  ;;  %v4390_v18 = vld [vmem:[%s12390_s0 + $0x160] sm:$0xff] }
 0x228   : > { %8019 = vmatpush1.bf16.msra.mxu1 %v10009_v14  ;;  %8443 = vmatpush1.bf16.msra.mxu0 %v10012_v15  ;;  %v4382_v14 = vld [vmem:[%s12390_s0 + $0x120] sm:$0xff] }
 0x229   : > { %8020 = vmatprep.subr.bf16.mxu1 %v10017_v22  ;;  %8444 = vmatprep.subr.bf16.mxu0 %v10020_v23  ;;  %v4398_v15 = vld [vmem:[%s12390_s0 + $0x1a0] sm:$0xff]  ;;  %v8870_v22 = vcombine.low %v11956_v16, %v11961_v17  ;;  %v8886_v23 = vcombine.low %v11966_v20, %v11971_v21  ;;  %v12058_v20 = vld [vmem:[%s12390_s0 + $0x28] sm:$0xff] }
 0x22a   : > { %8046 = vmatprep.mubr.bf16.mxu1 %v8871_v24  ;;  %8470 = vmatprep.mubr.bf16.mxu0 %v8887_v25  ;;  %v4406_v19 = vld [vmem:[%s12390_s0 + $0x1e0] sm:$0xff]  ;;  %v12063_v21 = vld [vmem:[%s12390_s0 + $0xa8] sm:$0xff] }
 0x22b   : > { %v10093_v24 = vld [vmem:[%s11545_s15 + $0x500] ss:$8 sps:$4 sm:$0xff]   ;;  %v10107_v16 = vld [vmem:[%s11545_s15 + $0x524] ss:$8 sps:$4 sm:$0xff]  }
 0x22c   : > { %8021 = vmatpush1.bf16.msra.mxu1 %v10015_v26  ;;  %8445 = vmatpush1.bf16.msra.mxu0 %v10018_v27  ;;  %v10096_v25 = vld [vmem:[%s11545_s15 + $0xd00] ss:$8 sps:$4 sm:$0xff]   ;;  %v10101_v26 = vld [vmem:[%s11545_s15 + $0x514] ss:$8 sps:$4 sm:$0xff]   ;;  %v10110_v17 = vld [vmem:[%s11545_s15 + $0xd24] ss:$8 sps:$4 sm:$0xff]  }
 0x22d   : > { %8022 = vmatprep.subr.bf16.mxu1 %v10023_v28  ;;  %8446 = vmatprep.subr.bf16.mxu0 %v10026_v29  ;;  %v10104_v27 = vld [vmem:[%s11545_s15 + $0xd14] ss:$8 sps:$4 sm:$0xff]   ;;  %v10099_v28 = vld [vmem:[%s11545_s15 + $0x510] ss:$8 sps:$4 sm:$0xff]  }
 0x22e   : > { %v10102_v29 = vld [vmem:[%s11545_s15 + $0xd10] ss:$8 sps:$4 sm:$0xff]  }
 0x230   : > { %8023 = vmatpush1.bf16.msra.mxu1 %v10021_v0  ;;  %8447 = vmatpush1.bf16.msra.mxu0 %v10024_v1  ;;  %v8903_v0 = vcombine.high %v4382_v14, %v4398_v15  ;;  %v8919_v1 = vcombine.high %v4390_v18, %v4406_v19 }
 0x231   : > { %8024 = vmatprep.subr.bf16.mxu1 %v10029_v3  ;;  %8448 = vmatprep.subr.bf16.mxu0 %v10032_v2  ;;  %v12068_v3 = vld [vmem:[%s12390_s0 + $0x68] sm:$0xff] }
 0x232   : > { %v12073_v2 = vld [vmem:[%s12390_s0 + $0xe8] sm:$0xff] }
 0x234   : > { %8025 = vmatpush1.bf16.msra.mxu1 %v10027_v5  ;;  %8449 = vmatpush1.bf16.msra.mxu0 %v10030_v6  ;;  %v8902_v5 = vcombine.low %v4382_v14, %v4398_v15  ;;  %v8918_v6 = vcombine.low %v4390_v18, %v4406_v19  ;;  %v10165_v14 = vld [vmem:[%s11545_s15 + $0x5c0] ss:$8 sps:$4 sm:$0xff]   ;;  %v10173_v18 = vld [vmem:[%s11545_s15 + $0x5d4] ss:$8 sps:$4 sm:$0xff]  }
 0x235   : > { %8026 = vmatprep.subr.bf16.mxu1 %v10035_v30  ;;  %8450 = vmatprep.subr.bf16.mxu0 %v10038_v31  ;;  %v10105_v30 = vld [vmem:[%s11545_s15 + $0x520] ss:$8 sps:$4 sm:$0xff]   ;;  %v10176_v19 = vld [vmem:[%s11545_s15 + $0xdd4] ss:$8 sps:$4 sm:$0xff]  }
 0x236   : > { %v10108_v31 = vld [vmem:[%s11545_s15 + $0xd20] ss:$8 sps:$4 sm:$0xff]  }
 0x237   : > { %v10168_v15 = vld [vmem:[%s11545_s15 + $0xdc0] ss:$8 sps:$4 sm:$0xff]  }
 0x238   : > { %8027 = vmatpush1.bf16.msra.mxu1 %v10033_v32  ;;  %8451 = vmatpush1.bf16.msra.mxu0 %v10036_v33  ;;  %v10113_v32 = vld [vmem:[%s11545_s15 + $0x534] ss:$8 sps:$4 sm:$0xff]  }
 0x239   : > { %8028 = vmatprep.subr.bf16.mxu1 %v10041_v34  ;;  %8452 = vmatprep.subr.bf16.mxu0 %v10044_v35  ;;  %v10116_v33 = vld [vmem:[%s11545_s15 + $0xd34] ss:$8 sps:$4 sm:$0xff]   ;;  %v8873_v34 = vcombine.high %v12058_v20, %v12063_v21  ;;  %v8889_v35 = vcombine.high %v12068_v3, %v12073_v2 }
 0x23c   : > { %8029 = vmatpush1.bf16.msra.mxu1 %v10039_v36  ;;  %8453 = vmatpush1.bf16.msra.mxu0 %v10042_v37  ;;  %v10111_v36 = vld [vmem:[%s11545_s15 + $0x530] ss:$8 sps:$4 sm:$0xff]  }
 0x23d   : > { %8030 = vmatprep.subr.bf16.mxu1 %v10047_v38  ;;  %8454 = vmatprep.subr.bf16.mxu0 %v10050_v39  ;;  %v10114_v37 = vld [vmem:[%s11545_s15 + $0xd30] ss:$8 sps:$4 sm:$0xff]   ;;  %v10119_v38 = vld [vmem:[%s11545_s15 + $0x544] ss:$8 sps:$4 sm:$0xff]  }
 0x23e   : > { %v10122_v39 = vld [vmem:[%s11545_s15 + $0xd44] ss:$8 sps:$4 sm:$0xff]  }
 0x240   : > { %8031 = vmatpush1.bf16.msra.mxu1 %v10045_v40  ;;  %8455 = vmatpush1.bf16.msra.mxu0 %v10048_v41  ;;  %v10117_v40 = vld [vmem:[%s11545_s15 + $0x540] ss:$8 sps:$4 sm:$0xff]  }
 0x241   : > { %8032 = vmatprep.subr.bf16.mxu1 %v10053_v44  ;;  %8456 = vmatprep.subr.bf16.mxu0 %v10056_v45  ;;  %v10120_v41 = vld [vmem:[%s11545_s15 + $0xd40] ss:$8 sps:$4 sm:$0xff]   ;;  %v10125_v44 = vld [vmem:[%s11545_s15 + $0x554] ss:$8 sps:$4 sm:$0xff]  }
 0x242   : > { %v10128_v45 = vld [vmem:[%s11545_s15 + $0xd54] ss:$8 sps:$4 sm:$0xff]  }
 0x244   : > { %8033 = vmatpush1.bf16.msra.mxu1 %v10051_v48  ;;  %8457 = vmatpush1.bf16.msra.mxu0 %v10054_v49  ;;  %v10123_v48 = vld [vmem:[%s11545_s15 + $0x550] ss:$8 sps:$4 sm:$0xff]  }
 0x245   : > { %8034 = vmatprep.subr.bf16.mxu1 %v10059_v50  ;;  %8458 = vmatprep.subr.bf16.mxu0 %v10062_v51  ;;  %v10126_v49 = vld [vmem:[%s11545_s15 + $0xd50] ss:$8 sps:$4 sm:$0xff]   ;;  %v10131_v50 = vld [vmem:[%s11545_s15 + $0x564] ss:$8 sps:$4 sm:$0xff]  }
 0x246   : > { %v10134_v51 = vld [vmem:[%s11545_s15 + $0xd64] ss:$8 sps:$4 sm:$0xff]  }
 0x248   : > { %8035 = vmatpush1.bf16.msra.mxu1 %v10057_v52  ;;  %8459 = vmatpush1.bf16.msra.mxu0 %v10060_v42  ;;  %v10129_v52 = vld [vmem:[%s11545_s15 + $0x560] ss:$8 sps:$4 sm:$0xff]  }
 0x249   : > { %8036 = vmatprep.subr.bf16.mxu1 %v10065_v43  ;;  %8460 = vmatprep.subr.bf16.mxu0 %v10068_v46  ;;  %v10132_v42 = vld [vmem:[%s11545_s15 + $0xd60] ss:$8 sps:$4 sm:$0xff]   ;;  %v10137_v43 = vld [vmem:[%s11545_s15 + $0x574] ss:$8 sps:$4 sm:$0xff]  }
 0x24a   : > { %v10140_v46 = vld [vmem:[%s11545_s15 + $0xd74] ss:$8 sps:$4 sm:$0xff]  }
 0x24c   : > { %8037 = vmatpush1.bf16.msra.mxu1 %v10063_v47  ;;  %8461 = vmatpush1.bf16.msra.mxu0 %v10066_v53  ;;  %v10135_v47 = vld [vmem:[%s11545_s15 + $0x570] ss:$8 sps:$4 sm:$0xff]  }
 0x24d   : > { %8038 = vmatprep.subr.bf16.mxu1 %v10071_v54  ;;  %8462 = vmatprep.subr.bf16.mxu0 %v10074_v55  ;;  %v10138_v53 = vld [vmem:[%s11545_s15 + $0xd70] ss:$8 sps:$4 sm:$0xff]   ;;  %v10143_v54 = vld [vmem:[%s11545_s15 + $0x584] ss:$8 sps:$4 sm:$0xff]  }
 0x24e   : > { %v10146_v55 = vld [vmem:[%s11545_s15 + $0xd84] ss:$8 sps:$4 sm:$0xff]  }
 0x250   : > { %8039 = vmatpush1.bf16.msra.mxu1 %v10069_v56  ;;  %8463 = vmatpush1.bf16.msra.mxu0 %v10072_v57  ;;  %v10141_v56 = vld [vmem:[%s11545_s15 + $0x580] ss:$8 sps:$4 sm:$0xff]  }
 0x251   : > { %8040 = vmatprep.subr.bf16.mxu1 %v10077_v60  ;;  %8464 = vmatprep.subr.bf16.mxu0 %v10080_v61  ;;  %v10144_v57 = vld [vmem:[%s11545_s15 + $0xd80] ss:$8 sps:$4 sm:$0xff]   ;;  %v10149_v60 = vld [vmem:[%s11545_s15 + $0x594] ss:$8 sps:$4 sm:$0xff]  }
 0x252   : > { %v10152_v61 = vld [vmem:[%s11545_s15 + $0xd94] ss:$8 sps:$4 sm:$0xff]  }
 0x254   : > { %8041 = vmatpush1.bf16.msra.mxu1 %v10075_v4  ;;  %8465 = vmatpush1.bf16.msra.mxu0 %v10078_v7  ;;  %v10147_v4 = vld [vmem:[%s11545_s15 + $0x590] ss:$8 sps:$4 sm:$0xff]  }
 0x255   : > { %8042 = vmatprep.subr.bf16.mxu1 %v10083_v8  ;;  %8466 = vmatprep.subr.bf16.mxu0 %v10086_v9  ;;  %v10150_v7 = vld [vmem:[%s11545_s15 + $0xd90] ss:$8 sps:$4 sm:$0xff]   ;;  %v10155_v8 = vld [vmem:[%s11545_s15 + $0x5a4] ss:$8 sps:$4 sm:$0xff]  }
 0x256   : > { %v10158_v9 = vld [vmem:[%s11545_s15 + $0xda4] ss:$8 sps:$4 sm:$0xff]  }
 0x258   : > { %8043 = vmatpush1.bf16.msra.mxu1 %v10081_v10  ;;  %8467 = vmatpush1.bf16.msra.mxu0 %v10084_v58  ;;  %v10153_v10 = vld [vmem:[%s11545_s15 + $0x5a0] ss:$8 sps:$4 sm:$0xff]  }
 0x259   : > { %8044 = vmatprep.subr.bf16.mxu1 %v10089_v59  ;;  %8468 = vmatprep.subr.bf16.mxu0 %v10092_v62  ;;  %v10156_v58 = vld [vmem:[%s11545_s15 + $0xda0] ss:$8 sps:$4 sm:$0xff]   ;;  %v10161_v59 = vld [vmem:[%s11545_s15 + $0x5b4] ss:$8 sps:$4 sm:$0xff]  }
 0x25a   : > { %v10164_v62 = vld [vmem:[%s11545_s15 + $0xdb4] ss:$8 sps:$4 sm:$0xff]  }
 0x25c   : > { %8045 = vmatpush1.bf16.msra.mxu1 %v10087_v63  ;;  %8469 = vmatpush1.bf16.msra.mxu0 %v10090_v11  ;;  %v10159_v63 = vld [vmem:[%s11545_s15 + $0x5b0] ss:$8 sps:$4 sm:$0xff]  }
 0x25d   : > { %8067 = vmatprep.subr.bf16.mxu1 %v10095_v12  ;;  %8491 = vmatprep.subr.bf16.mxu0 %v10098_v13  ;;  %v10162_v11 = vld [vmem:[%s11545_s15 + $0xdb0] ss:$8 sps:$4 sm:$0xff]   ;;  %v10167_v12 = vld [vmem:[%s11545_s15 + $0x5c4] ss:$8 sps:$4 sm:$0xff]  }
 0x25e   : > { %v10170_v13 = vld [vmem:[%s11545_s15 + $0xdc4] ss:$8 sps:$4 sm:$0xff]  }
 0x25f   : > { %8047 = vmatmul.mubr.bf16.vlgmr.msra.gmra.mrb[0].mxu1 %v8870_v22  ;;  %8471 = vmatmul.mubr.bf16.vlgmr.msra.gmra.mrb[0].mxu0 %v8886_v23  ;;  %v10171_v22 = vld [vmem:[%s11545_s15 + $0x5d0] ss:$8 sps:$4 sm:$0xff]  }
 0x260   : > { %8068 = vmatpush1.bf16.msra.mxu1 %v10093_v24  ;;  %8492 = vmatpush1.bf16.msra.mxu0 %v10096_v25  ;;  %v10174_v23 = vld [vmem:[%s11545_s15 + $0xdd0] ss:$8 sps:$4 sm:$0xff]   ;;  %v10179_v24 = vld [vmem:[%s11545_s15 + $0x5e4] ss:$8 sps:$4 sm:$0xff]  }
 0x261   : > { %8069 = vmatprep.subr.bf16.mxu1 %v10101_v26  ;;  %8493 = vmatprep.subr.bf16.mxu0 %v10104_v27  ;;  %v10182_v25 = vld [vmem:[%s11545_s15 + $0xde4] ss:$8 sps:$4 sm:$0xff]   ;;  %v10177_v26 = vld [vmem:[%s11545_s15 + $0x5e0] ss:$8 sps:$4 sm:$0xff]  }
 0x262   : > { %8056 = vmatprep.mubr.bf16.mxu1 %v8903_v0  ;;  %8480 = vmatprep.mubr.bf16.mxu0 %v8919_v1  ;;  %v10180_v27 = vld [vmem:[%s11545_s15 + $0xde0] ss:$8 sps:$4 sm:$0xff]   ;;  %v10183_v0 = vld [vmem:[%s11545_s15 + $0x5f0] ss:$8 sps:$4 sm:$0xff]  }
 0x263   : > { %v10186_v1 = vld [vmem:[%s11545_s15 + $0xdf0] ss:$8 sps:$4 sm:$0xff]  }
 0x264   : > { %8070 = vmatpush1.bf16.msra.mxu1 %v10099_v28  ;;  %8494 = vmatpush1.bf16.msra.mxu0 %v10102_v29  ;;  %v10185_v28 = vld [vmem:[%s11545_s15 + $0x5f4] ss:$8 sps:$4 sm:$0xff]  }
 0x265   : > { %8071 = vmatprep.subr.bf16.mxu1 %v10107_v16  ;;  %8495 = vmatprep.subr.bf16.mxu0 %v10110_v17  ;;  %v10188_v29 = vld [vmem:[%s11545_s15 + $0xdf4] ss:$8 sps:$4 sm:$0xff]   ;;  %v10191_v16 = vld [vmem:[%s11545_s15 + $0x604] ss:$8 sps:$4 sm:$0xff]  }
 0x266   : > { %v10194_v17 = vld [vmem:[%s11545_s15 + $0xe04] ss:$8 sps:$4 sm:$0xff]  }
 0x267   : > { %8057 = vmatmul.mubr.bf16.gmra.mrb[4].mxu1 %v8902_v5  ;;  %8481 = vmatmul.mubr.bf16.gmra.mrb[4].mxu0 %v8918_v6  ;;  %v4383_v5 = vld [vmem:[%s12390_s0 + $0x128] sm:$0xff]  ;;  %v8872_v6 = vcombine.low %v12058_v20, %v12063_v21 }
 0x268   : > { %8072 = vmatpush1.bf16.msra.mxu1 %v10105_v30  ;;  %8496 = vmatpush1.bf16.msra.mxu0 %v10108_v31  ;;  %v8888_v30 = vcombine.low %v12068_v3, %v12073_v2  ;;  %v4399_v31 = vld [vmem:[%s12390_s0 + $0x1a8] sm:$0xff]  ;;  %v10197_v3 = vld [vmem:[%s11545_s15 + $0x614] ss:$8 sps:$4 sm:$0xff]  }
 0x269   : > { %8073 = vmatprep.subr.bf16.mxu1 %v10113_v32  ;;  %8497 = vmatprep.subr.bf16.mxu0 %v10116_v33  ;;  %v4391_v32 = vld [vmem:[%s12390_s0 + $0x168] sm:$0xff]  ;;  %v10200_v2 = vld [vmem:[%s11545_s15 + $0xe14] ss:$8 sps:$4 sm:$0xff]  }
 0x26a   : > { %8099 = vmatprep.mubr.bf16.mxu1 %v8873_v34  ;;  %8523 = vmatprep.mubr.bf16.mxu0 %v8889_v35  ;;  %v4407_v33 = vld [vmem:[%s12390_s0 + $0x1e8] sm:$0xff]  ;;  %v8905_v34 = vcombine.high %v4383_v5, %v4399_v31 }
 0x26b   : > { %v10189_v20 = vld [vmem:[%s11545_s15 + $0x600] ss:$8 sps:$4 sm:$0xff]   ;;  %v8921_v35 = vcombine.high %v4391_v32, %v4407_v33 }
 0x26c   : > { %8074 = vmatpush1.bf16.msra.mxu1 %v10111_v36  ;;  %8498 = vmatpush1.bf16.msra.mxu0 %v10114_v37  ;;  %v10192_v21 = vld [vmem:[%s11545_s15 + $0xe00] ss:$8 sps:$4 sm:$0xff]   ;;  %v10195_v36 = vld [vmem:[%s11545_s15 + $0x610] ss:$8 sps:$4 sm:$0xff]  }
 0x26d   : > { %8075 = vmatprep.subr.bf16.mxu1 %v10119_v38  ;;  %8499 = vmatprep.subr.bf16.mxu0 %v10122_v39  ;;  %v10198_v37 = vld [vmem:[%s11545_s15 + $0xe10] ss:$8 sps:$4 sm:$0xff]   ;;  %v10203_v38 = vld [vmem:[%s11545_s15 + $0x624] ss:$8 sps:$4 sm:$0xff]  }
 0x26e   : > { %v10206_v39 = vld [vmem:[%s11545_s15 + $0xe24] ss:$8 sps:$4 sm:$0xff]  }
 0x270   : > { %8076 = vmatpush1.bf16.msra.mxu1 %v10117_v40  ;;  %8500 = vmatpush1.bf16.msra.mxu0 %v10120_v41  ;;  %v12162_v40 = vld [vmem:[%s12390_s0 + $0x30] sm:$0xff]  ;;  %v8904_v41 = vcombine.low %v4383_v5, %v4399_v31  ;;  %v10261_v5 = vld [vmem:[%s11545_s15 + $0x6c0] ss:$8 sps:$4 sm:$0xff]  }
 0x271   : > { %8077 = vmatprep.subr.bf16.mxu1 %v10125_v44  ;;  %8501 = vmatprep.subr.bf16.mxu0 %v10128_v45  ;;  %v8920_v44 = vcombine.low %v4391_v32, %v4407_v33  ;;  %v12167_v45 = vld [vmem:[%s12390_s0 + $0xb0] sm:$0xff] }
 0x272   : > { %v10272_v31 = vld [vmem:[%s11545_s15 + $0xed4] ss:$8 sps:$4 sm:$0xff]   ;;  %v10267_v32 = vld [vmem:[%s11545_s15 + $0x6d0] ss:$8 sps:$4 sm:$0xff]  }
 0x273   : > { %v10270_v33 = vld [vmem:[%s11545_s15 + $0xed0] ss:$8 sps:$4 sm:$0xff]  }
 0x274   : > { %8078 = vmatpush1.bf16.msra.mxu1 %v10123_v48  ;;  %8502 = vmatpush1.bf16.msra.mxu0 %v10126_v49  ;;  %v12172_v48 = vld [vmem:[%s12390_s0 + $0x70] sm:$0xff] }
 0x275   : > { %8079 = vmatprep.subr.bf16.mxu1 %v10131_v50  ;;  %8503 = vmatprep.subr.bf16.mxu0 %v10134_v51  ;;  %v12177_v49 = vld [vmem:[%s12390_s0 + $0xf0] sm:$0xff]  ;;  %v10201_v50 = vld [vmem:[%s11545_s15 + $0x620] ss:$8 sps:$4 sm:$0xff]  }
 0x276   : > { %v10204_v51 = vld [vmem:[%s11545_s15 + $0xe20] ss:$8 sps:$4 sm:$0xff]  }
 0x278   : > { %8080 = vmatpush1.bf16.msra.mxu1 %v10129_v52  ;;  %8504 = vmatpush1.bf16.msra.mxu0 %v10132_v42  ;;  %v10209_v52 = vld [vmem:[%s11545_s15 + $0x634] ss:$8 sps:$4 sm:$0xff]  }
 0x279   : > { %8081 = vmatprep.subr.bf16.mxu1 %v10137_v43  ;;  %8505 = vmatprep.subr.bf16.mxu0 %v10140_v46  ;;  %v10212_v42 = vld [vmem:[%s11545_s15 + $0xe34] ss:$8 sps:$4 sm:$0xff]   ;;  %v8875_v43 = vcombine.high %v12162_v40, %v12167_v45  ;;  %v8891_v46 = vcombine.high %v12172_v48, %v12177_v49 }
 0x27c   : > { %8082 = vmatpush1.bf16.msra.mxu1 %v10135_v47  ;;  %8506 = vmatpush1.bf16.msra.mxu0 %v10138_v53  ;;  %v10207_v47 = vld [vmem:[%s11545_s15 + $0x630] ss:$8 sps:$4 sm:$0xff]  }
 0x27d   : > { %8083 = vmatprep.subr.bf16.mxu1 %v10143_v54  ;;  %8507 = vmatprep.subr.bf16.mxu0 %v10146_v55  ;;  %v10210_v53 = vld [vmem:[%s11545_s15 + $0xe30] ss:$8 sps:$4 sm:$0xff]   ;;  %v10215_v54 = vld [vmem:[%s11545_s15 + $0x644] ss:$8 sps:$4 sm:$0xff]  }
 0x27e   : > { %v10218_v55 = vld [vmem:[%s11545_s15 + $0xe44] ss:$8 sps:$4 sm:$0xff]  }
 0x280   : > { %8084 = vmatpush1.bf16.msra.mxu1 %v10141_v56  ;;  %8508 = vmatpush1.bf16.msra.mxu0 %v10144_v57  ;;  %v10213_v56 = vld [vmem:[%s11545_s15 + $0x640] ss:$8 sps:$4 sm:$0xff]  }
 0x281   : > { %8085 = vmatprep.subr.bf16.mxu1 %v10149_v60  ;;  %8509 = vmatprep.subr.bf16.mxu0 %v10152_v61  ;;  %v10216_v57 = vld [vmem:[%s11545_s15 + $0xe40] ss:$8 sps:$4 sm:$0xff]   ;;  %v10221_v60 = vld [vmem:[%s11545_s15 + $0x654] ss:$8 sps:$4 sm:$0xff]  }
 0x282   : > { %v10224_v61 = vld [vmem:[%s11545_s15 + $0xe54] ss:$8 sps:$4 sm:$0xff]  }
 0x284   : > { %8086 = vmatpush1.bf16.msra.mxu1 %v10147_v4  ;;  %8510 = vmatpush1.bf16.msra.mxu0 %v10150_v7  ;;  %v10219_v4 = vld [vmem:[%s11545_s15 + $0x650] ss:$8 sps:$4 sm:$0xff]  }
 0x285   : > { %8087 = vmatprep.subr.bf16.mxu1 %v10155_v8  ;;  %8511 = vmatprep.subr.bf16.mxu0 %v10158_v9  ;;  %v10222_v7 = vld [vmem:[%s11545_s15 + $0xe50] ss:$8 sps:$4 sm:$0xff]   ;;  %v10227_v8 = vld [vmem:[%s11545_s15 + $0x664] ss:$8 sps:$4 sm:$0xff]  }
 0x286   : > { %v10230_v9 = vld [vmem:[%s11545_s15 + $0xe64] ss:$8 sps:$4 sm:$0xff]  }
 0x288   : > { %8088 = vmatpush1.bf16.msra.mxu1 %v10153_v10  ;;  %8512 = vmatpush1.bf16.msra.mxu0 %v10156_v58  ;;  %v10225_v10 = vld [vmem:[%s11545_s15 + $0x660] ss:$8 sps:$4 sm:$0xff]  }
 0x289   : > { %8089 = vmatprep.subr.bf16.mxu1 %v10161_v59  ;;  %8513 = vmatprep.subr.bf16.mxu0 %v10164_v62  ;;  %v10228_v58 = vld [vmem:[%s11545_s15 + $0xe60] ss:$8 sps:$4 sm:$0xff]   ;;  %v10233_v59 = vld [vmem:[%s11545_s15 + $0x674] ss:$8 sps:$4 sm:$0xff]  }
 0x28a   : > { %v10236_v62 = vld [vmem:[%s11545_s15 + $0xe74] ss:$8 sps:$4 sm:$0xff]  }
 0x28c   : > { %8090 = vmatpush1.bf16.msra.mxu1 %v10159_v63  ;;  %8514 = vmatpush1.bf16.msra.mxu0 %v10162_v11  ;;  %v10231_v63 = vld [vmem:[%s11545_s15 + $0x670] ss:$8 sps:$4 sm:$0xff]  }
 0x28d   : > { %8091 = vmatprep.subr.bf16.mxu1 %v10167_v12  ;;  %8515 = vmatprep.subr.bf16.mxu0 %v10170_v13  ;;  %v10234_v11 = vld [vmem:[%s11545_s15 + $0xe70] ss:$8 sps:$4 sm:$0xff]   ;;  %v10239_v12 = vld [vmem:[%s11545_s15 + $0x684] ss:$8 sps:$4 sm:$0xff]  }
 0x28e   : > { %v10242_v13 = vld [vmem:[%s11545_s15 + $0xe84] ss:$8 sps:$4 sm:$0xff]  }
 0x290   : > { %8092 = vmatpush1.bf16.msra.mxu1 %v10165_v14  ;;  %8516 = vmatpush1.bf16.msra.mxu0 %v10168_v15  ;;  %v10237_v14 = vld [vmem:[%s11545_s15 + $0x680] ss:$8 sps:$4 sm:$0xff]  }
 0x291   : > { %8093 = vmatprep.subr.bf16.mxu1 %v10173_v18  ;;  %8517 = vmatprep.subr.bf16.mxu0 %v10176_v19  ;;  %v10240_v15 = vld [vmem:[%s11545_s15 + $0xe80] ss:$8 sps:$4 sm:$0xff]   ;;  %v10245_v18 = vld [vmem:[%s11545_s15 + $0x694] ss:$8 sps:$4 sm:$0xff]  }
 0x292   : > { %v10248_v19 = vld [vmem:[%s11545_s15 + $0xe94] ss:$8 sps:$4 sm:$0xff]  }
 0x294   : > { %8094 = vmatpush1.bf16.msra.mxu1 %v10171_v22  ;;  %8518 = vmatpush1.bf16.msra.mxu0 %v10174_v23  ;;  %v10243_v22 = vld [vmem:[%s11545_s15 + $0x690] ss:$8 sps:$4 sm:$0xff]  }
 0x295   : > { %8095 = vmatprep.subr.bf16.mxu1 %v10179_v24  ;;  %8519 = vmatprep.subr.bf16.mxu0 %v10182_v25  ;;  %v10246_v23 = vld [vmem:[%s11545_s15 + $0xe90] ss:$8 sps:$4 sm:$0xff]   ;;  %v10251_v24 = vld [vmem:[%s11545_s15 + $0x6a4] ss:$8 sps:$4 sm:$0xff]  }
 0x296   : > { %v10254_v25 = vld [vmem:[%s11545_s15 + $0xea4] ss:$8 sps:$4 sm:$0xff]  }
 0x298   : > { %8096 = vmatpush1.bf16.msra.mxu1 %v10177_v26  ;;  %8520 = vmatpush1.bf16.msra.mxu0 %v10180_v27  ;;  %v10249_v26 = vld [vmem:[%s11545_s15 + $0x6a0] ss:$8 sps:$4 sm:$0xff]  }
 0x299   : > { %8097 = vmatprep.subr.bf16.mxu1 %v10185_v28  ;;  %8521 = vmatprep.subr.bf16.mxu0 %v10188_v29  ;;  %v10252_v27 = vld [vmem:[%s11545_s15 + $0xea0] ss:$8 sps:$4 sm:$0xff]   ;;  %v10257_v28 = vld [vmem:[%s11545_s15 + $0x6b4] ss:$8 sps:$4 sm:$0xff]  }
 0x29a   : > { %v10260_v29 = vld [vmem:[%s11545_s15 + $0xeb4] ss:$8 sps:$4 sm:$0xff]  }
 0x29c   : > { %8098 = vmatpush1.bf16.msra.mxu1 %v10183_v0  ;;  %8522 = vmatpush1.bf16.msra.mxu0 %v10186_v1  ;;  %v10255_v0 = vld [vmem:[%s11545_s15 + $0x6b0] ss:$8 sps:$4 sm:$0xff]  }
 0x29d   : > { %8120 = vmatprep.subr.bf16.mxu1 %v10191_v16  ;;  %8544 = vmatprep.subr.bf16.mxu0 %v10194_v17  ;;  %v10258_v1 = vld [vmem:[%s11545_s15 + $0xeb0] ss:$8 sps:$4 sm:$0xff]   ;;  %v10263_v16 = vld [vmem:[%s11545_s15 + $0x6c4] ss:$8 sps:$4 sm:$0xff]  }
 0x29e   : > { %v10266_v17 = vld [vmem:[%s11545_s15 + $0xec4] ss:$8 sps:$4 sm:$0xff]  }
 0x29f   : > { %8100 = vmatmul.mubr.bf16.vlgmr.msra.gmra.mrb[0].mxu1 %v8872_v6  ;;  %8524 = vmatmul.mubr.bf16.vlgmr.msra.gmra.mrb[0].mxu0 %v8888_v30  ;;  %v10264_v6 = vld [vmem:[%s11545_s15 + $0xec0] ss:$8 sps:$4 sm:$0xff]   ;;  %v10269_v30 = vld [vmem:[%s11545_s15 + $0x6d4] ss:$8 sps:$4 sm:$0xff]  }
 0x2a0   : > { %8121 = vmatpush1.bf16.msra.mxu1 %v10189_v20  ;;  %8545 = vmatpush1.bf16.msra.mxu0 %v10192_v21  ;;  %v10275_v20 = vld [vmem:[%s11545_s15 + $0x6e4] ss:$8 sps:$4 sm:$0xff]  }
 0x2a1   : > { %8122 = vmatprep.subr.bf16.mxu1 %v10197_v3  ;;  %8546 = vmatprep.subr.bf16.mxu0 %v10200_v2  ;;  %v10278_v21 = vld [vmem:[%s11545_s15 + $0xee4] ss:$8 sps:$4 sm:$0xff]   ;;  %v10273_v3 = vld [vmem:[%s11545_s15 + $0x6e0] ss:$8 sps:$4 sm:$0xff]  }
 0x2a2   : > { %8109 = vmatprep.mubr.bf16.mxu1 %v8905_v34  ;;  %8533 = vmatprep.mubr.bf16.mxu0 %v8921_v35  ;;  %v10276_v2 = vld [vmem:[%s11545_s15 + $0xee0] ss:$8 sps:$4 sm:$0xff]   ;;  %v10281_v34 = vld [vmem:[%s11545_s15 + $0x6f4] ss:$8 sps:$4 sm:$0xff]  }
 0x2a3   : > { %v10284_v35 = vld [vmem:[%s11545_s15 + $0xef4] ss:$8 sps:$4 sm:$0xff]  }
 0x2a4   : > { %8123 = vmatpush1.bf16.msra.mxu1 %v10195_v36  ;;  %8547 = vmatpush1.bf16.msra.mxu0 %v10198_v37  ;;  %v10279_v36 = vld [vmem:[%s11545_s15 + $0x6f0] ss:$8 sps:$4 sm:$0xff]  }
 0x2a5   : > { %8124 = vmatprep.subr.bf16.mxu1 %v10203_v38  ;;  %8548 = vmatprep.subr.bf16.mxu0 %v10206_v39  ;;  %v10282_v37 = vld [vmem:[%s11545_s15 + $0xef0] ss:$8 sps:$4 sm:$0xff]   ;;  %v10287_v38 = vld [vmem:[%s11545_s15 + $0x704] ss:$8 sps:$4 sm:$0xff]  }
 0x2a6   : > { %v10290_v39 = vld [vmem:[%s11545_s15 + $0xf04] ss:$8 sps:$4 sm:$0xff]  }
 0x2a7   : > { %8110 = vmatmul.mubr.bf16.gmra.mrb[4].mxu1 %v8904_v41  ;;  %8534 = vmatmul.mubr.bf16.gmra.mrb[4].mxu0 %v8920_v44  ;;  %v4384_v41 = vld [vmem:[%s12390_s0 + $0x130] sm:$0xff]  ;;  %v8874_v44 = vcombine.low %v12162_v40, %v12167_v45  ;;  %v10285_v40 = vld [vmem:[%s11545_s15 + $0x700] ss:$8 sps:$4 sm:$0xff]  }
 0x2a8   : > { %8125 = vmatpush1.bf16.msra.mxu1 %v10201_v50  ;;  %8549 = vmatpush1.bf16.msra.mxu0 %v10204_v51  ;;  %v8890_v50 = vcombine.low %v12172_v48, %v12177_v49  ;;  %v4400_v51 = vld [vmem:[%s12390_s0 + $0x1b0] sm:$0xff]  ;;  %v10288_v45 = vld [vmem:[%s11545_s15 + $0xf00] ss:$8 sps:$4 sm:$0xff]  }
 0x2a9   : > { %8126 = vmatprep.subr.bf16.mxu1 %v10209_v52  ;;  %8550 = vmatprep.subr.bf16.mxu0 %v10212_v42  ;;  %v4392_v52 = vld [vmem:[%s12390_s0 + $0x170] sm:$0xff] }
 0x2aa   : > { %8152 = vmatprep.mubr.bf16.mxu1 %v8875_v43  ;;  %8576 = vmatprep.mubr.bf16.mxu0 %v8891_v46  ;;  %v4408_v42 = vld [vmem:[%s12390_s0 + $0x1f0] sm:$0xff]  ;;  %v8907_v43 = vcombine.high %v4384_v41, %v4400_v51 }
 0x2ab   : > { %v10293_v48 = vld [vmem:[%s11545_s15 + $0x714] ss:$8 sps:$4 sm:$0xff]   ;;  %v8923_v46 = vcombine.high %v4392_v52, %v4408_v42 }
 0x2ac   : > { %8127 = vmatpush1.bf16.msra.mxu1 %v10207_v47  ;;  %8551 = vmatpush1.bf16.msra.mxu0 %v10210_v53  ;;  %v10296_v49 = vld [vmem:[%s11545_s15 + $0xf14] ss:$8 sps:$4 sm:$0xff]   ;;  %v10291_v47 = vld [vmem:[%s11545_s15 + $0x710] ss:$8 sps:$4 sm:$0xff]  }
 0x2ad   : > { %8128 = vmatprep.subr.bf16.mxu1 %v10215_v54  ;;  %8552 = vmatprep.subr.bf16.mxu0 %v10218_v55  ;;  %v10294_v53 = vld [vmem:[%s11545_s15 + $0xf10] ss:$8 sps:$4 sm:$0xff]   ;;  %v10299_v54 = vld [vmem:[%s11545_s15 + $0x724] ss:$8 sps:$4 sm:$0xff]  }
 0x2ae   : > { %v10302_v55 = vld [vmem:[%s11545_s15 + $0xf24] ss:$8 sps:$4 sm:$0xff]  }
 0x2b0   : > { %8129 = vmatpush1.bf16.msra.mxu1 %v10213_v56  ;;  %8553 = vmatpush1.bf16.msra.mxu0 %v10216_v57  ;;  %v12266_v56 = vld [vmem:[%s12390_s0 + $0x38] sm:$0xff]  ;;  %v8906_v57 = vcombine.low %v4384_v41, %v4400_v51  ;;  %v10357_v41 = vld [vmem:[%s11545_s15 + $0x7c0] ss:$8 sps:$4 sm:$0xff]  }
 0x2b1   : > { %8130 = vmatprep.subr.bf16.mxu1 %v10221_v60  ;;  %8554 = vmatprep.subr.bf16.mxu0 %v10224_v61  ;;  %v8922_v60 = vcombine.low %v4392_v52, %v4408_v42  ;;  %v12271_v61 = vld [vmem:[%s12390_s0 + $0xb8] sm:$0xff] }
 0x2b2   : > { %v10368_v51 = vld [vmem:[%s11545_s15 + $0xfd4] ss:$8 sps:$4 sm:$0xff]   ;;  %v10363_v52 = vld [vmem:[%s11545_s15 + $0x7d0] ss:$8 sps:$4 sm:$0xff]  }
 0x2b3   : > { %v10366_v42 = vld [vmem:[%s11545_s15 + $0xfd0] ss:$8 sps:$4 sm:$0xff]  }
 0x2b4   : > { %8131 = vmatpush1.bf16.msra.mxu1 %v10219_v4  ;;  %8555 = vmatpush1.bf16.msra.mxu0 %v10222_v7  ;;  %v12276_v4 = vld [vmem:[%s12390_s0 + $0x78] sm:$0xff] }
 0x2b5   : > { %8132 = vmatprep.subr.bf16.mxu1 %v10227_v8  ;;  %8556 = vmatprep.subr.bf16.mxu0 %v10230_v9  ;;  %v12281_v7 = vld [vmem:[%s12390_s0 + $0xf8] sm:$0xff]  ;;  %v10297_v8 = vld [vmem:[%s11545_s15 + $0x720] ss:$8 sps:$4 sm:$0xff]  }
 0x2b6   : > { %v10300_v9 = vld [vmem:[%s11545_s15 + $0xf20] ss:$8 sps:$4 sm:$0xff]  }
 0x2b8   : > { %8133 = vmatpush1.bf16.msra.mxu1 %v10225_v10  ;;  %8557 = vmatpush1.bf16.msra.mxu0 %v10228_v58  ;;  %v10305_v10 = vld [vmem:[%s11545_s15 + $0x734] ss:$8 sps:$4 sm:$0xff]  }
 0x2b9   : > { %8134 = vmatprep.subr.bf16.mxu1 %v10233_v59  ;;  %8558 = vmatprep.subr.bf16.mxu0 %v10236_v62  ;;  %v10308_v58 = vld [vmem:[%s11545_s15 + $0xf34] ss:$8 sps:$4 sm:$0xff]   ;;  %v8877_v59 = vcombine.high %v12266_v56, %v12271_v61  ;;  %v8893_v62 = vcombine.high %v12276_v4, %v12281_v7 }
 0x2bc   : > { %8135 = vmatpush1.bf16.msra.mxu1 %v10231_v63  ;;  %8559 = vmatpush1.bf16.msra.mxu0 %v10234_v11  ;;  %v10303_v63 = vld [vmem:[%s11545_s15 + $0x730] ss:$8 sps:$4 sm:$0xff]  }
 0x2bd   : > { %8136 = vmatprep.subr.bf16.mxu1 %v10239_v12  ;;  %8560 = vmatprep.subr.bf16.mxu0 %v10242_v13  ;;  %v10306_v11 = vld [vmem:[%s11545_s15 + $0xf30] ss:$8 sps:$4 sm:$0xff]   ;;  %v10311_v12 = vld [vmem:[%s11545_s15 + $0x744] ss:$8 sps:$4 sm:$0xff]  }
 0x2be   : > { %v10314_v13 = vld [vmem:[%s11545_s15 + $0xf44] ss:$8 sps:$4 sm:$0xff]  }
 0x2c0   : > { %8137 = vmatpush1.bf16.msra.mxu1 %v10237_v14  ;;  %8561 = vmatpush1.bf16.msra.mxu0 %v10240_v15  ;;  %v10309_v14 = vld [vmem:[%s11545_s15 + $0x740] ss:$8 sps:$4 sm:$0xff]  }
 0x2c1   : > { %8138 = vmatprep.subr.bf16.mxu1 %v10245_v18  ;;  %8562 = vmatprep.subr.bf16.mxu0 %v10248_v19  ;;  %v10312_v15 = vld [vmem:[%s11545_s15 + $0xf40] ss:$8 sps:$4 sm:$0xff]   ;;  %v10317_v18 = vld [vmem:[%s11545_s15 + $0x754] ss:$8 sps:$4 sm:$0xff]  }
 0x2c2   : > { %v10320_v19 = vld [vmem:[%s11545_s15 + $0xf54] ss:$8 sps:$4 sm:$0xff]  }
 0x2c4   : > { %8139 = vmatpush1.bf16.msra.mxu1 %v10243_v22  ;;  %8563 = vmatpush1.bf16.msra.mxu0 %v10246_v23  ;;  %v10315_v22 = vld [vmem:[%s11545_s15 + $0x750] ss:$8 sps:$4 sm:$0xff]  }
 0x2c5   : > { %8140 = vmatprep.subr.bf16.mxu1 %v10251_v24  ;;  %8564 = vmatprep.subr.bf16.mxu0 %v10254_v25  ;;  %v10318_v23 = vld [vmem:[%s11545_s15 + $0xf50] ss:$8 sps:$4 sm:$0xff]   ;;  %v10323_v24 = vld [vmem:[%s11545_s15 + $0x764] ss:$8 sps:$4 sm:$0xff]  }
 0x2c6   : > { %v10326_v25 = vld [vmem:[%s11545_s15 + $0xf64] ss:$8 sps:$4 sm:$0xff]  }
 0x2c8   : > { %8141 = vmatpush1.bf16.msra.mxu1 %v10249_v26  ;;  %8565 = vmatpush1.bf16.msra.mxu0 %v10252_v27  ;;  %v10321_v26 = vld [vmem:[%s11545_s15 + $0x760] ss:$8 sps:$4 sm:$0xff]  }
 0x2c9   : > { %8142 = vmatprep.subr.bf16.mxu1 %v10257_v28  ;;  %8566 = vmatprep.subr.bf16.mxu0 %v10260_v29  ;;  %v10324_v27 = vld [vmem:[%s11545_s15 + $0xf60] ss:$8 sps:$4 sm:$0xff]   ;;  %v10329_v28 = vld [vmem:[%s11545_s15 + $0x774] ss:$8 sps:$4 sm:$0xff]  }
 0x2ca   : > { %v10332_v29 = vld [vmem:[%s11545_s15 + $0xf74] ss:$8 sps:$4 sm:$0xff]  }
 0x2cc   : > { %8143 = vmatpush1.bf16.msra.mxu1 %v10255_v0  ;;  %8567 = vmatpush1.bf16.msra.mxu0 %v10258_v1  ;;  %v10327_v0 = vld [vmem:[%s11545_s15 + $0x770] ss:$8 sps:$4 sm:$0xff]  }
 0x2cd   : > { %8144 = vmatprep.subr.bf16.mxu1 %v10263_v16  ;;  %8568 = vmatprep.subr.bf16.mxu0 %v10266_v17  ;;  %v10330_v1 = vld [vmem:[%s11545_s15 + $0xf70] ss:$8 sps:$4 sm:$0xff]   ;;  %v10335_v16 = vld [vmem:[%s11545_s15 + $0x784] ss:$8 sps:$4 sm:$0xff]  }
 0x2ce   : > { %v10338_v17 = vld [vmem:[%s11545_s15 + $0xf84] ss:$8 sps:$4 sm:$0xff]  }
 0x2d0   : > { %8145 = vmatpush1.bf16.msra.mxu1 %v10261_v5  ;;  %8569 = vmatpush1.bf16.msra.mxu0 %v10264_v6  ;;  %v10333_v5 = vld [vmem:[%s11545_s15 + $0x780] ss:$8 sps:$4 sm:$0xff]  }
 0x2d1   : > { %8146 = vmatprep.subr.bf16.mxu1 %v10269_v30  ;;  %8570 = vmatprep.subr.bf16.mxu0 %v10272_v31  ;;  %v10336_v6 = vld [vmem:[%s11545_s15 + $0xf80] ss:$8 sps:$4 sm:$0xff]   ;;  %v10341_v30 = vld [vmem:[%s11545_s15 + $0x794] ss:$8 sps:$4 sm:$0xff]  }
 0x2d2   : > { %v10344_v31 = vld [vmem:[%s11545_s15 + $0xf94] ss:$8 sps:$4 sm:$0xff]  }
 0x2d4   : > { %8147 = vmatpush1.bf16.msra.mxu1 %v10267_v32  ;;  %8571 = vmatpush1.bf16.msra.mxu0 %v10270_v33  ;;  %v10339_v32 = vld [vmem:[%s11545_s15 + $0x790] ss:$8 sps:$4 sm:$0xff]  }
 0x2d5   : > { %8148 = vmatprep.subr.bf16.mxu1 %v10275_v20  ;;  %8572 = vmatprep.subr.bf16.mxu0 %v10278_v21  ;;  %v10342_v33 = vld [vmem:[%s11545_s15 + $0xf90] ss:$8 sps:$4 sm:$0xff]   ;;  %v10347_v20 = vld [vmem:[%s11545_s15 + $0x7a4] ss:$8 sps:$4 sm:$0xff]  }
 0x2d6   : > { %v10350_v21 = vld [vmem:[%s11545_s15 + $0xfa4] ss:$8 sps:$4 sm:$0xff]  }
 0x2d8   : > { %8149 = vmatpush1.bf16.msra.mxu1 %v10273_v3  ;;  %8573 = vmatpush1.bf16.msra.mxu0 %v10276_v2  ;;  %v10345_v3 = vld [vmem:[%s11545_s15 + $0x7a0] ss:$8 sps:$4 sm:$0xff]  }
 0x2d9   : > { %8150 = vmatprep.subr.bf16.mxu1 %v10281_v34  ;;  %8574 = vmatprep.subr.bf16.mxu0 %v10284_v35  ;;  %v10348_v2 = vld [vmem:[%s11545_s15 + $0xfa0] ss:$8 sps:$4 sm:$0xff]   ;;  %v10353_v34 = vld [vmem:[%s11545_s15 + $0x7b4] ss:$8 sps:$4 sm:$0xff]  }
 0x2da   : > { %v10356_v35 = vld [vmem:[%s11545_s15 + $0xfb4] ss:$8 sps:$4 sm:$0xff]  }
 0x2dc   : > { %8151 = vmatpush1.bf16.msra.mxu1 %v10279_v36  ;;  %8575 = vmatpush1.bf16.msra.mxu0 %v10282_v37  ;;  %v10351_v36 = vld [vmem:[%s11545_s15 + $0x7b0] ss:$8 sps:$4 sm:$0xff]  }
 0x2dd   : > { %8173 = vmatprep.subr.bf16.mxu1 %v10287_v38  ;;  %8597 = vmatprep.subr.bf16.mxu0 %v10290_v39  ;;  %v10354_v37 = vld [vmem:[%s11545_s15 + $0xfb0] ss:$8 sps:$4 sm:$0xff]   ;;  %v10359_v38 = vld [vmem:[%s11545_s15 + $0x7c4] ss:$8 sps:$4 sm:$0xff]  }
 0x2de   : > { %v10362_v39 = vld [vmem:[%s11545_s15 + $0xfc4] ss:$8 sps:$4 sm:$0xff]  }
 0x2df   : > { %8153 = vmatmul.mubr.bf16.vlgmr.msra.gmra.mrb[0].mxu1 %v8874_v44  ;;  %8577 = vmatmul.mubr.bf16.vlgmr.msra.gmra.mrb[0].mxu0 %v8890_v50  ;;  %v10360_v44 = vld [vmem:[%s11545_s15 + $0xfc0] ss:$8 sps:$4 sm:$0xff]   ;;  %v10365_v50 = vld [vmem:[%s11545_s15 + $0x7d4] ss:$8 sps:$4 sm:$0xff]  }
 0x2e0   : > { %8174 = vmatpush1.bf16.msra.mxu1 %v10285_v40  ;;  %8598 = vmatpush1.bf16.msra.mxu0 %v10288_v45  ;;  %v10371_v40 = vld [vmem:[%s11545_s15 + $0x7e4] ss:$8 sps:$4 sm:$0xff]  }
 0x2e1   : > { %8175 = vmatprep.subr.bf16.mxu1 %v10293_v48  ;;  %8599 = vmatprep.subr.bf16.mxu0 %v10296_v49  ;;  %v10374_v45 = vld [vmem:[%s11545_s15 + $0xfe4] ss:$8 sps:$4 sm:$0xff]   ;;  %v10369_v48 = vld [vmem:[%s11545_s15 + $0x7e0] ss:$8 sps:$4 sm:$0xff]  }
 0x2e2   : > { %8162 = vmatprep.mubr.bf16.mxu1 %v8907_v43  ;;  %8586 = vmatprep.mubr.bf16.mxu0 %v8923_v46  ;;  %v10372_v49 = vld [vmem:[%s11545_s15 + $0xfe0] ss:$8 sps:$4 sm:$0xff]   ;;  %v10377_v43 = vld [vmem:[%s11545_s15 + $0x7f4] ss:$8 sps:$4 sm:$0xff]  }
 0x2e3   : > { %v10380_v46 = vld [vmem:[%s11545_s15 + $0xff4] ss:$8 sps:$4 sm:$0xff]  }
 0x2e4   : > { %8176 = vmatpush1.bf16.msra.mxu1 %v10291_v47  ;;  %8600 = vmatpush1.bf16.msra.mxu0 %v10294_v53  ;;  %v10375_v47 = vld [vmem:[%s11545_s15 + $0x7f0] ss:$8 sps:$4 sm:$0xff]  }
 0x2e5   : > { %8177 = vmatprep.subr.bf16.mxu1 %v10299_v54  ;;  %8601 = vmatprep.subr.bf16.mxu0 %v10302_v55  ;;  %v10378_v53 = vld [vmem:[%s11545_s15 + $0xff0] ss:$8 sps:$4 sm:$0xff]   ;;  %s8861_s15 = sshll.u32 %s4310_s27, 5 }
 0x2e6   : > { %v4385_v54 = vld [vmem:[%s12390_s0 + $0x138] sm:$0xff]  ;;  %s12359_s3 = scalar_lea.vmem [#allocation3], %s8861_s15 }
 0x2e7   : > { %8163 = vmatmul.mubr.bf16.gmra.mrb[4].mxu1 %v8906_v57  ;;  %8587 = vmatmul.mubr.bf16.gmra.mrb[4].mxu0 %v8922_v60  ;;  %v4401_v55 = vld [vmem:[%s12390_s0 + $0x1b8] sm:$0xff] }
 0x2e8   : > { %8178 = vmatpush1.bf16.msra.mxu1 %v10297_v8  ;;  %8602 = vmatpush1.bf16.msra.mxu0 %v10300_v9  ;;  %v4393_v57 = vld [vmem:[%s12390_s0 + $0x178] sm:$0xff]  ;;  %v8876_v8 = vcombine.low %v12266_v56, %v12271_v61  ;;  %v8892_v9 = vcombine.low %v12276_v4, %v12281_v7 }
 0x2e9   : > { %8179 = vmatprep.subr.bf16.mxu1 %v10305_v10  ;;  %8603 = vmatprep.subr.bf16.mxu0 %v10308_v58  ;;  %v4409_v60 = vld [vmem:[%s12390_s0 + $0x1f8] sm:$0xff]  ;;  %v8909_v10 = vcombine.high %v4385_v54, %v4401_v55 }
 0x2ea   : > { %8205 = vmatprep.mubr.bf16.mxu1 %v8877_v59  ;;  %8629 = vmatprep.mubr.bf16.mxu0 %v8893_v62  ;;  %v8925_v58 = vcombine.high %v4393_v57, %v4409_v60  ;;  %v8908_v59 = vcombine.low %v4385_v54, %v4401_v55  ;;  %v8924_v62 = vcombine.low %v4393_v57, %v4409_v60 }
 0x2ec   : > { %8180 = vmatpush1.bf16.msra.mxu1 %v10303_v63  ;;  %8604 = vmatpush1.bf16.msra.mxu0 %v10306_v11 }
 0x2ed   : > { %8181 = vmatprep.subr.bf16.mxu1 %v10311_v12  ;;  %8605 = vmatprep.subr.bf16.mxu0 %v10314_v13 }
 0x2f0   : > { %8182 = vmatpush1.bf16.msra.mxu1 %v10309_v14  ;;  %8606 = vmatpush1.bf16.msra.mxu0 %v10312_v15 }
 0x2f1   : > { %8183 = vmatprep.subr.bf16.mxu1 %v10317_v18  ;;  %8607 = vmatprep.subr.bf16.mxu0 %v10320_v19 }
 0x2f4   : > { %8184 = vmatpush1.bf16.msra.mxu1 %v10315_v22  ;;  %8608 = vmatpush1.bf16.msra.mxu0 %v10318_v23 }
 0x2f5   : > { %8185 = vmatprep.subr.bf16.mxu1 %v10323_v24  ;;  %8609 = vmatprep.subr.bf16.mxu0 %v10326_v25 }
 0x2f8   : > { %8186 = vmatpush1.bf16.msra.mxu1 %v10321_v26  ;;  %8610 = vmatpush1.bf16.msra.mxu0 %v10324_v27 }
 0x2f9   : > { %8187 = vmatprep.subr.bf16.mxu1 %v10329_v28  ;;  %8611 = vmatprep.subr.bf16.mxu0 %v10332_v29 }
 0x2fc   : > { %8188 = vmatpush1.bf16.msra.mxu1 %v10327_v0  ;;  %8612 = vmatpush1.bf16.msra.mxu0 %v10330_v1 }
 0x2fd   : > { %8189 = vmatprep.subr.bf16.mxu1 %v10335_v16  ;;  %8613 = vmatprep.subr.bf16.mxu0 %v10338_v17 }
 0x300   : > { %8190 = vmatpush1.bf16.msra.mxu1 %v10333_v5  ;;  %8614 = vmatpush1.bf16.msra.mxu0 %v10336_v6 }
 0x301   : > { %8191 = vmatprep.subr.bf16.mxu1 %v10341_v30  ;;  %8615 = vmatprep.subr.bf16.mxu0 %v10344_v31 }
 0x304   : > { %8192 = vmatpush1.bf16.msra.mxu1 %v10339_v32  ;;  %8616 = vmatpush1.bf16.msra.mxu0 %v10342_v33 }
 0x305   : > { %8193 = vmatprep.subr.bf16.mxu1 %v10347_v20  ;;  %8617 = vmatprep.subr.bf16.mxu0 %v10350_v21 }
 0x308   : > { %8194 = vmatpush1.bf16.msra.mxu1 %v10345_v3  ;;  %8618 = vmatpush1.bf16.msra.mxu0 %v10348_v2 }
 0x309   : > { %8195 = vmatprep.subr.bf16.mxu1 %v10353_v34  ;;  %8619 = vmatprep.subr.bf16.mxu0 %v10356_v35 }
 0x30c   : > { %8196 = vmatpush1.bf16.msra.mxu1 %v10351_v36  ;;  %8620 = vmatpush1.bf16.msra.mxu0 %v10354_v37 }
 0x30d   : > { %8197 = vmatprep.subr.bf16.mxu1 %v10359_v38  ;;  %8621 = vmatprep.subr.bf16.mxu0 %v10362_v39 }
 0x310   : > { %8198 = vmatpush1.bf16.msra.mxu1 %v10357_v41  ;;  %8622 = vmatpush1.bf16.msra.mxu0 %v10360_v44 }
 0x311   : > { %8199 = vmatprep.subr.bf16.mxu1 %v10365_v50  ;;  %8623 = vmatprep.subr.bf16.mxu0 %v10368_v51 }
 0x314   : > { %8200 = vmatpush1.bf16.msra.mxu1 %v10363_v52  ;;  %8624 = vmatpush1.bf16.msra.mxu0 %v10366_v42 }
 0x315   : > { %8201 = vmatprep.subr.bf16.mxu1 %v10371_v40  ;;  %8625 = vmatprep.subr.bf16.mxu0 %v10374_v45 }
 0x318   : > { %8202 = vmatpush1.bf16.msra.mxu1 %v10369_v48  ;;  %8626 = vmatpush1.bf16.msra.mxu0 %v10372_v49 }
 0x319   : > { %8203 = vmatprep.subr.bf16.mxu1 %v10377_v43  ;;  %8627 = vmatprep.subr.bf16.mxu0 %v10380_v46 }
 0x31c   : > { %8204 = vmatpush1.bf16.msra.mxu1 %v10375_v47  ;;  %8628 = vmatpush1.bf16.msra.mxu0 %v10378_v53 }
 0x31f   : > { %8206 = vmatmul.mubr.bf16.vlgmr.msra.gmra.mrb[0].mxu1 %v8876_v8  ;;  %8630 = vmatmul.mubr.bf16.vlgmr.msra.gmra.mrb[0].mxu0 %v8892_v9 }
 0x320   : > { %8215 = vmatprep.mubr.bf16.mxu1 %v8909_v10  ;;  %8639 = vmatprep.mubr.bf16.mxu0 %v8925_v58 }
 0x327   : > { %8216 = vmatmul.mubr.bf16.gmra.mrb[4].mxu1 %v8908_v59  ;;  %8640 = vmatmul.mubr.bf16.gmra.mrb[4].mxu0 %v8924_v62 }
 0x3f2   : > { %v8207_v63 = vpop.f32.mrb[0].mxu1  ;;  %v8631_v11 = vpop.f32.mrb[0].mxu0 }
 0x3f3   : > { %v9453_v12 = vadd.f32 %v8631_v11, %v8207_v63  ;;  %v8209_v56 = vpop.f32.mrb[1].mxu1  ;;  %v8633_v61 = vpop.f32.mrb[1].mxu0 }
 0x3f4   : > { %v9454_v13 = vadd.f32 %v8633_v61, %v8209_v56  ;;  %v8211_v4 = vpop.f32.mrb[2].mxu1  ;;  %v8635_v7 = vpop.f32.mrb[2].mxu0 }
 0x3f5   : > { %vm8650_vm0 = vcmp.ge.f32.partialorder %v9453_v12, 0.0  ;;  %v8658_v14 = vmul.f32 0.2, %v9453_v12  ;;  %v9455_v15 = vadd.f32 %v8635_v7, %v8211_v4  ;;  %v8213_v18 = vpop.f32.mrb[3].mxu1  ;;  %v8637_v19 = vpop.f32.mrb[3].mxu0 }
 0x3f6   : > { %vm8651_vm1 = vcmp.ge.f32.partialorder %v9454_v13, 0.0  ;;  %v8659_v22 = vmul.f32 0.2, %v9454_v13  ;;  %v9456_v23 = vadd.f32 %v8637_v19, %v8213_v18 }
 0x3f7   : > { %v8666_v24 = vsel %vm8650_vm0, %v9453_v12, %v8658_v14  ;;  %vm8652_vm2 = vcmp.ge.f32.partialorder %v9455_v15, 0.0  ;;  %v8660_v25 = vmul.f32 0.2, %v9455_v15 }
 0x3f8   : > { %v8667_v26 = vsel %vm8651_vm1, %v9454_v13, %v8659_v22  ;;  %vm8653_vm3 = vcmp.ge.f32.partialorder %v9456_v23, 0.0  ;;  %v8661_v27 = vmul.f32 0.2, %v9456_v23 }
 0x3f9   : > { %v9448_v28 = vpack.c.bf16 %v8667_v26, %v8666_v24  ;;  %v8668_v29 = vsel %vm8652_vm2, %v9455_v15, %v8660_v25 }
 0x3fa   : > { %v8669_v0 = vsel %vm8653_vm3, %v9456_v23, %v8661_v27  ;;  %v8217_v1 = vpop.f32.mrb[4].mxu1  ;;  %v8641_v16 = vpop.f32.mrb[4].mxu0 }
 0x3fb   : > { %8698 = vst [vmem:[%s12359_s3] sm:$0xff] %v9448_v28  ;;  %v9449_v17 = vpack.c.bf16 %v8669_v0, %v8668_v29  ;;  %v9457_v5 = vadd.f32 %v8641_v16, %v8217_v1  ;;  %v8219_v6 = vpop.f32.mrb[5].mxu1  ;;  %v8643_v30 = vpop.f32.mrb[5].mxu0 }
 0x3fc   : > { %v9458_v31 = vadd.f32 %v8643_v30, %v8219_v6  ;;  %v8221_v32 = vpop.f32.mrb[6].mxu1  ;;  %v8645_v33 = vpop.f32.mrb[6].mxu0 }
 0x3fd   : > { %8699 = vst [vmem:[%s12359_s3 + $0x8] sm:$0xff] %v9449_v17  ;;  %vm8654_vm4 = vcmp.ge.f32.partialorder %v9457_v5, 0.0  ;;  %v8662_v20 = vmul.f32 0.2, %v9457_v5  ;;  %v9459_v21 = vadd.f32 %v8645_v33, %v8221_v32  ;;  %v8223_v3 = vpop.f32.mrb[7].mxu1  ;;  %v8647_v2 = vpop.f32.mrb[7].mxu0 }
 0x3fe   : > { %vm8655_vm5 = vcmp.ge.f32.partialorder %v9458_v31, 0.0  ;;  %v8663_v34 = vmul.f32 0.2, %v9458_v31  ;;  %v9460_v35 = vadd.f32 %v8647_v2, %v8223_v3 }
 0x3ff   : > { %v8670_v36 = vsel %vm8654_vm4, %v9457_v5, %v8662_v20  ;;  %vm8656_vm6 = vcmp.ge.f32.partialorder %v9459_v21, 0.0  ;;  %v8664_v37 = vmul.f32 0.2, %v9459_v21  ;;  %8708 = sbr.rel (!%p10471_p6) target bundleno = 1038 (0x40e), region = 84 }
 0x400   : > { %v8671_v38 = vsel %vm8655_vm5, %v9458_v31, %v8663_v34  ;;  %vm8657_vm7 = vcmp.ge.f32.partialorder %v9460_v35, 0.0  ;;  %v8665_v39 = vmul.f32 0.2, %v9460_v35 }
 0x401   : > { %v9450_v41 = vpack.c.bf16 %v8671_v38, %v8670_v36  ;;  %v8672_v44 = vsel %vm8656_vm6, %v9459_v21, %v8664_v37 }
 0x402   : > { %v8673_v50 = vsel %vm8657_vm7, %v9460_v35, %v8665_v39  ;;  %v8748_v52 = vld [vmem:[%s12359_s3] sm:$0xff] (%p10471_p6) }
 0x403   : > { %8700 = vst [vmem:[%s12359_s3 + $0x10] sm:$0xff] %v9450_v41  ;;  %v9451_v51 = vpack.c.bf16 %v8673_v50, %v8672_v44  ;;  %8749 = vst [vmem:[%s8714_s5] sm:$0xff] (%p10471_p6), %v8748_v52 }
 0x404   : > { %v8750_v42 = vld [vmem:[%s12359_s3 + $0x8] sm:$0xff] (%p10471_p6) }
 0x405   : > { %8701 = vst [vmem:[%s12359_s3 + $0x18] sm:$0xff] %v9451_v51  ;;  %8751 = vst [vmem:[%s8714_s5 + $0x10] sm:$0xff] (%p10471_p6), %v8750_v42 }
 0x40a   : > { %v8752_v40 = vld [vmem:[%s12359_s3 + $0x10] sm:$0xff] }
 0x40b   : > { %8753 = vst [vmem:[%s8714_s5 + $0x20] sm:$0xff] %v8752_v40 }
 0x40c   : > { %v8754_v45 = vld [vmem:[%s12359_s3 + $0x18] sm:$0xff] }
 0x40d   : > { %8755 = vst [vmem:[%s8714_s5 + $0x30] sm:$0xff] %v8754_v45 }
 0x40e PF: > { %s12_s13 = sadd.s32 1, %s10419_s13   ;;  %s12394_s9 = smov %s10407_s10 }
 0x40f   : > { %p9_p11 = scmp.ge.s32.totalorder %s12_s13, 4   ;;  %s12395_s10 = smov %s10476_s19 }
 0x410   : > { %s12396_s11 = smov %s10415_s12  ;;  %s12397_s12 = smov %s12399_s14 }
 0x411   :  { %11 = sbr.rel (!%p9_p11) target bundleno = 3 (0x3), region = 162 }

</bundles_post_ra>
